<compile_context>
chip_gen: v7x
topology: tpu7x:2x2x1
jax: 0.10.0
libtpu: 0.0.40
codegen_flags: <defaults>
</compile_context>

<pallas_src>
import numpy as np
import jax
import jax.numpy as jnp
from jax.experimental import pallas as pl
from jax.experimental.pallas import tpu as pltpu


# ------------------------------ small helpers ------------------------------

def _round_up(x, m):
    return (x + m - 1) // m * m


def _row_tile(m, cap=512):
    """Largest multiple-of-8 divisor of m that is <= cap and gives >=2 blocks."""
    target = min(cap, m // 2 if m >= 16 else m)
    for t in range(target, 7, -1):
        if m % t == 0 and t % 8 == 0:
            return t
    return m


# ----------------------------- Pallas kernels ------------------------------

def _conv_bn_relu_pool_kernel(x_ref, w_ref, shift_ref, o_ref):
    """One matmul producing the 4 pool candidates as lane-aligned column
    groups, then shift+ReLU and an in-register 2x2 max-pool.  fp32 math,
    bf16 store."""
    y = jnp.dot(x_ref[...], w_ref[...], preferred_element_type=jnp.float32)
    y = jnp.maximum(y + shift_ref[...], 0.0)          # (tm, 4*g), g = Wo*Cout
    g = o_ref.shape[-1]                                # multiple of 128
    p = jnp.maximum(jnp.maximum(y[:, 0:g], y[:, g:2 * g]),
                    jnp.maximum(y[:, 2 * g:3 * g], y[:, 3 * g:4 * g]))
    o_ref[...] = p.astype(o_ref.dtype)


def _fc_fused_kernel(x_ref, w1_ref, b1_ref, w2_ref, b2_ref, w3_ref, b3_ref,
                     o_ref):
    """fc1+ReLU -> fc2+ReLU -> fc3 fused; bf16 intermediates between dots."""
    h = jnp.dot(x_ref[...], w1_ref[...], preferred_element_type=jnp.float32)
    h = jnp.maximum(h + b1_ref[...], 0.0).astype(jnp.bfloat16)
    # TODO(synk): Dropout(0.5) modeled in inference mode (identity); no RNG mask.
    h = jnp.dot(h, w2_ref[...], preferred_element_type=jnp.float32)
    h = jnp.maximum(h + b2_ref[...], 0.0).astype(jnp.bfloat16)
    o_ref[...] = (jnp.dot(h, w3_ref[...], preferred_element_type=jnp.float32)
                  + b3_ref[...])


# ------------------------------- layer glue --------------------------------

def conv_bn_relu_pool(x_nhwc, w, b, gamma, beta, mean, var, eps=1e-5):
    """Conv2d(5x5,pad=2,stride=1) + BatchNorm (inference) + ReLU + MaxPool(2,2).

    x_nhwc: (N,H,W,Cin) bf16.  w: (Cout,Cin,5,5) PyTorch layout, fp32.
    Returns (N*Ho, Wo*Cout) bf16; rows ordered (n, io), columns (jo, co).
    """
    n, h, wd, cin = x_nhwc.shape
    cout = w.shape[0]
    ho, wo = h // 2, wd // 2
    wp = wd + 4                       # padded width
    k = 6 * wp * cin                  # row-window K: 6 input rows per pooled row
    g = wo * cout                     # lane-dense output width
    assert g % 128 == 0

    # ---- BN fold (trace time) ----
    bn_scale = gamma / jnp.sqrt(var + eps)                       # (Cout,)
    shift = (bn_scale * (b - mean) + beta).astype(jnp.float32)   # (Cout,)
    shift_full = jnp.tile(shift[None, :], (4 * wo, 1)).reshape(1, 4 * g)
    wk = jnp.transpose(w, (2, 3, 1, 0)) * bn_scale[None, None, None, :]  # (5,5,Cin,Cout)

    # ---- big conv+pool weight (K, 4*g): one gather from the 5x5 taps ----
    # BigW[(r,wcol,ci),(di,dj,jo,co)] = wk[r-di, wcol-2jo-dj, ci, co] (else 0)
    table = jnp.concatenate(
        [wk.reshape(25 * cin, cout), jnp.zeros((1, cout), wk.dtype)], axis=0)
    idx = np.full((6, wp, cin, 2, 2, wo), 25 * cin, dtype=np.int32)
    for di in range(2):
        for kh in range(5):
            r = di + kh
            for dj in range(2):
                for kw in range(5):
                    for jo in range(wo):
                        wcol = 2 * jo + dj + kw
                        for ci in range(cin):
                            idx[r, wcol, ci, di, dj, jo] = (kh * 5 + kw) * cin + ci
    big_w = table[idx.reshape(-1)].reshape(k, 4 * g).astype(jnp.bfloat16)

    # ---- input row-window slab: X[(n,io),(r,wcol,ci)] = xpad[n, 2io+r, wcol, ci]
    xpad = jnp.pad(x_nhwc, ((0, 0), (2, 2), (2, 2), (0, 0)))     # (N,H+4,W+4,Cin) bf16
    rows = [xpad[:, r:r + 2 * ho:2] for r in range(6)]           # 6 x (N,Ho,W+4,Cin)
    xwin = jnp.stack(rows, axis=2).reshape(n * ho, k)            # (M, K) bf16

    m = n * ho
    tm = _row_tile(m, 512)
    out = pl.pallas_call(
        _conv_bn_relu_pool_kernel,
        out_shape=jax.ShapeDtypeStruct((m, g), jnp.bfloat16),
        grid_spec=pltpu.PrefetchScalarGridSpec(
            num_scalar_prefetch=0,
            grid=(m // tm,),
            in_specs=[
                pl.BlockSpec((tm, k), lambda i: (i, 0)),
                pl.BlockSpec((k, 4 * g), lambda i: (0, 0)),
                pl.BlockSpec((1, 4 * g), lambda i: (0, 0)),
            ],
            out_specs=pl.BlockSpec((tm, g), lambda i: (i, 0)),
        ),
        compiler_params=pltpu.CompilerParams(
            dimension_semantics=("parallel",),
            vmem_limit_bytes=32 * 1024 * 1024),
    )(xwin, big_w, shift_full)
    return out


def fc_head(x_flat, p):
    """Linear(2048,120)+ReLU -> Dropout(id) -> Linear(120,84)+ReLU -> Linear(84,43).

    x_flat: (N, 2048) bf16, flattened in NHWC (h,w,c) order; the PyTorch NCHW
    flatten order is folded into fc1's weight rows (no activation transpose).
    """
    n, kin = x_flat.shape
    lane = 128

    # Fold the NCHW flatten permutation into fc1's rows (trace-time gather).
    ho, wo, co = 8, 8, 32
    hh, ww, cc = np.meshgrid(np.arange(ho), np.arange(wo), np.arange(co),
                             indexing="ij")
    perm = (cc * (ho * wo) + hh * wo + ww).reshape(-1)           # ours -> pytorch row
    w1m = p["fc1_w"][perm]                                       # (2048, 120)

    def pad_mat(wm, rows, cols):
        return jnp.pad(wm, ((0, rows - wm.shape[0]),
                            (0, cols - wm.shape[1]))).astype(jnp.bfloat16)

    def pad_vec(v, cols):
        return jnp.pad(v, (0, cols - v.shape[0])).reshape(1, cols).astype(
            jnp.float32)

    w1 = pad_mat(w1m, kin, lane)
    w2 = pad_mat(p["fc2_w"], lane, lane)
    w3 = pad_mat(p["fc3_w"], lane, lane)
    b1 = pad_vec(p["fc1_b"], lane)
    b2 = pad_vec(p["fc2_b"], lane)
    b3 = pad_vec(p["fc3_b"], lane)

    # Fixed row tile (<=128); pad the batch so the grid always has >=2 blocks.
    n8 = _round_up(n, 8)
    tm = min(128, max(8, (n8 // 2) // 8 * 8))
    n_pad = _round_up(max(n8, 2 * tm), tm)
    xp = jnp.pad(x_flat, ((0, n_pad - n), (0, 0)))

    out = pl.pallas_call(
        _fc_fused_kernel,
        out_shape=jax.ShapeDtypeStruct((n_pad, lane), jnp.float32),
        grid_spec=pltpu.PrefetchScalarGridSpec(
            num_scalar_prefetch=0,
            grid=(n_pad // tm,),
            in_specs=[
                pl.BlockSpec((tm, kin), lambda i: (i, 0)),
                pl.BlockSpec((kin, lane), lambda i: (0, 0)),
                pl.BlockSpec((1, lane), lambda i: (0, 0)),
                pl.BlockSpec((lane, lane), lambda i: (0, 0)),
                pl.BlockSpec((1, lane), lambda i: (0, 0)),
                pl.BlockSpec((lane, lane), lambda i: (0, 0)),
                pl.BlockSpec((1, lane), lambda i: (0, 0)),
            ],
            out_specs=pl.BlockSpec((tm, lane), lambda i: (i, 0)),
        ),
        compiler_params=pltpu.CompilerParams(
            dimension_semantics=("parallel",),
            vmem_limit_bytes=32 * 1024 * 1024),
    )(xp, w1, b1, w2, b2, w3, b3)
    return out[:n, :43]


def lzr_forward(x_nchw, p):
    """Forward pass of Lzr.  Input is NCHW (PyTorch convention), N x 3 x 32 x 32."""
    n = x_nchw.shape[0]
    x = jnp.transpose(x_nchw, (0, 2, 3, 1)).astype(jnp.bfloat16)      # NHWC bf16

    # Conv(3->16,5,p2)+BN+ReLU+MaxPool(2,2)  -> (N*16, 16*16) lane-dense bf16
    y1 = conv_bn_relu_pool(x, p["w1"], p["b1"], p["g1"], p["be1"],
                           p["m1"], p["v1"])
    x2 = y1.reshape(n, 16, 16, 16)                                     # pure reshape

    # Conv(16->32,5,p2)+BN+ReLU+MaxPool(2,2) -> (N*8, 8*32) lane-dense bf16
    y2 = conv_bn_relu_pool(x2, p["w2"], p["b2"], p["g2"], p["be2"],
                           p["m2"], p["v2"])
    xf = y2.reshape(n, 8 * 8 * 32)                                     # NHWC flatten

    # fc1+ReLU -> (Dropout=identity) -> fc2+ReLU -> fc3, one fused kernel.
    return fc_head(xf, p)                                              # (N, 43)


# --------------------------- deterministic init ----------------------------

def init_params(key):
    ks = jax.random.split(key, 20)

    def nrm(k, shape, scale=0.1):
        return (scale * jax.random.normal(k, shape)).astype(jnp.float32)

    p = {}
    # Conv1 + BN1
    p["w1"] = nrm(ks[0], (16, 3, 5, 5))
    p["b1"] = nrm(ks[1], (16,))
    p["g1"] = 1.0 + nrm(ks[2], (16,), 0.05)
    p["be1"] = nrm(ks[3], (16,), 0.05)
    p["m1"] = nrm(ks[4], (16,), 0.05)
    p["v1"] = 1.0 + jnp.abs(nrm(ks[5], (16,), 0.05))
    # Conv2 + BN2
    p["w2"] = nrm(ks[6], (32, 16, 5, 5), 0.05)
    p["b2"] = nrm(ks[7], (32,))
    p["g2"] = 1.0 + nrm(ks[8], (32,), 0.05)
    p["be2"] = nrm(ks[9], (32,), 0.05)
    p["m2"] = nrm(ks[10], (32,), 0.05)
    p["v2"] = 1.0 + jnp.abs(nrm(ks[11], (32,), 0.05))
    # Linear layers, stored as (in, out); fc1 `in` is in PyTorch NCHW-flatten order
    p["fc1_w"] = nrm(ks[12], (32 * 8 * 8, 120), 0.02)
    p["fc1_b"] = nrm(ks[13], (120,))
    p["fc2_w"] = nrm(ks[14], (120, 84), 0.05)
    p["fc2_b"] = nrm(ks[15], (84,))
    p["fc3_w"] = nrm(ks[16], (84, 43), 0.05)
    p["fc3_b"] = nrm(ks[17], (43,))
    return p


# --------------------------------- main ------------------------------------

if __name__ == "__main__":
    key = jax.random.PRNGKey(0)
    pkey, xkey = jax.random.split(key)
    params = init_params(pkey)

    # Architecture requires 32x32 spatial input (32 -> 16 -> 8 before Flatten).
    x = jax.random.normal(xkey, (2, 3, 32, 32), dtype=jnp.float32)

    out = jax.jit(lzr_forward)(x, params)
    out = jax.block_until_ready(out)
    assert out.shape == (2, 43), out.shape
    assert bool(jnp.all(jnp.isfinite(out)))
    print("KERNEL_OK")
</pallas_src>

<mosaic_0001>
module attributes {stable_mosaic.version = 11 : i64} {
  func.func @_conv_bn_relu_pool_kernel(%arg0: i32, %arg1: memref<16x648xbf16, #tpu.memory_space<vmem>>, %arg2: memref<648x1024xbf16, #tpu.memory_space<vmem>>, %arg3: memref<1x1024xf32, #tpu.memory_space<vmem>>, %arg4: memref<16x256xbf16, #tpu.memory_space<vmem>>) attributes {dimension_semantics = [#tpu.dimension_semantics<parallel>], iteration_bounds = array<i64: 2>, scalar_prefetch = 0 : i64, scratch_operands = 0 : i64, tpu.core_type = #tpu.core_type<tc>, window_params = [{transform_indices = @transform_0, window_bounds = array<i64: 16, 648>}, {pipeline_mode = #tpu.pipeline_mode<synchronous>, transform_indices = @transform_1, window_bounds = array<i64: 648, 1024>}, {pipeline_mode = #tpu.pipeline_mode<synchronous>, transform_indices = @transform_2, window_bounds = array<i64: 1, 1024>}, {transform_indices = @transform_3, window_bounds = array<i64: 16, 256>}]} {
    %c0 = arith.constant 0 : index
    %c0_0 = arith.constant 0 : index
    %0 = vector.load %arg1[%c0, %c0_0] : memref<16x648xbf16, #tpu.memory_space<vmem>>, vector<16x648xbf16>
    %c0_1 = arith.constant 0 : index
    %c0_2 = arith.constant 0 : index
    %1 = vector.load %arg2[%c0_1, %c0_2] : memref<648x1024xbf16, #tpu.memory_space<vmem>>, vector<648x1024xbf16>
    %cst = arith.constant dense<0.000000e+00> : vector<16x1024xf32>
    %2 = tpu.matmul %0, %1, %cst {dimension_numbers = #tpu.dot_dimension_numbers<[1], [0], [0], [1], [0, 0, 1, 1], [], []>} : vector<16x648xbf16>, vector<648x1024xbf16>, vector<16x1024xf32> -> vector<16x1024xf32>
    %c0_3 = arith.constant 0 : index
    %c0_4 = arith.constant 0 : index
    %3 = vector.load %arg3[%c0_3, %c0_4] : memref<1x1024xf32, #tpu.memory_space<vmem>>, vector<1x1024xf32>
    %4 = vector.broadcast %3 : vector<1x1024xf32> to vector<16x1024xf32>
    %5 = arith.addf %2, %4 : vector<16x1024xf32>
    %cst_5 = arith.constant 0.000000e+00 : f32
    %6 = vector.broadcast %cst_5 : f32 to vector<16x1024xf32>
    %7 = arith.maximumf %5, %6 : vector<16x1024xf32>
    %8 = vector.extract_strided_slice %7 {offsets = [0, 0], sizes = [16, 256], strides = [1, 1]} : vector<16x1024xf32> to vector<16x256xf32>
    %9 = vector.extract_strided_slice %7 {offsets = [0, 256], sizes = [16, 256], strides = [1, 1]} : vector<16x1024xf32> to vector<16x256xf32>
    %10 = arith.maximumf %8, %9 : vector<16x256xf32>
    %11 = vector.extract_strided_slice %7 {offsets = [0, 512], sizes = [16, 256], strides = [1, 1]} : vector<16x1024xf32> to vector<16x256xf32>
    %12 = vector.extract_strided_slice %7 {offsets = [0, 768], sizes = [16, 256], strides = [1, 1]} : vector<16x1024xf32> to vector<16x256xf32>
    %13 = arith.maximumf %11, %12 : vector<16x256xf32>
    %14 = arith.maximumf %10, %13 : vector<16x256xf32>
    %15 = arith.truncf %14 : vector<16x256xf32> to vector<16x256xbf16>
    %c0_6 = arith.constant 0 : index
    %c0_7 = arith.constant 0 : index
    %16 = vector.load %arg4[%c0_6, %c0_7] : memref<16x256xbf16, #tpu.memory_space<vmem>>, vector<16x256xbf16>
    tpu.vector_store %arg4[%c0_6, %c0_7], %15 {strides = array<i32>} : memref<16x256xbf16, #tpu.memory_space<vmem>>, vector<16x256xbf16>,
    return
  }
  func.func @transform_0(%arg0: i32) -> (i32, i32) {
    %c0_i32 = arith.constant 0 : i32
    %c0_i32_0 = arith.constant 0 : i32
    return %arg0, %c0_i32 : i32, i32
  }
  func.func @transform_1(%arg0: i32) -> (i32, i32) {
    %c0_i32 = arith.constant 0 : i32
    %c0_i32_0 = arith.constant 0 : i32
    %c0_i32_1 = arith.constant 0 : i32
    return %c0_i32, %c0_i32_0 : i32, i32
  }
  func.func @transform_2(%arg0: i32) -> (i32, i32) {
    %c0_i32 = arith.constant 0 : i32
    %c0_i32_0 = arith.constant 0 : i32
    %c0_i32_1 = arith.constant 0 : i32
    return %c0_i32, %c0_i32_0 : i32, i32
  }
  func.func @transform_3(%arg0: i32) -> (i32, i32) {
    %c0_i32 = arith.constant 0 : i32
    %c0_i32_0 = arith.constant 0 : i32
    return %arg0, %c0_i32 : i32, i32
  }
}

module attributes {stable_mosaic.version = 11 : i64} {
  func.func @_conv_bn_relu_pool_kernel(%arg0: i32, %arg1: memref<8x1920xbf16, #tpu.memory_space<vmem>>, %arg2: memref<1920x1024xbf16, #tpu.memory_space<vmem>>, %arg3: memref<1x1024xf32, #tpu.memory_space<vmem>>, %arg4: memref<8x256xbf16, #tpu.memory_space<vmem>>) attributes {dimension_semantics = [#tpu.dimension_semantics<parallel>], iteration_bounds = array<i64: 2>, scalar_prefetch = 0 : i64, scratch_operands = 0 : i64, tpu.core_type = #tpu.core_type<tc>, window_params = [{transform_indices = @transform_0, window_bounds = array<i64: 8, 1920>}, {pipeline_mode = #tpu.pipeline_mode<synchronous>, transform_indices = @transform_1, window_bounds = array<i64: 1920, 1024>}, {pipeline_mode = #tpu.pipeline_mode<synchronous>, transform_indices = @transform_2, window_bounds = array<i64: 1, 1024>}, {transform_indices = @transform_3, window_bounds = array<i64: 8, 256>}]} {
    %c0 = arith.constant 0 : index
    %c0_0 = arith.constant 0 : index
    %0 = vector.load %arg1[%c0, %c0_0] : memref<8x1920xbf16, #tpu.memory_space<vmem>>, vector<8x1920xbf16>
    %c0_1 = arith.constant 0 : index
    %c0_2 = arith.constant 0 : index
    %1 = vector.load %arg2[%c0_1, %c0_2] : memref<1920x1024xbf16, #tpu.memory_space<vmem>>, vector<1920x1024xbf16>
    %cst = arith.constant dense<0.000000e+00> : vector<8x1024xf32>
    %2 = tpu.matmul %0, %1, %cst {dimension_numbers = #tpu.dot_dimension_numbers<[1], [0], [0], [1], [0, 0, 1, 1], [], []>} : vector<8x1920xbf16>, vector<1920x1024xbf16>, vector<8x1024xf32> -> vector<8x1024xf32>
    %c0_3 = arith.constant 0 : index
    %c0_4 = arith.constant 0 : index
    %3 = vector.load %arg3[%c0_3, %c0_4] : memref<1x1024xf32, #tpu.memory_space<vmem>>, vector<1x1024xf32>
    %4 = vector.broadcast %3 : vector<1x1024xf32> to vector<8x1024xf32>
    %5 = arith.addf %2, %4 : vector<8x1024xf32>
    %cst_5 = arith.constant 0.000000e+00 : f32
    %6 = vector.broadcast %cst_5 : f32 to vector<8x1024xf32>
    %7 = arith.maximumf %5, %6 : vector<8x1024xf32>
    %8 = vector.extract_strided_slice %7 {offsets = [0, 0], sizes = [8, 256], strides = [1, 1]} : vector<8x1024xf32> to vector<8x256xf32>
    %9 = vector.extract_strided_slice %7 {offsets = [0, 256], sizes = [8, 256], strides = [1, 1]} : vector<8x1024xf32> to vector<8x256xf32>
    %10 = arith.maximumf %8, %9 : vector<8x256xf32>
    %11 = vector.extract_strided_slice %7 {offsets = [0, 512], sizes = [8, 256], strides = [1, 1]} : vector<8x1024xf32> to vector<8x256xf32>
    %12 = vector.extract_strided_slice %7 {offsets = [0, 768], sizes = [8, 256], strides = [1, 1]} : vector<8x1024xf32> to vector<8x256xf32>
    %13 = arith.maximumf %11, %12 : vector<8x256xf32>
    %14 = arith.maximumf %10, %13 : vector<8x256xf32>
    %15 = arith.truncf %14 : vector<8x256xf32> to vector<8x256xbf16>
    %c0_6 = arith.constant 0 : index
    %c0_7 = arith.constant 0 : index
    %16 = vector.load %arg4[%c0_6, %c0_7] : memref<8x256xbf16, #tpu.memory_space<vmem>>, vector<8x256xbf16>
    tpu.vector_store %arg4[%c0_6, %c0_7], %15 {strides = array<i32>} : memref<8x256xbf16, #tpu.memory_space<vmem>>, vector<8x256xbf16>,
    return
  }
  func.func @transform_0(%arg0: i32) -> (i32, i32) {
    %c0_i32 = arith.constant 0 : i32
    %c0_i32_0 = arith.constant 0 : i32
    return %arg0, %c0_i32 : i32, i32
  }
  func.func @transform_1(%arg0: i32) -> (i32, i32) {
    %c0_i32 = arith.constant 0 : i32
    %c0_i32_0 = arith.constant 0 : i32
    %c0_i32_1 = arith.constant 0 : i32
    return %c0_i32, %c0_i32_0 : i32, i32
  }
  func.func @transform_2(%arg0: i32) -> (i32, i32) {
    %c0_i32 = arith.constant 0 : i32
    %c0_i32_0 = arith.constant 0 : i32
    %c0_i32_1 = arith.constant 0 : i32
    return %c0_i32, %c0_i32_0 : i32, i32
  }
  func.func @transform_3(%arg0: i32) -> (i32, i32) {
    %c0_i32 = arith.constant 0 : i32
    %c0_i32_0 = arith.constant 0 : i32
    return %arg0, %c0_i32 : i32, i32
  }
}

module attributes {stable_mosaic.version = 11 : i64} {
  func.func @_fc_fused_kernel(%arg0: i32, %arg1: memref<8x2048xbf16, #tpu.memory_space<vmem>>, %arg2: memref<2048x128xbf16, #tpu.memory_space<vmem>>, %arg3: memref<1x128xf32, #tpu.memory_space<vmem>>, %arg4: memref<128x128xbf16, #tpu.memory_space<vmem>>, %arg5: memref<1x128xf32, #tpu.memory_space<vmem>>, %arg6: memref<128x128xbf16, #tpu.memory_space<vmem>>, %arg7: memref<1x128xf32, #tpu.memory_space<vmem>>, %arg8: memref<8x128xf32, #tpu.memory_space<vmem>>) attributes {dimension_semantics = [#tpu.dimension_semantics<parallel>], iteration_bounds = array<i64: 2>, scalar_prefetch = 0 : i64, scratch_operands = 0 : i64, tpu.core_type = #tpu.core_type<tc>, window_params = [{transform_indices = @transform_0, window_bounds = array<i64: 8, 2048>}, {pipeline_mode = #tpu.pipeline_mode<synchronous>, transform_indices = @transform_1, window_bounds = array<i64: 2048, 128>}, {pipeline_mode = #tpu.pipeline_mode<synchronous>, transform_indices = @transform_2, window_bounds = array<i64: 1, 128>}, {pipeline_mode = #tpu.pipeline_mode<synchronous>, transform_indices = @transform_3, window_bounds = array<i64: 128, 128>}, {pipeline_mode = #tpu.pipeline_mode<synchronous>, transform_indices = @transform_4, window_bounds = array<i64: 1, 128>}, {pipeline_mode = #tpu.pipeline_mode<synchronous>, transform_indices = @transform_5, window_bounds = array<i64: 128, 128>}, {pipeline_mode = #tpu.pipeline_mode<synchronous>, transform_indices = @transform_6, window_bounds = array<i64: 1, 128>}, {transform_indices = @transform_7, window_bounds = array<i64: 8, 128>}]} {
    %c0 = arith.constant 0 : index
    %c0_0 = arith.constant 0 : index
    %0 = vector.load %arg1[%c0, %c0_0] : memref<8x2048xbf16, #tpu.memory_space<vmem>>, vector<8x2048xbf16>
    %c0_1 = arith.constant 0 : index
    %c0_2 = arith.constant 0 : index
    %1 = vector.load %arg2[%c0_1, %c0_2] : memref<2048x128xbf16, #tpu.memory_space<vmem>>, vector<2048x128xbf16>
    %cst = arith.constant dense<0.000000e+00> : vector<8x128xf32>
    %2 = tpu.matmul %0, %1, %cst {dimension_numbers = #tpu.dot_dimension_numbers<[1], [0], [0], [1], [0, 0, 1, 1], [], []>} : vector<8x2048xbf16>, vector<2048x128xbf16>, vector<8x128xf32> -> vector<8x128xf32>
    %c0_3 = arith.constant 0 : index
    %c0_4 = arith.constant 0 : index
    %3 = vector.load %arg3[%c0_3, %c0_4] : memref<1x128xf32, #tpu.memory_space<vmem>>, vector<1x128xf32>
    %4 = vector.broadcast %3 : vector<1x128xf32> to vector<8x128xf32>
    %5 = arith.addf %2, %4 : vector<8x128xf32>
    %cst_5 = arith.constant 0.000000e+00 : f32
    %6 = vector.broadcast %cst_5 : f32 to vector<8x128xf32>
    %7 = arith.maximumf %5, %6 : vector<8x128xf32>
    %8 = arith.truncf %7 : vector<8x128xf32> to vector<8x128xbf16>
    %c0_6 = arith.constant 0 : index
    %c0_7 = arith.constant 0 : index
    %9 = vector.load %arg4[%c0_6, %c0_7] : memref<128x128xbf16, #tpu.memory_space<vmem>>, vector<128x128xbf16>
    %cst_8 = arith.constant dense<0.000000e+00> : vector<8x128xf32>
    %10 = tpu.matmul %8, %9, %cst_8 {dimension_numbers = #tpu.dot_dimension_numbers<[1], [0], [0], [1], [0, 0, 1, 1], [], []>} : vector<8x128xbf16>, vector<128x128xbf16>, vector<8x128xf32> -> vector<8x128xf32>
    %c0_9 = arith.constant 0 : index
    %c0_10 = arith.constant 0 : index
    %11 = vector.load %arg5[%c0_9, %c0_10] : memref<1x128xf32, #tpu.memory_space<vmem>>, vector<1x128xf32>
    %12 = vector.broadcast %11 : vector<1x128xf32> to vector<8x128xf32>
    %13 = arith.addf %10, %12 : vector<8x128xf32>
    %cst_11 = arith.constant 0.000000e+00 : f32
    %14 = vector.broadcast %cst_11 : f32 to vector<8x128xf32>
    %15 = arith.maximumf %13, %14 : vector<8x128xf32>
    %16 = arith.truncf %15 : vector<8x128xf32> to vector<8x128xbf16>
    %c0_12 = arith.constant 0 : index
    %c0_13 = arith.constant 0 : index
    %17 = vector.load %arg6[%c0_12, %c0_13] : memref<128x128xbf16, #tpu.memory_space<vmem>>, vector<128x128xbf16>
    %cst_14 = arith.constant dense<0.000000e+00> : vector<8x128xf32>
    %18 = tpu.matmul %16, %17, %cst_14 {dimension_numbers = #tpu.dot_dimension_numbers<[1], [0], [0], [1], [0, 0, 1, 1], [], []>} : vector<8x128xbf16>, vector<128x128xbf16>, vector<8x128xf32> -> vector<8x128xf32>
    %c0_15 = arith.constant 0 : index
    %c0_16 = arith.constant 0 : index
    %19 = vector.load %arg7[%c0_15, %c0_16] : memref<1x128xf32, #tpu.memory_space<vmem>>, vector<1x128xf32>
    %20 = vector.broadcast %19 : vector<1x128xf32> to vector<8x128xf32>
    %21 = arith.addf %18, %20 : vector<8x128xf32>
    %c0_17 = arith.constant 0 : index
    %c0_18 = arith.constant 0 : index
    %22 = vector.load %arg8[%c0_17, %c0_18] : memref<8x128xf32, #tpu.memory_space<vmem>>, vector<8x128xf32>
    tpu.vector_store %arg8[%c0_17, %c0_18], %21 {strides = array<i32>} : memref<8x128xf32, #tpu.memory_space<vmem>>, vector<8x128xf32>,
    return
  }
  func.func @transform_0(%arg0: i32) -> (i32, i32) {
    %c0_i32 = arith.constant 0 : i32
    %c0_i32_0 = arith.constant 0 : i32
    return %arg0, %c0_i32 : i32, i32
  }
  func.func @transform_1(%arg0: i32) -> (i32, i32) {
    %c0_i32 = arith.constant 0 : i32
    %c0_i32_0 = arith.constant 0 : i32
    %c0_i32_1 = arith.constant 0 : i32
    return %c0_i32, %c0_i32_0 : i32, i32
  }
  func.func @transform_2(%arg0: i32) -> (i32, i32) {
    %c0_i32 = arith.constant 0 : i32
    %c0_i32_0 = arith.constant 0 : i32
    %c0_i32_1 = arith.constant 0 : i32
    return %c0_i32, %c0_i32_0 : i32, i32
  }
  func.func @transform_3(%arg0: i32) -> (i32, i32) {
    %c0_i32 = arith.constant 0 : i32
    %c0_i32_0 = arith.constant 0 : i32
    %c0_i32_1 = arith.constant 0 : i32
    return %c0_i32, %c0_i32_0 : i32, i32
  }
  func.func @transform_4(%arg0: i32) -> (i32, i32) {
    %c0_i32 = arith.constant 0 : i32
    %c0_i32_0 = arith.constant 0 : i32
    %c0_i32_1 = arith.constant 0 : i32
    return %c0_i32, %c0_i32_0 : i32, i32
  }
  func.func @transform_5(%arg0: i32) -> (i32, i32) {
    %c0_i32 = arith.constant 0 : i32
    %c0_i32_0 = arith.constant 0 : i32
    %c0_i32_1 = arith.constant 0 : i32
    return %c0_i32, %c0_i32_0 : i32, i32
  }
  func.func @transform_6(%arg0: i32) -> (i32, i32) {
    %c0_i32 = arith.constant 0 : i32
    %c0_i32_0 = arith.constant 0 : i32
    %c0_i32_1 = arith.constant 0 : i32
    return %c0_i32, %c0_i32_0 : i32, i32
  }
  func.func @transform_7(%arg0: i32) -> (i32, i32) {
    %c0_i32 = arith.constant 0 : i32
    %c0_i32_0 = arith.constant 0 : i32
    return %arg0, %c0_i32 : i32, i32
  }
}

</mosaic_0001>

<bundles_post_ra>
// kernel: tile.10
= control target key start
LH: loop header
LB: loop body
LE: loop exit
PB: predicated region body
PF: predicated region fallthrough
CT: control target
= control target key end

     0   :  { %s64_s0 = inlined_call_operand.vmem [shape: f32[16], index: 0, kind: input, shape index: {}]   ;;  %s65_s1 = inlined_call_operand.vmem [shape: f32[64,1,1,16], index: 1, kind: output, shape index: {}]  }
   0x1   :  { %v4_v0 = vld [vmem:[%s64_s0] ss:$0 sm:$0xff] }
   0x2   :  { %5 = vst [vmem:[%s65_s1] sm:$0xff] %v4_v0  ;;  %20 = vst [vmem:[%s65_s1 + $0x8] sm:$0xff] %v4_v0 }
   0x3   :  { %21 = vst [vmem:[%s65_s1 + $0x10] sm:$0xff] %v4_v0  ;;  %22 = vst [vmem:[%s65_s1 + $0x18] sm:$0xff] %v4_v0 }
   0x4   :  { %23 = vst [vmem:[%s65_s1 + $0x20] sm:$0xff] %v4_v0  ;;  %24 = vst [vmem:[%s65_s1 + $0x28] sm:$0xff] %v4_v0 }
   0x5   :  { %25 = vst [vmem:[%s65_s1 + $0x30] sm:$0xff] %v4_v0  ;;  %26 = vst [vmem:[%s65_s1 + $0x38] sm:$0xff] %v4_v0 }

// kernel: tile.11
= control target key start
LH: loop header
LB: loop body
LE: loop exit
PB: predicated region body
PF: predicated region fallthrough
CT: control target
= control target key end

     0   :  { %vm4_vm0 = vcmask 1047556   ;;  %s167_s16 = smov 112   ;;  %s168_s19 = smov 80   ;;  %vm6_vm1 = vcmask 130048   ;;  %vm17_vm2 = vcmask 1048448   ;;  %vm28_vm3 = vcmask 917248   ;;  %s264_s0 = inlined_call_operand.vmem [shape: f32[64,1,1,16], index: 0, kind: input, shape index: {}]   ;;  %s265_s1 = inlined_call_operand.vmem [shape: f32[1,1024], index: 1, kind: output, shape index: {}]  }
   0x1   :  { %v139_v0 = vld [vmem:[%s264_s0 + $0x7] ss:$8 sm:$0xf]   ;;  %v143_v2 = vld [vmem:[%s264_s0 + $0x5] ss:$8 sm:$0xf]  }
   0x2   :  { %v140_v1 = vld [vmem:[%s264_s0 + $0x7] ss:$8 sm:$0xf0]   ;;  %v144_v4 = vld [vmem:[%s264_s0 + $0x5] ss:$8 sm:$0xf0]  }
   0x3   :  { %v14_v3 = vsel %vm4_vm0, %v140_v1, %v139_v0  ;;  %v141_v5 = vld [vmem:[%s264_s0 + $0x6] ss:$8 sm:$0xf]   ;;  %v36_v6 = vsel %vm4_vm0, %v144_v4, %v143_v2  ;;  %v145_v9 = vld [vmem:[%s264_s0 + $0x4] ss:$8 sm:$0xf]  }
   0x4   :  { %15 = vrot.lane.b32.xlu0 %v14_v3, %s167_s16  ;;  %v142_v7 = vld [vmem:[%s264_s0 + $0x6] ss:$8 sm:$0xf0]   ;;  %37 = vrot.lane.b32.xlu1 %v36_v6, %s168_s19  ;;  %v146_v10 = vld [vmem:[%s264_s0 + $0x4] ss:$8 sm:$0xf0]  }
   0x5   :  { %v25_v8 = vsel %vm4_vm0, %v142_v7, %v141_v5  ;;  %v47_v11 = vsel %vm4_vm0, %v146_v10, %v145_v9  ;;  %v147_v12 = vld [vmem:[%s264_s0 + $0x3] ss:$8 sm:$0xf]   ;;  %v149_v14 = vld [vmem:[%s264_s0 + $0x2] ss:$8 sm:$0xf]  }
   0x6   :  { %v148_v13 = vld [vmem:[%s264_s0 + $0x3] ss:$8 sm:$0xf0]   ;;  %s169_s30 = smov 96   ;;  %s170_s4 = smov 64   ;;  %vm39_vm4 = vcmask 786048  }
   0x7   :  { %v150_v15 = vld [vmem:[%s264_s0 + $0x2] ss:$8 sm:$0xf0]   ;;  %v58_v16 = vsel %vm4_vm0, %v148_v13, %v147_v12  ;;  %v151_v17 = vld [vmem:[%s264_s0 + $0x1] ss:$8 sm:$0xf]  }
   0x8   :  { %26 = vrot.lane.b32.xlu0 %v25_v8, %s169_s30  ;;  %48 = vrot.lane.b32.xlu1 %v47_v11, %s170_s4  ;;  %v152_v18 = vld [vmem:[%s264_s0 + $0x1] ss:$8 sm:$0xf0]   ;;  %v69_v19 = vsel %vm4_vm0, %v150_v15, %v149_v14  ;;  %v2_v20 = vld [vmem:[%s264_s0] ss:$8 sm:$0xf]  }
   0x9   :  { %v3_v21 = vld [vmem:[%s264_s0] ss:$8 sm:$0xf0]   ;;  %s171_s0 = smov 48   ;;  %s172_s13 = smov 32   ;;  %v80_v23 = vsel %vm4_vm0, %v152_v18, %v151_v17  ;;  %vm50_vm5 = vcmask 654848  }
   0xa   :  { %v5_v22 = vsel %vm4_vm0, %v3_v21, %v2_v20  ;;  %s173_s14 = smov 16   ;;  %vm61_vm6 = vcmask 523648   ;;  %vm72_vm7 = vcmask 392448   ;;  %vm83_vm8 = vcmask 261248  }
   0xb   :  { %7 = vst.msk [vmem:[#allocation0] ss:$8 sm:$0xf] %vm6_vm1, %v5_v22   ;;  %8 = vst.msk [vmem:[#allocation0] ss:$8 sm:$0xf0] %vm6_vm1, %v5_v22  }
   0xc   :  { %59 = vrot.lane.b32.xlu0 %v58_v16, %s171_s0  ;;  %70 = vrot.lane.b32.xlu1 %v69_v19, %s172_s13 }
  0x10   :  { %81 = vrot.lane.b32.xlu0 %v80_v23, %s173_s14 }
  0x76   :  { %v16_v24 = vpop.permute.xlu0 %15   ;;  %v38_v25 = vpop.permute.xlu1 %37  }
  0x77   :  { %18 = vst.msk [vmem:[#allocation0] ss:$8 sm:$0xf] %vm17_vm2, %v16_v24   ;;  %19 = vst.msk [vmem:[#allocation0] ss:$8 sm:$0xf0] %vm17_vm2, %v16_v24  }
  0x7a   :  { %v27_v26 = vpop.permute.xlu0 %26   ;;  %v49_v27 = vpop.permute.xlu1 %48  }
  0x7b   :  { %29 = vst.msk [vmem:[#allocation0] ss:$8 sm:$0xf] %vm28_vm3, %v27_v26   ;;  %30 = vst.msk [vmem:[#allocation0] ss:$8 sm:$0xf0] %vm28_vm3, %v27_v26  }
  0x7c   :  { %40 = vst.msk [vmem:[#allocation0] ss:$8 sm:$0xf] %vm39_vm4, %v38_v25   ;;  %41 = vst.msk [vmem:[#allocation0] ss:$8 sm:$0xf0] %vm39_vm4, %v38_v25  }
  0x7d   :  { %51 = vst.msk [vmem:[#allocation0] ss:$8 sm:$0xf] %vm50_vm5, %v49_v27   ;;  %52 = vst.msk [vmem:[#allocation0] ss:$8 sm:$0xf0] %vm50_vm5, %v49_v27  }
  0x7e   :  { %v60_v28 = vpop.permute.xlu0 %59   ;;  %v71_v29 = vpop.permute.xlu1 %70  }
  0x7f   :  { %62 = vst.msk [vmem:[#allocation0] ss:$8 sm:$0xf] %vm61_vm6, %v60_v28   ;;  %63 = vst.msk [vmem:[#allocation0] ss:$8 sm:$0xf0] %vm61_vm6, %v60_v28  }
  0x80   :  { %73 = vst.msk [vmem:[#allocation0] ss:$8 sm:$0xf] %vm72_vm7, %v71_v29   ;;  %74 = vst.msk [vmem:[#allocation0] ss:$8 sm:$0xf0] %vm72_vm7, %v71_v29  }
  0x82   :  { %v82_v30 = vpop.permute.xlu0 %81  }
  0x83   :  { %84 = vst.msk [vmem:[#allocation0] ss:$8 sm:$0xf] %vm83_vm8, %v82_v30   ;;  %85 = vst.msk [vmem:[#allocation0] ss:$8 sm:$0xf0] %vm83_vm8, %v82_v30  }
  0x8a   :  { %v89_v31 = vld [vmem:[#allocation0] sm:$0x1]  ;;  %v93_v32 = vld [vmem:[#allocation0 + $0x8] sm:$0x1]  ;;  %v98_v33 = vld [vmem:[#allocation0 + $0x10] sm:$0x1] }
  0x8b   :  { %91 = vst [vmem:[%s265_s1] sm:$0x1] %v89_v31  ;;  %153 = vst [vmem:[%s265_s1 + $0x1] sm:$0x1] %v93_v32  ;;  %v104_v34 = vld [vmem:[#allocation0 + $0x18] sm:$0x1] }
  0x8c   :  { %154 = vst [vmem:[%s265_s1 + $0x2] sm:$0x1] %v98_v33  ;;  %v110_v35 = vld [vmem:[#allocation0 + $0x20] sm:$0x1]  ;;  %v116_v36 = vld [vmem:[#allocation0 + $0x28] sm:$0x1] }
  0x8d   :  { %155 = vst [vmem:[%s265_s1 + $0x3] sm:$0x1] %v104_v34  ;;  %156 = vst [vmem:[%s265_s1 + $0x4] sm:$0x1] %v110_v35  ;;  %v122_v37 = vld [vmem:[#allocation0 + $0x30] sm:$0x1] }
  0x8e   :  { %157 = vst [vmem:[%s265_s1 + $0x5] sm:$0x1] %v116_v36  ;;  %v128_v38 = vld [vmem:[#allocation0 + $0x38] sm:$0x1]  ;;  %158 = vst [vmem:[%s265_s1 + $0x6] sm:$0x1] %v122_v37 }
  0x8f   :  { %159 = vst [vmem:[%s265_s1 + $0x7] sm:$0x1] %v128_v38 }

// kernel: lzr_forward.3
= control target key start
LH: loop header
LB: loop body
LE: loop exit
PB: predicated region body
PF: predicated region fallthrough
CT: control target
= control target key end

     0   :  { %s3311_s12 = smov 0   ;;  %s4343_s0 = inlined_call_operand.vmem [shape: bf16[32,648], index: 0, kind: input, shape index: {}]   ;;  %s4344_s1 = inlined_call_operand.vmem [shape: bf16[648,1024], index: 1, kind: input, shape index: {}]   ;;  %s4345_s2 = inlined_call_operand.vmem [shape: f32[1,1024], index: 2, kind: input, shape index: {}]   ;;  %s4346_s3 = inlined_call_operand.vmem [shape: bf16[32,256], index: 3, kind: output, shape index: {}]  }
   0x1 LB: > { %s2846_s13 = sadd.s32 4294967295, %s3289_s12   ;;  %p2850_p0 = scmp.ge.s32.totalorder %s3289_s12, 1  ;;  %s3289_s12 = sphi %s3311_s12, %s13_s12  }
   0x2   : > { %p139_p1 = scmp.lt.s32.totalorder %s3289_s12, 3 }
   0x4   : > { %p140_p2 = pnand %p2850_p0, %p139_p1 }
   0x5   : > { %v186_v0 = vld [vmem:[%s4344_s1] sm:$0xff] (!%p140_p2)  ;;  %v187_v2 = vld [vmem:[%s4344_s1 + $0x8] sm:$0xff] (!%p140_p2)  ;;  %s2851_s11 = sshll.u32 (!%p140_p2), %s2846_s13, 1  ;;  %vm2201_vm0 = vcmask (!%p140_p2), 64512   ;;  %vm2205_vm1 = vcmask (!%p140_p2), 1043456  }
   0x6   : > { %143 = sbr.rel (%p140_p2) target bundleno = 563 (0x233), region = 32  ;;  %v190_v1 = vld [vmem:[%s4344_s1 + $0x20] sm:$0xff] (!%p140_p2)  ;;  %v191_v4 = vld [vmem:[%s4344_s1 + $0x28] sm:$0xff] (!%p140_p2)  ;;  %p166_p3 = scmp.lt.s32.totalorder (!%p140_p2), %s2851_s11, 3 }
   0x7   : > { %v2863_v3 = vcombine.high (!%p140_p2), %v186_v0, %v190_v1  ;;  %v2862_v5 = vcombine.low (!%p140_p2), %v186_v0, %v190_v1  ;;  %v194_v6 = vld [vmem:[%s4344_s1 + $0x40] sm:$0xff] (!%p140_p2)  ;;  %v2865_v8 = vcombine.high (!%p140_p2), %v187_v2, %v191_v4  ;;  %v2864_v9 = vcombine.low (!%p140_p2), %v187_v2, %v191_v4  ;;  %v195_v11 = vld [vmem:[%s4344_s1 + $0x48] sm:$0xff] (!%p140_p2) }
   0x8   : > { %v198_v7 = vld [vmem:[%s4344_s1 + $0x60] sm:$0xff] (!%p140_p2)  ;;  %v199_v12 = vld [vmem:[%s4344_s1 + $0x68] sm:$0xff] (!%p140_p2) }
   0x9   : > { %v2871_v10 = vcombine.high (!%p140_p2), %v194_v6, %v198_v7  ;;  %v202_v13 = vld [vmem:[%s4344_s1 + $0x80] sm:$0xff] (!%p140_p2)  ;;  %2230 = vmatprep.subr.bf16.mxu0 (!%p140_p2), %v2863_v3  ;;  %v2873_v14 = vcombine.high (!%p140_p2), %v195_v11, %v199_v12  ;;  %v203_v16 = vld [vmem:[%s4344_s1 + $0x88] sm:$0xff] (!%p140_p2)  ;;  %2359 = vmatprep.subr.bf16.mxu1 (!%p140_p2), %v2865_v8  ;;  %v2870_v18 = vcombine.low (!%p140_p2), %v194_v6, %v198_v7 }
   0xa   : > { %v206_v15 = vld [vmem:[%s4344_s1 + $0xa0] sm:$0xff] (!%p140_p2)  ;;  %v207_v17 = vld [vmem:[%s4344_s1 + $0xa8] sm:$0xff] (!%p140_p2)  ;;  %2231 = vmatpush1.bf16.msra.mxu0 (!%p140_p2), %v2862_v5  ;;  %2360 = vmatpush1.bf16.msra.mxu1 (!%p140_p2), %v2864_v9  ;;  %v2872_v19 = vcombine.low (!%p140_p2), %v195_v11, %v199_v12 }
   0xb   : > { %2232 = vmatprep.subr.bf16.mxu0 (!%p140_p2), %v2871_v10  ;;  %v2879_v20 = vcombine.high (!%p140_p2), %v202_v13, %v206_v15  ;;  %2361 = vmatprep.subr.bf16.mxu1 (!%p140_p2), %v2873_v14  ;;  %v2881_v21 = vcombine.high (!%p140_p2), %v203_v16, %v207_v17  ;;  %v210_v22 = vld [vmem:[%s4344_s1 + $0xc0] sm:$0xff] (!%p140_p2)  ;;  %v211_v24 = vld [vmem:[%s4344_s1 + $0xc8] sm:$0xff] (!%p140_p2)  ;;  %v2878_v26 = vcombine.low (!%p140_p2), %v202_v13, %v206_v15 }
   0xc   : > { %v214_v23 = vld [vmem:[%s4344_s1 + $0xe0] sm:$0xff] (!%p140_p2)  ;;  %v215_v25 = vld [vmem:[%s4344_s1 + $0xe8] sm:$0xff] (!%p140_p2)  ;;  %v2880_v27 = vcombine.low (!%p140_p2), %v203_v16, %v207_v17 }
   0xd   : > { %v2887_v28 = vcombine.high %v210_v22, %v214_v23  ;;  %v2889_v29 = vcombine.high %v211_v24, %v215_v25  ;;  %v218_v30 = vld [vmem:[%s4344_s1 + $0x100] sm:$0xff]  ;;  %v219_v32 = vld [vmem:[%s4344_s1 + $0x108] sm:$0xff]  ;;  %s4348_s11 = smov (!%p166_p3, %s2851_s11), 3  ;;  %v2886_v34 = vcombine.low %v210_v22, %v214_v23  ;;  %v2888_v35 = vcombine.low %v211_v24, %v215_v25 }
   0xe   : > { %2233 = vmatpush1.bf16.msra.mxu0 %v2870_v18  ;;  %2362 = vmatpush1.bf16.msra.mxu1 %v2872_v19  ;;  %v222_v31 = vld [vmem:[%s4344_s1 + $0x120] sm:$0xff]  ;;  %v223_v33 = vld [vmem:[%s4344_s1 + $0x128] sm:$0xff]  ;;  %s3253_s10 = smul.u32 24, %s4348_s11  ;;  %s3202_s16 = sshll.u32 %s4348_s11, 3 }
   0xf   : > { %2234 = vmatprep.subr.bf16.mxu0 %v2879_v20  ;;  %2363 = vmatprep.subr.bf16.mxu1 %v2881_v21  ;;  %v2895_v36 = vcombine.high %v218_v30, %v222_v31  ;;  %v2897_v37 = vcombine.high %v219_v32, %v223_v33  ;;  %v226_v38 = vld [vmem:[%s4344_s1 + $0x140] sm:$0xff]  ;;  %v227_v40 = vld [vmem:[%s4344_s1 + $0x148] sm:$0xff]  ;;  %v2894_v42 = vcombine.low %v218_v30, %v222_v31  ;;  %s177_s19 = scalar_lea.vmem %s4346_s3, %s3202_s16 }
  0x10   : > { %v230_v39 = vld [vmem:[%s4344_s1 + $0x160] sm:$0xff]  ;;  %v231_v41 = vld [vmem:[%s4344_s1 + $0x168] sm:$0xff]  ;;  %v2896_v43 = vcombine.low %v219_v32, %v223_v33  ;;  %s3409_s23 = scalar_lea.vmem %s4343_s0, %s3253_s10 }
  0x11   : > { %v2903_v44 = vcombine.high %v226_v38, %v230_v39  ;;  %v2905_v45 = vcombine.high %v227_v40, %v231_v41  ;;  %v234_v46 = vld [vmem:[%s4344_s1 + $0x180] sm:$0xff]  ;;  %v235_v48 = vld [vmem:[%s4344_s1 + $0x188] sm:$0xff]  ;;  %v2902_v50 = vcombine.low %v226_v38, %v230_v39  ;;  %v2904_v51 = vcombine.low %v227_v40, %v231_v41 }
  0x12   : > { %2235 = vmatpush1.bf16.msra.mxu0 %v2878_v26  ;;  %2364 = vmatpush1.bf16.msra.mxu1 %v2880_v27  ;;  %v238_v47 = vld [vmem:[%s4344_s1 + $0x1a0] sm:$0xff]  ;;  %v239_v49 = vld [vmem:[%s4344_s1 + $0x1a8] sm:$0xff] }
  0x13   : > { %2236 = vmatprep.subr.bf16.mxu0 %v2887_v28  ;;  %2365 = vmatprep.subr.bf16.mxu1 %v2889_v29  ;;  %v2911_v52 = vcombine.high %v234_v46, %v238_v47  ;;  %v2913_v53 = vcombine.high %v235_v48, %v239_v49  ;;  %v242_v54 = vld [vmem:[%s4344_s1 + $0x1c0] sm:$0xff]  ;;  %v243_v57 = vld [vmem:[%s4344_s1 + $0x1c8] sm:$0xff]  ;;  %v2910_v59 = vcombine.low %v234_v46, %v238_v47 }
  0x14   : > { %v246_v55 = vld [vmem:[%s4344_s1 + $0x1e0] sm:$0xff]  ;;  %v247_v58 = vld [vmem:[%s4344_s1 + $0x1e8] sm:$0xff]  ;;  %v2912_v60 = vcombine.low %v235_v48, %v239_v49 }
  0x15   : > { %v3418_v56 = vld [vmem:[%s3409_s23 + $0x4] ss:$24 sps:$4 sm:$0xff]   ;;  %v2919_v61 = vcombine.high %v242_v54, %v246_v55  ;;  %v2921_v62 = vcombine.high %v243_v57, %v247_v58  ;;  %v251_v1 = vld [vmem:[%s4344_s1 + $0x208] sm:$0xff]  ;;  %v2918_v3 = vcombine.low %v242_v54, %v246_v55  ;;  %v2920_v4 = vcombine.low %v243_v57, %v247_v58 }
  0x16   : > { %2237 = vmatpush1.bf16.msra.mxu0 %v2886_v34  ;;  %2366 = vmatpush1.bf16.msra.mxu1 %v2888_v35  ;;  %v250_v63 = vld [vmem:[%s4344_s1 + $0x200] sm:$0xff]  ;;  %v255_v2 = vld [vmem:[%s4344_s1 + $0x228] sm:$0xff] }
  0x17   : > { %2238 = vmatprep.subr.bf16.mxu0 %v2895_v36  ;;  %2367 = vmatprep.subr.bf16.mxu1 %v2897_v37  ;;  %v254_v0 = vld [vmem:[%s4344_s1 + $0x220] sm:$0xff]  ;;  %v2929_v6 = vcombine.high %v251_v1, %v255_v2  ;;  %v259_v9 = vld [vmem:[%s4344_s1 + $0x248] sm:$0xff]  ;;  %v2928_v12 = vcombine.low %v251_v1, %v255_v2 }
  0x18   : > { %2262 = vmatprep.mubr.bf16.mxu0 %v3418_v56  ;;  %2391 = vmatprep.mubr.bf16.mxu1 %v3418_v56  ;;  %v2927_v5 = vcombine.high %v250_v63, %v254_v0  ;;  %v258_v7 = vld [vmem:[%s4344_s1 + $0x240] sm:$0xff]  ;;  %v263_v10 = vld [vmem:[%s4344_s1 + $0x268] sm:$0xff]  ;;  %v2926_v11 = vcombine.low %v250_v63, %v254_v0 }
  0x19   : > { %v262_v8 = vld [vmem:[%s4344_s1 + $0x260] sm:$0xff]  ;;  %v2937_v14 = vcombine.high %v259_v9, %v263_v10  ;;  %v267_v17 = vld [vmem:[%s4344_s1 + $0x288] sm:$0xff]  ;;  %v2936_v20 = vcombine.low %v259_v9, %v263_v10 }
  0x1a   : > { %2239 = vmatpush1.bf16.msra.mxu0 %v2894_v42  ;;  %2368 = vmatpush1.bf16.msra.mxu1 %v2896_v43  ;;  %v2935_v13 = vcombine.high %v258_v7, %v262_v8  ;;  %v266_v15 = vld [vmem:[%s4344_s1 + $0x280] sm:$0xff]  ;;  %v271_v18 = vld [vmem:[%s4344_s1 + $0x2a8] sm:$0xff]  ;;  %v2934_v19 = vcombine.low %v258_v7, %v262_v8 }
  0x1b   : > { %2240 = vmatprep.subr.bf16.mxu0 %v2903_v44  ;;  %2369 = vmatprep.subr.bf16.mxu1 %v2905_v45  ;;  %v270_v16 = vld [vmem:[%s4344_s1 + $0x2a0] sm:$0xff]  ;;  %v2945_v22 = vcombine.high %v267_v17, %v271_v18  ;;  %v275_v25 = vld [vmem:[%s4344_s1 + $0x2c8] sm:$0xff]  ;;  %v2944_v28 = vcombine.low %v267_v17, %v271_v18 }
  0x1c   : > { %v2943_v21 = vcombine.high %v266_v15, %v270_v16  ;;  %v274_v23 = vld [vmem:[%s4344_s1 + $0x2c0] sm:$0xff]  ;;  %v279_v26 = vld [vmem:[%s4344_s1 + $0x2e8] sm:$0xff]  ;;  %v2942_v27 = vcombine.low %v266_v15, %v270_v16 }
  0x1d   : > { %v278_v24 = vld [vmem:[%s4344_s1 + $0x2e0] sm:$0xff]  ;;  %v2953_v30 = vcombine.high %v275_v25, %v279_v26  ;;  %v283_v33 = vld [vmem:[%s4344_s1 + $0x308] sm:$0xff]  ;;  %v2952_v36 = vcombine.low %v275_v25, %v279_v26 }
  0x1e   : > { %2241 = vmatpush1.bf16.msra.mxu0 %v2902_v50  ;;  %2370 = vmatpush1.bf16.msra.mxu1 %v2904_v51  ;;  %v2951_v29 = vcombine.high %v274_v23, %v278_v24  ;;  %v282_v31 = vld [vmem:[%s4344_s1 + $0x300] sm:$0xff]  ;;  %v287_v34 = vld [vmem:[%s4344_s1 + $0x328] sm:$0xff]  ;;  %v2950_v35 = vcombine.low %v274_v23, %v278_v24 }
  0x1f   : > { %2242 = vmatprep.subr.bf16.mxu0 %v2911_v52  ;;  %2371 = vmatprep.subr.bf16.mxu1 %v2913_v53  ;;  %v286_v32 = vld [vmem:[%s4344_s1 + $0x320] sm:$0xff]  ;;  %v2961_v38 = vcombine.high %v283_v33, %v287_v34  ;;  %v291_v41 = vld [vmem:[%s4344_s1 + $0x348] sm:$0xff]  ;;  %v2960_v44 = vcombine.low %v283_v33, %v287_v34 }
  0x20   : > { %v2959_v37 = vcombine.high %v282_v31, %v286_v32  ;;  %v290_v39 = vld [vmem:[%s4344_s1 + $0x340] sm:$0xff]  ;;  %v295_v42 = vld [vmem:[%s4344_s1 + $0x368] sm:$0xff]  ;;  %v2958_v43 = vcombine.low %v282_v31, %v286_v32 }
  0x21   : > { %v294_v40 = vld [vmem:[%s4344_s1 + $0x360] sm:$0xff]  ;;  %v2969_v46 = vcombine.high %v291_v41, %v295_v42  ;;  %v299_v49 = vld [vmem:[%s4344_s1 + $0x388] sm:$0xff]  ;;  %v2968_v52 = vcombine.low %v291_v41, %v295_v42 }
  0x22   : > { %2243 = vmatpush1.bf16.msra.mxu0 %v2910_v59  ;;  %2372 = vmatpush1.bf16.msra.mxu1 %v2912_v60  ;;  %v2967_v45 = vcombine.high %v290_v39, %v294_v40  ;;  %v298_v47 = vld [vmem:[%s4344_s1 + $0x380] sm:$0xff]  ;;  %v303_v50 = vld [vmem:[%s4344_s1 + $0x3a8] sm:$0xff]  ;;  %v2966_v51 = vcombine.low %v290_v39, %v294_v40 }
  0x23   : > { %2244 = vmatprep.subr.bf16.mxu0 %v2919_v61  ;;  %2373 = vmatprep.subr.bf16.mxu1 %v2921_v62  ;;  %v302_v48 = vld [vmem:[%s4344_s1 + $0x3a0] sm:$0xff]  ;;  %v2977_v54 = vcombine.high %v299_v49, %v303_v50  ;;  %v307_v58 = vld [vmem:[%s4344_s1 + $0x3c8] sm:$0xff]  ;;  %v2976_v61 = vcombine.low %v299_v49, %v303_v50 }
  0x24   : > { %v2975_v53 = vcombine.high %v298_v47, %v302_v48  ;;  %v306_v55 = vld [vmem:[%s4344_s1 + $0x3c0] sm:$0xff]  ;;  %v311_v59 = vld [vmem:[%s4344_s1 + $0x3e8] sm:$0xff]  ;;  %v2974_v60 = vcombine.low %v298_v47, %v302_v48 }
  0x25   : > { %v310_v57 = vld [vmem:[%s4344_s1 + $0x3e0] sm:$0xff]  ;;  %v2985_v63 = vcombine.high %v307_v58, %v311_v59  ;;  %v315_v2 = vld [vmem:[%s4344_s1 + $0x408] sm:$0xff] }
  0x26   : > { %2245 = vmatpush1.bf16.msra.mxu0 %v2918_v3  ;;  %2374 = vmatpush1.bf16.msra.mxu1 %v2920_v4  ;;  %v2983_v62 = vcombine.high %v306_v55, %v310_v57  ;;  %v314_v0 = vld [vmem:[%s4344_s1 + $0x400] sm:$0xff]  ;;  %v319_v3 = vld [vmem:[%s4344_s1 + $0x428] sm:$0xff]  ;;  %v2982_v4 = vcombine.low %v306_v55, %v310_v57 }
  0x27   : > { %2246 = vmatprep.subr.bf16.mxu0 %v2927_v5  ;;  %2375 = vmatprep.subr.bf16.mxu1 %v2929_v6  ;;  %v318_v1 = vld [vmem:[%s4344_s1 + $0x420] sm:$0xff]  ;;  %v2984_v5 = vcombine.low %v307_v58, %v311_v59  ;;  %v2993_v7 = vcombine.high %v315_v2, %v319_v3 }
  0x28   : > { %v2991_v6 = vcombine.high %v314_v0, %v318_v1  ;;  %v322_v8 = vld [vmem:[%s4344_s1 + $0x440] sm:$0xff] }
  0x29   : > { %v326_v9 = vld [vmem:[%s4344_s1 + $0x460] sm:$0xff] }
  0x2a   : > { %2247 = vmatpush1.bf16.msra.mxu0 %v2926_v11  ;;  %2376 = vmatpush1.bf16.msra.mxu1 %v2928_v12  ;;  %v3264_v10 = vld [vmem:[%s3409_s23] ss:$24 sps:$4 sm:$0xff]   ;;  %v323_v11 = vld [vmem:[%s4344_s1 + $0x448] sm:$0xff]  ;;  %v2999_v15 = vcombine.high %v322_v8, %v326_v9 }
  0x2b   : > { %2248 = vmatprep.subr.bf16.mxu0 %v2935_v13  ;;  %2377 = vmatprep.subr.bf16.mxu1 %v2937_v14  ;;  %v327_v12 = vld [vmem:[%s4344_s1 + $0x468] sm:$0xff]  ;;  %v2990_v13 = vcombine.low %v314_v0, %v318_v1  ;;  %v2992_v14 = vcombine.low %v315_v2, %v319_v3  ;;  %v330_v17 = vld [vmem:[%s4344_s1 + $0x480] sm:$0xff] }
  0x2c   : > { %v3001_v16 = vcombine.high %v323_v11, %v327_v12  ;;  %v334_v18 = vld [vmem:[%s4344_s1 + $0x4a0] sm:$0xff]  ;;  %v3000_v23 = vcombine.low %v323_v11, %v327_v12 }
  0x2d   : > { %v3007_v24 = vcombine.high %v330_v17, %v334_v18  ;;  %v338_v26 = vld [vmem:[%s4344_s1 + $0x4c0] sm:$0xff] }
  0x2e   : > { %2249 = vmatpush1.bf16.msra.mxu0 %v2934_v19  ;;  %2378 = vmatpush1.bf16.msra.mxu1 %v2936_v20  ;;  %v3265_v19 = vld [vmem:[%s3409_s23 + $0xc] ss:$24 sps:$4 sm:$0xff]  }
  0x2f   : > { %2250 = vmatprep.subr.bf16.mxu0 %v2943_v21  ;;  %2379 = vmatprep.subr.bf16.mxu1 %v2945_v22  ;;  %v331_v20 = vld [vmem:[%s4344_s1 + $0x488] sm:$0xff]  ;;  %v2998_v22 = vcombine.low %v322_v8, %v326_v9  ;;  %v346_v34 = vld [vmem:[%s4344_s1 + $0x500] sm:$0xff] }
  0x30   : > { %v335_v21 = vld [vmem:[%s4344_s1 + $0x4a8] sm:$0xff]  ;;  %v354_v42 = vld [vmem:[%s4344_s1 + $0x540] sm:$0xff] }
  0x31   : > { %v3009_v25 = vcombine.high %v331_v20, %v335_v21  ;;  %v3008_v31 = vcombine.low %v331_v20, %v335_v21  ;;  %v362_v50 = vld [vmem:[%s4344_s1 + $0x580] sm:$0xff]  ;;  %v395_v21 = vld [vmem:[%s4344_s1 + $0x688] sm:$0xff] }
  0x32   : > { %2251 = vmatpush1.bf16.msra.mxu0 %v2942_v27  ;;  %2380 = vmatpush1.bf16.msra.mxu1 %v2944_v28  ;;  %v342_v27 = vld [vmem:[%s4344_s1 + $0x4e0] sm:$0xff]  ;;  %v339_v28 = vld [vmem:[%s4344_s1 + $0x4c8] sm:$0xff] }
  0x33   : > { %2252 = vmatprep.subr.bf16.mxu0 %v2951_v29  ;;  %2381 = vmatprep.subr.bf16.mxu1 %v2953_v30  ;;  %v343_v29 = vld [vmem:[%s4344_s1 + $0x4e8] sm:$0xff]  ;;  %v3006_v30 = vcombine.low %v330_v17, %v334_v18  ;;  %v3015_v32 = vcombine.high %v338_v26, %v342_v27  ;;  %v370_v59 = vld [vmem:[%s4344_s1 + $0x5c0] sm:$0xff] }
  0x34   : > { %v3017_v33 = vcombine.high %v339_v28, %v343_v29  ;;  %v3016_v39 = vcombine.low %v339_v28, %v343_v29  ;;  %v378_v3 = vld [vmem:[%s4344_s1 + $0x600] sm:$0xff]  ;;  %v403_v29 = vld [vmem:[%s4344_s1 + $0x6c8] sm:$0xff] }
  0x35   : > { %v386_v11 = vld [vmem:[%s4344_s1 + $0x640] sm:$0xff] }
  0x36   : > { %2253 = vmatpush1.bf16.msra.mxu0 %v2950_v35  ;;  %2382 = vmatpush1.bf16.msra.mxu1 %v2952_v36  ;;  %v350_v35 = vld [vmem:[%s4344_s1 + $0x520] sm:$0xff]  ;;  %v347_v36 = vld [vmem:[%s4344_s1 + $0x508] sm:$0xff] }
  0x37   : > { %2254 = vmatprep.subr.bf16.mxu0 %v2959_v37  ;;  %2383 = vmatprep.subr.bf16.mxu1 %v2961_v38  ;;  %v351_v37 = vld [vmem:[%s4344_s1 + $0x528] sm:$0xff]  ;;  %v3014_v38 = vcombine.low %v338_v26, %v342_v27  ;;  %v3023_v40 = vcombine.high %v346_v34, %v350_v35  ;;  %v390_v12 = vld [vmem:[%s4344_s1 + $0x660] sm:$0xff] }
  0x38   : > { %v3025_v41 = vcombine.high %v347_v36, %v351_v37  ;;  %v3024_v47 = vcombine.low %v347_v36, %v351_v37  ;;  %v3063_v17 = vcombine.high %v386_v11, %v390_v12  ;;  %v398_v20 = vld [vmem:[%s4344_s1 + $0x6a0] sm:$0xff]  ;;  %v411_v37 = vld [vmem:[%s4344_s1 + $0x708] sm:$0xff] }
  0x39   : > { %v402_v27 = vld [vmem:[%s4344_s1 + $0x6c0] sm:$0xff] }
  0x3a   : > { %2255 = vmatpush1.bf16.msra.mxu0 %v2958_v43  ;;  %2384 = vmatpush1.bf16.msra.mxu1 %v2960_v44  ;;  %v358_v43 = vld [vmem:[%s4344_s1 + $0x560] sm:$0xff]  ;;  %v355_v44 = vld [vmem:[%s4344_s1 + $0x548] sm:$0xff] }
  0x3b   : > { %2256 = vmatprep.subr.bf16.mxu0 %v2967_v45  ;;  %2385 = vmatprep.subr.bf16.mxu1 %v2969_v46  ;;  %v359_v45 = vld [vmem:[%s4344_s1 + $0x568] sm:$0xff]  ;;  %v3022_v46 = vcombine.low %v346_v34, %v350_v35  ;;  %v3031_v48 = vcombine.high %v354_v42, %v358_v43  ;;  %v406_v28 = vld [vmem:[%s4344_s1 + $0x6e0] sm:$0xff] }
  0x3c   : > { %v3033_v49 = vcombine.high %v355_v44, %v359_v45  ;;  %v3032_v55 = vcombine.low %v355_v44, %v359_v45  ;;  %v410_v35 = vld [vmem:[%s4344_s1 + $0x700] sm:$0xff]  ;;  %v419_v45 = vld [vmem:[%s4344_s1 + $0x748] sm:$0xff] }
  0x3d   : > { %v414_v36 = vld [vmem:[%s4344_s1 + $0x720] sm:$0xff] }
  0x3e   : > { %2257 = vmatpush1.bf16.msra.mxu0 %v2966_v51  ;;  %2386 = vmatpush1.bf16.msra.mxu1 %v2968_v52  ;;  %v366_v51 = vld [vmem:[%s4344_s1 + $0x5a0] sm:$0xff]  ;;  %v363_v52 = vld [vmem:[%s4344_s1 + $0x588] sm:$0xff] }
  0x3f   : > { %2258 = vmatprep.subr.bf16.mxu0 %v2975_v53  ;;  %2387 = vmatprep.subr.bf16.mxu1 %v2977_v54  ;;  %v367_v53 = vld [vmem:[%s4344_s1 + $0x5a8] sm:$0xff]  ;;  %v3030_v54 = vcombine.low %v354_v42, %v358_v43  ;;  %v3039_v57 = vcombine.high %v362_v50, %v366_v51  ;;  %v418_v43 = vld [vmem:[%s4344_s1 + $0x740] sm:$0xff] }
  0x40   : > { %v3041_v58 = vcombine.high %v363_v52, %v367_v53  ;;  %v3040_v0 = vcombine.low %v363_v52, %v367_v53  ;;  %v422_v44 = vld [vmem:[%s4344_s1 + $0x760] sm:$0xff]  ;;  %v427_v53 = vld [vmem:[%s4344_s1 + $0x788] sm:$0xff] }
  0x41   : > { %v430_v52 = vld [vmem:[%s4344_s1 + $0x7a0] sm:$0xff] }
  0x42   : > { %2259 = vmatpush1.bf16.msra.mxu0 %v2974_v60  ;;  %2388 = vmatpush1.bf16.msra.mxu1 %v2976_v61  ;;  %v374_v60 = vld [vmem:[%s4344_s1 + $0x5e0] sm:$0xff]  ;;  %v371_v61 = vld [vmem:[%s4344_s1 + $0x5c8] sm:$0xff] }
  0x43   : > { %2260 = vmatprep.subr.bf16.mxu0 %v2983_v62  ;;  %2389 = vmatprep.subr.bf16.mxu1 %v2985_v63  ;;  %v375_v62 = vld [vmem:[%s4344_s1 + $0x5e8] sm:$0xff]  ;;  %v3038_v63 = vcombine.low %v362_v50, %v366_v51  ;;  %v3047_v1 = vcombine.high %v370_v59, %v374_v60  ;;  %v426_v51 = vld [vmem:[%s4344_s1 + $0x780] sm:$0xff] }
  0x44   : > { %v3049_v2 = vcombine.high %v371_v61, %v375_v62  ;;  %v3048_v8 = vcombine.low %v371_v61, %v375_v62  ;;  %v438_v61 = vld [vmem:[%s4344_s1 + $0x7e0] sm:$0xff]  ;;  %v435_v62 = vld [vmem:[%s4344_s1 + $0x7c8] sm:$0xff] }
  0x46   : > { %2261 = vmatpush1.bf16.msra.mxu0 %v2982_v4  ;;  %2390 = vmatpush1.bf16.msra.mxu1 %v2984_v5  ;;  %v382_v4 = vld [vmem:[%s4344_s1 + $0x620] sm:$0xff]  ;;  %v379_v5 = vld [vmem:[%s4344_s1 + $0x608] sm:$0xff] }
  0x47   : > { %2273 = vmatprep.subr.bf16.mxu0 %v2991_v6  ;;  %2402 = vmatprep.subr.bf16.mxu1 %v2993_v7  ;;  %v383_v6 = vld [vmem:[%s4344_s1 + $0x628] sm:$0xff]  ;;  %v3046_v7 = vcombine.low %v370_v59, %v374_v60  ;;  %v3055_v9 = vcombine.high %v378_v3, %v382_v4  ;;  %v434_v60 = vld [vmem:[%s4344_s1 + $0x7c0] sm:$0xff] }
  0x49   : > { %2263 = vmatmul.mubr.bf16.vlgmr.msra.gmra.mrb[0].mxu0 %v3264_v10  ;;  %2392 = vmatmul.mubr.bf16.vlgmr.msra.gmra.mrb[0].mxu1 %v3264_v10  ;;  %v3057_v10 = vcombine.high %v379_v5, %v383_v6 }
  0x4a   : > { %2274 = vmatpush1.bf16.msra.mxu0 %v2990_v13  ;;  %2403 = vmatpush1.bf16.msra.mxu1 %v2992_v14  ;;  %v387_v13 = vld [vmem:[%s4344_s1 + $0x648] sm:$0xff] }
  0x4b   : > { %2275 = vmatprep.subr.bf16.mxu0 %v2999_v15  ;;  %2404 = vmatprep.subr.bf16.mxu1 %v3001_v16  ;;  %v391_v14 = vld [vmem:[%s4344_s1 + $0x668] sm:$0xff]  ;;  %v3054_v15 = vcombine.low %v378_v3, %v382_v4  ;;  %v3056_v16 = vcombine.low %v379_v5, %v383_v6  ;;  %v442_v4 = vld [vmem:[%s4344_s1 + $0x800] sm:$0xff] }
  0x4c   : > { %2305 = vmatprep.mubr.bf16.mxu0 %v3265_v19  ;;  %2434 = vmatprep.mubr.bf16.mxu1 %v3265_v19  ;;  %v3065_v18 = vcombine.high %v387_v13, %v391_v14  ;;  %v394_v19 = vld [vmem:[%s4344_s1 + $0x680] sm:$0xff]  ;;  %v443_v6 = vld [vmem:[%s4344_s1 + $0x808] sm:$0xff] }
  0x4d   : > { %v446_v5 = vld [vmem:[%s4344_s1 + $0x820] sm:$0xff] }
  0x4e   : > { %2276 = vmatpush1.bf16.msra.mxu0 %v2998_v22  ;;  %2405 = vmatpush1.bf16.msra.mxu1 %v3000_v23  ;;  %v399_v22 = vld [vmem:[%s4344_s1 + $0x6a8] sm:$0xff]  ;;  %v3062_v23 = vcombine.low %v386_v11, %v390_v12  ;;  %v450_v12 = vld [vmem:[%s4344_s1 + $0x840] sm:$0xff] }
  0x4f   : > { %2277 = vmatprep.subr.bf16.mxu0 %v3007_v24  ;;  %2406 = vmatprep.subr.bf16.mxu1 %v3009_v25  ;;  %v3064_v24 = vcombine.low %v387_v13, %v391_v14  ;;  %v3071_v25 = vcombine.high %v394_v19, %v398_v20  ;;  %v3073_v26 = vcombine.high %v395_v21, %v399_v22  ;;  %v454_v13 = vld [vmem:[%s4344_s1 + $0x860] sm:$0xff] }
  0x50   : > { %v3267_v14 = vld [vmem:[%s3409_s23 + $0x8] ss:$24 sps:$4 sm:$0xff]  }
  0x52   : > { %2278 = vmatpush1.bf16.msra.mxu0 %v3006_v30  ;;  %2407 = vmatpush1.bf16.msra.mxu1 %v3008_v31  ;;  %v407_v30 = vld [vmem:[%s4344_s1 + $0x6e8] sm:$0xff]  ;;  %v3070_v31 = vcombine.low %v394_v19, %v398_v20  ;;  %v3127_v19 = vcombine.high %v450_v12, %v454_v13 }
  0x53   : > { %2279 = vmatprep.subr.bf16.mxu0 %v3015_v32  ;;  %2408 = vmatprep.subr.bf16.mxu1 %v3017_v33  ;;  %v3072_v32 = vcombine.low %v395_v21, %v399_v22  ;;  %v3079_v33 = vcombine.high %v402_v27, %v406_v28  ;;  %v3081_v34 = vcombine.high %v403_v29, %v407_v30  ;;  %v458_v21 = vld [vmem:[%s4344_s1 + $0x880] sm:$0xff] }
  0x54   : > { %v462_v22 = vld [vmem:[%s4344_s1 + $0x8a0] sm:$0xff] }
  0x56   : > { %2280 = vmatpush1.bf16.msra.mxu0 %v3014_v38  ;;  %2409 = vmatpush1.bf16.msra.mxu1 %v3016_v39  ;;  %v415_v38 = vld [vmem:[%s4344_s1 + $0x728] sm:$0xff]  ;;  %v3078_v39 = vcombine.low %v402_v27, %v406_v28  ;;  %v3135_v28 = vcombine.high %v458_v21, %v462_v22 }
  0x57   : > { %2281 = vmatprep.subr.bf16.mxu0 %v3023_v40  ;;  %2410 = vmatprep.subr.bf16.mxu1 %v3025_v41  ;;  %v3080_v40 = vcombine.low %v403_v29, %v407_v30  ;;  %v3087_v41 = vcombine.high %v410_v35, %v414_v36  ;;  %v3089_v42 = vcombine.high %v411_v37, %v415_v38  ;;  %v466_v30 = vld [vmem:[%s4344_s1 + $0x8c0] sm:$0xff] }
  0x5a   : > { %2282 = vmatpush1.bf16.msra.mxu0 %v3022_v46  ;;  %2411 = vmatpush1.bf16.msra.mxu1 %v3024_v47  ;;  %v423_v46 = vld [vmem:[%s4344_s1 + $0x768] sm:$0xff]  ;;  %v3086_v47 = vcombine.low %v410_v35, %v414_v36 }
  0x5b   : > { %2283 = vmatprep.subr.bf16.mxu0 %v3031_v48  ;;  %2412 = vmatprep.subr.bf16.mxu1 %v3033_v49  ;;  %v3088_v48 = vcombine.low %v411_v37, %v415_v38  ;;  %v3095_v49 = vcombine.high %v418_v43, %v422_v44  ;;  %v3097_v50 = vcombine.high %v419_v45, %v423_v46  ;;  %v474_v38 = vld [vmem:[%s4344_s1 + $0x900] sm:$0xff] }
  0x5e   : > { %2284 = vmatpush1.bf16.msra.mxu0 %v3030_v54  ;;  %2413 = vmatpush1.bf16.msra.mxu1 %v3032_v55  ;;  %v431_v54 = vld [vmem:[%s4344_s1 + $0x7a8] sm:$0xff]  ;;  %v3094_v55 = vcombine.low %v418_v43, %v422_v44 }
  0x5f   : > { %2285 = vmatprep.subr.bf16.mxu0 %v3039_v57  ;;  %2414 = vmatprep.subr.bf16.mxu1 %v3041_v58  ;;  %v3096_v57 = vcombine.low %v419_v45, %v423_v46  ;;  %v3103_v58 = vcombine.high %v426_v51, %v430_v52  ;;  %v3105_v59 = vcombine.high %v427_v53, %v431_v54  ;;  %v482_v46 = vld [vmem:[%s4344_s1 + $0x940] sm:$0xff] }
  0x62   : > { %2286 = vmatpush1.bf16.msra.mxu0 %v3038_v63  ;;  %2415 = vmatpush1.bf16.msra.mxu1 %v3040_v0  ;;  %v439_v63 = vld [vmem:[%s4344_s1 + $0x7e8] sm:$0xff]  ;;  %v3102_v0 = vcombine.low %v426_v51, %v430_v52 }
  0x63   : > { %2287 = vmatprep.subr.bf16.mxu0 %v3047_v1  ;;  %2416 = vmatprep.subr.bf16.mxu1 %v3049_v2  ;;  %v3104_v1 = vcombine.low %v427_v53, %v431_v54  ;;  %v3111_v2 = vcombine.high %v434_v60, %v438_v61  ;;  %v3113_v3 = vcombine.high %v435_v62, %v439_v63  ;;  %v490_v54 = vld [vmem:[%s4344_s1 + $0x980] sm:$0xff] }
  0x66   : > { %2288 = vmatpush1.bf16.msra.mxu0 %v3046_v7  ;;  %2417 = vmatpush1.bf16.msra.mxu1 %v3048_v8  ;;  %v447_v7 = vld [vmem:[%s4344_s1 + $0x828] sm:$0xff]  ;;  %v3110_v8 = vcombine.low %v434_v60, %v438_v61 }
  0x67   : > { %2289 = vmatprep.subr.bf16.mxu0 %v3055_v9  ;;  %2418 = vmatprep.subr.bf16.mxu1 %v3057_v10  ;;  %v3112_v9 = vcombine.low %v435_v62, %v439_v63  ;;  %v3119_v10 = vcombine.high %v442_v4, %v446_v5  ;;  %v3121_v11 = vcombine.high %v443_v6, %v447_v7  ;;  %v498_v63 = vld [vmem:[%s4344_s1 + $0x9c0] sm:$0xff] }
  0x6a   : > { %2290 = vmatpush1.bf16.msra.mxu0 %v3054_v15  ;;  %2419 = vmatpush1.bf16.msra.mxu1 %v3056_v16  ;;  %v451_v15 = vld [vmem:[%s4344_s1 + $0x848] sm:$0xff] }
  0x6b   : > { %2291 = vmatprep.subr.bf16.mxu0 %v3063_v17  ;;  %2420 = vmatprep.subr.bf16.mxu1 %v3065_v18  ;;  %v455_v16 = vld [vmem:[%s4344_s1 + $0x868] sm:$0xff]  ;;  %v3118_v17 = vcombine.low %v442_v4, %v446_v5  ;;  %v3120_v18 = vcombine.low %v443_v6, %v447_v7  ;;  %v506_v7 = vld [vmem:[%s4344_s1 + $0xa00] sm:$0xff] }
  0x6c   : > { %v3129_v20 = vcombine.high %v451_v15, %v455_v16  ;;  %v3128_v27 = vcombine.low %v451_v15, %v455_v16  ;;  %v188_v15 = vld [vmem:[%s4344_s1 + $0x10] sm:$0xff] }
  0x6d   : > { %v192_v16 = vld [vmem:[%s4344_s1 + $0x30] sm:$0xff] }
  0x6e   : > { %2292 = vmatpush1.bf16.msra.mxu0 %v3062_v23  ;;  %2421 = vmatpush1.bf16.msra.mxu1 %v3064_v24  ;;  %v3272_v23 = vld [vmem:[%s3409_s23 + $0x14] ss:$24 sps:$4 sm:$0xff]  }
  0x6f   : > { %2293 = vmatprep.subr.bf16.mxu0 %v3071_v25  ;;  %2422 = vmatprep.subr.bf16.mxu1 %v3073_v26  ;;  %v459_v24 = vld [vmem:[%s4344_s1 + $0x888] sm:$0xff]  ;;  %v3126_v26 = vcombine.low %v450_v12, %v454_v13  ;;  %v3182_v12 = vcombine.low %v506_v7, %v506_v7 }
  0x70   : > { %v463_v25 = vld [vmem:[%s4344_s1 + $0x8a8] sm:$0xff] }
  0x71   : > { %v3137_v29 = vcombine.high %v459_v24, %v463_v25  ;;  %v3136_v35 = vcombine.low %v459_v24, %v463_v25  ;;  %v200_v24 = vld [vmem:[%s4344_s1 + $0x70] sm:$0xff] }
  0x72   : > { %2294 = vmatpush1.bf16.msra.mxu0 %v3070_v31  ;;  %2423 = vmatpush1.bf16.msra.mxu1 %v3072_v32  ;;  %v470_v31 = vld [vmem:[%s4344_s1 + $0x8e0] sm:$0xff]  ;;  %v467_v32 = vld [vmem:[%s4344_s1 + $0x8c8] sm:$0xff] }
  0x73   : > { %2295 = vmatprep.subr.bf16.mxu0 %v3079_v33  ;;  %2424 = vmatprep.subr.bf16.mxu1 %v3081_v34  ;;  %v471_v33 = vld [vmem:[%s4344_s1 + $0x8e8] sm:$0xff]  ;;  %v3134_v34 = vcombine.low %v458_v21, %v462_v22  ;;  %v3143_v36 = vcombine.high %v466_v30, %v470_v31 }
  0x74   : > { %v3145_v37 = vcombine.high %v467_v32, %v471_v33  ;;  %v3144_v43 = vcombine.low %v467_v32, %v471_v33  ;;  %v3847_v25 = vld [vmem:[%s3409_s23 + $0x10] ss:$24 sps:$4 sm:$0xff]  }
  0x75   : > { %v204_v32 = vld [vmem:[%s4344_s1 + $0x90] sm:$0xff] }
  0x76   : > { %2296 = vmatpush1.bf16.msra.mxu0 %v3078_v39  ;;  %2425 = vmatpush1.bf16.msra.mxu1 %v3080_v40  ;;  %v478_v39 = vld [vmem:[%s4344_s1 + $0x920] sm:$0xff]  ;;  %v475_v40 = vld [vmem:[%s4344_s1 + $0x908] sm:$0xff]  ;;  %v208_v33 = vld [vmem:[%s4344_s1 + $0xb0] sm:$0xff] }
  0x77   : > { %2297 = vmatprep.subr.bf16.mxu0 %v3087_v41  ;;  %2426 = vmatprep.subr.bf16.mxu1 %v3089_v42  ;;  %v479_v41 = vld [vmem:[%s4344_s1 + $0x928] sm:$0xff]  ;;  %v3142_v42 = vcombine.low %v466_v30, %v470_v31  ;;  %v3151_v44 = vcombine.high %v474_v38, %v478_v39 }
  0x78   : > { %v3153_v45 = vcombine.high %v475_v40, %v479_v41  ;;  %v3152_v51 = vcombine.low %v475_v40, %v479_v41  ;;  %v212_v40 = vld [vmem:[%s4344_s1 + $0xd0] sm:$0xff] }
  0x79   : > { %v216_v41 = vld [vmem:[%s4344_s1 + $0xf0] sm:$0xff] }
  0x7a   : > { %2298 = vmatpush1.bf16.msra.mxu0 %v3086_v47  ;;  %2427 = vmatpush1.bf16.msra.mxu1 %v3088_v48  ;;  %v486_v47 = vld [vmem:[%s4344_s1 + $0x960] sm:$0xff]  ;;  %v483_v48 = vld [vmem:[%s4344_s1 + $0x948] sm:$0xff] }
  0x7b   : > { %2299 = vmatprep.subr.bf16.mxu0 %v3095_v49  ;;  %2428 = vmatprep.subr.bf16.mxu1 %v3097_v50  ;;  %v487_v49 = vld [vmem:[%s4344_s1 + $0x968] sm:$0xff]  ;;  %v3150_v50 = vcombine.low %v474_v38, %v478_v39  ;;  %v3159_v52 = vcombine.high %v482_v46, %v486_v47  ;;  %v2883_v38 = vcombine.high %v204_v32, %v208_v33 }
  0x7c   : > { %v3161_v53 = vcombine.high %v483_v48, %v487_v49  ;;  %v3160_v60 = vcombine.low %v483_v48, %v487_v49  ;;  %v220_v48 = vld [vmem:[%s4344_s1 + $0x110] sm:$0xff] }
  0x7d   : > { %v224_v49 = vld [vmem:[%s4344_s1 + $0x130] sm:$0xff] }
  0x7e   : > { %2300 = vmatpush1.bf16.msra.mxu0 %v3094_v55  ;;  %2429 = vmatpush1.bf16.msra.mxu1 %v3096_v57  ;;  %v494_v55 = vld [vmem:[%s4344_s1 + $0x9a0] sm:$0xff]  ;;  %v491_v57 = vld [vmem:[%s4344_s1 + $0x988] sm:$0xff] }
  0x7f   : > { %2301 = vmatprep.subr.bf16.mxu0 %v3103_v58  ;;  %2430 = vmatprep.subr.bf16.mxu1 %v3105_v59  ;;  %v495_v58 = vld [vmem:[%s4344_s1 + $0x9a8] sm:$0xff]  ;;  %v3158_v59 = vcombine.low %v482_v46, %v486_v47  ;;  %v3167_v61 = vcombine.high %v490_v54, %v494_v55  ;;  %v2891_v46 = vcombine.high %v212_v40, %v216_v41 }
  0x80   : > { %v3169_v62 = vcombine.high %v491_v57, %v495_v58  ;;  %v3168_v4 = vcombine.low %v491_v57, %v495_v58  ;;  %v232_v57 = vld [vmem:[%s4344_s1 + $0x170] sm:$0xff]  ;;  %v229_v58 = vld [vmem:[%s4344_s1 + $0x158] sm:$0xff] }
  0x82   : > { %2302 = vmatpush1.bf16.msra.mxu0 %v3102_v0  ;;  %2431 = vmatpush1.bf16.msra.mxu1 %v3104_v1  ;;  %v502_v0 = vld [vmem:[%s4344_s1 + $0x9e0] sm:$0xff]  ;;  %v499_v1 = vld [vmem:[%s4344_s1 + $0x9c8] sm:$0xff] }
  0x83   : > { %2303 = vmatprep.subr.bf16.mxu0 %v3111_v2  ;;  %2432 = vmatprep.subr.bf16.mxu1 %v3113_v3  ;;  %v503_v2 = vld [vmem:[%s4344_s1 + $0x9e8] sm:$0xff]  ;;  %v3166_v3 = vcombine.low %v490_v54, %v494_v55  ;;  %v3175_v5 = vcombine.high %v498_v63, %v502_v0  ;;  %v228_v55 = vld [vmem:[%s4344_s1 + $0x150] sm:$0xff] }
  0x84   : > { %v3177_v6 = vcombine.high %v499_v1, %v503_v2 }
  0x86   : > { %2304 = vmatpush1.bf16.msra.mxu0 %v3110_v8  ;;  %2433 = vmatpush1.bf16.msra.mxu1 %v3112_v9  ;;  %v507_v8 = vld [vmem:[%s4344_s1 + $0xa08] sm:$0xff]  ;;  %v3174_v9 = vcombine.low %v498_v63, %v502_v0  ;;  %v236_v0 = vld [vmem:[%s4344_s1 + $0x190] sm:$0xff] }
  0x87   : > { %2316 = vmatprep.subr.bf16.mxu0 %v3119_v10  ;;  %2445 = vmatprep.subr.bf16.mxu1 %v3121_v11  ;;  %v3176_v10 = vcombine.low %v499_v1, %v503_v2  ;;  %v3183_v11 = vcombine.high %v506_v7, %v506_v7  ;;  %v3185_v13 = vcombine.high %v507_v8, %v507_v8  ;;  %v240_v1 = vld [vmem:[%s4344_s1 + $0x1b0] sm:$0xff]  ;;  %v237_v2 = vld [vmem:[%s4344_s1 + $0x198] sm:$0xff] }
  0x89   : > { %2306 = vmatmul.mubr.bf16.vlgmr.msra.gmra.mrb[0].mxu0 %v3267_v14  ;;  %2435 = vmatmul.mubr.bf16.vlgmr.msra.gmra.mrb[0].mxu1 %v3267_v14  ;;  %v3184_v14 = vcombine.low %v507_v8, %v507_v8  ;;  %v244_v8 = vld [vmem:[%s4344_s1 + $0x1d0] sm:$0xff] }
  0x8a   : > { %2317 = vmatpush1.bf16.msra.mxu0 %v3118_v17  ;;  %2446 = vmatpush1.bf16.msra.mxu1 %v3120_v18  ;;  %v189_v17 = vld [vmem:[%s4344_s1 + $0x18] sm:$0xff] }
  0x8b   : > { %2318 = vmatprep.subr.bf16.mxu0 %v3127_v19  ;;  %2447 = vmatprep.subr.bf16.mxu1 %v3129_v20  ;;  %v193_v18 = vld [vmem:[%s4344_s1 + $0x38] sm:$0xff]  ;;  %v2207_v19 = vsel %vm2205_vm1, %v3182_v12, 0  ;;  %v2867_v20 = vcombine.high %v188_v15, %v192_v16  ;;  %v2213_v21 = vsel %vm2205_vm1, %v3184_v14, 0  ;;  %v2914_v12 = vcombine.low %v236_v0, %v240_v1 }
  0x8c   : > { %3191 = vmatprep.mubr.msk.bf16.mxu0 %vm2201_vm0, %v3272_v23  ;;  %3193 = vmatprep.mubr.msk.bf16.mxu1 %vm2201_vm0, %v3272_v23  ;;  %v2869_v22 = vcombine.high %v189_v17, %v193_v18  ;;  %v196_v23 = vld [vmem:[%s4344_s1 + $0x50] sm:$0xff] }
  0x8d   : > { %v2875_v30 = vcombine.high %v196_v23, %v200_v24 }
  0x8e   : > { %2319 = vmatpush1.bf16.msra.mxu0 %v3126_v26  ;;  %2448 = vmatpush1.bf16.msra.mxu1 %v3128_v27  ;;  %v197_v26 = vld [vmem:[%s4344_s1 + $0x58] sm:$0xff] }
  0x8f   : > { %2320 = vmatprep.subr.bf16.mxu0 %v3135_v28  ;;  %2449 = vmatprep.subr.bf16.mxu1 %v3137_v29  ;;  %v201_v27 = vld [vmem:[%s4344_s1 + $0x78] sm:$0xff]  ;;  %v2866_v28 = vcombine.low %v188_v15, %v192_v16  ;;  %v2868_v29 = vcombine.low %v189_v17, %v193_v18  ;;  %v252_v16 = vld [vmem:[%s4344_s1 + $0x210] sm:$0xff] }
  0x90   : > { %v2877_v31 = vcombine.high %v197_v26, %v201_v27  ;;  %v256_v17 = vld [vmem:[%s4344_s1 + $0x230] sm:$0xff]  ;;  %v253_v18 = vld [vmem:[%s4344_s1 + $0x218] sm:$0xff] }
  0x92   : > { %2321 = vmatpush1.bf16.msra.mxu0 %v3134_v34  ;;  %2450 = vmatpush1.bf16.msra.mxu1 %v3136_v35  ;;  %v205_v34 = vld [vmem:[%s4344_s1 + $0x98] sm:$0xff] }
  0x93   : > { %2322 = vmatprep.subr.bf16.mxu0 %v3143_v36  ;;  %2451 = vmatprep.subr.bf16.mxu1 %v3145_v37  ;;  %v209_v35 = vld [vmem:[%s4344_s1 + $0xb8] sm:$0xff]  ;;  %v2874_v36 = vcombine.low %v196_v23, %v200_v24  ;;  %v2876_v37 = vcombine.low %v197_v26, %v201_v27  ;;  %v260_v24 = vld [vmem:[%s4344_s1 + $0x250] sm:$0xff] }
  0x94   : > { %v2885_v39 = vcombine.high %v205_v34, %v209_v35  ;;  %v264_v26 = vld [vmem:[%s4344_s1 + $0x270] sm:$0xff]  ;;  %v261_v27 = vld [vmem:[%s4344_s1 + $0x258] sm:$0xff] }
  0x96   : > { %2323 = vmatpush1.bf16.msra.mxu0 %v3142_v42  ;;  %2452 = vmatpush1.bf16.msra.mxu1 %v3144_v43  ;;  %v213_v42 = vld [vmem:[%s4344_s1 + $0xd8] sm:$0xff] }
  0x97   : > { %2324 = vmatprep.subr.bf16.mxu0 %v3151_v44  ;;  %2453 = vmatprep.subr.bf16.mxu1 %v3153_v45  ;;  %v217_v43 = vld [vmem:[%s4344_s1 + $0xf8] sm:$0xff]  ;;  %v2882_v44 = vcombine.low %v204_v32, %v208_v33  ;;  %v2884_v45 = vcombine.low %v205_v34, %v209_v35  ;;  %v268_v33 = vld [vmem:[%s4344_s1 + $0x290] sm:$0xff] }
  0x98   : > { %v2893_v47 = vcombine.high %v213_v42, %v217_v43  ;;  %v272_v34 = vld [vmem:[%s4344_s1 + $0x2b0] sm:$0xff]  ;;  %v269_v35 = vld [vmem:[%s4344_s1 + $0x298] sm:$0xff] }
  0x9a   : > { %2325 = vmatpush1.bf16.msra.mxu0 %v3150_v50  ;;  %2454 = vmatpush1.bf16.msra.mxu1 %v3152_v51  ;;  %v225_v50 = vld [vmem:[%s4344_s1 + $0x138] sm:$0xff]  ;;  %v2890_v51 = vcombine.low %v212_v40, %v216_v41  ;;  %v276_v41 = vld [vmem:[%s4344_s1 + $0x2d0] sm:$0xff] }
  0x9b   : > { %2326 = vmatprep.subr.bf16.mxu0 %v3159_v52  ;;  %2455 = vmatprep.subr.bf16.mxu1 %v3161_v53  ;;  %v2892_v52 = vcombine.low %v213_v42, %v217_v43  ;;  %v2899_v53 = vcombine.high %v220_v48, %v224_v49  ;;  %v280_v42 = vld [vmem:[%s4344_s1 + $0x2f0] sm:$0xff]  ;;  %v277_v43 = vld [vmem:[%s4344_s1 + $0x2d8] sm:$0xff] }
  0x9e   : > { %2327 = vmatpush1.bf16.msra.mxu0 %v3158_v59  ;;  %2456 = vmatpush1.bf16.msra.mxu1 %v3160_v60  ;;  %v233_v59 = vld [vmem:[%s4344_s1 + $0x178] sm:$0xff]  ;;  %v2898_v60 = vcombine.low %v220_v48, %v224_v49  ;;  %v284_v49 = vld [vmem:[%s4344_s1 + $0x310] sm:$0xff] }
  0x9f   : > { %2328 = vmatprep.subr.bf16.mxu0 %v3167_v61  ;;  %2457 = vmatprep.subr.bf16.mxu1 %v3169_v62  ;;  %v2907_v62 = vcombine.high %v228_v55, %v232_v57  ;;  %v2909_v63 = vcombine.high %v229_v58, %v233_v59 }
  0xa2   : > { %2329 = vmatpush1.bf16.msra.mxu0 %v3166_v3  ;;  %2458 = vmatpush1.bf16.msra.mxu1 %v3168_v4  ;;  %v241_v3 = vld [vmem:[%s4344_s1 + $0x1b8] sm:$0xff]  ;;  %v2906_v4 = vcombine.low %v228_v55, %v232_v57  ;;  %v292_v57 = vld [vmem:[%s4344_s1 + $0x350] sm:$0xff] }
  0xa3   : > { %2330 = vmatprep.subr.bf16.mxu0 %v3175_v5  ;;  %2459 = vmatprep.subr.bf16.mxu1 %v3177_v6  ;;  %v2908_v5 = vcombine.low %v229_v58, %v233_v59  ;;  %v2915_v6 = vcombine.high %v236_v0, %v240_v1  ;;  %v2917_v7 = vcombine.high %v237_v2, %v241_v3  ;;  %v296_v58 = vld [vmem:[%s4344_s1 + $0x370] sm:$0xff]  ;;  %v293_v59 = vld [vmem:[%s4344_s1 + $0x358] sm:$0xff] }
  0xa4   : > { %v300_v1 = vld [vmem:[%s4344_s1 + $0x390] sm:$0xff] }
  0xa6   : > { %2331 = vmatpush1.bf16.msra.mxu0 %v3174_v9  ;;  %2460 = vmatpush1.bf16.msra.mxu1 %v3176_v10  ;;  %v248_v9 = vld [vmem:[%s4344_s1 + $0x1f0] sm:$0xff]  ;;  %v245_v10 = vld [vmem:[%s4344_s1 + $0x1d8] sm:$0xff] }
  0xa7   : > { %3190 = vmatprep.subr.msk.bf16.mxu0 %vm2205_vm1, %v3183_v11  ;;  %3192 = vmatprep.subr.msk.bf16.mxu1 %vm2205_vm1, %v3185_v13  ;;  %v249_v11 = vld [vmem:[%s4344_s1 + $0x1f8] sm:$0xff]  ;;  %v2916_v13 = vcombine.low %v237_v2, %v241_v3  ;;  %v2923_v14 = vcombine.high %v244_v8, %v248_v9  ;;  %v304_v2 = vld [vmem:[%s4344_s1 + $0x3b0] sm:$0xff] }
  0xa8   : > { %v2925_v15 = vcombine.high %v245_v10, %v249_v11  ;;  %v301_v3 = vld [vmem:[%s4344_s1 + $0x398] sm:$0xff] }
  0xaa   : > { %2333 = vmatpush1.bf16.msra.mxu0 %v2207_v19  ;;  %2462 = vmatpush1.bf16.msra.mxu1 %v2213_v21  ;;  %v257_v19 = vld [vmem:[%s4344_s1 + $0x238] sm:$0xff]  ;;  %v2924_v21 = vcombine.low %v245_v10, %v249_v11  ;;  %v312_v10 = vld [vmem:[%s4344_s1 + $0x3f0] sm:$0xff] }
  0xab   : > { %2488 = vmatprep.subr.bf16.mxu0 %v2867_v20  ;;  %2617 = vmatprep.subr.bf16.mxu1 %v2869_v22  ;;  %v2922_v20 = vcombine.low %v244_v8, %v248_v9  ;;  %v2931_v22 = vcombine.high %v252_v16, %v256_v17  ;;  %v2933_v23 = vcombine.high %v253_v18, %v257_v19  ;;  %v308_v9 = vld [vmem:[%s4344_s1 + $0x3d0] sm:$0xff]  ;;  %v309_v11 = vld [vmem:[%s4344_s1 + $0x3d8] sm:$0xff] }
  0xad   : > { %2349 = vmatmul.mubr.bf16.vlgmr.msra.gmra.mrb[0].mxu0 %v3847_v25  ;;  %2478 = vmatmul.mubr.bf16.vlgmr.msra.gmra.mrb[0].mxu1 %v3847_v25 }
  0xae   : > { %2489 = vmatpush1.bf16.msra.mxu0 %v2866_v28  ;;  %2618 = vmatpush1.bf16.msra.mxu1 %v2868_v29  ;;  %v265_v28 = vld [vmem:[%s4344_s1 + $0x278] sm:$0xff]  ;;  %v2930_v29 = vcombine.low %v252_v16, %v256_v17  ;;  %v316_v17 = vld [vmem:[%s4344_s1 + $0x410] sm:$0xff] }
  0xaf   : > { %2490 = vmatprep.subr.bf16.mxu0 %v2875_v30  ;;  %2619 = vmatprep.subr.bf16.mxu1 %v2877_v31  ;;  %v2932_v30 = vcombine.low %v253_v18, %v257_v19  ;;  %v2939_v31 = vcombine.high %v260_v24, %v264_v26  ;;  %v2941_v32 = vcombine.high %v261_v27, %v265_v28  ;;  %v320_v18 = vld [vmem:[%s4344_s1 + $0x430] sm:$0xff]  ;;  %v317_v19 = vld [vmem:[%s4344_s1 + $0x418] sm:$0xff] }
  0xb0   : > { %2520 = vmatprep.mubr.bf16.mxu0 %v3418_v56  ;;  %2649 = vmatprep.mubr.bf16.mxu1 %v3418_v56  ;;  %v221_v56 = vld [vmem:[%s4344_s1 + $0x118] sm:$0xff] }
  0xb1   : > { %v2901_v54 = vcombine.high %v221_v56, %v225_v50  ;;  %v2900_v61 = vcombine.low %v221_v56, %v225_v50  ;;  %v288_v56 = vld [vmem:[%s4344_s1 + $0x330] sm:$0xff]  ;;  %v285_v50 = vld [vmem:[%s4344_s1 + $0x318] sm:$0xff] }
  0xb2   : > { %2491 = vmatpush1.bf16.msra.mxu0 %v2874_v36  ;;  %2620 = vmatpush1.bf16.msra.mxu1 %v2876_v37  ;;  %v273_v36 = vld [vmem:[%s4344_s1 + $0x2b8] sm:$0xff]  ;;  %v2938_v37 = vcombine.low %v260_v24, %v264_v26  ;;  %v324_v26 = vld [vmem:[%s4344_s1 + $0x450] sm:$0xff] }
  0xb3   : > { %2492 = vmatprep.subr.bf16.mxu0 %v2883_v38  ;;  %2621 = vmatprep.subr.bf16.mxu1 %v2885_v39  ;;  %v2940_v38 = vcombine.low %v261_v27, %v265_v28  ;;  %v2947_v39 = vcombine.high %v268_v33, %v272_v34  ;;  %v2949_v40 = vcombine.high %v269_v35, %v273_v36  ;;  %v328_v27 = vld [vmem:[%s4344_s1 + $0x470] sm:$0xff]  ;;  %v325_v28 = vld [vmem:[%s4344_s1 + $0x458] sm:$0xff] }
  0xb6   : > { %2493 = vmatpush1.bf16.msra.mxu0 %v2882_v44  ;;  %2622 = vmatpush1.bf16.msra.mxu1 %v2884_v45  ;;  %v281_v44 = vld [vmem:[%s4344_s1 + $0x2f8] sm:$0xff]  ;;  %v2946_v45 = vcombine.low %v268_v33, %v272_v34  ;;  %v332_v34 = vld [vmem:[%s4344_s1 + $0x490] sm:$0xff] }
  0xb7   : > { %2494 = vmatprep.subr.bf16.mxu0 %v2891_v46  ;;  %2623 = vmatprep.subr.bf16.mxu1 %v2893_v47  ;;  %v2948_v46 = vcombine.low %v269_v35, %v273_v36  ;;  %v2955_v47 = vcombine.high %v276_v41, %v280_v42  ;;  %v2957_v48 = vcombine.high %v277_v43, %v281_v44  ;;  %v336_v35 = vld [vmem:[%s4344_s1 + $0x4b0] sm:$0xff]  ;;  %v3279_v36 = vld [vmem:[%s3409_s23] ss:$24 sps:$4 sm:$0xff]  }
  0xba   : > { %2495 = vmatpush1.bf16.msra.mxu0 %v2890_v51  ;;  %2624 = vmatpush1.bf16.msra.mxu1 %v2892_v52  ;;  %v289_v51 = vld [vmem:[%s4344_s1 + $0x338] sm:$0xff]  ;;  %v2954_v52 = vcombine.low %v276_v41, %v280_v42  ;;  %v3011_v41 = vcombine.high %v332_v34, %v336_v35 }
  0xbb   : > { %2496 = vmatprep.subr.bf16.mxu0 %v2899_v53  ;;  %2625 = vmatprep.subr.bf16.mxu1 %v2901_v54  ;;  %v2956_v53 = vcombine.low %v277_v43, %v281_v44  ;;  %v2963_v54 = vcombine.high %v284_v49, %v288_v56  ;;  %v2965_v55 = vcombine.high %v285_v50, %v289_v51  ;;  %v340_v43 = vld [vmem:[%s4344_s1 + $0x4d0] sm:$0xff] }
  0xbc   : > { %v344_v44 = vld [vmem:[%s4344_s1 + $0x4f0] sm:$0xff] }
  0xbe   : > { %2497 = vmatpush1.bf16.msra.mxu0 %v2898_v60  ;;  %2626 = vmatpush1.bf16.msra.mxu1 %v2900_v61  ;;  %v297_v60 = vld [vmem:[%s4344_s1 + $0x378] sm:$0xff]  ;;  %v2962_v61 = vcombine.low %v284_v49, %v288_v56  ;;  %v3019_v56 = vcombine.high %v340_v43, %v344_v44 }
  0xbf   : > { %2498 = vmatprep.subr.bf16.mxu0 %v2907_v62  ;;  %2627 = vmatprep.subr.bf16.mxu1 %v2909_v63  ;;  %v2964_v62 = vcombine.low %v285_v50, %v289_v51  ;;  %v2971_v63 = vcombine.high %v292_v57, %v296_v58  ;;  %v2973_v0 = vcombine.high %v293_v59, %v297_v60  ;;  %v348_v51 = vld [vmem:[%s4344_s1 + $0x510] sm:$0xff] }
  0xc2   : > { %2499 = vmatpush1.bf16.msra.mxu0 %v2906_v4  ;;  %2628 = vmatpush1.bf16.msra.mxu1 %v2908_v5  ;;  %v305_v4 = vld [vmem:[%s4344_s1 + $0x3b8] sm:$0xff]  ;;  %v2970_v5 = vcombine.low %v292_v57, %v296_v58 }
  0xc3   : > { %2500 = vmatprep.subr.bf16.mxu0 %v2915_v6  ;;  %2629 = vmatprep.subr.bf16.mxu1 %v2917_v7  ;;  %v2972_v6 = vcombine.low %v293_v59, %v297_v60  ;;  %v2979_v7 = vcombine.high %v300_v1, %v304_v2  ;;  %v2981_v8 = vcombine.high %v301_v3, %v305_v4  ;;  %v356_v60 = vld [vmem:[%s4344_s1 + $0x550] sm:$0xff] }
  0xc6   : > { %2501 = vmatpush1.bf16.msra.mxu0 %v2914_v12  ;;  %2630 = vmatpush1.bf16.msra.mxu1 %v2916_v13  ;;  %v313_v12 = vld [vmem:[%s4344_s1 + $0x3f8] sm:$0xff]  ;;  %v2978_v13 = vcombine.low %v300_v1, %v304_v2 }
  0xc7   : > { %2502 = vmatprep.subr.bf16.mxu0 %v2923_v14  ;;  %2631 = vmatprep.subr.bf16.mxu1 %v2925_v15  ;;  %v2980_v14 = vcombine.low %v301_v3, %v305_v4  ;;  %v2987_v15 = vcombine.high %v308_v9, %v312_v10  ;;  %v2989_v16 = vcombine.high %v309_v11, %v313_v12  ;;  %v364_v4 = vld [vmem:[%s4344_s1 + $0x590] sm:$0xff] }
  0xca   : > { %2503 = vmatpush1.bf16.msra.mxu0 %v2922_v20  ;;  %2632 = vmatpush1.bf16.msra.mxu1 %v2924_v21  ;;  %v321_v20 = vld [vmem:[%s4344_s1 + $0x438] sm:$0xff]  ;;  %v2986_v21 = vcombine.low %v308_v9, %v312_v10 }
  0xcb   : > { %2504 = vmatprep.subr.bf16.mxu0 %v2931_v22  ;;  %2633 = vmatprep.subr.bf16.mxu1 %v2933_v23  ;;  %v2988_v22 = vcombine.low %v309_v11, %v313_v12  ;;  %v2995_v23 = vcombine.high %v316_v17, %v320_v18  ;;  %v2997_v24 = vcombine.high %v317_v19, %v321_v20  ;;  %v372_v12 = vld [vmem:[%s4344_s1 + $0x5d0] sm:$0xff] }
  0xce   : > { %2505 = vmatpush1.bf16.msra.mxu0 %v2930_v29  ;;  %2634 = vmatpush1.bf16.msra.mxu1 %v2932_v30  ;;  %v329_v29 = vld [vmem:[%s4344_s1 + $0x478] sm:$0xff]  ;;  %v2994_v30 = vcombine.low %v316_v17, %v320_v18 }
  0xcf   : > { %2506 = vmatprep.subr.bf16.mxu0 %v2939_v31  ;;  %2635 = vmatprep.subr.bf16.mxu1 %v2941_v32  ;;  %v2996_v31 = vcombine.low %v317_v19, %v321_v20  ;;  %v3003_v32 = vcombine.high %v324_v26, %v328_v27  ;;  %v3005_v33 = vcombine.high %v325_v28, %v329_v29  ;;  %v380_v20 = vld [vmem:[%s4344_s1 + $0x610] sm:$0xff] }
  0xd2   : > { %2507 = vmatpush1.bf16.msra.mxu0 %v2938_v37  ;;  %2636 = vmatpush1.bf16.msra.mxu1 %v2940_v38  ;;  %v333_v37 = vld [vmem:[%s4344_s1 + $0x498] sm:$0xff] }
  0xd3   : > { %2508 = vmatprep.subr.bf16.mxu0 %v2947_v39  ;;  %2637 = vmatprep.subr.bf16.mxu1 %v2949_v40  ;;  %v337_v38 = vld [vmem:[%s4344_s1 + $0x4b8] sm:$0xff]  ;;  %v3002_v39 = vcombine.low %v324_v26, %v328_v27  ;;  %v3004_v40 = vcombine.low %v325_v28, %v329_v29  ;;  %v388_v29 = vld [vmem:[%s4344_s1 + $0x650] sm:$0xff] }
  0xd4   : > { %v3013_v42 = vcombine.high %v333_v37, %v337_v38  ;;  %v3012_v49 = vcombine.low %v333_v37, %v337_v38  ;;  %v396_v37 = vld [vmem:[%s4344_s1 + $0x690] sm:$0xff] }
  0xd5   : > { %v400_v38 = vld [vmem:[%s4344_s1 + $0x6b0] sm:$0xff] }
  0xd6   : > { %2509 = vmatpush1.bf16.msra.mxu0 %v2946_v45  ;;  %2638 = vmatpush1.bf16.msra.mxu1 %v2948_v46  ;;  %v3280_v45 = vld [vmem:[%s3409_s23 + $0xc] ss:$24 sps:$4 sm:$0xff]   ;;  %v341_v46 = vld [vmem:[%s4344_s1 + $0x4d8] sm:$0xff] }
  0xd7   : > { %2510 = vmatprep.subr.bf16.mxu0 %v2955_v47  ;;  %2639 = vmatprep.subr.bf16.mxu1 %v2957_v48  ;;  %v345_v47 = vld [vmem:[%s4344_s1 + $0x4f8] sm:$0xff]  ;;  %v3010_v48 = vcombine.low %v332_v34, %v336_v35 }
  0xd8   : > { %v3021_v50 = vcombine.high %v341_v46, %v345_v47  ;;  %v3020_v57 = vcombine.low %v341_v46, %v345_v47  ;;  %v408_v46 = vld [vmem:[%s4344_s1 + $0x6f0] sm:$0xff]  ;;  %v405_v47 = vld [vmem:[%s4344_s1 + $0x6d8] sm:$0xff] }
  0xda   : > { %2511 = vmatpush1.bf16.msra.mxu0 %v2954_v52  ;;  %2640 = vmatpush1.bf16.msra.mxu1 %v2956_v53  ;;  %v352_v52 = vld [vmem:[%s4344_s1 + $0x530] sm:$0xff]  ;;  %v349_v53 = vld [vmem:[%s4344_s1 + $0x518] sm:$0xff] }
  0xdb   : > { %2512 = vmatprep.subr.bf16.mxu0 %v2963_v54  ;;  %2641 = vmatprep.subr.bf16.mxu1 %v2965_v55  ;;  %v353_v54 = vld [vmem:[%s4344_s1 + $0x538] sm:$0xff]  ;;  %v3018_v55 = vcombine.low %v340_v43, %v344_v44  ;;  %v3027_v58 = vcombine.high %v348_v51, %v352_v52  ;;  %v3075_v43 = vcombine.high %v396_v37, %v400_v38 }
  0xdc   : > { %v3029_v59 = vcombine.high %v349_v53, %v353_v54  ;;  %v3028_v1 = vcombine.low %v349_v53, %v353_v54  ;;  %v416_v53 = vld [vmem:[%s4344_s1 + $0x730] sm:$0xff]  ;;  %v413_v54 = vld [vmem:[%s4344_s1 + $0x718] sm:$0xff] }
  0xde   : > { %2513 = vmatpush1.bf16.msra.mxu0 %v2962_v61  ;;  %2642 = vmatpush1.bf16.msra.mxu1 %v2964_v62  ;;  %v360_v61 = vld [vmem:[%s4344_s1 + $0x570] sm:$0xff]  ;;  %v357_v62 = vld [vmem:[%s4344_s1 + $0x558] sm:$0xff] }
  0xdf   : > { %2514 = vmatprep.subr.bf16.mxu0 %v2971_v63  ;;  %2643 = vmatprep.subr.bf16.mxu1 %v2973_v0  ;;  %v361_v63 = vld [vmem:[%s4344_s1 + $0x578] sm:$0xff]  ;;  %v3026_v0 = vcombine.low %v348_v51, %v352_v52  ;;  %v3035_v2 = vcombine.high %v356_v60, %v360_v61  ;;  %v412_v52 = vld [vmem:[%s4344_s1 + $0x710] sm:$0xff] }
  0xe0   : > { %v3037_v3 = vcombine.high %v357_v62, %v361_v63  ;;  %v3036_v9 = vcombine.low %v357_v62, %v361_v63  ;;  %v424_v62 = vld [vmem:[%s4344_s1 + $0x770] sm:$0xff]  ;;  %v421_v63 = vld [vmem:[%s4344_s1 + $0x758] sm:$0xff] }
  0xe2   : > { %2515 = vmatpush1.bf16.msra.mxu0 %v2970_v5  ;;  %2644 = vmatpush1.bf16.msra.mxu1 %v2972_v6  ;;  %v368_v5 = vld [vmem:[%s4344_s1 + $0x5b0] sm:$0xff]  ;;  %v365_v6 = vld [vmem:[%s4344_s1 + $0x598] sm:$0xff] }
  0xe3   : > { %2516 = vmatprep.subr.bf16.mxu0 %v2979_v7  ;;  %2645 = vmatprep.subr.bf16.mxu1 %v2981_v8  ;;  %v369_v7 = vld [vmem:[%s4344_s1 + $0x5b8] sm:$0xff]  ;;  %v3034_v8 = vcombine.low %v356_v60, %v360_v61  ;;  %v3043_v10 = vcombine.high %v364_v4, %v368_v5  ;;  %v420_v61 = vld [vmem:[%s4344_s1 + $0x750] sm:$0xff] }
  0xe4   : > { %v3045_v11 = vcombine.high %v365_v6, %v369_v7  ;;  %v3044_v17 = vcombine.low %v365_v6, %v369_v7  ;;  %v432_v6 = vld [vmem:[%s4344_s1 + $0x7b0] sm:$0xff]  ;;  %v429_v7 = vld [vmem:[%s4344_s1 + $0x798] sm:$0xff] }
  0xe6   : > { %2517 = vmatpush1.bf16.msra.mxu0 %v2978_v13  ;;  %2646 = vmatpush1.bf16.msra.mxu1 %v2980_v14  ;;  %v376_v13 = vld [vmem:[%s4344_s1 + $0x5f0] sm:$0xff]  ;;  %v373_v14 = vld [vmem:[%s4344_s1 + $0x5d8] sm:$0xff] }
  0xe7   : > { %2518 = vmatprep.subr.bf16.mxu0 %v2987_v15  ;;  %2647 = vmatprep.subr.bf16.mxu1 %v2989_v16  ;;  %v377_v15 = vld [vmem:[%s4344_s1 + $0x5f8] sm:$0xff]  ;;  %v3042_v16 = vcombine.low %v364_v4, %v368_v5  ;;  %v3051_v18 = vcombine.high %v372_v12, %v376_v13  ;;  %v428_v5 = vld [vmem:[%s4344_s1 + $0x790] sm:$0xff] }
  0xe8   : > { %v3053_v19 = vcombine.high %v373_v14, %v377_v15  ;;  %v3052_v26 = vcombine.low %v373_v14, %v377_v15  ;;  %v440_v14 = vld [vmem:[%s4344_s1 + $0x7f0] sm:$0xff]  ;;  %v437_v15 = vld [vmem:[%s4344_s1 + $0x7d8] sm:$0xff] }
  0xea   : > { %2519 = vmatpush1.bf16.msra.mxu0 %v2986_v21  ;;  %2648 = vmatpush1.bf16.msra.mxu1 %v2988_v22  ;;  %v384_v21 = vld [vmem:[%s4344_s1 + $0x630] sm:$0xff]  ;;  %v381_v22 = vld [vmem:[%s4344_s1 + $0x618] sm:$0xff] }
  0xeb   : > { %2531 = vmatprep.subr.bf16.mxu0 %v2995_v23  ;;  %2660 = vmatprep.subr.bf16.mxu1 %v2997_v24  ;;  %v385_v23 = vld [vmem:[%s4344_s1 + $0x638] sm:$0xff]  ;;  %v3050_v24 = vcombine.low %v372_v12, %v376_v13  ;;  %v3059_v27 = vcombine.high %v380_v20, %v384_v21  ;;  %v436_v13 = vld [vmem:[%s4344_s1 + $0x7d0] sm:$0xff] }
  0xec   : > { %v3061_v28 = vcombine.high %v381_v22, %v385_v23  ;;  %v3060_v34 = vcombine.low %v381_v22, %v385_v23  ;;  %v448_v22 = vld [vmem:[%s4344_s1 + $0x830] sm:$0xff]  ;;  %v445_v23 = vld [vmem:[%s4344_s1 + $0x818] sm:$0xff] }
  0xed   : > { %2521 = vmatmul.mubr.bf16.vlgmr.msra.gmra.mrb[4].mxu0 %v3279_v36  ;;  %2650 = vmatmul.mubr.bf16.vlgmr.msra.gmra.mrb[4].mxu1 %v3279_v36 }
  0xee   : > { %2532 = vmatpush1.bf16.msra.mxu0 %v2994_v30  ;;  %2661 = vmatpush1.bf16.msra.mxu1 %v2996_v31  ;;  %v392_v30 = vld [vmem:[%s4344_s1 + $0x670] sm:$0xff]  ;;  %v389_v31 = vld [vmem:[%s4344_s1 + $0x658] sm:$0xff] }
  0xef   : > { %2533 = vmatprep.subr.bf16.mxu0 %v3003_v32  ;;  %2662 = vmatprep.subr.bf16.mxu1 %v3005_v33  ;;  %v393_v32 = vld [vmem:[%s4344_s1 + $0x678] sm:$0xff]  ;;  %v3058_v33 = vcombine.low %v380_v20, %v384_v21  ;;  %v3067_v35 = vcombine.high %v388_v29, %v392_v30  ;;  %v444_v21 = vld [vmem:[%s4344_s1 + $0x810] sm:$0xff] }
  0xf0   : > { %2563 = vmatprep.mubr.bf16.mxu0 %v3280_v45  ;;  %2692 = vmatprep.mubr.bf16.mxu1 %v3280_v45  ;;  %v3069_v36 = vcombine.high %v389_v31, %v393_v32  ;;  %v404_v45 = vld [vmem:[%s4344_s1 + $0x6d0] sm:$0xff] }
  0xf2   : > { %2534 = vmatpush1.bf16.msra.mxu0 %v3002_v39  ;;  %2663 = vmatpush1.bf16.msra.mxu1 %v3004_v40  ;;  %v397_v39 = vld [vmem:[%s4344_s1 + $0x698] sm:$0xff] }
  0xf3   : > { %2535 = vmatprep.subr.bf16.mxu0 %v3011_v41  ;;  %2664 = vmatprep.subr.bf16.mxu1 %v3013_v42  ;;  %v401_v40 = vld [vmem:[%s4344_s1 + $0x6b8] sm:$0xff]  ;;  %v3066_v41 = vcombine.low %v388_v29, %v392_v30  ;;  %v3068_v42 = vcombine.low %v389_v31, %v393_v32  ;;  %v452_v30 = vld [vmem:[%s4344_s1 + $0x850] sm:$0xff] }
  0xf4   : > { %v3077_v44 = vcombine.high %v397_v39, %v401_v40  ;;  %v456_v31 = vld [vmem:[%s4344_s1 + $0x870] sm:$0xff]  ;;  %v453_v32 = vld [vmem:[%s4344_s1 + $0x858] sm:$0xff] }
  0xf6   : > { %2536 = vmatpush1.bf16.msra.mxu0 %v3010_v48  ;;  %2665 = vmatpush1.bf16.msra.mxu1 %v3012_v49  ;;  %v409_v48 = vld [vmem:[%s4344_s1 + $0x6f8] sm:$0xff]  ;;  %v3074_v49 = vcombine.low %v396_v37, %v400_v38  ;;  %v460_v38 = vld [vmem:[%s4344_s1 + $0x890] sm:$0xff] }
  0xf7   : > { %2537 = vmatprep.subr.bf16.mxu0 %v3019_v56  ;;  %2666 = vmatprep.subr.bf16.mxu1 %v3021_v50  ;;  %v3076_v56 = vcombine.low %v397_v39, %v401_v40  ;;  %v3083_v50 = vcombine.high %v404_v45, %v408_v46  ;;  %v3085_v51 = vcombine.high %v405_v47, %v409_v48  ;;  %v464_v39 = vld [vmem:[%s4344_s1 + $0x8b0] sm:$0xff]  ;;  %v3281_v40 = vld [vmem:[%s3409_s23 + $0x8] ss:$24 sps:$4 sm:$0xff]  }
  0xfa   : > { %2538 = vmatpush1.bf16.msra.mxu0 %v3018_v55  ;;  %2667 = vmatpush1.bf16.msra.mxu1 %v3020_v57  ;;  %v417_v55 = vld [vmem:[%s4344_s1 + $0x738] sm:$0xff]  ;;  %v3082_v57 = vcombine.low %v404_v45, %v408_v46  ;;  %v3139_v45 = vcombine.high %v460_v38, %v464_v39 }
  0xfb   : > { %2539 = vmatprep.subr.bf16.mxu0 %v3027_v58  ;;  %2668 = vmatprep.subr.bf16.mxu1 %v3029_v59  ;;  %v3084_v58 = vcombine.low %v405_v47, %v409_v48  ;;  %v3091_v59 = vcombine.high %v412_v52, %v416_v53  ;;  %v3093_v60 = vcombine.high %v413_v54, %v417_v55  ;;  %v468_v47 = vld [vmem:[%s4344_s1 + $0x8d0] sm:$0xff] }
  0xfc   : > { %v472_v48 = vld [vmem:[%s4344_s1 + $0x8f0] sm:$0xff] }
  0xfe   : > { %2540 = vmatpush1.bf16.msra.mxu0 %v3026_v0  ;;  %2669 = vmatpush1.bf16.msra.mxu1 %v3028_v1  ;;  %v425_v0 = vld [vmem:[%s4344_s1 + $0x778] sm:$0xff]  ;;  %v3090_v1 = vcombine.low %v412_v52, %v416_v53  ;;  %v3147_v53 = vcombine.high %v468_v47, %v472_v48 }
  0xff   : > { %2541 = vmatprep.subr.bf16.mxu0 %v3035_v2  ;;  %2670 = vmatprep.subr.bf16.mxu1 %v3037_v3  ;;  %v3092_v2 = vcombine.low %v413_v54, %v417_v55  ;;  %v3099_v3 = vcombine.high %v420_v61, %v424_v62  ;;  %v3101_v4 = vcombine.high %v421_v63, %v425_v0  ;;  %v476_v55 = vld [vmem:[%s4344_s1 + $0x910] sm:$0xff] }
 0x102   : > { %2542 = vmatpush1.bf16.msra.mxu0 %v3034_v8  ;;  %2671 = vmatpush1.bf16.msra.mxu1 %v3036_v9  ;;  %v433_v8 = vld [vmem:[%s4344_s1 + $0x7b8] sm:$0xff]  ;;  %v3098_v9 = vcombine.low %v420_v61, %v424_v62 }
 0x103   : > { %2543 = vmatprep.subr.bf16.mxu0 %v3043_v10  ;;  %2672 = vmatprep.subr.bf16.mxu1 %v3045_v11  ;;  %v3100_v10 = vcombine.low %v421_v63, %v425_v0  ;;  %v3107_v11 = vcombine.high %v428_v5, %v432_v6  ;;  %v3109_v12 = vcombine.high %v429_v7, %v433_v8  ;;  %v484_v0 = vld [vmem:[%s4344_s1 + $0x950] sm:$0xff] }
 0x106   : > { %2544 = vmatpush1.bf16.msra.mxu0 %v3042_v16  ;;  %2673 = vmatpush1.bf16.msra.mxu1 %v3044_v17  ;;  %v441_v16 = vld [vmem:[%s4344_s1 + $0x7f8] sm:$0xff]  ;;  %v3106_v17 = vcombine.low %v428_v5, %v432_v6 }
 0x107   : > { %2545 = vmatprep.subr.bf16.mxu0 %v3051_v18  ;;  %2674 = vmatprep.subr.bf16.mxu1 %v3053_v19  ;;  %v3108_v18 = vcombine.low %v429_v7, %v433_v8  ;;  %v3115_v19 = vcombine.high %v436_v13, %v440_v14  ;;  %v3117_v20 = vcombine.high %v437_v15, %v441_v16  ;;  %v492_v8 = vld [vmem:[%s4344_s1 + $0x990] sm:$0xff] }
 0x10a   : > { %2546 = vmatpush1.bf16.msra.mxu0 %v3050_v24  ;;  %2675 = vmatpush1.bf16.msra.mxu1 %v3052_v26  ;;  %v449_v24 = vld [vmem:[%s4344_s1 + $0x838] sm:$0xff]  ;;  %v3114_v26 = vcombine.low %v436_v13, %v440_v14 }
 0x10b   : > { %2547 = vmatprep.subr.bf16.mxu0 %v3059_v27  ;;  %2676 = vmatprep.subr.bf16.mxu1 %v3061_v28  ;;  %v3116_v27 = vcombine.low %v437_v15, %v441_v16  ;;  %v3123_v28 = vcombine.high %v444_v21, %v448_v22  ;;  %v3125_v29 = vcombine.high %v445_v23, %v449_v24  ;;  %v500_v16 = vld [vmem:[%s4344_s1 + $0x9d0] sm:$0xff] }
 0x10e   : > { %2548 = vmatpush1.bf16.msra.mxu0 %v3058_v33  ;;  %2677 = vmatpush1.bf16.msra.mxu1 %v3060_v34  ;;  %v457_v33 = vld [vmem:[%s4344_s1 + $0x878] sm:$0xff]  ;;  %v3122_v34 = vcombine.low %v444_v21, %v448_v22 }
 0x10f   : > { %2549 = vmatprep.subr.bf16.mxu0 %v3067_v35  ;;  %2678 = vmatprep.subr.bf16.mxu1 %v3069_v36  ;;  %v3124_v35 = vcombine.low %v445_v23, %v449_v24  ;;  %v3131_v36 = vcombine.high %v452_v30, %v456_v31  ;;  %v3133_v37 = vcombine.high %v453_v32, %v457_v33  ;;  %v508_v24 = vld [vmem:[%s4344_s1 + $0xa10] sm:$0xff] }
 0x112   : > { %2550 = vmatpush1.bf16.msra.mxu0 %v3066_v41  ;;  %2679 = vmatpush1.bf16.msra.mxu1 %v3068_v42  ;;  %v461_v41 = vld [vmem:[%s4344_s1 + $0x898] sm:$0xff] }
 0x113   : > { %2551 = vmatprep.subr.bf16.mxu0 %v3075_v43  ;;  %2680 = vmatprep.subr.bf16.mxu1 %v3077_v44  ;;  %v465_v42 = vld [vmem:[%s4344_s1 + $0x8b8] sm:$0xff]  ;;  %v3130_v43 = vcombine.low %v452_v30, %v456_v31  ;;  %v3132_v44 = vcombine.low %v453_v32, %v457_v33  ;;  %v3186_v30 = vcombine.low %v508_v24, %v508_v24 }
 0x114   : > { %v3141_v46 = vcombine.high %v461_v41, %v465_v42  ;;  %v3140_v52 = vcombine.low %v461_v41, %v465_v42 }
 0x115   : > { %v2219_v33 = vsel %vm2205_vm1, %v3186_v30, 0 }
 0x116   : > { %2552 = vmatpush1.bf16.msra.mxu0 %v3074_v49  ;;  %2681 = vmatpush1.bf16.msra.mxu1 %v3076_v56  ;;  %v3282_v49 = vld [vmem:[%s3409_s23 + $0x14] ss:$24 sps:$4 sm:$0xff]   ;;  %v469_v56 = vld [vmem:[%s4344_s1 + $0x8d8] sm:$0xff] }
 0x117   : > { %2553 = vmatprep.subr.bf16.mxu0 %v3083_v50  ;;  %2682 = vmatprep.subr.bf16.mxu1 %v3085_v51  ;;  %v473_v50 = vld [vmem:[%s4344_s1 + $0x8f8] sm:$0xff]  ;;  %v3138_v51 = vcombine.low %v460_v38, %v464_v39  ;;  %v510_v38 = vld [vmem:[%s4345_s2] sm:$0xff] }
 0x118   : > { %v3149_v54 = vcombine.high %v469_v56, %v473_v50  ;;  %v3148_v61 = vcombine.low %v469_v56, %v473_v50 }
 0x11a   : > { %2554 = vmatpush1.bf16.msra.mxu0 %v3082_v57  ;;  %2683 = vmatpush1.bf16.msra.mxu1 %v3084_v58  ;;  %v480_v57 = vld [vmem:[%s4344_s1 + $0x930] sm:$0xff]  ;;  %v477_v58 = vld [vmem:[%s4344_s1 + $0x918] sm:$0xff] }
 0x11b   : > { %2555 = vmatprep.subr.bf16.mxu0 %v3091_v59  ;;  %2684 = vmatprep.subr.bf16.mxu1 %v3093_v60  ;;  %v481_v59 = vld [vmem:[%s4344_s1 + $0x938] sm:$0xff]  ;;  %v3146_v60 = vcombine.low %v468_v47, %v472_v48  ;;  %v3155_v62 = vcombine.high %v476_v55, %v480_v57 }
 0x11c   : > { %v3157_v63 = vcombine.high %v477_v58, %v481_v59  ;;  %v3156_v5 = vcombine.low %v477_v58, %v481_v59 }
 0x11e   : > { %2556 = vmatpush1.bf16.msra.mxu0 %v3090_v1  ;;  %2685 = vmatpush1.bf16.msra.mxu1 %v3092_v2  ;;  %v488_v1 = vld [vmem:[%s4344_s1 + $0x970] sm:$0xff]  ;;  %v485_v2 = vld [vmem:[%s4344_s1 + $0x958] sm:$0xff] }
 0x11f   : > { %2557 = vmatprep.subr.bf16.mxu0 %v3099_v3  ;;  %2686 = vmatprep.subr.bf16.mxu1 %v3101_v4  ;;  %v489_v3 = vld [vmem:[%s4344_s1 + $0x978] sm:$0xff]  ;;  %v3154_v4 = vcombine.low %v476_v55, %v480_v57  ;;  %v3163_v6 = vcombine.high %v484_v0, %v488_v1 }
 0x120   : > { %v3165_v7 = vcombine.high %v485_v2, %v489_v3  ;;  %v3164_v13 = vcombine.low %v485_v2, %v489_v3 }
 0x122   : > { %2558 = vmatpush1.bf16.msra.mxu0 %v3098_v9  ;;  %2687 = vmatpush1.bf16.msra.mxu1 %v3100_v10  ;;  %v496_v9 = vld [vmem:[%s4344_s1 + $0x9b0] sm:$0xff]  ;;  %v493_v10 = vld [vmem:[%s4344_s1 + $0x998] sm:$0xff] }
 0x123   : > { %2559 = vmatprep.subr.bf16.mxu0 %v3107_v11  ;;  %2688 = vmatprep.subr.bf16.mxu1 %v3109_v12  ;;  %v497_v11 = vld [vmem:[%s4344_s1 + $0x9b8] sm:$0xff]  ;;  %v3162_v12 = vcombine.low %v484_v0, %v488_v1  ;;  %v3171_v14 = vcombine.high %v492_v8, %v496_v9 }
 0x124   : > { %v3173_v15 = vcombine.high %v493_v10, %v497_v11  ;;  %v3172_v21 = vcombine.low %v493_v10, %v497_v11 }
 0x126   : > { %2560 = vmatpush1.bf16.msra.mxu0 %v3106_v17  ;;  %2689 = vmatpush1.bf16.msra.mxu1 %v3108_v18  ;;  %v504_v17 = vld [vmem:[%s4344_s1 + $0x9f0] sm:$0xff]  ;;  %v501_v18 = vld [vmem:[%s4344_s1 + $0x9d8] sm:$0xff] }
 0x127   : > { %2561 = vmatprep.subr.bf16.mxu0 %v3115_v19  ;;  %2690 = vmatprep.subr.bf16.mxu1 %v3117_v20  ;;  %v505_v19 = vld [vmem:[%s4344_s1 + $0x9f8] sm:$0xff]  ;;  %v3170_v20 = vcombine.low %v492_v8, %v496_v9  ;;  %v3179_v22 = vcombine.high %v500_v16, %v504_v17 }
 0x128   : > { %v3181_v23 = vcombine.high %v501_v18, %v505_v19 }
 0x12a   : > { %2562 = vmatpush1.bf16.msra.mxu0 %v3114_v26  ;;  %2691 = vmatpush1.bf16.msra.mxu1 %v3116_v27  ;;  %v509_v26 = vld [vmem:[%s4344_s1 + $0xa18] sm:$0xff]  ;;  %v3178_v27 = vcombine.low %v500_v16, %v504_v17 }
 0x12b   : > { %2574 = vmatprep.subr.bf16.mxu0 %v3123_v28  ;;  %2703 = vmatprep.subr.bf16.mxu1 %v3125_v29  ;;  %v3180_v28 = vcombine.low %v501_v18, %v505_v19  ;;  %v3187_v29 = vcombine.high %v508_v24, %v508_v24  ;;  %v3189_v31 = vcombine.high %v509_v26, %v509_v26 }
 0x12c   : > { %v3188_v32 = vcombine.low %v509_v26, %v509_v26 }
 0x12d   : > { %2564 = vmatmul.mubr.bf16.vlgmr.msra.gmra.mrb[4].mxu0 %v3281_v40  ;;  %2693 = vmatmul.mubr.bf16.vlgmr.msra.gmra.mrb[4].mxu1 %v3281_v40 }
 0x12e   : > { %2575 = vmatpush1.bf16.msra.mxu0 %v3122_v34  ;;  %2704 = vmatpush1.bf16.msra.mxu1 %v3124_v35  ;;  %v2225_v34 = vsel %vm2205_vm1, %v3188_v32, 0  ;;  %v512_v35 = vlaneseq }
 0x12f   : > { %2576 = vmatprep.subr.bf16.mxu0 %v3131_v36  ;;  %2705 = vmatprep.subr.bf16.mxu1 %v3133_v37 }
 0x130   : > { %3195 = vmatprep.mubr.msk.bf16.mxu0 %vm2201_vm0, %v3282_v49  ;;  %3197 = vmatprep.mubr.msk.bf16.mxu1 %vm2201_vm0, %v3282_v49  ;;  %v513_v36 = vshrl.u32 %v512_v35, 7 }
 0x132   : > { %2577 = vmatpush1.bf16.msra.mxu0 %v3130_v43  ;;  %2706 = vmatpush1.bf16.msra.mxu1 %v3132_v44  ;;  %v514_v37 = vsub.s32 0, %v513_v36  ;;  %v522_v39 = vsub.s32 2, %v513_v36  ;;  %v518_v40 = vsub.s32 1, %v513_v36  ;;  %v526_v41 = vsub.s32 3, %v513_v36 }
 0x133   : > { %2578 = vmatprep.subr.bf16.mxu0 %v3139_v45  ;;  %2707 = vmatprep.subr.bf16.mxu1 %v3141_v46  ;;  %v530_v9 = vsub.s32 4, %v513_v36  ;;  %v538_v10 = vsub.s32 6, %v513_v36  ;;  %v534_v11 = vsub.s32 5, %v513_v36 }
 0x134   : > { %v515_v42 = vrot.slane %v510_v38, %v514_v37  ;;  %v523_v43 = vrot.slane %v510_v38, %v522_v39  ;;  %v519_v44 = vrot.slane %v510_v38, %v518_v40  ;;  %v527_v45 = vrot.slane %v510_v38, %v526_v41 }
 0x136   : > { %2579 = vmatpush1.bf16.msra.mxu0 %v3138_v51  ;;  %2708 = vmatpush1.bf16.msra.mxu1 %v3140_v52 }
 0x137   : > { %2580 = vmatprep.subr.bf16.mxu0 %v3147_v53  ;;  %2709 = vmatprep.subr.bf16.mxu1 %v3149_v54 }
 0x13a   : > { %2581 = vmatpush1.bf16.msra.mxu0 %v3146_v60  ;;  %2710 = vmatpush1.bf16.msra.mxu1 %v3148_v61 }
 0x13b   : > { %2582 = vmatprep.subr.bf16.mxu0 %v3155_v62  ;;  %2711 = vmatprep.subr.bf16.mxu1 %v3157_v63 }
 0x13e   : > { %2583 = vmatpush1.bf16.msra.mxu0 %v3154_v4  ;;  %2712 = vmatpush1.bf16.msra.mxu1 %v3156_v5 }
 0x13f   : > { %2584 = vmatprep.subr.bf16.mxu0 %v3163_v6  ;;  %2713 = vmatprep.subr.bf16.mxu1 %v3165_v7 }
 0x142   : > { %2585 = vmatpush1.bf16.msra.mxu0 %v3162_v12  ;;  %2714 = vmatpush1.bf16.msra.mxu1 %v3164_v13  ;;  %v542_v12 = vsub.s32 7, %v513_v36  ;;  %v531_v13 = vrot.slane %v510_v38, %v530_v9 }
 0x143   : > { %2586 = vmatprep.subr.bf16.mxu0 %v3171_v14  ;;  %2715 = vmatprep.subr.bf16.mxu1 %v3173_v15  ;;  %v539_v14 = vrot.slane %v510_v38, %v538_v10  ;;  %v535_v15 = vrot.slane %v510_v38, %v534_v11 }
 0x144   : > { %v543_v16 = vrot.slane %v510_v38, %v542_v12 }
 0x146   : > { %2587 = vmatpush1.bf16.msra.mxu0 %v3170_v20  ;;  %2716 = vmatpush1.bf16.msra.mxu1 %v3172_v21 }
 0x147   : > { %2588 = vmatprep.subr.bf16.mxu0 %v3179_v22  ;;  %2717 = vmatprep.subr.bf16.mxu1 %v3181_v23 }
 0x14a   : > { %2589 = vmatpush1.bf16.msra.mxu0 %v3178_v27  ;;  %2718 = vmatpush1.bf16.msra.mxu1 %v3180_v28 }
 0x14b   : > { %3194 = vmatprep.subr.msk.bf16.mxu0 %vm2205_vm1, %v3187_v29  ;;  %3196 = vmatprep.subr.msk.bf16.mxu1 %vm2205_vm1, %v3189_v31 }
 0x14e   : > { %2591 = vmatpush1.bf16.msra.mxu0 %v2219_v33  ;;  %2720 = vmatpush1.bf16.msra.mxu1 %v2225_v34 }
 0x151   : > { %2607 = vmatmul.mubr.bf16.vlgmr.msra.gmra.mrb[4].mxu0 %v3847_v25  ;;  %2736 = vmatmul.mubr.bf16.vlgmr.msra.gmra.mrb[4].mxu1 %v3847_v25 }
 0x180   : > { %v2350_v46 = vpop.f32.mrb[0].mxu0  ;;  %v2479_v48 = vpop.f32.mrb[0].mxu1 }
 0x181   : > { %v3205_v47 = vadd.f32 %v2350_v46, %v515_v42  ;;  %v2352_v49 = vpop.f32.mrb[1].mxu0  ;;  %v3209_v56 = vadd.f32 %v2479_v48, %v523_v43  ;;  %v2481_v50 = vpop.f32.mrb[1].mxu1 }
 0x182   : > { %v3206_v25 = vadd.f32 %v2352_v49, %v519_v44  ;;  %v2354_v51 = vpop.f32.mrb[2].mxu0  ;;  %v3210_v53 = vadd.f32 %v2481_v50, %v527_v45  ;;  %v2483_v55 = vpop.f32.mrb[2].mxu1 }
 0x183   : > { %v2746_v52 = vmax.f32 %v3205_v47, 0.0  ;;  %v3207_v54 = vadd.f32 %v2354_v51, %v515_v42  ;;  %v2356_v57 = vpop.f32.mrb[3].mxu0  ;;  %v2748_v58 = vmax.f32 %v3209_v56, 0.0  ;;  %v3211_v60 = vadd.f32 %v2483_v55, %v523_v43  ;;  %v2485_v62 = vpop.f32.mrb[3].mxu1 }
 0x184   : > { %v2747_v59 = vmax.f32 %v3206_v25, 0.0  ;;  %v3208_v61 = vadd.f32 %v2356_v57, %v519_v44  ;;  %v2749_v63 = vmax.f32 %v3210_v53, 0.0  ;;  %v3212_v1 = vadd.f32 %v2485_v62, %v527_v45 }
 0x185   : > { %v2754_v0 = vmax.f32 %v3207_v54, 0.0  ;;  %v2762_v2 = vmax.f32 %v2746_v52, %v2748_v58  ;;  %v2756_v3 = vmax.f32 %v3211_v60, 0.0 }
 0x186   : > { %v2755_v4 = vmax.f32 %v3208_v61, 0.0  ;;  %v2763_v5 = vmax.f32 %v2747_v59, %v2749_v63  ;;  %v2757_v6 = vmax.f32 %v3212_v1, 0.0 }
 0x187   : > { %v2764_v7 = vmax.f32 %v2754_v0, %v2756_v3 }
 0x188   : > { %v2765_v8 = vmax.f32 %v2755_v4, %v2757_v6 }
 0x224   : > { %v2608_v17 = vpop.f32.mrb[4].mxu0  ;;  %v2737_v19 = vpop.f32.mrb[4].mxu1 }
 0x225   : > { %v3213_v18 = vadd.f32 %v2608_v17, %v531_v13  ;;  %v2610_v20 = vpop.f32.mrb[5].mxu0  ;;  %v3217_v21 = vadd.f32 %v2737_v19, %v539_v14  ;;  %v2739_v23 = vpop.f32.mrb[5].mxu1 }
 0x226   : > { %v3214_v22 = vadd.f32 %v2610_v20, %v535_v15  ;;  %v2612_v24 = vpop.f32.mrb[6].mxu0  ;;  %v3218_v27 = vadd.f32 %v2739_v23, %v543_v16  ;;  %v2741_v29 = vpop.f32.mrb[6].mxu1 }
 0x227   : > { %v2750_v26 = vmax.f32 %v3213_v18, 0.0  ;;  %v3215_v28 = vadd.f32 %v2612_v24, %v531_v13  ;;  %v2614_v30 = vpop.f32.mrb[7].mxu0  ;;  %v2752_v31 = vmax.f32 %v3217_v21, 0.0  ;;  %v3219_v33 = vadd.f32 %v2741_v29, %v539_v14  ;;  %v2743_v35 = vpop.f32.mrb[7].mxu1 }
 0x228   : > { %v2751_v32 = vmax.f32 %v3214_v22, 0.0  ;;  %v3216_v34 = vadd.f32 %v2614_v30, %v535_v15  ;;  %v2753_v36 = vmax.f32 %v3218_v27, 0.0  ;;  %v3220_v38 = vadd.f32 %v2743_v35, %v543_v16 }
 0x229   : > { %v2758_v37 = vmax.f32 %v3215_v28, 0.0  ;;  %v2766_v39 = vmax.f32 %v2750_v26, %v2752_v31  ;;  %v2760_v40 = vmax.f32 %v3219_v33, 0.0 }
 0x22a   : > { %v2759_v41 = vmax.f32 %v3216_v34, 0.0  ;;  %v2767_v42 = vmax.f32 %v2751_v32, %v2753_v36  ;;  %v2761_v43 = vmax.f32 %v3220_v38, 0.0 }
 0x22b   : > { %v2770_v44 = vmax.f32 %v2762_v2, %v2766_v39  ;;  %v2768_v45 = vmax.f32 %v2758_v37, %v2760_v40 }
 0x22c   : > { %v2771_v46 = vmax.f32 %v2763_v5, %v2767_v42  ;;  %v2769_v47 = vmax.f32 %v2759_v41, %v2761_v43 }
 0x22d   : > { %v2772_v48 = vmax.f32 %v2764_v7, %v2768_v45 }
 0x22e   : > { %v3203_v49 = vpack.c.bf16 %v2771_v46, %v2770_v44  ;;  %v2773_v56 = vmax.f32 %v2765_v8, %v2769_v47 }
 0x230   : > { %2786 = vst [vmem:[%s177_s19] sm:$0xff] %v3203_v49  ;;  %v3204_v25 = vpack.c.bf16 %v2773_v56, %v2772_v48 }
 0x232   : > { %2787 = vst [vmem:[%s177_s19 + $0x8] sm:$0xff] %v3204_v25 }
 0x233 PF: > { %s13_s12 = sadd.s32 1, %s3289_s12  }
 0x234   : > { %p10_p4 = scmp.ge.s32.totalorder %s13_s12, 4  }
 0x236   :  { %12 = sbr.rel (!%p10_p4) target bundleno = 1 (0x1), region = 62 }

// kernel: tile.14
= control target key start
LH: loop header
LB: loop body
LE: loop exit
PB: predicated region body
PF: predicated region fallthrough
CT: control target
= control target key end

     0   :  { %s40_s0 = inlined_call_operand.vmem [shape: f32[32], index: 0, kind: input, shape index: {}]   ;;  %s41_s1 = inlined_call_operand.vmem [shape: f32[32,1,1,32], index: 1, kind: output, shape index: {}]  }
   0x1   :  { %v4_v0 = vld [vmem:[%s40_s0] ss:$0 sm:$0xff] }
   0x2   :  { %5 = vst [vmem:[%s41_s1] sm:$0xff] %v4_v0  ;;  %12 = vst [vmem:[%s41_s1 + $0x8] sm:$0xff] %v4_v0 }
   0x3   :  { %13 = vst [vmem:[%s41_s1 + $0x10] sm:$0xff] %v4_v0  ;;  %14 = vst [vmem:[%s41_s1 + $0x18] sm:$0xff] %v4_v0 }

// kernel: tile.15
= control target key start
LH: loop header
LB: loop body
LE: loop exit
PB: predicated region body
PF: predicated region fallthrough
CT: control target
= control target key end

     0   :  { %s93_s8 = smov 96   ;;  %vm3_vm0 = vcmask 261120   ;;  %s95_s15 = smov 64   ;;  %vm10_vm1 = vcmask 1048320   ;;  %vm17_vm2 = vcmask 785920   ;;  %vm24_vm3 = vcmask 523520   ;;  %s142_s0 = inlined_call_operand.vmem [shape: f32[32,1,1,32], index: 0, kind: input, shape index: {}]   ;;  %s143_s1 = inlined_call_operand.vmem [shape: f32[1,1024], index: 1, kind: output, shape index: {}]  }
   0x1   :  { %v80_v0 = vld [vmem:[%s142_s0 + $0x3] ss:$4 sm:$0xff]   ;;  %v82_v1 = vld [vmem:[%s142_s0 + $0x1] ss:$4 sm:$0xff]   ;;  %v2_v2 = vld [vmem:[%s142_s0] ss:$4 sm:$0xff]  }
   0x2   :  { %8 = vrot.lane.b32.xlu0 %v80_v0, %s93_s8  ;;  %v81_v3 = vld [vmem:[%s142_s0 + $0x2] ss:$4 sm:$0xff]   ;;  %s94_s0 = smov 32   ;;  %4 = vst.msk [vmem:[#allocation0] ss:$8 sm:$0xf] %vm3_vm0, %v2_v2  }
   0x3   :  { %22 = vrot.lane.b32.xlu1 %v82_v1, %s94_s0  ;;  %5 = vst.msk [vmem:[#allocation0] ss:$8 sm:$0xf0] %vm3_vm0, %v2_v2  }
   0x6   :  { %15 = vrot.lane.b32.xlu0 %v81_v3, %s95_s15 }
  0x74   :  { %v9_v4 = vpop.permute.xlu0 %8  }
  0x75   :  { %11 = vst.msk [vmem:[#allocation0] ss:$8 sm:$0xf] %vm10_vm1, %v9_v4   ;;  %12 = vst.msk [vmem:[#allocation0] ss:$8 sm:$0xf0] %vm10_vm1, %v9_v4   ;;  %v23_v5 = vpop.permute.xlu1 %22  }
  0x78   :  { %v16_v6 = vpop.permute.xlu0 %15  }
  0x79   :  { %18 = vst.msk [vmem:[#allocation0] ss:$8 sm:$0xf] %vm17_vm2, %v16_v6   ;;  %19 = vst.msk [vmem:[#allocation0] ss:$8 sm:$0xf0] %vm17_vm2, %v16_v6  }
  0x7a   :  { %25 = vst.msk [vmem:[#allocation0] ss:$8 sm:$0xf] %vm24_vm3, %v23_v5   ;;  %26 = vst.msk [vmem:[#allocation0] ss:$8 sm:$0xf0] %vm24_vm3, %v23_v5  }
  0x81   :  { %v30_v7 = vld [vmem:[#allocation0] sm:$0x1]  ;;  %v34_v8 = vld [vmem:[#allocation0 + $0x8] sm:$0x1]  ;;  %v39_v9 = vld [vmem:[#allocation0 + $0x10] sm:$0x1] }
  0x82   :  { %32 = vst [vmem:[%s143_s1] sm:$0x1] %v30_v7  ;;  %83 = vst [vmem:[%s143_s1 + $0x1] sm:$0x1] %v34_v8  ;;  %v45_v10 = vld [vmem:[#allocation0 + $0x18] sm:$0x1] }
  0x83   :  { %84 = vst [vmem:[%s143_s1 + $0x2] sm:$0x1] %v39_v9  ;;  %v51_v11 = vld [vmem:[#allocation0 + $0x20] sm:$0x1]  ;;  %v57_v12 = vld [vmem:[#allocation0 + $0x28] sm:$0x1] }
  0x84   :  { %85 = vst [vmem:[%s143_s1 + $0x3] sm:$0x1] %v45_v10  ;;  %86 = vst [vmem:[%s143_s1 + $0x4] sm:$0x1] %v51_v11  ;;  %v63_v13 = vld [vmem:[#allocation0 + $0x30] sm:$0x1] }
  0x85   :  { %87 = vst [vmem:[%s143_s1 + $0x5] sm:$0x1] %v57_v12  ;;  %v69_v14 = vld [vmem:[#allocation0 + $0x38] sm:$0x1]  ;;  %88 = vst [vmem:[%s143_s1 + $0x6] sm:$0x1] %v63_v13 }
  0x86   :  { %89 = vst [vmem:[%s143_s1 + $0x7] sm:$0x1] %v69_v14 }

// kernel: lzr_forward.4
= control target key start
LH: loop header
LB: loop body
LE: loop exit
PB: predicated region body
PF: predicated region fallthrough
CT: control target
= control target key end

     0   :  { %s8589_s12 = smov 0   ;;  %s11657_s0 = inlined_call_operand.vmem [shape: bf16[16,1920], index: 0, kind: input, shape index: {}]   ;;  %s11658_s1 = inlined_call_operand.vmem [shape: bf16[1920,1024], index: 1, kind: input, shape index: {}]   ;;  %s11659_s2 = inlined_call_operand.vmem [shape: f32[1,1024], index: 2, kind: input, shape index: {}]   ;;  %s11660_s3 = inlined_call_operand.vmem [shape: bf16[16,256], index: 3, kind: output, shape index: {}]  }
   0x1 LB: > { %s7425_s13 = sadd.s32 4294967295, %s8566_s12   ;;  %p7429_p0 = scmp.ge.s32.totalorder %s8566_s12, 1  ;;  %s8566_s12 = sphi %s8589_s12, %s13_s12  }
   0x2   : > { %p137_p1 = scmp.lt.s32.totalorder %s8566_s12, 3 }
   0x4   : > { %p138_p2 = pnand %p7429_p0, %p137_p1 }
   0x5   : > { %v180_v0 = vld [vmem:[%s11658_s1] sm:$0xff] (!%p138_p2)  ;;  %v181_v2 = vld [vmem:[%s11658_s1 + $0x8] sm:$0xff] (!%p138_p2)  ;;  %p161_p3 = scmp.lt.s32.totalorder (!%p138_p2), %s7425_s13, 1 }
   0x6   : > { %141 = sbr.rel (%p138_p2) target bundleno = 1193 (0x4a9), region = 32  ;;  %v184_v1 = vld [vmem:[%s11658_s1 + $0x20] sm:$0xff] (!%p138_p2)  ;;  %v185_v4 = vld [vmem:[%s11658_s1 + $0x28] sm:$0xff] (!%p138_p2) }
   0x7   : > { %v7449_v3 = vcombine.high (!%p138_p2), %v180_v0, %v184_v1  ;;  %v7448_v5 = vcombine.low (!%p138_p2), %v180_v0, %v184_v1  ;;  %v188_v6 = vld [vmem:[%s11658_s1 + $0x40] sm:$0xff] (!%p138_p2)  ;;  %v7451_v8 = vcombine.high (!%p138_p2), %v181_v2, %v185_v4  ;;  %v7450_v9 = vcombine.low (!%p138_p2), %v181_v2, %v185_v4  ;;  %v189_v11 = vld [vmem:[%s11658_s1 + $0x48] sm:$0xff] (!%p138_p2) }
   0x8   : > { %v192_v7 = vld [vmem:[%s11658_s1 + $0x60] sm:$0xff] (!%p138_p2)  ;;  %v193_v12 = vld [vmem:[%s11658_s1 + $0x68] sm:$0xff] (!%p138_p2) }
   0x9   : > { %v7457_v10 = vcombine.high (!%p138_p2), %v188_v6, %v192_v7  ;;  %v196_v13 = vld [vmem:[%s11658_s1 + $0x80] sm:$0xff] (!%p138_p2)  ;;  %6035 = vmatprep.subr.bf16.mxu0 (!%p138_p2), %v7449_v3  ;;  %v7459_v14 = vcombine.high (!%p138_p2), %v189_v11, %v193_v12  ;;  %v197_v16 = vld [vmem:[%s11658_s1 + $0x88] sm:$0xff] (!%p138_p2)  ;;  %6363 = vmatprep.subr.bf16.mxu1 (!%p138_p2), %v7451_v8  ;;  %v7456_v18 = vcombine.low (!%p138_p2), %v188_v6, %v192_v7 }
   0xa   : > { %v200_v15 = vld [vmem:[%s11658_s1 + $0xa0] sm:$0xff] (!%p138_p2)  ;;  %v201_v17 = vld [vmem:[%s11658_s1 + $0xa8] sm:$0xff] (!%p138_p2)  ;;  %6036 = vmatpush1.bf16.msra.mxu0 (!%p138_p2), %v7448_v5  ;;  %6364 = vmatpush1.bf16.msra.mxu1 (!%p138_p2), %v7450_v9  ;;  %v7458_v19 = vcombine.low (!%p138_p2), %v189_v11, %v193_v12 }
   0xb   : > { %6037 = vmatprep.subr.bf16.mxu0 (!%p138_p2), %v7457_v10  ;;  %v7465_v20 = vcombine.high (!%p138_p2), %v196_v13, %v200_v15  ;;  %6365 = vmatprep.subr.bf16.mxu1 (!%p138_p2), %v7459_v14  ;;  %v7467_v21 = vcombine.high (!%p138_p2), %v197_v16, %v201_v17  ;;  %v204_v22 = vld [vmem:[%s11658_s1 + $0xc0] sm:$0xff] (!%p138_p2)  ;;  %v205_v24 = vld [vmem:[%s11658_s1 + $0xc8] sm:$0xff] (!%p138_p2)  ;;  %v7464_v26 = vcombine.low (!%p138_p2), %v196_v13, %v200_v15 }
   0xc   : > { %v208_v23 = vld [vmem:[%s11658_s1 + $0xe0] sm:$0xff] (!%p138_p2)  ;;  %v209_v25 = vld [vmem:[%s11658_s1 + $0xe8] sm:$0xff] (!%p138_p2)  ;;  %v7466_v27 = vcombine.low (!%p138_p2), %v197_v16, %v201_v17 }
   0xd   : > { %v7473_v28 = vcombine.high %v204_v22, %v208_v23  ;;  %v7475_v29 = vcombine.high %v205_v24, %v209_v25  ;;  %v212_v30 = vld [vmem:[%s11658_s1 + $0x100] sm:$0xff]  ;;  %s11662_s13 = smov (!%p161_p3, %s7425_s13), 1  ;;  %v213_v32 = vld [vmem:[%s11658_s1 + $0x108] sm:$0xff]  ;;  %v7472_v34 = vcombine.low %v204_v22, %v208_v23  ;;  %v7474_v35 = vcombine.low %v205_v24, %v209_v25 }
   0xe   : > { %6038 = vmatpush1.bf16.msra.mxu0 %v7456_v18  ;;  %6366 = vmatpush1.bf16.msra.mxu1 %v7458_v19  ;;  %v216_v31 = vld [vmem:[%s11658_s1 + $0x120] sm:$0xff]  ;;  %v217_v33 = vld [vmem:[%s11658_s1 + $0x128] sm:$0xff]  ;;  %s8533_s6 = smul.u32 60, %s11662_s13 }
   0xf   : > { %6039 = vmatprep.subr.bf16.mxu0 %v7465_v20  ;;  %6367 = vmatprep.subr.bf16.mxu1 %v7467_v21  ;;  %v7481_v36 = vcombine.high %v212_v30, %v216_v31  ;;  %v7483_v37 = vcombine.high %v213_v32, %v217_v33  ;;  %v220_v38 = vld [vmem:[%s11658_s1 + $0x140] sm:$0xff]  ;;  %v221_v40 = vld [vmem:[%s11658_s1 + $0x148] sm:$0xff]  ;;  %v7480_v42 = vcombine.low %v212_v30, %v216_v31 }
  0x10   : > { %v224_v39 = vld [vmem:[%s11658_s1 + $0x160] sm:$0xff]  ;;  %v225_v41 = vld [vmem:[%s11658_s1 + $0x168] sm:$0xff]  ;;  %v7482_v43 = vcombine.low %v213_v32, %v217_v33  ;;  %s8685_s19 = scalar_lea.vmem %s11657_s0, %s8533_s6 }
  0x11   : > { %v7489_v44 = vcombine.high %v220_v38, %v224_v39  ;;  %v7491_v45 = vcombine.high %v221_v40, %v225_v41  ;;  %v228_v46 = vld [vmem:[%s11658_s1 + $0x180] sm:$0xff]  ;;  %v229_v48 = vld [vmem:[%s11658_s1 + $0x188] sm:$0xff]  ;;  %v7488_v50 = vcombine.low %v220_v38, %v224_v39  ;;  %v7490_v51 = vcombine.low %v221_v40, %v225_v41 }
  0x12   : > { %6040 = vmatpush1.bf16.msra.mxu0 %v7464_v26  ;;  %6368 = vmatpush1.bf16.msra.mxu1 %v7466_v27  ;;  %v232_v47 = vld [vmem:[%s11658_s1 + $0x1a0] sm:$0xff]  ;;  %v233_v49 = vld [vmem:[%s11658_s1 + $0x1a8] sm:$0xff] }
  0x13   : > { %6041 = vmatprep.subr.bf16.mxu0 %v7473_v28  ;;  %6369 = vmatprep.subr.bf16.mxu1 %v7475_v29  ;;  %v7497_v52 = vcombine.high %v228_v46, %v232_v47  ;;  %v8694_v53 = vld [vmem:[%s8685_s19] sm:$0xff]  ;;  %v7499_v54 = vcombine.high %v229_v48, %v233_v49  ;;  %v237_v58 = vld [vmem:[%s11658_s1 + $0x1c8] sm:$0xff]  ;;  %v7496_v60 = vcombine.low %v228_v46, %v232_v47 }
  0x14   : > { %v236_v55 = vld [vmem:[%s11658_s1 + $0x1c0] sm:$0xff]  ;;  %v8704_v57 = vcombine.high %v8694_v53, %v8694_v53  ;;  %v241_v59 = vld [vmem:[%s11658_s1 + $0x1e8] sm:$0xff]  ;;  %v7498_v61 = vcombine.low %v229_v48, %v233_v49 }
  0x15   : > { %v240_v56 = vld [vmem:[%s11658_s1 + $0x1e0] sm:$0xff]  ;;  %v7507_v63 = vcombine.high %v237_v58, %v241_v59  ;;  %v245_v2 = vld [vmem:[%s11658_s1 + $0x208] sm:$0xff]  ;;  %v7506_v5 = vcombine.low %v237_v58, %v241_v59 }
  0x16   : > { %6042 = vmatpush1.bf16.msra.mxu0 %v7472_v34  ;;  %6370 = vmatpush1.bf16.msra.mxu1 %v7474_v35  ;;  %v7505_v62 = vcombine.high %v236_v55, %v240_v56  ;;  %v244_v0 = vld [vmem:[%s11658_s1 + $0x200] sm:$0xff]  ;;  %v249_v3 = vld [vmem:[%s11658_s1 + $0x228] sm:$0xff]  ;;  %v7504_v4 = vcombine.low %v236_v55, %v240_v56 }
  0x17   : > { %6043 = vmatprep.subr.bf16.mxu0 %v7481_v36  ;;  %6371 = vmatprep.subr.bf16.mxu1 %v7483_v37  ;;  %v248_v1 = vld [vmem:[%s11658_s1 + $0x220] sm:$0xff]  ;;  %v7515_v7 = vcombine.high %v245_v2, %v249_v3  ;;  %v253_v10 = vld [vmem:[%s11658_s1 + $0x248] sm:$0xff]  ;;  %v7514_v13 = vcombine.low %v245_v2, %v249_v3 }
  0x18   : > { %6067 = vmatprep.mubr.bf16.mxu0 %v8704_v57  ;;  %6395 = vmatprep.mubr.bf16.mxu1 %v8704_v57  ;;  %v7513_v6 = vcombine.high %v244_v0, %v248_v1  ;;  %v252_v8 = vld [vmem:[%s11658_s1 + $0x240] sm:$0xff]  ;;  %v257_v11 = vld [vmem:[%s11658_s1 + $0x268] sm:$0xff]  ;;  %v7512_v12 = vcombine.low %v244_v0, %v248_v1 }
  0x19   : > { %v256_v9 = vld [vmem:[%s11658_s1 + $0x260] sm:$0xff]  ;;  %v7523_v15 = vcombine.high %v253_v10, %v257_v11  ;;  %v261_v18 = vld [vmem:[%s11658_s1 + $0x288] sm:$0xff]  ;;  %v7522_v21 = vcombine.low %v253_v10, %v257_v11 }
  0x1a   : > { %6044 = vmatpush1.bf16.msra.mxu0 %v7480_v42  ;;  %6372 = vmatpush1.bf16.msra.mxu1 %v7482_v43  ;;  %v7521_v14 = vcombine.high %v252_v8, %v256_v9  ;;  %v260_v16 = vld [vmem:[%s11658_s1 + $0x280] sm:$0xff]  ;;  %v265_v19 = vld [vmem:[%s11658_s1 + $0x2a8] sm:$0xff]  ;;  %v7520_v20 = vcombine.low %v252_v8, %v256_v9 }
  0x1b   : > { %6045 = vmatprep.subr.bf16.mxu0 %v7489_v44  ;;  %6373 = vmatprep.subr.bf16.mxu1 %v7491_v45  ;;  %v264_v17 = vld [vmem:[%s11658_s1 + $0x2a0] sm:$0xff]  ;;  %v7531_v23 = vcombine.high %v261_v18, %v265_v19  ;;  %v269_v26 = vld [vmem:[%s11658_s1 + $0x2c8] sm:$0xff]  ;;  %v7530_v29 = vcombine.low %v261_v18, %v265_v19 }
  0x1c   : > { %v7529_v22 = vcombine.high %v260_v16, %v264_v17  ;;  %v268_v24 = vld [vmem:[%s11658_s1 + $0x2c0] sm:$0xff]  ;;  %v273_v27 = vld [vmem:[%s11658_s1 + $0x2e8] sm:$0xff]  ;;  %v7528_v28 = vcombine.low %v260_v16, %v264_v17 }
  0x1d   : > { %v272_v25 = vld [vmem:[%s11658_s1 + $0x2e0] sm:$0xff]  ;;  %v7539_v31 = vcombine.high %v269_v26, %v273_v27  ;;  %v277_v34 = vld [vmem:[%s11658_s1 + $0x308] sm:$0xff]  ;;  %v7538_v37 = vcombine.low %v269_v26, %v273_v27 }
  0x1e   : > { %6046 = vmatpush1.bf16.msra.mxu0 %v7488_v50  ;;  %6374 = vmatpush1.bf16.msra.mxu1 %v7490_v51  ;;  %v7537_v30 = vcombine.high %v268_v24, %v272_v25  ;;  %v276_v32 = vld [vmem:[%s11658_s1 + $0x300] sm:$0xff]  ;;  %v281_v35 = vld [vmem:[%s11658_s1 + $0x328] sm:$0xff]  ;;  %v7536_v36 = vcombine.low %v268_v24, %v272_v25 }
  0x1f   : > { %6047 = vmatprep.subr.bf16.mxu0 %v7497_v52  ;;  %6375 = vmatprep.subr.bf16.mxu1 %v7499_v54  ;;  %v280_v33 = vld [vmem:[%s11658_s1 + $0x320] sm:$0xff]  ;;  %v7547_v39 = vcombine.high %v277_v34, %v281_v35  ;;  %v285_v42 = vld [vmem:[%s11658_s1 + $0x348] sm:$0xff]  ;;  %v7546_v45 = vcombine.low %v277_v34, %v281_v35 }
  0x20   : > { %v7545_v38 = vcombine.high %v276_v32, %v280_v33  ;;  %v284_v40 = vld [vmem:[%s11658_s1 + $0x340] sm:$0xff]  ;;  %v289_v43 = vld [vmem:[%s11658_s1 + $0x368] sm:$0xff]  ;;  %v7544_v44 = vcombine.low %v276_v32, %v280_v33 }
  0x21   : > { %v288_v41 = vld [vmem:[%s11658_s1 + $0x360] sm:$0xff]  ;;  %v7555_v47 = vcombine.high %v285_v42, %v289_v43  ;;  %v293_v50 = vld [vmem:[%s11658_s1 + $0x388] sm:$0xff]  ;;  %v7554_v54 = vcombine.low %v285_v42, %v289_v43 }
  0x22   : > { %6048 = vmatpush1.bf16.msra.mxu0 %v7496_v60  ;;  %6376 = vmatpush1.bf16.msra.mxu1 %v7498_v61  ;;  %v7553_v46 = vcombine.high %v284_v40, %v288_v41  ;;  %v292_v48 = vld [vmem:[%s11658_s1 + $0x380] sm:$0xff]  ;;  %v297_v51 = vld [vmem:[%s11658_s1 + $0x3a8] sm:$0xff]  ;;  %v7552_v52 = vcombine.low %v284_v40, %v288_v41 }
  0x23   : > { %6049 = vmatprep.subr.bf16.mxu0 %v7505_v62  ;;  %6377 = vmatprep.subr.bf16.mxu1 %v7507_v63  ;;  %v296_v49 = vld [vmem:[%s11658_s1 + $0x3a0] sm:$0xff]  ;;  %v7563_v56 = vcombine.high %v293_v50, %v297_v51  ;;  %v301_v60 = vld [vmem:[%s11658_s1 + $0x3c8] sm:$0xff]  ;;  %v7562_v63 = vcombine.low %v293_v50, %v297_v51 }
  0x24   : > { %v7561_v55 = vcombine.high %v292_v48, %v296_v49  ;;  %v300_v58 = vld [vmem:[%s11658_s1 + $0x3c0] sm:$0xff]  ;;  %v305_v61 = vld [vmem:[%s11658_s1 + $0x3e8] sm:$0xff]  ;;  %v7560_v62 = vcombine.low %v292_v48, %v296_v49 }
  0x25   : > { %v304_v59 = vld [vmem:[%s11658_s1 + $0x3e0] sm:$0xff]  ;;  %v7571_v1 = vcombine.high %v301_v60, %v305_v61 }
  0x26   : > { %6050 = vmatpush1.bf16.msra.mxu0 %v7504_v4  ;;  %6378 = vmatpush1.bf16.msra.mxu1 %v7506_v5  ;;  %v7569_v0 = vcombine.high %v300_v58, %v304_v59  ;;  %v308_v2 = vld [vmem:[%s11658_s1 + $0x400] sm:$0xff]  ;;  %v309_v4 = vld [vmem:[%s11658_s1 + $0x408] sm:$0xff] }
  0x27   : > { %6051 = vmatprep.subr.bf16.mxu0 %v7513_v6  ;;  %6379 = vmatprep.subr.bf16.mxu1 %v7515_v7  ;;  %v312_v3 = vld [vmem:[%s11658_s1 + $0x420] sm:$0xff]  ;;  %v313_v5 = vld [vmem:[%s11658_s1 + $0x428] sm:$0xff]  ;;  %v7568_v6 = vcombine.low %v300_v58, %v304_v59  ;;  %v7570_v7 = vcombine.low %v301_v60, %v305_v61 }
  0x28   : > { %v7577_v8 = vcombine.high %v308_v2, %v312_v3  ;;  %v7579_v9 = vcombine.high %v309_v4, %v313_v5  ;;  %v316_v10 = vld [vmem:[%s11658_s1 + $0x440] sm:$0xff]  ;;  %v7576_v16 = vcombine.low %v308_v2, %v312_v3  ;;  %v7578_v17 = vcombine.low %v309_v4, %v313_v5 }
  0x29   : > { %v320_v11 = vld [vmem:[%s11658_s1 + $0x460] sm:$0xff] }
  0x2a   : > { %6052 = vmatpush1.bf16.msra.mxu0 %v7512_v12  ;;  %6380 = vmatpush1.bf16.msra.mxu1 %v7514_v13  ;;  %v8830_v12 = vcombine.low %v8694_v53, %v8694_v53  ;;  %v317_v13 = vld [vmem:[%s11658_s1 + $0x448] sm:$0xff]  ;;  %v7585_v18 = vcombine.high %v316_v10, %v320_v11  ;;  %v324_v53 = vld [vmem:[%s11658_s1 + $0x480] sm:$0xff]  ;;  %v7584_v24 = vcombine.low %v316_v10, %v320_v11 }
  0x2b   : > { %6053 = vmatprep.subr.bf16.mxu0 %v7521_v14  ;;  %6381 = vmatprep.subr.bf16.mxu1 %v7523_v15  ;;  %v321_v14 = vld [vmem:[%s11658_s1 + $0x468] sm:$0xff] }
  0x2c   : > { %v8839_v15 = vld [vmem:[%s8685_s19 + $0x8] sm:$0xff]  ;;  %v7587_v19 = vcombine.high %v317_v13, %v321_v14  ;;  %v7586_v25 = vcombine.low %v317_v13, %v321_v14 }
  0x2e   : > { %6054 = vmatpush1.bf16.msra.mxu0 %v7520_v20  ;;  %6382 = vmatpush1.bf16.msra.mxu1 %v7522_v21  ;;  %v328_v20 = vld [vmem:[%s11658_s1 + $0x4a0] sm:$0xff]  ;;  %v8849_v21 = vcombine.high %v8839_v15, %v8839_v15 }
  0x2f   : > { %6055 = vmatprep.subr.bf16.mxu0 %v7529_v22  ;;  %6383 = vmatprep.subr.bf16.mxu1 %v7531_v23  ;;  %v325_v22 = vld [vmem:[%s11658_s1 + $0x488] sm:$0xff]  ;;  %v7593_v26 = vcombine.high %v324_v53, %v328_v20  ;;  %v7592_v32 = vcombine.low %v324_v53, %v328_v20 }
  0x30   : > { %v329_v23 = vld [vmem:[%s11658_s1 + $0x4a8] sm:$0xff] }
  0x31   : > { %v7595_v27 = vcombine.high %v325_v22, %v329_v23  ;;  %v7594_v33 = vcombine.low %v325_v22, %v329_v23 }
  0x32   : > { %6056 = vmatpush1.bf16.msra.mxu0 %v7528_v28  ;;  %6384 = vmatpush1.bf16.msra.mxu1 %v7530_v29  ;;  %v332_v28 = vld [vmem:[%s11658_s1 + $0x4c0] sm:$0xff] }
  0x33   : > { %6057 = vmatprep.subr.bf16.mxu0 %v7537_v30  ;;  %6385 = vmatprep.subr.bf16.mxu1 %v7539_v31  ;;  %v336_v29 = vld [vmem:[%s11658_s1 + $0x4e0] sm:$0xff]  ;;  %v333_v30 = vld [vmem:[%s11658_s1 + $0x4c8] sm:$0xff] }
  0x34   : > { %v337_v31 = vld [vmem:[%s11658_s1 + $0x4e8] sm:$0xff]  ;;  %v7601_v34 = vcombine.high %v332_v28, %v336_v29  ;;  %v7600_v40 = vcombine.low %v332_v28, %v336_v29 }
  0x35   : > { %v7603_v35 = vcombine.high %v333_v30, %v337_v31  ;;  %v7602_v41 = vcombine.low %v333_v30, %v337_v31 }
  0x36   : > { %6058 = vmatpush1.bf16.msra.mxu0 %v7536_v36  ;;  %6386 = vmatpush1.bf16.msra.mxu1 %v7538_v37  ;;  %v340_v36 = vld [vmem:[%s11658_s1 + $0x500] sm:$0xff] }
  0x37   : > { %6059 = vmatprep.subr.bf16.mxu0 %v7545_v38  ;;  %6387 = vmatprep.subr.bf16.mxu1 %v7547_v39  ;;  %v344_v37 = vld [vmem:[%s11658_s1 + $0x520] sm:$0xff]  ;;  %v341_v38 = vld [vmem:[%s11658_s1 + $0x508] sm:$0xff] }
  0x38   : > { %v345_v39 = vld [vmem:[%s11658_s1 + $0x528] sm:$0xff]  ;;  %v7609_v42 = vcombine.high %v340_v36, %v344_v37  ;;  %v7608_v48 = vcombine.low %v340_v36, %v344_v37 }
  0x39   : > { %v7611_v43 = vcombine.high %v341_v38, %v345_v39  ;;  %v7610_v49 = vcombine.low %v341_v38, %v345_v39 }
  0x3a   : > { %6060 = vmatpush1.bf16.msra.mxu0 %v7544_v44  ;;  %6388 = vmatpush1.bf16.msra.mxu1 %v7546_v45  ;;  %v348_v44 = vld [vmem:[%s11658_s1 + $0x540] sm:$0xff] }
  0x3b   : > { %6061 = vmatprep.subr.bf16.mxu0 %v7553_v46  ;;  %6389 = vmatprep.subr.bf16.mxu1 %v7555_v47  ;;  %v352_v45 = vld [vmem:[%s11658_s1 + $0x560] sm:$0xff]  ;;  %v349_v46 = vld [vmem:[%s11658_s1 + $0x548] sm:$0xff] }
  0x3c   : > { %v353_v47 = vld [vmem:[%s11658_s1 + $0x568] sm:$0xff]  ;;  %v7617_v50 = vcombine.high %v348_v44, %v352_v45  ;;  %v7616_v58 = vcombine.low %v348_v44, %v352_v45 }
  0x3d   : > { %v7619_v51 = vcombine.high %v349_v46, %v353_v47  ;;  %v7618_v59 = vcombine.low %v349_v46, %v353_v47 }
  0x3e   : > { %6062 = vmatpush1.bf16.msra.mxu0 %v7552_v52  ;;  %6390 = vmatpush1.bf16.msra.mxu1 %v7554_v54  ;;  %v356_v52 = vld [vmem:[%s11658_s1 + $0x580] sm:$0xff] }
  0x3f   : > { %6063 = vmatprep.subr.bf16.mxu0 %v7561_v55  ;;  %6391 = vmatprep.subr.bf16.mxu1 %v7563_v56  ;;  %v360_v54 = vld [vmem:[%s11658_s1 + $0x5a0] sm:$0xff]  ;;  %v357_v55 = vld [vmem:[%s11658_s1 + $0x588] sm:$0xff] }
  0x40   : > { %v361_v56 = vld [vmem:[%s11658_s1 + $0x5a8] sm:$0xff]  ;;  %v7625_v60 = vcombine.high %v356_v52, %v360_v54  ;;  %v7624_v2 = vcombine.low %v356_v52, %v360_v54 }
  0x41   : > { %v7627_v61 = vcombine.high %v357_v55, %v361_v56  ;;  %v7626_v3 = vcombine.low %v357_v55, %v361_v56 }
  0x42   : > { %6064 = vmatpush1.bf16.msra.mxu0 %v7560_v62  ;;  %6392 = vmatpush1.bf16.msra.mxu1 %v7562_v63  ;;  %v364_v62 = vld [vmem:[%s11658_s1 + $0x5c0] sm:$0xff] }
  0x43   : > { %6065 = vmatprep.subr.bf16.mxu0 %v7569_v0  ;;  %6393 = vmatprep.subr.bf16.mxu1 %v7571_v1  ;;  %v368_v63 = vld [vmem:[%s11658_s1 + $0x5e0] sm:$0xff]  ;;  %v365_v0 = vld [vmem:[%s11658_s1 + $0x5c8] sm:$0xff] }
  0x44   : > { %v369_v1 = vld [vmem:[%s11658_s1 + $0x5e8] sm:$0xff]  ;;  %v7633_v4 = vcombine.high %v364_v62, %v368_v63  ;;  %v7632_v10 = vcombine.low %v364_v62, %v368_v63 }
  0x45   : > { %v7635_v5 = vcombine.high %v365_v0, %v369_v1  ;;  %v7634_v11 = vcombine.low %v365_v0, %v369_v1 }
  0x46   : > { %6066 = vmatpush1.bf16.msra.mxu0 %v7568_v6  ;;  %6394 = vmatpush1.bf16.msra.mxu1 %v7570_v7  ;;  %v372_v6 = vld [vmem:[%s11658_s1 + $0x600] sm:$0xff] }
  0x47   : > { %6076 = vmatprep.subr.bf16.mxu0 %v7577_v8  ;;  %6404 = vmatprep.subr.bf16.mxu1 %v7579_v9  ;;  %v376_v7 = vld [vmem:[%s11658_s1 + $0x620] sm:$0xff]  ;;  %v373_v8 = vld [vmem:[%s11658_s1 + $0x608] sm:$0xff] }
  0x48   : > { %v377_v9 = vld [vmem:[%s11658_s1 + $0x628] sm:$0xff]  ;;  %v7641_v13 = vcombine.high %v372_v6, %v376_v7  ;;  %v7640_v53 = vcombine.low %v372_v6, %v376_v7 }
  0x49   : > { %6068 = vmatmul.mubr.bf16.vlgmr.msra.gmra.mrb[0].mxu0 %v8830_v12  ;;  %6396 = vmatmul.mubr.bf16.vlgmr.msra.gmra.mrb[0].mxu1 %v8830_v12  ;;  %v7643_v14 = vcombine.high %v373_v8, %v377_v9  ;;  %v7642_v20 = vcombine.low %v373_v8, %v377_v9 }
  0x4a   : > { %6077 = vmatpush1.bf16.msra.mxu0 %v7576_v16  ;;  %6405 = vmatpush1.bf16.msra.mxu1 %v7578_v17  ;;  %v380_v16 = vld [vmem:[%s11658_s1 + $0x640] sm:$0xff] }
  0x4b   : > { %6078 = vmatprep.subr.bf16.mxu0 %v7585_v18  ;;  %6406 = vmatprep.subr.bf16.mxu1 %v7587_v19  ;;  %v384_v17 = vld [vmem:[%s11658_s1 + $0x660] sm:$0xff]  ;;  %v381_v18 = vld [vmem:[%s11658_s1 + $0x648] sm:$0xff] }
  0x4c   : > { %6108 = vmatprep.mubr.bf16.mxu0 %v8849_v21  ;;  %6436 = vmatprep.mubr.bf16.mxu1 %v8849_v21  ;;  %v385_v19 = vld [vmem:[%s11658_s1 + $0x668] sm:$0xff]  ;;  %v7649_v22 = vcombine.high %v380_v16, %v384_v17  ;;  %v7648_v28 = vcombine.low %v380_v16, %v384_v17 }
  0x4d   : > { %v7651_v23 = vcombine.high %v381_v18, %v385_v19  ;;  %v7650_v29 = vcombine.low %v381_v18, %v385_v19 }
  0x4e   : > { %6079 = vmatpush1.bf16.msra.mxu0 %v7584_v24  ;;  %6407 = vmatpush1.bf16.msra.mxu1 %v7586_v25  ;;  %v388_v24 = vld [vmem:[%s11658_s1 + $0x680] sm:$0xff] }
  0x4f   : > { %6080 = vmatprep.subr.bf16.mxu0 %v7593_v26  ;;  %6408 = vmatprep.subr.bf16.mxu1 %v7595_v27  ;;  %v392_v25 = vld [vmem:[%s11658_s1 + $0x6a0] sm:$0xff]  ;;  %v389_v26 = vld [vmem:[%s11658_s1 + $0x688] sm:$0xff] }
  0x50   : > { %v393_v27 = vld [vmem:[%s11658_s1 + $0x6a8] sm:$0xff]  ;;  %v7657_v30 = vcombine.high %v388_v24, %v392_v25  ;;  %v7656_v36 = vcombine.low %v388_v24, %v392_v25  ;;  %v9046_v25 = vld [vmem:[%s8685_s19 + $0x10] sm:$0xff] }
  0x51   : > { %v7659_v31 = vcombine.high %v389_v26, %v393_v27  ;;  %v7658_v37 = vcombine.low %v389_v26, %v393_v27  ;;  %v449_v24 = vld [vmem:[%s11658_s1 + $0x868] sm:$0xff] }
  0x52   : > { %6081 = vmatpush1.bf16.msra.mxu0 %v7592_v32  ;;  %6409 = vmatpush1.bf16.msra.mxu1 %v7594_v33  ;;  %v396_v32 = vld [vmem:[%s11658_s1 + $0x6c0] sm:$0xff] }
  0x53   : > { %6082 = vmatprep.subr.bf16.mxu0 %v7601_v34  ;;  %6410 = vmatprep.subr.bf16.mxu1 %v7603_v35  ;;  %v400_v33 = vld [vmem:[%s11658_s1 + $0x6e0] sm:$0xff]  ;;  %v397_v34 = vld [vmem:[%s11658_s1 + $0x6c8] sm:$0xff] }
  0x54   : > { %v401_v35 = vld [vmem:[%s11658_s1 + $0x6e8] sm:$0xff]  ;;  %v7665_v38 = vcombine.high %v396_v32, %v400_v33  ;;  %v7664_v44 = vcombine.low %v396_v32, %v400_v33 }
  0x55   : > { %v7667_v39 = vcombine.high %v397_v34, %v401_v35  ;;  %v7666_v45 = vcombine.low %v397_v34, %v401_v35  ;;  %v453_v32 = vld [vmem:[%s11658_s1 + $0x888] sm:$0xff] }
  0x56   : > { %6083 = vmatpush1.bf16.msra.mxu0 %v7600_v40  ;;  %6411 = vmatpush1.bf16.msra.mxu1 %v7602_v41  ;;  %v404_v40 = vld [vmem:[%s11658_s1 + $0x700] sm:$0xff]  ;;  %v457_v33 = vld [vmem:[%s11658_s1 + $0x8a8] sm:$0xff] }
  0x57   : > { %6084 = vmatprep.subr.bf16.mxu0 %v7609_v42  ;;  %6412 = vmatprep.subr.bf16.mxu1 %v7611_v43  ;;  %v408_v41 = vld [vmem:[%s11658_s1 + $0x720] sm:$0xff]  ;;  %v405_v42 = vld [vmem:[%s11658_s1 + $0x708] sm:$0xff] }
  0x58   : > { %v409_v43 = vld [vmem:[%s11658_s1 + $0x728] sm:$0xff]  ;;  %v7673_v46 = vcombine.high %v404_v40, %v408_v41  ;;  %v7672_v52 = vcombine.low %v404_v40, %v408_v41 }
  0x59   : > { %v7675_v47 = vcombine.high %v405_v42, %v409_v43  ;;  %v7674_v54 = vcombine.low %v405_v42, %v409_v43  ;;  %v461_v40 = vld [vmem:[%s11658_s1 + $0x8c8] sm:$0xff]  ;;  %v7722_v43 = vcombine.low %v453_v32, %v457_v33 }
  0x5a   : > { %6085 = vmatpush1.bf16.msra.mxu0 %v7608_v48  ;;  %6413 = vmatpush1.bf16.msra.mxu1 %v7610_v49  ;;  %v412_v48 = vld [vmem:[%s11658_s1 + $0x740] sm:$0xff]  ;;  %v465_v41 = vld [vmem:[%s11658_s1 + $0x8e8] sm:$0xff] }
  0x5b   : > { %6086 = vmatprep.subr.bf16.mxu0 %v7617_v50  ;;  %6414 = vmatprep.subr.bf16.mxu1 %v7619_v51  ;;  %v416_v49 = vld [vmem:[%s11658_s1 + $0x760] sm:$0xff]  ;;  %v413_v50 = vld [vmem:[%s11658_s1 + $0x748] sm:$0xff] }
  0x5c   : > { %v417_v51 = vld [vmem:[%s11658_s1 + $0x768] sm:$0xff]  ;;  %v7681_v55 = vcombine.high %v412_v48, %v416_v49  ;;  %v7680_v62 = vcombine.low %v412_v48, %v416_v49 }
  0x5d   : > { %v7683_v56 = vcombine.high %v413_v50, %v417_v51  ;;  %v7682_v63 = vcombine.low %v413_v50, %v417_v51  ;;  %v469_v48 = vld [vmem:[%s11658_s1 + $0x908] sm:$0xff]  ;;  %v7730_v51 = vcombine.low %v461_v40, %v465_v41 }
  0x5e   : > { %6087 = vmatpush1.bf16.msra.mxu0 %v7616_v58  ;;  %6415 = vmatpush1.bf16.msra.mxu1 %v7618_v59  ;;  %v420_v58 = vld [vmem:[%s11658_s1 + $0x780] sm:$0xff]  ;;  %v473_v49 = vld [vmem:[%s11658_s1 + $0x928] sm:$0xff] }
  0x5f   : > { %6088 = vmatprep.subr.bf16.mxu0 %v7625_v60  ;;  %6416 = vmatprep.subr.bf16.mxu1 %v7627_v61  ;;  %v424_v59 = vld [vmem:[%s11658_s1 + $0x7a0] sm:$0xff]  ;;  %v421_v60 = vld [vmem:[%s11658_s1 + $0x788] sm:$0xff] }
  0x60   : > { %v425_v61 = vld [vmem:[%s11658_s1 + $0x7a8] sm:$0xff]  ;;  %v7689_v0 = vcombine.high %v420_v58, %v424_v59  ;;  %v7688_v6 = vcombine.low %v420_v58, %v424_v59 }
  0x61   : > { %v7691_v1 = vcombine.high %v421_v60, %v425_v61  ;;  %v7690_v7 = vcombine.low %v421_v60, %v425_v61  ;;  %v477_v58 = vld [vmem:[%s11658_s1 + $0x948] sm:$0xff]  ;;  %v7738_v61 = vcombine.low %v469_v48, %v473_v49 }
  0x62   : > { %6089 = vmatpush1.bf16.msra.mxu0 %v7624_v2  ;;  %6417 = vmatpush1.bf16.msra.mxu1 %v7626_v3  ;;  %v428_v2 = vld [vmem:[%s11658_s1 + $0x7c0] sm:$0xff]  ;;  %v481_v59 = vld [vmem:[%s11658_s1 + $0x968] sm:$0xff] }
  0x63   : > { %6090 = vmatprep.subr.bf16.mxu0 %v7633_v4  ;;  %6418 = vmatprep.subr.bf16.mxu1 %v7635_v5  ;;  %v432_v3 = vld [vmem:[%s11658_s1 + $0x7e0] sm:$0xff]  ;;  %v429_v4 = vld [vmem:[%s11658_s1 + $0x7c8] sm:$0xff] }
  0x64   : > { %v433_v5 = vld [vmem:[%s11658_s1 + $0x7e8] sm:$0xff]  ;;  %v7697_v8 = vcombine.high %v428_v2, %v432_v3  ;;  %v7696_v16 = vcombine.low %v428_v2, %v432_v3 }
  0x65   : > { %v7699_v9 = vcombine.high %v429_v4, %v433_v5  ;;  %v7698_v17 = vcombine.low %v429_v4, %v433_v5  ;;  %v485_v2 = vld [vmem:[%s11658_s1 + $0x988] sm:$0xff]  ;;  %v7746_v5 = vcombine.low %v477_v58, %v481_v59 }
  0x66   : > { %6091 = vmatpush1.bf16.msra.mxu0 %v7632_v10  ;;  %6419 = vmatpush1.bf16.msra.mxu1 %v7634_v11  ;;  %v436_v10 = vld [vmem:[%s11658_s1 + $0x800] sm:$0xff]  ;;  %v489_v3 = vld [vmem:[%s11658_s1 + $0x9a8] sm:$0xff] }
  0x67   : > { %6092 = vmatprep.subr.bf16.mxu0 %v7641_v13  ;;  %6420 = vmatprep.subr.bf16.mxu1 %v7643_v14  ;;  %v440_v11 = vld [vmem:[%s11658_s1 + $0x820] sm:$0xff]  ;;  %v437_v13 = vld [vmem:[%s11658_s1 + $0x808] sm:$0xff] }
  0x68   : > { %v441_v14 = vld [vmem:[%s11658_s1 + $0x828] sm:$0xff]  ;;  %v7705_v18 = vcombine.high %v436_v10, %v440_v11  ;;  %v7704_v26 = vcombine.low %v436_v10, %v440_v11 }
  0x69   : > { %v7707_v19 = vcombine.high %v437_v13, %v441_v14  ;;  %v7706_v27 = vcombine.low %v437_v13, %v441_v14  ;;  %v493_v10 = vld [vmem:[%s11658_s1 + $0x9c8] sm:$0xff]  ;;  %v7754_v14 = vcombine.low %v485_v2, %v489_v3 }
  0x6a   : > { %6093 = vmatpush1.bf16.msra.mxu0 %v7640_v53  ;;  %6421 = vmatpush1.bf16.msra.mxu1 %v7642_v20  ;;  %v444_v53 = vld [vmem:[%s11658_s1 + $0x840] sm:$0xff]  ;;  %v497_v11 = vld [vmem:[%s11658_s1 + $0x9e8] sm:$0xff] }
  0x6b   : > { %6094 = vmatprep.subr.bf16.mxu0 %v7649_v22  ;;  %6422 = vmatprep.subr.bf16.mxu1 %v7651_v23  ;;  %v448_v20 = vld [vmem:[%s11658_s1 + $0x860] sm:$0xff]  ;;  %v9037_v22 = vcombine.low %v8839_v15, %v8839_v15  ;;  %v445_v23 = vld [vmem:[%s11658_s1 + $0x848] sm:$0xff] }
  0x6c   : > { %v452_v15 = vld [vmem:[%s11658_s1 + $0x880] sm:$0xff]  ;;  %v7712_v34 = vcombine.low %v444_v53, %v448_v20  ;;  %v7714_v35 = vcombine.low %v445_v23, %v449_v24 }
  0x6e   : > { %6095 = vmatpush1.bf16.msra.mxu0 %v7648_v28  ;;  %6423 = vmatpush1.bf16.msra.mxu1 %v7650_v29  ;;  %v7713_v28 = vcombine.high %v444_v53, %v448_v20  ;;  %v7715_v29 = vcombine.high %v445_v23, %v449_v24  ;;  %v501_v53 = vld [vmem:[%s11658_s1 + $0xa08] sm:$0xff]  ;;  %v7762_v24 = vcombine.low %v493_v10, %v497_v11 }
  0x6f   : > { %6096 = vmatprep.subr.bf16.mxu0 %v7657_v30  ;;  %6424 = vmatprep.subr.bf16.mxu1 %v7659_v31  ;;  %v456_v30 = vld [vmem:[%s11658_s1 + $0x8a0] sm:$0xff]  ;;  %v9056_v31 = vcombine.high %v9046_v25, %v9046_v25  ;;  %v505_v20 = vld [vmem:[%s11658_s1 + $0xa28] sm:$0xff] }
  0x70   : > { %v7720_v42 = vcombine.low %v452_v15, %v456_v30 }
  0x72   : > { %6097 = vmatpush1.bf16.msra.mxu0 %v7656_v36  ;;  %6425 = vmatpush1.bf16.msra.mxu1 %v7658_v37  ;;  %v7721_v36 = vcombine.high %v452_v15, %v456_v30  ;;  %v7723_v37 = vcombine.high %v453_v32, %v457_v33  ;;  %v509_v15 = vld [vmem:[%s11658_s1 + $0xa48] sm:$0xff]  ;;  %v7770_v33 = vcombine.low %v501_v53, %v505_v20 }
  0x73   : > { %6098 = vmatprep.subr.bf16.mxu0 %v7665_v38  ;;  %6426 = vmatprep.subr.bf16.mxu1 %v7667_v39  ;;  %v460_v38 = vld [vmem:[%s11658_s1 + $0x8c0] sm:$0xff]  ;;  %v513_v30 = vld [vmem:[%s11658_s1 + $0xa68] sm:$0xff] }
  0x74   : > { %v464_v39 = vld [vmem:[%s11658_s1 + $0x8e0] sm:$0xff] }
  0x75   : > { %v7728_v50 = vcombine.low %v460_v38, %v464_v39 }
  0x76   : > { %6099 = vmatpush1.bf16.msra.mxu0 %v7664_v44  ;;  %6427 = vmatpush1.bf16.msra.mxu1 %v7666_v45  ;;  %v7729_v44 = vcombine.high %v460_v38, %v464_v39  ;;  %v7731_v45 = vcombine.high %v461_v40, %v465_v41  ;;  %v517_v38 = vld [vmem:[%s11658_s1 + $0xa88] sm:$0xff]  ;;  %v7778_v41 = vcombine.low %v509_v15, %v513_v30 }
  0x77   : > { %6100 = vmatprep.subr.bf16.mxu0 %v7673_v46  ;;  %6428 = vmatprep.subr.bf16.mxu1 %v7675_v47  ;;  %v468_v46 = vld [vmem:[%s11658_s1 + $0x900] sm:$0xff]  ;;  %v521_v39 = vld [vmem:[%s11658_s1 + $0xaa8] sm:$0xff] }
  0x78   : > { %v472_v47 = vld [vmem:[%s11658_s1 + $0x920] sm:$0xff] }
  0x79   : > { %v7736_v60 = vcombine.low %v468_v46, %v472_v47 }
  0x7a   : > { %6101 = vmatpush1.bf16.msra.mxu0 %v7672_v52  ;;  %6429 = vmatpush1.bf16.msra.mxu1 %v7674_v54  ;;  %v7737_v52 = vcombine.high %v468_v46, %v472_v47  ;;  %v7739_v54 = vcombine.high %v469_v48, %v473_v49  ;;  %v525_v46 = vld [vmem:[%s11658_s1 + $0xac8] sm:$0xff]  ;;  %v7786_v49 = vcombine.low %v517_v38, %v521_v39 }
  0x7b   : > { %6102 = vmatprep.subr.bf16.mxu0 %v7681_v55  ;;  %6430 = vmatprep.subr.bf16.mxu1 %v7683_v56  ;;  %v476_v55 = vld [vmem:[%s11658_s1 + $0x940] sm:$0xff]  ;;  %v529_v47 = vld [vmem:[%s11658_s1 + $0xae8] sm:$0xff] }
  0x7c   : > { %v480_v56 = vld [vmem:[%s11658_s1 + $0x960] sm:$0xff] }
  0x7d   : > { %v7744_v4 = vcombine.low %v476_v55, %v480_v56 }
  0x7e   : > { %6103 = vmatpush1.bf16.msra.mxu0 %v7680_v62  ;;  %6431 = vmatpush1.bf16.msra.mxu1 %v7682_v63  ;;  %v7745_v62 = vcombine.high %v476_v55, %v480_v56  ;;  %v7747_v63 = vcombine.high %v477_v58, %v481_v59  ;;  %v533_v55 = vld [vmem:[%s11658_s1 + $0xb08] sm:$0xff]  ;;  %v7794_v59 = vcombine.low %v525_v46, %v529_v47 }
  0x7f   : > { %6104 = vmatprep.subr.bf16.mxu0 %v7689_v0  ;;  %6432 = vmatprep.subr.bf16.mxu1 %v7691_v1  ;;  %v484_v0 = vld [vmem:[%s11658_s1 + $0x980] sm:$0xff]  ;;  %v537_v56 = vld [vmem:[%s11658_s1 + $0xb28] sm:$0xff] }
  0x80   : > { %v488_v1 = vld [vmem:[%s11658_s1 + $0x9a0] sm:$0xff] }
  0x81   : > { %v7752_v13 = vcombine.low %v484_v0, %v488_v1 }
  0x82   : > { %6105 = vmatpush1.bf16.msra.mxu0 %v7688_v6  ;;  %6433 = vmatpush1.bf16.msra.mxu1 %v7690_v7  ;;  %v7753_v6 = vcombine.high %v484_v0, %v488_v1  ;;  %v7755_v7 = vcombine.high %v485_v2, %v489_v3  ;;  %v541_v0 = vld [vmem:[%s11658_s1 + $0xb48] sm:$0xff]  ;;  %v7802_v3 = vcombine.low %v533_v55, %v537_v56 }
  0x83   : > { %6106 = vmatprep.subr.bf16.mxu0 %v7697_v8  ;;  %6434 = vmatprep.subr.bf16.mxu1 %v7699_v9  ;;  %v492_v8 = vld [vmem:[%s11658_s1 + $0x9c0] sm:$0xff]  ;;  %v545_v1 = vld [vmem:[%s11658_s1 + $0xb68] sm:$0xff] }
  0x84   : > { %v496_v9 = vld [vmem:[%s11658_s1 + $0x9e0] sm:$0xff] }
  0x85   : > { %v7760_v23 = vcombine.low %v492_v8, %v496_v9 }
  0x86   : > { %6107 = vmatpush1.bf16.msra.mxu0 %v7696_v16  ;;  %6435 = vmatpush1.bf16.msra.mxu1 %v7698_v17  ;;  %v7761_v16 = vcombine.high %v492_v8, %v496_v9  ;;  %v7763_v17 = vcombine.high %v493_v10, %v497_v11  ;;  %v549_v8 = vld [vmem:[%s11658_s1 + $0xb88] sm:$0xff]  ;;  %v7810_v11 = vcombine.low %v541_v0, %v545_v1 }
  0x87   : > { %6117 = vmatprep.subr.bf16.mxu0 %v7705_v18  ;;  %6445 = vmatprep.subr.bf16.mxu1 %v7707_v19  ;;  %v500_v18 = vld [vmem:[%s11658_s1 + $0xa00] sm:$0xff]  ;;  %v553_v9 = vld [vmem:[%s11658_s1 + $0xba8] sm:$0xff] }
  0x88   : > { %v504_v19 = vld [vmem:[%s11658_s1 + $0xa20] sm:$0xff] }
  0x89   : > { %6109 = vmatmul.mubr.bf16.vlgmr.msra.gmra.mrb[0].mxu0 %v9037_v22  ;;  %6437 = vmatmul.mubr.bf16.vlgmr.msra.gmra.mrb[0].mxu1 %v9037_v22  ;;  %v7768_v32 = vcombine.low %v500_v18, %v504_v19 }
  0x8a   : > { %6118 = vmatpush1.bf16.msra.mxu0 %v7704_v26  ;;  %6446 = vmatpush1.bf16.msra.mxu1 %v7706_v27  ;;  %v7769_v26 = vcombine.high %v500_v18, %v504_v19  ;;  %v7771_v27 = vcombine.high %v501_v53, %v505_v20  ;;  %v557_v18 = vld [vmem:[%s11658_s1 + $0xbc8] sm:$0xff]  ;;  %v7818_v20 = vcombine.low %v549_v8, %v553_v9 }
  0x8b   : > { %6119 = vmatprep.subr.bf16.mxu0 %v7713_v28  ;;  %6447 = vmatprep.subr.bf16.mxu1 %v7715_v29  ;;  %v508_v28 = vld [vmem:[%s11658_s1 + $0xa40] sm:$0xff]  ;;  %v561_v19 = vld [vmem:[%s11658_s1 + $0xbe8] sm:$0xff] }
  0x8c   : > { %6149 = vmatprep.mubr.bf16.mxu0 %v9056_v31  ;;  %6477 = vmatprep.mubr.bf16.mxu1 %v9056_v31  ;;  %v512_v29 = vld [vmem:[%s11658_s1 + $0xa60] sm:$0xff] }
  0x8d   : > { %v7776_v40 = vcombine.low %v508_v28, %v512_v29 }
  0x8e   : > { %6120 = vmatpush1.bf16.msra.mxu0 %v7712_v34  ;;  %6448 = vmatpush1.bf16.msra.mxu1 %v7714_v35  ;;  %v7777_v34 = vcombine.high %v508_v28, %v512_v29  ;;  %v7779_v35 = vcombine.high %v509_v15, %v513_v30  ;;  %v565_v28 = vld [vmem:[%s11658_s1 + $0xc08] sm:$0xff]  ;;  %v7826_v30 = vcombine.low %v557_v18, %v561_v19 }
  0x8f   : > { %6121 = vmatprep.subr.bf16.mxu0 %v7721_v36  ;;  %6449 = vmatprep.subr.bf16.mxu1 %v7723_v37  ;;  %v516_v36 = vld [vmem:[%s11658_s1 + $0xa80] sm:$0xff]  ;;  %v569_v29 = vld [vmem:[%s11658_s1 + $0xc28] sm:$0xff] }
  0x90   : > { %v520_v37 = vld [vmem:[%s11658_s1 + $0xaa0] sm:$0xff] }
  0x91   : > { %v7784_v48 = vcombine.low %v516_v36, %v520_v37 }
  0x92   : > { %6122 = vmatpush1.bf16.msra.mxu0 %v7720_v42  ;;  %6450 = vmatpush1.bf16.msra.mxu1 %v7722_v43  ;;  %v7785_v42 = vcombine.high %v516_v36, %v520_v37  ;;  %v7787_v43 = vcombine.high %v517_v38, %v521_v39  ;;  %v9244_v36 = vcombine.low %v9046_v25, %v9046_v25  ;;  %v573_v37 = vld [vmem:[%s11658_s1 + $0xc48] sm:$0xff]  ;;  %v9253_v39 = vld [vmem:[%s8685_s19 + $0x18] sm:$0xff]  ;;  %v580_v25 = vld [vmem:[%s11658_s1 + $0xc80] sm:$0xff] }
  0x93   : > { %6123 = vmatprep.subr.bf16.mxu0 %v7729_v44  ;;  %6451 = vmatprep.subr.bf16.mxu1 %v7731_v45  ;;  %v524_v44 = vld [vmem:[%s11658_s1 + $0xac0] sm:$0xff]  ;;  %v577_v38 = vld [vmem:[%s11658_s1 + $0xc68] sm:$0xff] }
  0x94   : > { %v528_v45 = vld [vmem:[%s11658_s1 + $0xae0] sm:$0xff] }
  0x95   : > { %v7792_v58 = vcombine.low %v524_v44, %v528_v45 }
  0x96   : > { %6124 = vmatpush1.bf16.msra.mxu0 %v7728_v50  ;;  %6452 = vmatpush1.bf16.msra.mxu1 %v7730_v51  ;;  %v7793_v50 = vcombine.high %v524_v44, %v528_v45  ;;  %v7795_v51 = vcombine.high %v525_v46, %v529_v47  ;;  %v584_v44 = vld [vmem:[%s11658_s1 + $0xca0] sm:$0xff]  ;;  %v9263_v45 = vcombine.high %v9253_v39, %v9253_v39  ;;  %v581_v46 = vld [vmem:[%s11658_s1 + $0xc88] sm:$0xff] }
  0x97   : > { %6125 = vmatprep.subr.bf16.mxu0 %v7737_v52  ;;  %6453 = vmatprep.subr.bf16.mxu1 %v7739_v54  ;;  %v532_v52 = vld [vmem:[%s11658_s1 + $0xb00] sm:$0xff]  ;;  %v585_v47 = vld [vmem:[%s11658_s1 + $0xca8] sm:$0xff] }
  0x98   : > { %v536_v54 = vld [vmem:[%s11658_s1 + $0xb20] sm:$0xff] }
  0x99   : > { %v7800_v2 = vcombine.low %v532_v52, %v536_v54 }
  0x9a   : > { %6126 = vmatpush1.bf16.msra.mxu0 %v7736_v60  ;;  %6454 = vmatpush1.bf16.msra.mxu1 %v7738_v61  ;;  %v7801_v60 = vcombine.high %v532_v52, %v536_v54  ;;  %v7803_v61 = vcombine.high %v533_v55, %v537_v56  ;;  %v588_v52 = vld [vmem:[%s11658_s1 + $0xcc0] sm:$0xff]  ;;  %v589_v55 = vld [vmem:[%s11658_s1 + $0xcc8] sm:$0xff] }
  0x9b   : > { %6127 = vmatprep.subr.bf16.mxu0 %v7745_v62  ;;  %6455 = vmatprep.subr.bf16.mxu1 %v7747_v63  ;;  %v540_v62 = vld [vmem:[%s11658_s1 + $0xb40] sm:$0xff]  ;;  %v593_v56 = vld [vmem:[%s11658_s1 + $0xce8] sm:$0xff] }
  0x9c   : > { %v544_v63 = vld [vmem:[%s11658_s1 + $0xb60] sm:$0xff] }
  0x9d   : > { %v7808_v10 = vcombine.low %v540_v62, %v544_v63  ;;  %v592_v54 = vld [vmem:[%s11658_s1 + $0xce0] sm:$0xff] }
  0x9e   : > { %6128 = vmatpush1.bf16.msra.mxu0 %v7744_v4  ;;  %6456 = vmatpush1.bf16.msra.mxu1 %v7746_v5  ;;  %v7809_v4 = vcombine.high %v540_v62, %v544_v63  ;;  %v7811_v5 = vcombine.high %v541_v0, %v545_v1  ;;  %v596_v62 = vld [vmem:[%s11658_s1 + $0xd00] sm:$0xff]  ;;  %v597_v0 = vld [vmem:[%s11658_s1 + $0xd08] sm:$0xff] }
  0x9f   : > { %6129 = vmatprep.subr.bf16.mxu0 %v7753_v6  ;;  %6457 = vmatprep.subr.bf16.mxu1 %v7755_v7  ;;  %v548_v6 = vld [vmem:[%s11658_s1 + $0xb80] sm:$0xff]  ;;  %v601_v1 = vld [vmem:[%s11658_s1 + $0xd28] sm:$0xff] }
  0xa0   : > { %v552_v7 = vld [vmem:[%s11658_s1 + $0xba0] sm:$0xff] }
  0xa1   : > { %v7816_v53 = vcombine.low %v548_v6, %v552_v7  ;;  %v600_v63 = vld [vmem:[%s11658_s1 + $0xd20] sm:$0xff] }
  0xa2   : > { %6130 = vmatpush1.bf16.msra.mxu0 %v7752_v13  ;;  %6458 = vmatpush1.bf16.msra.mxu1 %v7754_v14  ;;  %v7817_v13 = vcombine.high %v548_v6, %v552_v7  ;;  %v7819_v14 = vcombine.high %v549_v8, %v553_v9  ;;  %v604_v6 = vld [vmem:[%s11658_s1 + $0xd40] sm:$0xff]  ;;  %v605_v8 = vld [vmem:[%s11658_s1 + $0xd48] sm:$0xff] }
  0xa3   : > { %6131 = vmatprep.subr.bf16.mxu0 %v7761_v16  ;;  %6459 = vmatprep.subr.bf16.mxu1 %v7763_v17  ;;  %v556_v16 = vld [vmem:[%s11658_s1 + $0xbc0] sm:$0xff]  ;;  %v609_v9 = vld [vmem:[%s11658_s1 + $0xd68] sm:$0xff] }
  0xa4   : > { %v560_v17 = vld [vmem:[%s11658_s1 + $0xbe0] sm:$0xff] }
  0xa5   : > { %v7824_v15 = vcombine.low %v556_v16, %v560_v17  ;;  %v608_v7 = vld [vmem:[%s11658_s1 + $0xd60] sm:$0xff] }
  0xa6   : > { %6132 = vmatpush1.bf16.msra.mxu0 %v7760_v23  ;;  %6460 = vmatpush1.bf16.msra.mxu1 %v7762_v24  ;;  %v7825_v23 = vcombine.high %v556_v16, %v560_v17  ;;  %v7827_v24 = vcombine.high %v557_v18, %v561_v19  ;;  %v612_v16 = vld [vmem:[%s11658_s1 + $0xd80] sm:$0xff]  ;;  %v613_v18 = vld [vmem:[%s11658_s1 + $0xd88] sm:$0xff] }
  0xa7   : > { %6133 = vmatprep.subr.bf16.mxu0 %v7769_v26  ;;  %6461 = vmatprep.subr.bf16.mxu1 %v7771_v27  ;;  %v564_v26 = vld [vmem:[%s11658_s1 + $0xc00] sm:$0xff]  ;;  %v617_v19 = vld [vmem:[%s11658_s1 + $0xda8] sm:$0xff] }
  0xa8   : > { %v568_v27 = vld [vmem:[%s11658_s1 + $0xc20] sm:$0xff] }
  0xa9   : > { %v616_v17 = vld [vmem:[%s11658_s1 + $0xda0] sm:$0xff] }
  0xaa   : > { %6134 = vmatpush1.bf16.msra.mxu0 %v7768_v32  ;;  %6462 = vmatpush1.bf16.msra.mxu1 %v7770_v33  ;;  %v7833_v32 = vcombine.high %v564_v26, %v568_v27  ;;  %v7835_v33 = vcombine.high %v565_v28, %v569_v29 }
  0xab   : > { %6135 = vmatprep.subr.bf16.mxu0 %v7777_v34  ;;  %6463 = vmatprep.subr.bf16.mxu1 %v7779_v35  ;;  %v572_v34 = vld [vmem:[%s11658_s1 + $0xc40] sm:$0xff] }
  0xac   : > { %v576_v35 = vld [vmem:[%s11658_s1 + $0xc60] sm:$0xff] }
  0xae   : > { %6136 = vmatpush1.bf16.msra.mxu0 %v7776_v40  ;;  %6464 = vmatpush1.bf16.msra.mxu1 %v7778_v41  ;;  %v7832_v40 = vcombine.low %v564_v26, %v568_v27  ;;  %v7834_v41 = vcombine.low %v565_v28, %v569_v29  ;;  %v620_v26 = vld [vmem:[%s11658_s1 + $0xdc0] sm:$0xff]  ;;  %v621_v28 = vld [vmem:[%s11658_s1 + $0xdc8] sm:$0xff] }
  0xaf   : > { %6137 = vmatprep.subr.bf16.mxu0 %v7785_v42  ;;  %6465 = vmatprep.subr.bf16.mxu1 %v7787_v43  ;;  %v7841_v42 = vcombine.high %v572_v34, %v576_v35  ;;  %v7843_v43 = vcombine.high %v573_v37, %v577_v38  ;;  %v624_v27 = vld [vmem:[%s11658_s1 + $0xde0] sm:$0xff]  ;;  %v625_v29 = vld [vmem:[%s11658_s1 + $0xde8] sm:$0xff] }
  0xb2   : > { %6138 = vmatpush1.bf16.msra.mxu0 %v7784_v48  ;;  %6466 = vmatpush1.bf16.msra.mxu1 %v7786_v49  ;;  %v7840_v48 = vcombine.low %v572_v34, %v576_v35  ;;  %v7842_v49 = vcombine.low %v573_v37, %v577_v38  ;;  %v628_v34 = vld [vmem:[%s11658_s1 + $0xe00] sm:$0xff]  ;;  %v629_v37 = vld [vmem:[%s11658_s1 + $0xe08] sm:$0xff] }
  0xb3   : > { %6139 = vmatprep.subr.bf16.mxu0 %v7793_v50  ;;  %6467 = vmatprep.subr.bf16.mxu1 %v7795_v51  ;;  %v7849_v50 = vcombine.high %v580_v25, %v584_v44  ;;  %v7851_v51 = vcombine.high %v581_v46, %v585_v47  ;;  %v632_v35 = vld [vmem:[%s11658_s1 + $0xe20] sm:$0xff]  ;;  %v633_v38 = vld [vmem:[%s11658_s1 + $0xe28] sm:$0xff] }
  0xb6   : > { %6140 = vmatpush1.bf16.msra.mxu0 %v7792_v58  ;;  %6468 = vmatpush1.bf16.msra.mxu1 %v7794_v59  ;;  %v7848_v58 = vcombine.low %v580_v25, %v584_v44  ;;  %v7850_v59 = vcombine.low %v581_v46, %v585_v47  ;;  %v636_v25 = vld [vmem:[%s11658_s1 + $0xe40] sm:$0xff]  ;;  %v637_v46 = vld [vmem:[%s11658_s1 + $0xe48] sm:$0xff] }
  0xb7   : > { %6141 = vmatprep.subr.bf16.mxu0 %v7801_v60  ;;  %6469 = vmatprep.subr.bf16.mxu1 %v7803_v61  ;;  %v7857_v60 = vcombine.high %v588_v52, %v592_v54  ;;  %v7859_v61 = vcombine.high %v589_v55, %v593_v56  ;;  %v640_v44 = vld [vmem:[%s11658_s1 + $0xe60] sm:$0xff]  ;;  %v641_v47 = vld [vmem:[%s11658_s1 + $0xe68] sm:$0xff] }
  0xba   : > { %6142 = vmatpush1.bf16.msra.mxu0 %v7800_v2  ;;  %6470 = vmatpush1.bf16.msra.mxu1 %v7802_v3  ;;  %v7856_v2 = vcombine.low %v588_v52, %v592_v54  ;;  %v7858_v3 = vcombine.low %v589_v55, %v593_v56  ;;  %v644_v52 = vld [vmem:[%s11658_s1 + $0xe80] sm:$0xff]  ;;  %v645_v55 = vld [vmem:[%s11658_s1 + $0xe88] sm:$0xff] }
  0xbb   : > { %6143 = vmatprep.subr.bf16.mxu0 %v7809_v4  ;;  %6471 = vmatprep.subr.bf16.mxu1 %v7811_v5  ;;  %v7865_v4 = vcombine.high %v596_v62, %v600_v63  ;;  %v7867_v5 = vcombine.high %v597_v0, %v601_v1  ;;  %v648_v54 = vld [vmem:[%s11658_s1 + $0xea0] sm:$0xff]  ;;  %v649_v56 = vld [vmem:[%s11658_s1 + $0xea8] sm:$0xff] }
  0xbe   : > { %6144 = vmatpush1.bf16.msra.mxu0 %v7808_v10  ;;  %6472 = vmatpush1.bf16.msra.mxu1 %v7810_v11  ;;  %v7864_v10 = vcombine.low %v596_v62, %v600_v63  ;;  %v7866_v11 = vcombine.low %v597_v0, %v601_v1  ;;  %v652_v62 = vld [vmem:[%s11658_s1 + $0xec0] sm:$0xff]  ;;  %v653_v0 = vld [vmem:[%s11658_s1 + $0xec8] sm:$0xff] }
  0xbf   : > { %6145 = vmatprep.subr.bf16.mxu0 %v7817_v13  ;;  %6473 = vmatprep.subr.bf16.mxu1 %v7819_v14  ;;  %v7873_v13 = vcombine.high %v604_v6, %v608_v7  ;;  %v7875_v14 = vcombine.high %v605_v8, %v609_v9  ;;  %v656_v63 = vld [vmem:[%s11658_s1 + $0xee0] sm:$0xff]  ;;  %v657_v1 = vld [vmem:[%s11658_s1 + $0xee8] sm:$0xff] }
  0xc2   : > { %6146 = vmatpush1.bf16.msra.mxu0 %v7816_v53  ;;  %6474 = vmatpush1.bf16.msra.mxu1 %v7818_v20  ;;  %v7872_v53 = vcombine.low %v604_v6, %v608_v7  ;;  %v7874_v20 = vcombine.low %v605_v8, %v609_v9  ;;  %v660_v6 = vld [vmem:[%s11658_s1 + $0xf00] sm:$0xff]  ;;  %v661_v8 = vld [vmem:[%s11658_s1 + $0xf08] sm:$0xff] }
  0xc3   : > { %6147 = vmatprep.subr.bf16.mxu0 %v7825_v23  ;;  %6475 = vmatprep.subr.bf16.mxu1 %v7827_v24  ;;  %v7881_v23 = vcombine.high %v612_v16, %v616_v17  ;;  %v7883_v24 = vcombine.high %v613_v18, %v617_v19  ;;  %v664_v7 = vld [vmem:[%s11658_s1 + $0xf20] sm:$0xff]  ;;  %v665_v9 = vld [vmem:[%s11658_s1 + $0xf28] sm:$0xff] }
  0xc6   : > { %6148 = vmatpush1.bf16.msra.mxu0 %v7824_v15  ;;  %6476 = vmatpush1.bf16.msra.mxu1 %v7826_v30  ;;  %v7880_v15 = vcombine.low %v612_v16, %v616_v17  ;;  %v7882_v30 = vcombine.low %v613_v18, %v617_v19  ;;  %v668_v16 = vld [vmem:[%s11658_s1 + $0xf40] sm:$0xff]  ;;  %v669_v18 = vld [vmem:[%s11658_s1 + $0xf48] sm:$0xff] }
  0xc7   : > { %6158 = vmatprep.subr.bf16.mxu0 %v7833_v32  ;;  %6486 = vmatprep.subr.bf16.mxu1 %v7835_v33  ;;  %v7889_v32 = vcombine.high %v620_v26, %v624_v27  ;;  %v7891_v33 = vcombine.high %v621_v28, %v625_v29  ;;  %v672_v17 = vld [vmem:[%s11658_s1 + $0xf60] sm:$0xff]  ;;  %v673_v19 = vld [vmem:[%s11658_s1 + $0xf68] sm:$0xff] }
  0xc9   : > { %6150 = vmatmul.mubr.bf16.vlgmr.msra.gmra.mrb[0].mxu0 %v9244_v36  ;;  %6478 = vmatmul.mubr.bf16.vlgmr.msra.gmra.mrb[0].mxu1 %v9244_v36 }
  0xca   : > { %6159 = vmatpush1.bf16.msra.mxu0 %v7832_v40  ;;  %6487 = vmatpush1.bf16.msra.mxu1 %v7834_v41  ;;  %v7888_v40 = vcombine.low %v620_v26, %v624_v27  ;;  %v7890_v41 = vcombine.low %v621_v28, %v625_v29  ;;  %v676_v26 = vld [vmem:[%s11658_s1 + $0xf80] sm:$0xff]  ;;  %v677_v28 = vld [vmem:[%s11658_s1 + $0xf88] sm:$0xff] }
  0xcb   : > { %6160 = vmatprep.subr.bf16.mxu0 %v7841_v42  ;;  %6488 = vmatprep.subr.bf16.mxu1 %v7843_v43  ;;  %v7897_v42 = vcombine.high %v628_v34, %v632_v35  ;;  %v7899_v43 = vcombine.high %v629_v37, %v633_v38  ;;  %v680_v27 = vld [vmem:[%s11658_s1 + $0xfa0] sm:$0xff]  ;;  %v681_v29 = vld [vmem:[%s11658_s1 + $0xfa8] sm:$0xff] }
  0xcc   : > { %6190 = vmatprep.mubr.bf16.mxu0 %v9263_v45  ;;  %6518 = vmatprep.mubr.bf16.mxu1 %v9263_v45 }
  0xce   : > { %6161 = vmatpush1.bf16.msra.mxu0 %v7840_v48  ;;  %6489 = vmatpush1.bf16.msra.mxu1 %v7842_v49  ;;  %v7896_v48 = vcombine.low %v628_v34, %v632_v35  ;;  %v7898_v49 = vcombine.low %v629_v37, %v633_v38  ;;  %v684_v34 = vld [vmem:[%s11658_s1 + $0xfc0] sm:$0xff]  ;;  %v685_v37 = vld [vmem:[%s11658_s1 + $0xfc8] sm:$0xff] }
  0xcf   : > { %6162 = vmatprep.subr.bf16.mxu0 %v7849_v50  ;;  %6490 = vmatprep.subr.bf16.mxu1 %v7851_v51  ;;  %v7905_v50 = vcombine.high %v636_v25, %v640_v44  ;;  %v7907_v51 = vcombine.high %v637_v46, %v641_v47  ;;  %v688_v35 = vld [vmem:[%s11658_s1 + $0xfe0] sm:$0xff]  ;;  %v689_v38 = vld [vmem:[%s11658_s1 + $0xfe8] sm:$0xff] }
  0xd2   : > { %6163 = vmatpush1.bf16.msra.mxu0 %v7848_v58  ;;  %6491 = vmatpush1.bf16.msra.mxu1 %v7850_v59  ;;  %v7904_v58 = vcombine.low %v636_v25, %v640_v44  ;;  %v7906_v59 = vcombine.low %v637_v46, %v641_v47  ;;  %v692_v25 = vld [vmem:[%s11658_s1 + $0x1000] sm:$0xff]  ;;  %v693_v46 = vld [vmem:[%s11658_s1 + $0x1008] sm:$0xff] }
  0xd3   : > { %6164 = vmatprep.subr.bf16.mxu0 %v7857_v60  ;;  %6492 = vmatprep.subr.bf16.mxu1 %v7859_v61  ;;  %v7913_v60 = vcombine.high %v644_v52, %v648_v54  ;;  %v7915_v61 = vcombine.high %v645_v55, %v649_v56  ;;  %v696_v44 = vld [vmem:[%s11658_s1 + $0x1020] sm:$0xff]  ;;  %v697_v47 = vld [vmem:[%s11658_s1 + $0x1028] sm:$0xff] }
  0xd6   : > { %6165 = vmatpush1.bf16.msra.mxu0 %v7856_v2  ;;  %6493 = vmatpush1.bf16.msra.mxu1 %v7858_v3  ;;  %v7912_v2 = vcombine.low %v644_v52, %v648_v54  ;;  %v7914_v3 = vcombine.low %v645_v55, %v649_v56  ;;  %v700_v52 = vld [vmem:[%s11658_s1 + $0x1040] sm:$0xff]  ;;  %v9451_v55 = vcombine.low %v9253_v39, %v9253_v39  ;;  %v701_v56 = vld [vmem:[%s11658_s1 + $0x1048] sm:$0xff] }
  0xd7   : > { %6166 = vmatprep.subr.bf16.mxu0 %v7865_v4  ;;  %6494 = vmatprep.subr.bf16.mxu1 %v7867_v5  ;;  %v7921_v4 = vcombine.high %v652_v62, %v656_v63  ;;  %v7923_v5 = vcombine.high %v653_v0, %v657_v1  ;;  %v704_v54 = vld [vmem:[%s11658_s1 + $0x1060] sm:$0xff] }
  0xd8   : > { %v708_v39 = vld [vmem:[%s11658_s1 + $0x1080] sm:$0xff] }
  0xda   : > { %6167 = vmatpush1.bf16.msra.mxu0 %v7864_v10  ;;  %6495 = vmatpush1.bf16.msra.mxu1 %v7866_v11  ;;  %v7920_v10 = vcombine.low %v652_v62, %v656_v63  ;;  %v7922_v11 = vcombine.low %v653_v0, %v657_v1  ;;  %v7969_v62 = vcombine.high %v700_v52, %v704_v54  ;;  %v712_v0 = vld [vmem:[%s11658_s1 + $0x10a0] sm:$0xff] }
  0xdb   : > { %6168 = vmatprep.subr.bf16.mxu0 %v7873_v13  ;;  %6496 = vmatprep.subr.bf16.mxu1 %v7875_v14  ;;  %v7929_v13 = vcombine.high %v660_v6, %v664_v7  ;;  %v7931_v14 = vcombine.high %v661_v8, %v665_v9 }
  0xde   : > { %6169 = vmatpush1.bf16.msra.mxu0 %v7872_v53  ;;  %6497 = vmatpush1.bf16.msra.mxu1 %v7874_v20  ;;  %v7928_v53 = vcombine.low %v660_v6, %v664_v7  ;;  %v7930_v20 = vcombine.low %v661_v8, %v665_v9  ;;  %v7977_v6 = vcombine.high %v708_v39, %v712_v0  ;;  %v716_v8 = vld [vmem:[%s11658_s1 + $0x10c0] sm:$0xff] }
  0xdf   : > { %6170 = vmatprep.subr.bf16.mxu0 %v7881_v23  ;;  %6498 = vmatprep.subr.bf16.mxu1 %v7883_v24  ;;  %v7937_v23 = vcombine.high %v668_v16, %v672_v17  ;;  %v7939_v24 = vcombine.high %v669_v18, %v673_v19  ;;  %v720_v9 = vld [vmem:[%s11658_s1 + $0x10e0] sm:$0xff] }
  0xe2   : > { %6171 = vmatpush1.bf16.msra.mxu0 %v7880_v15  ;;  %6499 = vmatpush1.bf16.msra.mxu1 %v7882_v30  ;;  %v7936_v15 = vcombine.low %v668_v16, %v672_v17  ;;  %v7938_v30 = vcombine.low %v669_v18, %v673_v19  ;;  %v7985_v16 = vcombine.high %v716_v8, %v720_v9  ;;  %v724_v18 = vld [vmem:[%s11658_s1 + $0x1100] sm:$0xff] }
  0xe3   : > { %6172 = vmatprep.subr.bf16.mxu0 %v7889_v32  ;;  %6500 = vmatprep.subr.bf16.mxu1 %v7891_v33  ;;  %v7945_v32 = vcombine.high %v676_v26, %v680_v27  ;;  %v7947_v33 = vcombine.high %v677_v28, %v681_v29  ;;  %v728_v19 = vld [vmem:[%s11658_s1 + $0x1120] sm:$0xff] }
  0xe6   : > { %6173 = vmatpush1.bf16.msra.mxu0 %v7888_v40  ;;  %6501 = vmatpush1.bf16.msra.mxu1 %v7890_v41  ;;  %v7944_v40 = vcombine.low %v676_v26, %v680_v27  ;;  %v7946_v41 = vcombine.low %v677_v28, %v681_v29  ;;  %v7993_v26 = vcombine.high %v724_v18, %v728_v19  ;;  %v732_v28 = vld [vmem:[%s11658_s1 + $0x1140] sm:$0xff] }
  0xe7   : > { %6174 = vmatprep.subr.bf16.mxu0 %v7897_v42  ;;  %6502 = vmatprep.subr.bf16.mxu1 %v7899_v43  ;;  %v7953_v42 = vcombine.high %v684_v34, %v688_v35  ;;  %v7955_v43 = vcombine.high %v685_v37, %v689_v38  ;;  %v736_v29 = vld [vmem:[%s11658_s1 + $0x1160] sm:$0xff] }
  0xea   : > { %6175 = vmatpush1.bf16.msra.mxu0 %v7896_v48  ;;  %6503 = vmatpush1.bf16.msra.mxu1 %v7898_v49  ;;  %v7952_v48 = vcombine.low %v684_v34, %v688_v35  ;;  %v7954_v49 = vcombine.low %v685_v37, %v689_v38  ;;  %v8001_v34 = vcombine.high %v732_v28, %v736_v29  ;;  %v740_v37 = vld [vmem:[%s11658_s1 + $0x1180] sm:$0xff] }
  0xeb   : > { %6176 = vmatprep.subr.bf16.mxu0 %v7905_v50  ;;  %6504 = vmatprep.subr.bf16.mxu1 %v7907_v51  ;;  %v7961_v50 = vcombine.high %v692_v25, %v696_v44  ;;  %v7963_v51 = vcombine.high %v693_v46, %v697_v47  ;;  %v744_v38 = vld [vmem:[%s11658_s1 + $0x11a0] sm:$0xff] }
  0xee   : > { %6177 = vmatpush1.bf16.msra.mxu0 %v7904_v58  ;;  %6505 = vmatpush1.bf16.msra.mxu1 %v7906_v59  ;;  %v705_v58 = vld [vmem:[%s11658_s1 + $0x1068] sm:$0xff]  ;;  %v9460_v59 = vld [vmem:[%s8685_s19 + $0x20] sm:$0xff] }
  0xef   : > { %6178 = vmatprep.subr.bf16.mxu0 %v7913_v60  ;;  %6506 = vmatprep.subr.bf16.mxu1 %v7915_v61  ;;  %v7960_v60 = vcombine.low %v692_v25, %v696_v44  ;;  %v7962_v61 = vcombine.low %v693_v46, %v697_v47  ;;  %v7971_v63 = vcombine.high %v701_v56, %v705_v58  ;;  %v748_v46 = vld [vmem:[%s11658_s1 + $0x11c0] sm:$0xff] }
  0xf0   : > { %v9470_v1 = vcombine.high %v9460_v59, %v9460_v59  ;;  %v8009_v25 = vcombine.high %v740_v37, %v744_v38  ;;  %v752_v47 = vld [vmem:[%s11658_s1 + $0x11e0] sm:$0xff] }
  0xf2   : > { %6179 = vmatpush1.bf16.msra.mxu0 %v7912_v2  ;;  %6507 = vmatpush1.bf16.msra.mxu1 %v7914_v3  ;;  %v709_v2 = vld [vmem:[%s11658_s1 + $0x1088] sm:$0xff] }
  0xf3   : > { %6180 = vmatprep.subr.bf16.mxu0 %v7921_v4  ;;  %6508 = vmatprep.subr.bf16.mxu1 %v7923_v5  ;;  %v713_v3 = vld [vmem:[%s11658_s1 + $0x10a8] sm:$0xff]  ;;  %v7968_v4 = vcombine.low %v700_v52, %v704_v54  ;;  %v7970_v5 = vcombine.low %v701_v56, %v705_v58  ;;  %v8017_v52 = vcombine.high %v748_v46, %v752_v47  ;;  %v756_v56 = vld [vmem:[%s11658_s1 + $0x1200] sm:$0xff] }
  0xf4   : > { %v7979_v7 = vcombine.high %v709_v2, %v713_v3  ;;  %v760_v58 = vld [vmem:[%s11658_s1 + $0x1220] sm:$0xff] }
  0xf6   : > { %6181 = vmatpush1.bf16.msra.mxu0 %v7920_v10  ;;  %6509 = vmatpush1.bf16.msra.mxu1 %v7922_v11  ;;  %v717_v10 = vld [vmem:[%s11658_s1 + $0x10c8] sm:$0xff] }
  0xf7   : > { %6182 = vmatprep.subr.bf16.mxu0 %v7929_v13  ;;  %6510 = vmatprep.subr.bf16.mxu1 %v7931_v14  ;;  %v721_v11 = vld [vmem:[%s11658_s1 + $0x10e8] sm:$0xff]  ;;  %v7976_v13 = vcombine.low %v708_v39, %v712_v0  ;;  %v7978_v14 = vcombine.low %v709_v2, %v713_v3  ;;  %v8025_v39 = vcombine.high %v756_v56, %v760_v58  ;;  %v764_v2 = vld [vmem:[%s11658_s1 + $0x1240] sm:$0xff] }
  0xf8   : > { %v7987_v17 = vcombine.high %v717_v10, %v721_v11  ;;  %v768_v3 = vld [vmem:[%s11658_s1 + $0x1260] sm:$0xff] }
  0xfa   : > { %6183 = vmatpush1.bf16.msra.mxu0 %v7928_v53  ;;  %6511 = vmatpush1.bf16.msra.mxu1 %v7930_v20  ;;  %v725_v53 = vld [vmem:[%s11658_s1 + $0x1108] sm:$0xff] }
  0xfb   : > { %6184 = vmatprep.subr.bf16.mxu0 %v7937_v23  ;;  %6512 = vmatprep.subr.bf16.mxu1 %v7939_v24  ;;  %v729_v20 = vld [vmem:[%s11658_s1 + $0x1128] sm:$0xff]  ;;  %v7984_v23 = vcombine.low %v716_v8, %v720_v9  ;;  %v7986_v24 = vcombine.low %v717_v10, %v721_v11  ;;  %v8033_v8 = vcombine.high %v764_v2, %v768_v3  ;;  %v772_v10 = vld [vmem:[%s11658_s1 + $0x1280] sm:$0xff] }
  0xfc   : > { %v7995_v27 = vcombine.high %v725_v53, %v729_v20  ;;  %v776_v11 = vld [vmem:[%s11658_s1 + $0x12a0] sm:$0xff] }
  0xfe   : > { %6185 = vmatpush1.bf16.msra.mxu0 %v7936_v15  ;;  %6513 = vmatpush1.bf16.msra.mxu1 %v7938_v30  ;;  %v733_v15 = vld [vmem:[%s11658_s1 + $0x1148] sm:$0xff] }
  0xff   : > { %6186 = vmatprep.subr.bf16.mxu0 %v7945_v32  ;;  %6514 = vmatprep.subr.bf16.mxu1 %v7947_v33  ;;  %v737_v30 = vld [vmem:[%s11658_s1 + $0x1168] sm:$0xff]  ;;  %v7992_v32 = vcombine.low %v724_v18, %v728_v19  ;;  %v7994_v33 = vcombine.low %v725_v53, %v729_v20  ;;  %v8041_v18 = vcombine.high %v772_v10, %v776_v11  ;;  %v780_v53 = vld [vmem:[%s11658_s1 + $0x12c0] sm:$0xff] }
 0x100   : > { %v8003_v35 = vcombine.high %v733_v15, %v737_v30  ;;  %v784_v20 = vld [vmem:[%s11658_s1 + $0x12e0] sm:$0xff] }
 0x102   : > { %6187 = vmatpush1.bf16.msra.mxu0 %v7944_v40  ;;  %6515 = vmatpush1.bf16.msra.mxu1 %v7946_v41  ;;  %v741_v40 = vld [vmem:[%s11658_s1 + $0x1188] sm:$0xff] }
 0x103   : > { %6188 = vmatprep.subr.bf16.mxu0 %v7953_v42  ;;  %6516 = vmatprep.subr.bf16.mxu1 %v7955_v43  ;;  %v745_v41 = vld [vmem:[%s11658_s1 + $0x11a8] sm:$0xff]  ;;  %v8000_v42 = vcombine.low %v732_v28, %v736_v29  ;;  %v8002_v43 = vcombine.low %v733_v15, %v737_v30  ;;  %v8049_v28 = vcombine.high %v780_v53, %v784_v20  ;;  %v788_v15 = vld [vmem:[%s11658_s1 + $0x1300] sm:$0xff] }
 0x104   : > { %v8011_v44 = vcombine.high %v741_v40, %v745_v41  ;;  %v792_v30 = vld [vmem:[%s11658_s1 + $0x1320] sm:$0xff] }
 0x106   : > { %6189 = vmatpush1.bf16.msra.mxu0 %v7952_v48  ;;  %6517 = vmatpush1.bf16.msra.mxu1 %v7954_v49  ;;  %v749_v48 = vld [vmem:[%s11658_s1 + $0x11c8] sm:$0xff] }
 0x107   : > { %6199 = vmatprep.subr.bf16.mxu0 %v7961_v50  ;;  %6527 = vmatprep.subr.bf16.mxu1 %v7963_v51  ;;  %v753_v49 = vld [vmem:[%s11658_s1 + $0x11e8] sm:$0xff]  ;;  %v8008_v50 = vcombine.low %v740_v37, %v744_v38  ;;  %v8010_v51 = vcombine.low %v741_v40, %v745_v41  ;;  %v8057_v37 = vcombine.high %v788_v15, %v792_v30  ;;  %v796_v40 = vld [vmem:[%s11658_s1 + $0x1340] sm:$0xff] }
 0x108   : > { %v8019_v54 = vcombine.high %v749_v48, %v753_v49  ;;  %v800_v41 = vld [vmem:[%s11658_s1 + $0x1360] sm:$0xff] }
 0x109   : > { %6191 = vmatmul.mubr.bf16.vlgmr.msra.gmra.mrb[0].mxu0 %v9451_v55  ;;  %6519 = vmatmul.mubr.bf16.vlgmr.msra.gmra.mrb[0].mxu1 %v9451_v55 }
 0x10a   : > { %6200 = vmatpush1.bf16.msra.mxu0 %v7960_v60  ;;  %6528 = vmatpush1.bf16.msra.mxu1 %v7962_v61  ;;  %v757_v60 = vld [vmem:[%s11658_s1 + $0x1208] sm:$0xff] }
 0x10b   : > { %6201 = vmatprep.subr.bf16.mxu0 %v7969_v62  ;;  %6529 = vmatprep.subr.bf16.mxu1 %v7971_v63  ;;  %v761_v61 = vld [vmem:[%s11658_s1 + $0x1228] sm:$0xff]  ;;  %v8016_v62 = vcombine.low %v748_v46, %v752_v47  ;;  %v8018_v63 = vcombine.low %v749_v48, %v753_v49  ;;  %v8065_v46 = vcombine.high %v796_v40, %v800_v41  ;;  %v804_v48 = vld [vmem:[%s11658_s1 + $0x1380] sm:$0xff] }
 0x10c   : > { %6231 = vmatprep.mubr.bf16.mxu0 %v9470_v1  ;;  %6559 = vmatprep.mubr.bf16.mxu1 %v9470_v1  ;;  %v8027_v0 = vcombine.high %v757_v60, %v761_v61  ;;  %v808_v49 = vld [vmem:[%s11658_s1 + $0x13a0] sm:$0xff] }
 0x10e   : > { %6202 = vmatpush1.bf16.msra.mxu0 %v7968_v4  ;;  %6530 = vmatpush1.bf16.msra.mxu1 %v7970_v5  ;;  %v765_v4 = vld [vmem:[%s11658_s1 + $0x1248] sm:$0xff] }
 0x10f   : > { %6203 = vmatprep.subr.bf16.mxu0 %v7977_v6  ;;  %6531 = vmatprep.subr.bf16.mxu1 %v7979_v7  ;;  %v769_v5 = vld [vmem:[%s11658_s1 + $0x1268] sm:$0xff]  ;;  %v8024_v6 = vcombine.low %v756_v56, %v760_v58  ;;  %v8026_v7 = vcombine.low %v757_v60, %v761_v61  ;;  %v8073_v56 = vcombine.high %v804_v48, %v808_v49  ;;  %v812_v60 = vld [vmem:[%s11658_s1 + $0x13c0] sm:$0xff] }
 0x110   : > { %v8035_v9 = vcombine.high %v765_v4, %v769_v5  ;;  %v816_v61 = vld [vmem:[%s11658_s1 + $0x13e0] sm:$0xff] }
 0x112   : > { %6204 = vmatpush1.bf16.msra.mxu0 %v7976_v13  ;;  %6532 = vmatpush1.bf16.msra.mxu1 %v7978_v14  ;;  %v773_v13 = vld [vmem:[%s11658_s1 + $0x1288] sm:$0xff] }
 0x113   : > { %6205 = vmatprep.subr.bf16.mxu0 %v7985_v16  ;;  %6533 = vmatprep.subr.bf16.mxu1 %v7987_v17  ;;  %v777_v14 = vld [vmem:[%s11658_s1 + $0x12a8] sm:$0xff]  ;;  %v8032_v16 = vcombine.low %v764_v2, %v768_v3  ;;  %v8034_v17 = vcombine.low %v765_v4, %v769_v5  ;;  %v8081_v2 = vcombine.high %v812_v60, %v816_v61  ;;  %v820_v4 = vld [vmem:[%s11658_s1 + $0x1400] sm:$0xff] }
 0x114   : > { %v8043_v19 = vcombine.high %v773_v13, %v777_v14  ;;  %v824_v5 = vld [vmem:[%s11658_s1 + $0x1420] sm:$0xff] }
 0x116   : > { %6206 = vmatpush1.bf16.msra.mxu0 %v7984_v23  ;;  %6534 = vmatpush1.bf16.msra.mxu1 %v7986_v24  ;;  %v781_v23 = vld [vmem:[%s11658_s1 + $0x12c8] sm:$0xff] }
 0x117   : > { %6207 = vmatprep.subr.bf16.mxu0 %v7993_v26  ;;  %6535 = vmatprep.subr.bf16.mxu1 %v7995_v27  ;;  %v785_v24 = vld [vmem:[%s11658_s1 + $0x12e8] sm:$0xff]  ;;  %v8040_v26 = vcombine.low %v772_v10, %v776_v11  ;;  %v8042_v27 = vcombine.low %v773_v13, %v777_v14  ;;  %v8089_v10 = vcombine.high %v820_v4, %v824_v5  ;;  %v828_v13 = vld [vmem:[%s11658_s1 + $0x1440] sm:$0xff] }
 0x118   : > { %v8051_v29 = vcombine.high %v781_v23, %v785_v24  ;;  %v832_v14 = vld [vmem:[%s11658_s1 + $0x1460] sm:$0xff] }
 0x11a   : > { %6208 = vmatpush1.bf16.msra.mxu0 %v7992_v32  ;;  %6536 = vmatpush1.bf16.msra.mxu1 %v7994_v33  ;;  %v789_v32 = vld [vmem:[%s11658_s1 + $0x1308] sm:$0xff] }
 0x11b   : > { %6209 = vmatprep.subr.bf16.mxu0 %v8001_v34  ;;  %6537 = vmatprep.subr.bf16.mxu1 %v8003_v35  ;;  %v793_v33 = vld [vmem:[%s11658_s1 + $0x1328] sm:$0xff]  ;;  %v8048_v34 = vcombine.low %v780_v53, %v784_v20  ;;  %v8050_v35 = vcombine.low %v781_v23, %v785_v24  ;;  %v8088_v53 = vcombine.low %v820_v4, %v824_v5 }
 0x11c   : > { %v8059_v38 = vcombine.high %v789_v32, %v793_v33  ;;  %v8097_v23 = vcombine.high %v828_v13, %v832_v14 }
 0x11e   : > { %6210 = vmatpush1.bf16.msra.mxu0 %v8000_v42  ;;  %6538 = vmatpush1.bf16.msra.mxu1 %v8002_v43  ;;  %v797_v42 = vld [vmem:[%s11658_s1 + $0x1348] sm:$0xff] }
 0x11f   : > { %6211 = vmatprep.subr.bf16.mxu0 %v8009_v25  ;;  %6539 = vmatprep.subr.bf16.mxu1 %v8011_v44  ;;  %v801_v43 = vld [vmem:[%s11658_s1 + $0x1368] sm:$0xff]  ;;  %v8056_v25 = vcombine.low %v788_v15, %v792_v30  ;;  %v8058_v44 = vcombine.low %v789_v32, %v793_v33  ;;  %v8096_v15 = vcombine.low %v828_v13, %v832_v14 }
 0x120   : > { %v8067_v47 = vcombine.high %v797_v42, %v801_v43 }
 0x122   : > { %6212 = vmatpush1.bf16.msra.mxu0 %v8008_v50  ;;  %6540 = vmatpush1.bf16.msra.mxu1 %v8010_v51  ;;  %v805_v50 = vld [vmem:[%s11658_s1 + $0x1388] sm:$0xff] }
 0x123   : > { %6213 = vmatprep.subr.bf16.mxu0 %v8017_v52  ;;  %6541 = vmatprep.subr.bf16.mxu1 %v8019_v54  ;;  %v809_v51 = vld [vmem:[%s11658_s1 + $0x13a8] sm:$0xff]  ;;  %v8064_v52 = vcombine.low %v796_v40, %v800_v41  ;;  %v8066_v54 = vcombine.low %v797_v42, %v801_v43 }
 0x124   : > { %v8075_v58 = vcombine.high %v805_v50, %v809_v51 }
 0x126   : > { %6214 = vmatpush1.bf16.msra.mxu0 %v8016_v62  ;;  %6542 = vmatpush1.bf16.msra.mxu1 %v8018_v63  ;;  %v813_v62 = vld [vmem:[%s11658_s1 + $0x13c8] sm:$0xff] }
 0x127   : > { %6215 = vmatprep.subr.bf16.mxu0 %v8025_v39  ;;  %6543 = vmatprep.subr.bf16.mxu1 %v8027_v0  ;;  %v817_v63 = vld [vmem:[%s11658_s1 + $0x13e8] sm:$0xff]  ;;  %v8072_v39 = vcombine.low %v804_v48, %v808_v49  ;;  %v8074_v0 = vcombine.low %v805_v50, %v809_v51 }
 0x128   : > { %v8083_v3 = vcombine.high %v813_v62, %v817_v63 }
 0x12a   : > { %6216 = vmatpush1.bf16.msra.mxu0 %v8024_v6  ;;  %6544 = vmatpush1.bf16.msra.mxu1 %v8026_v7  ;;  %v821_v6 = vld [vmem:[%s11658_s1 + $0x1408] sm:$0xff] }
 0x12b   : > { %6217 = vmatprep.subr.bf16.mxu0 %v8033_v8  ;;  %6545 = vmatprep.subr.bf16.mxu1 %v8035_v9  ;;  %v825_v7 = vld [vmem:[%s11658_s1 + $0x1428] sm:$0xff]  ;;  %v8080_v8 = vcombine.low %v812_v60, %v816_v61  ;;  %v8082_v9 = vcombine.low %v813_v62, %v817_v63 }
 0x12c   : > { %v8091_v11 = vcombine.high %v821_v6, %v825_v7  ;;  %v8090_v20 = vcombine.low %v821_v6, %v825_v7 }
 0x12e   : > { %6218 = vmatpush1.bf16.msra.mxu0 %v8032_v16  ;;  %6546 = vmatpush1.bf16.msra.mxu1 %v8034_v17  ;;  %v9658_v16 = vcombine.low %v9460_v59, %v9460_v59  ;;  %v829_v17 = vld [vmem:[%s11658_s1 + $0x1448] sm:$0xff]  ;;  %v836_v59 = vld [vmem:[%s11658_s1 + $0x1480] sm:$0xff] }
 0x12f   : > { %6219 = vmatprep.subr.bf16.mxu0 %v8041_v18  ;;  %6547 = vmatprep.subr.bf16.mxu1 %v8043_v19  ;;  %v833_v18 = vld [vmem:[%s11658_s1 + $0x1468] sm:$0xff] }
 0x130   : > { %v9667_v19 = vld [vmem:[%s8685_s19 + $0x28] sm:$0xff]  ;;  %v8099_v24 = vcombine.high %v829_v17, %v833_v18  ;;  %v8098_v30 = vcombine.low %v829_v17, %v833_v18 }
 0x132   : > { %6220 = vmatpush1.bf16.msra.mxu0 %v8040_v26  ;;  %6548 = vmatpush1.bf16.msra.mxu1 %v8042_v27  ;;  %v840_v26 = vld [vmem:[%s11658_s1 + $0x14a0] sm:$0xff]  ;;  %v9677_v27 = vcombine.high %v9667_v19, %v9667_v19 }
 0x133   : > { %6221 = vmatprep.subr.bf16.mxu0 %v8049_v28  ;;  %6549 = vmatprep.subr.bf16.mxu1 %v8051_v29  ;;  %v837_v28 = vld [vmem:[%s11658_s1 + $0x1488] sm:$0xff]  ;;  %v8105_v32 = vcombine.high %v836_v59, %v840_v26  ;;  %v8104_v40 = vcombine.low %v836_v59, %v840_v26 }
 0x134   : > { %v841_v29 = vld [vmem:[%s11658_s1 + $0x14a8] sm:$0xff] }
 0x135   : > { %v8107_v33 = vcombine.high %v837_v28, %v841_v29  ;;  %v8106_v41 = vcombine.low %v837_v28, %v841_v29 }
 0x136   : > { %6222 = vmatpush1.bf16.msra.mxu0 %v8048_v34  ;;  %6550 = vmatpush1.bf16.msra.mxu1 %v8050_v35  ;;  %v844_v34 = vld [vmem:[%s11658_s1 + $0x14c0] sm:$0xff] }
 0x137   : > { %6223 = vmatprep.subr.bf16.mxu0 %v8057_v37  ;;  %6551 = vmatprep.subr.bf16.mxu1 %v8059_v38  ;;  %v848_v35 = vld [vmem:[%s11658_s1 + $0x14e0] sm:$0xff]  ;;  %v845_v37 = vld [vmem:[%s11658_s1 + $0x14c8] sm:$0xff] }
 0x138   : > { %v849_v38 = vld [vmem:[%s11658_s1 + $0x14e8] sm:$0xff]  ;;  %v8113_v42 = vcombine.high %v844_v34, %v848_v35  ;;  %v8112_v48 = vcombine.low %v844_v34, %v848_v35 }
 0x139   : > { %v8115_v43 = vcombine.high %v845_v37, %v849_v38  ;;  %v8114_v49 = vcombine.low %v845_v37, %v849_v38 }
 0x13a   : > { %6224 = vmatpush1.bf16.msra.mxu0 %v8056_v25  ;;  %6552 = vmatpush1.bf16.msra.mxu1 %v8058_v44  ;;  %v852_v25 = vld [vmem:[%s11658_s1 + $0x1500] sm:$0xff] }
 0x13b   : > { %6225 = vmatprep.subr.bf16.mxu0 %v8065_v46  ;;  %6553 = vmatprep.subr.bf16.mxu1 %v8067_v47  ;;  %v856_v44 = vld [vmem:[%s11658_s1 + $0x1520] sm:$0xff]  ;;  %v853_v46 = vld [vmem:[%s11658_s1 + $0x1508] sm:$0xff] }
 0x13c   : > { %v857_v47 = vld [vmem:[%s11658_s1 + $0x1528] sm:$0xff]  ;;  %v8121_v50 = vcombine.high %v852_v25, %v856_v44  ;;  %v8120_v60 = vcombine.low %v852_v25, %v856_v44 }
 0x13d   : > { %v8123_v51 = vcombine.high %v853_v46, %v857_v47  ;;  %v8122_v61 = vcombine.low %v853_v46, %v857_v47 }
 0x13e   : > { %6226 = vmatpush1.bf16.msra.mxu0 %v8064_v52  ;;  %6554 = vmatpush1.bf16.msra.mxu1 %v8066_v54  ;;  %v860_v52 = vld [vmem:[%s11658_s1 + $0x1540] sm:$0xff] }
 0x13f   : > { %6227 = vmatprep.subr.bf16.mxu0 %v8073_v56  ;;  %6555 = vmatprep.subr.bf16.mxu1 %v8075_v58  ;;  %v864_v54 = vld [vmem:[%s11658_s1 + $0x1560] sm:$0xff]  ;;  %v861_v56 = vld [vmem:[%s11658_s1 + $0x1548] sm:$0xff] }
 0x140   : > { %v865_v58 = vld [vmem:[%s11658_s1 + $0x1568] sm:$0xff]  ;;  %v8129_v62 = vcombine.high %v860_v52, %v864_v54  ;;  %v8128_v4 = vcombine.low %v860_v52, %v864_v54 }
 0x141   : > { %v8131_v63 = vcombine.high %v861_v56, %v865_v58  ;;  %v8130_v5 = vcombine.low %v861_v56, %v865_v58 }
 0x142   : > { %6228 = vmatpush1.bf16.msra.mxu0 %v8072_v39  ;;  %6556 = vmatpush1.bf16.msra.mxu1 %v8074_v0  ;;  %v868_v39 = vld [vmem:[%s11658_s1 + $0x1580] sm:$0xff] }
 0x143   : > { %6229 = vmatprep.subr.bf16.mxu0 %v8081_v2  ;;  %6557 = vmatprep.subr.bf16.mxu1 %v8083_v3  ;;  %v872_v0 = vld [vmem:[%s11658_s1 + $0x15a0] sm:$0xff]  ;;  %v869_v2 = vld [vmem:[%s11658_s1 + $0x1588] sm:$0xff] }
 0x144   : > { %v873_v3 = vld [vmem:[%s11658_s1 + $0x15a8] sm:$0xff]  ;;  %v8137_v6 = vcombine.high %v868_v39, %v872_v0  ;;  %v8136_v13 = vcombine.low %v868_v39, %v872_v0 }
 0x145   : > { %v8139_v7 = vcombine.high %v869_v2, %v873_v3  ;;  %v8138_v14 = vcombine.low %v869_v2, %v873_v3 }
 0x146   : > { %6230 = vmatpush1.bf16.msra.mxu0 %v8080_v8  ;;  %6558 = vmatpush1.bf16.msra.mxu1 %v8082_v9  ;;  %v876_v8 = vld [vmem:[%s11658_s1 + $0x15c0] sm:$0xff] }
 0x147   : > { %6240 = vmatprep.subr.bf16.mxu0 %v8089_v10  ;;  %6568 = vmatprep.subr.bf16.mxu1 %v8091_v11  ;;  %v880_v9 = vld [vmem:[%s11658_s1 + $0x15e0] sm:$0xff]  ;;  %v877_v10 = vld [vmem:[%s11658_s1 + $0x15c8] sm:$0xff] }
 0x148   : > { %v881_v11 = vld [vmem:[%s11658_s1 + $0x15e8] sm:$0xff]  ;;  %v8145_v17 = vcombine.high %v876_v8, %v880_v9  ;;  %v8144_v59 = vcombine.low %v876_v8, %v880_v9 }
 0x149   : > { %6232 = vmatmul.mubr.bf16.vlgmr.msra.gmra.mrb[0].mxu0 %v9658_v16  ;;  %6560 = vmatmul.mubr.bf16.vlgmr.msra.gmra.mrb[0].mxu1 %v9658_v16  ;;  %v8147_v18 = vcombine.high %v877_v10, %v881_v11  ;;  %v8146_v26 = vcombine.low %v877_v10, %v881_v11 }
 0x14a   : > { %6241 = vmatpush1.bf16.msra.mxu0 %v8088_v53  ;;  %6569 = vmatpush1.bf16.msra.mxu1 %v8090_v20  ;;  %v884_v53 = vld [vmem:[%s11658_s1 + $0x1600] sm:$0xff] }
 0x14b   : > { %6242 = vmatprep.subr.bf16.mxu0 %v8097_v23  ;;  %6570 = vmatprep.subr.bf16.mxu1 %v8099_v24  ;;  %v888_v20 = vld [vmem:[%s11658_s1 + $0x1620] sm:$0xff]  ;;  %v885_v23 = vld [vmem:[%s11658_s1 + $0x1608] sm:$0xff] }
 0x14c   : > { %6272 = vmatprep.mubr.bf16.mxu0 %v9677_v27  ;;  %6600 = vmatprep.mubr.bf16.mxu1 %v9677_v27  ;;  %v889_v24 = vld [vmem:[%s11658_s1 + $0x1628] sm:$0xff]  ;;  %v8153_v28 = vcombine.high %v884_v53, %v888_v20  ;;  %v8152_v34 = vcombine.low %v884_v53, %v888_v20 }
 0x14d   : > { %v8155_v29 = vcombine.high %v885_v23, %v889_v24  ;;  %v8154_v35 = vcombine.low %v885_v23, %v889_v24 }
 0x14e   : > { %6243 = vmatpush1.bf16.msra.mxu0 %v8096_v15  ;;  %6571 = vmatpush1.bf16.msra.mxu1 %v8098_v30  ;;  %v892_v15 = vld [vmem:[%s11658_s1 + $0x1640] sm:$0xff] }
 0x14f   : > { %6244 = vmatprep.subr.bf16.mxu0 %v8105_v32  ;;  %6572 = vmatprep.subr.bf16.mxu1 %v8107_v33  ;;  %v896_v30 = vld [vmem:[%s11658_s1 + $0x1660] sm:$0xff]  ;;  %v893_v32 = vld [vmem:[%s11658_s1 + $0x1648] sm:$0xff] }
 0x150   : > { %v897_v33 = vld [vmem:[%s11658_s1 + $0x1668] sm:$0xff]  ;;  %v8161_v37 = vcombine.high %v892_v15, %v896_v30  ;;  %v8160_v25 = vcombine.low %v892_v15, %v896_v30 }
 0x151   : > { %v8163_v38 = vcombine.high %v893_v32, %v897_v33  ;;  %v8162_v44 = vcombine.low %v893_v32, %v897_v33 }
 0x152   : > { %6245 = vmatpush1.bf16.msra.mxu0 %v8104_v40  ;;  %6573 = vmatpush1.bf16.msra.mxu1 %v8106_v41  ;;  %v900_v40 = vld [vmem:[%s11658_s1 + $0x1680] sm:$0xff] }
 0x153   : > { %6246 = vmatprep.subr.bf16.mxu0 %v8113_v42  ;;  %6574 = vmatprep.subr.bf16.mxu1 %v8115_v43  ;;  %v904_v41 = vld [vmem:[%s11658_s1 + $0x16a0] sm:$0xff]  ;;  %v901_v42 = vld [vmem:[%s11658_s1 + $0x1688] sm:$0xff] }
 0x154   : > { %v905_v43 = vld [vmem:[%s11658_s1 + $0x16a8] sm:$0xff]  ;;  %v8169_v46 = vcombine.high %v900_v40, %v904_v41  ;;  %v8168_v52 = vcombine.low %v900_v40, %v904_v41 }
 0x155   : > { %v8171_v47 = vcombine.high %v901_v42, %v905_v43  ;;  %v8170_v54 = vcombine.low %v901_v42, %v905_v43 }
 0x156   : > { %6247 = vmatpush1.bf16.msra.mxu0 %v8112_v48  ;;  %6575 = vmatpush1.bf16.msra.mxu1 %v8114_v49  ;;  %v908_v48 = vld [vmem:[%s11658_s1 + $0x16c0] sm:$0xff] }
 0x157   : > { %6248 = vmatprep.subr.bf16.mxu0 %v8121_v50  ;;  %6576 = vmatprep.subr.bf16.mxu1 %v8123_v51  ;;  %v912_v49 = vld [vmem:[%s11658_s1 + $0x16e0] sm:$0xff]  ;;  %v909_v50 = vld [vmem:[%s11658_s1 + $0x16c8] sm:$0xff] }
 0x158   : > { %v913_v51 = vld [vmem:[%s11658_s1 + $0x16e8] sm:$0xff]  ;;  %v8177_v56 = vcombine.high %v908_v48, %v912_v49  ;;  %v8176_v39 = vcombine.low %v908_v48, %v912_v49  ;;  %v9874_v49 = vld [vmem:[%s8685_s19 + $0x30] sm:$0xff] }
 0x159   : > { %v8179_v58 = vcombine.high %v909_v50, %v913_v51  ;;  %v8178_v0 = vcombine.low %v909_v50, %v913_v51  ;;  %v961_v48 = vld [vmem:[%s11658_s1 + $0x1868] sm:$0xff] }
 0x15a   : > { %6249 = vmatpush1.bf16.msra.mxu0 %v8120_v60  ;;  %6577 = vmatpush1.bf16.msra.mxu1 %v8122_v61  ;;  %v916_v60 = vld [vmem:[%s11658_s1 + $0x1700] sm:$0xff] }
 0x15b   : > { %6250 = vmatprep.subr.bf16.mxu0 %v8129_v62  ;;  %6578 = vmatprep.subr.bf16.mxu1 %v8131_v63  ;;  %v920_v61 = vld [vmem:[%s11658_s1 + $0x1720] sm:$0xff]  ;;  %v917_v62 = vld [vmem:[%s11658_s1 + $0x1708] sm:$0xff] }
 0x15c   : > { %v921_v63 = vld [vmem:[%s11658_s1 + $0x1728] sm:$0xff]  ;;  %v8185_v2 = vcombine.high %v916_v60, %v920_v61  ;;  %v8184_v8 = vcombine.low %v916_v60, %v920_v61 }
 0x15d   : > { %v8187_v3 = vcombine.high %v917_v62, %v921_v63  ;;  %v8186_v9 = vcombine.low %v917_v62, %v921_v63  ;;  %v965_v60 = vld [vmem:[%s11658_s1 + $0x1888] sm:$0xff] }
 0x15e   : > { %6251 = vmatpush1.bf16.msra.mxu0 %v8128_v4  ;;  %6579 = vmatpush1.bf16.msra.mxu1 %v8130_v5  ;;  %v924_v4 = vld [vmem:[%s11658_s1 + $0x1740] sm:$0xff]  ;;  %v969_v61 = vld [vmem:[%s11658_s1 + $0x18a8] sm:$0xff] }
 0x15f   : > { %6252 = vmatprep.subr.bf16.mxu0 %v8137_v6  ;;  %6580 = vmatprep.subr.bf16.mxu1 %v8139_v7  ;;  %v928_v5 = vld [vmem:[%s11658_s1 + $0x1760] sm:$0xff]  ;;  %v925_v6 = vld [vmem:[%s11658_s1 + $0x1748] sm:$0xff] }
 0x160   : > { %v929_v7 = vld [vmem:[%s11658_s1 + $0x1768] sm:$0xff]  ;;  %v8193_v10 = vcombine.high %v924_v4, %v928_v5  ;;  %v8192_v53 = vcombine.low %v924_v4, %v928_v5 }
 0x161   : > { %v8195_v11 = vcombine.high %v925_v6, %v929_v7  ;;  %v8194_v20 = vcombine.low %v925_v6, %v929_v7  ;;  %v973_v4 = vld [vmem:[%s11658_s1 + $0x18c8] sm:$0xff]  ;;  %v8234_v7 = vcombine.low %v965_v60, %v969_v61 }
 0x162   : > { %6253 = vmatpush1.bf16.msra.mxu0 %v8136_v13  ;;  %6581 = vmatpush1.bf16.msra.mxu1 %v8138_v14  ;;  %v932_v13 = vld [vmem:[%s11658_s1 + $0x1780] sm:$0xff]  ;;  %v977_v5 = vld [vmem:[%s11658_s1 + $0x18e8] sm:$0xff] }
 0x163   : > { %6254 = vmatprep.subr.bf16.mxu0 %v8145_v17  ;;  %6582 = vmatprep.subr.bf16.mxu1 %v8147_v18  ;;  %v936_v14 = vld [vmem:[%s11658_s1 + $0x17a0] sm:$0xff]  ;;  %v933_v17 = vld [vmem:[%s11658_s1 + $0x1788] sm:$0xff] }
 0x164   : > { %v937_v18 = vld [vmem:[%s11658_s1 + $0x17a8] sm:$0xff]  ;;  %v8201_v23 = vcombine.high %v932_v13, %v936_v14  ;;  %v8200_v15 = vcombine.low %v932_v13, %v936_v14 }
 0x165   : > { %v8203_v24 = vcombine.high %v933_v17, %v937_v18  ;;  %v8202_v30 = vcombine.low %v933_v17, %v937_v18  ;;  %v981_v13 = vld [vmem:[%s11658_s1 + $0x1908] sm:$0xff]  ;;  %v8242_v18 = vcombine.low %v973_v4, %v977_v5 }
 0x166   : > { %6255 = vmatpush1.bf16.msra.mxu0 %v8144_v59  ;;  %6583 = vmatpush1.bf16.msra.mxu1 %v8146_v26  ;;  %v940_v59 = vld [vmem:[%s11658_s1 + $0x17c0] sm:$0xff]  ;;  %v985_v14 = vld [vmem:[%s11658_s1 + $0x1928] sm:$0xff] }
 0x167   : > { %6256 = vmatprep.subr.bf16.mxu0 %v8153_v28  ;;  %6584 = vmatprep.subr.bf16.mxu1 %v8155_v29  ;;  %v944_v26 = vld [vmem:[%s11658_s1 + $0x17e0] sm:$0xff]  ;;  %v941_v28 = vld [vmem:[%s11658_s1 + $0x17c8] sm:$0xff] }
 0x168   : > { %v945_v29 = vld [vmem:[%s11658_s1 + $0x17e8] sm:$0xff]  ;;  %v8209_v32 = vcombine.high %v940_v59, %v944_v26  ;;  %v8208_v40 = vcombine.low %v940_v59, %v944_v26 }
 0x169   : > { %v8211_v33 = vcombine.high %v941_v28, %v945_v29  ;;  %v8210_v41 = vcombine.low %v941_v28, %v945_v29  ;;  %v989_v59 = vld [vmem:[%s11658_s1 + $0x1948] sm:$0xff]  ;;  %v8250_v29 = vcombine.low %v981_v13, %v985_v14 }
 0x16a   : > { %6257 = vmatpush1.bf16.msra.mxu0 %v8152_v34  ;;  %6585 = vmatpush1.bf16.msra.mxu1 %v8154_v35  ;;  %v948_v34 = vld [vmem:[%s11658_s1 + $0x1800] sm:$0xff]  ;;  %v993_v26 = vld [vmem:[%s11658_s1 + $0x1968] sm:$0xff] }
 0x16b   : > { %6258 = vmatprep.subr.bf16.mxu0 %v8161_v37  ;;  %6586 = vmatprep.subr.bf16.mxu1 %v8163_v38  ;;  %v952_v35 = vld [vmem:[%s11658_s1 + $0x1820] sm:$0xff]  ;;  %v949_v37 = vld [vmem:[%s11658_s1 + $0x1808] sm:$0xff] }
 0x16c   : > { %v953_v38 = vld [vmem:[%s11658_s1 + $0x1828] sm:$0xff]  ;;  %v8217_v42 = vcombine.high %v948_v34, %v952_v35  ;;  %v8216_v50 = vcombine.low %v948_v34, %v952_v35 }
 0x16d   : > { %v8219_v43 = vcombine.high %v949_v37, %v953_v38  ;;  %v8218_v51 = vcombine.low %v949_v37, %v953_v38  ;;  %v997_v34 = vld [vmem:[%s11658_s1 + $0x1988] sm:$0xff]  ;;  %v8258_v38 = vcombine.low %v989_v59, %v993_v26 }
 0x16e   : > { %6259 = vmatpush1.bf16.msra.mxu0 %v8160_v25  ;;  %6587 = vmatpush1.bf16.msra.mxu1 %v8162_v44  ;;  %v956_v25 = vld [vmem:[%s11658_s1 + $0x1840] sm:$0xff]  ;;  %v1001_v35 = vld [vmem:[%s11658_s1 + $0x19a8] sm:$0xff] }
 0x16f   : > { %6260 = vmatprep.subr.bf16.mxu0 %v8169_v46  ;;  %6588 = vmatprep.subr.bf16.mxu1 %v8171_v47  ;;  %v960_v44 = vld [vmem:[%s11658_s1 + $0x1860] sm:$0xff]  ;;  %v9865_v46 = vcombine.low %v9667_v19, %v9667_v19  ;;  %v957_v47 = vld [vmem:[%s11658_s1 + $0x1848] sm:$0xff] }
 0x170   : > { %v964_v19 = vld [vmem:[%s11658_s1 + $0x1880] sm:$0xff]  ;;  %v8224_v62 = vcombine.low %v956_v25, %v960_v44  ;;  %v8226_v63 = vcombine.low %v957_v47, %v961_v48 }
 0x172   : > { %6261 = vmatpush1.bf16.msra.mxu0 %v8168_v52  ;;  %6589 = vmatpush1.bf16.msra.mxu1 %v8170_v54  ;;  %v8225_v52 = vcombine.high %v956_v25, %v960_v44  ;;  %v8227_v54 = vcombine.high %v957_v47, %v961_v48  ;;  %v1005_v25 = vld [vmem:[%s11658_s1 + $0x19c8] sm:$0xff]  ;;  %v8266_v48 = vcombine.low %v997_v34, %v1001_v35 }
 0x173   : > { %6262 = vmatprep.subr.bf16.mxu0 %v8177_v56  ;;  %6590 = vmatprep.subr.bf16.mxu1 %v8179_v58  ;;  %v968_v56 = vld [vmem:[%s11658_s1 + $0x18a0] sm:$0xff]  ;;  %v9884_v58 = vcombine.high %v9874_v49, %v9874_v49  ;;  %v1009_v44 = vld [vmem:[%s11658_s1 + $0x19e8] sm:$0xff] }
 0x174   : > { %v8232_v6 = vcombine.low %v964_v19, %v968_v56 }
 0x176   : > { %6263 = vmatpush1.bf16.msra.mxu0 %v8176_v39  ;;  %6591 = vmatpush1.bf16.msra.mxu1 %v8178_v0  ;;  %v8233_v39 = vcombine.high %v964_v19, %v968_v56  ;;  %v8235_v0 = vcombine.high %v965_v60, %v969_v61  ;;  %v1013_v19 = vld [vmem:[%s11658_s1 + $0x1a08] sm:$0xff]  ;;  %v8274_v61 = vcombine.low %v1005_v25, %v1009_v44 }
 0x177   : > { %6264 = vmatprep.subr.bf16.mxu0 %v8185_v2  ;;  %6592 = vmatprep.subr.bf16.mxu1 %v8187_v3  ;;  %v972_v2 = vld [vmem:[%s11658_s1 + $0x18c0] sm:$0xff]  ;;  %v1017_v56 = vld [vmem:[%s11658_s1 + $0x1a28] sm:$0xff] }
 0x178   : > { %v976_v3 = vld [vmem:[%s11658_s1 + $0x18e0] sm:$0xff] }
 0x179   : > { %v8240_v17 = vcombine.low %v972_v2, %v976_v3 }
 0x17a   : > { %6265 = vmatpush1.bf16.msra.mxu0 %v8184_v8  ;;  %6593 = vmatpush1.bf16.msra.mxu1 %v8186_v9  ;;  %v8241_v8 = vcombine.high %v972_v2, %v976_v3  ;;  %v8243_v9 = vcombine.high %v973_v4, %v977_v5  ;;  %v1021_v2 = vld [vmem:[%s11658_s1 + $0x1a48] sm:$0xff]  ;;  %v8282_v5 = vcombine.low %v1013_v19, %v1017_v56 }
 0x17b   : > { %6266 = vmatprep.subr.bf16.mxu0 %v8193_v10  ;;  %6594 = vmatprep.subr.bf16.mxu1 %v8195_v11  ;;  %v980_v10 = vld [vmem:[%s11658_s1 + $0x1900] sm:$0xff]  ;;  %v1025_v3 = vld [vmem:[%s11658_s1 + $0x1a68] sm:$0xff] }
 0x17c   : > { %v984_v11 = vld [vmem:[%s11658_s1 + $0x1920] sm:$0xff] }
 0x17d   : > { %v8248_v28 = vcombine.low %v980_v10, %v984_v11 }
 0x17e   : > { %6267 = vmatpush1.bf16.msra.mxu0 %v8192_v53  ;;  %6595 = vmatpush1.bf16.msra.mxu1 %v8194_v20  ;;  %v8249_v53 = vcombine.high %v980_v10, %v984_v11  ;;  %v8251_v20 = vcombine.high %v981_v13, %v985_v14  ;;  %v1029_v10 = vld [vmem:[%s11658_s1 + $0x1a88] sm:$0xff]  ;;  %v8290_v14 = vcombine.low %v1021_v2, %v1025_v3 }
 0x17f   : > { %6268 = vmatprep.subr.bf16.mxu0 %v8201_v23  ;;  %6596 = vmatprep.subr.bf16.mxu1 %v8203_v24  ;;  %v988_v23 = vld [vmem:[%s11658_s1 + $0x1940] sm:$0xff]  ;;  %v1033_v11 = vld [vmem:[%s11658_s1 + $0x1aa8] sm:$0xff] }
 0x180   : > { %v992_v24 = vld [vmem:[%s11658_s1 + $0x1960] sm:$0xff] }
 0x181   : > { %v8256_v37 = vcombine.low %v988_v23, %v992_v24 }
 0x182   : > { %6269 = vmatpush1.bf16.msra.mxu0 %v8200_v15  ;;  %6597 = vmatpush1.bf16.msra.mxu1 %v8202_v30  ;;  %v8257_v15 = vcombine.high %v988_v23, %v992_v24  ;;  %v8259_v30 = vcombine.high %v989_v59, %v993_v26  ;;  %v1037_v23 = vld [vmem:[%s11658_s1 + $0x1ac8] sm:$0xff]  ;;  %v8298_v26 = vcombine.low %v1029_v10, %v1033_v11 }
 0x183   : > { %6270 = vmatprep.subr.bf16.mxu0 %v8209_v32  ;;  %6598 = vmatprep.subr.bf16.mxu1 %v8211_v33  ;;  %v996_v32 = vld [vmem:[%s11658_s1 + $0x1980] sm:$0xff]  ;;  %v1041_v24 = vld [vmem:[%s11658_s1 + $0x1ae8] sm:$0xff] }
 0x184   : > { %v1000_v33 = vld [vmem:[%s11658_s1 + $0x19a0] sm:$0xff] }
 0x185   : > { %v8264_v47 = vcombine.low %v996_v32, %v1000_v33 }
 0x186   : > { %6271 = vmatpush1.bf16.msra.mxu0 %v8208_v40  ;;  %6599 = vmatpush1.bf16.msra.mxu1 %v8210_v41  ;;  %v8265_v40 = vcombine.high %v996_v32, %v1000_v33  ;;  %v8267_v41 = vcombine.high %v997_v34, %v1001_v35  ;;  %v1045_v32 = vld [vmem:[%s11658_s1 + $0x1b08] sm:$0xff]  ;;  %v8306_v35 = vcombine.low %v1037_v23, %v1041_v24 }
 0x187   : > { %6281 = vmatprep.subr.bf16.mxu0 %v8217_v42  ;;  %6609 = vmatprep.subr.bf16.mxu1 %v8219_v43  ;;  %v1004_v42 = vld [vmem:[%s11658_s1 + $0x19c0] sm:$0xff]  ;;  %v1049_v33 = vld [vmem:[%s11658_s1 + $0x1b28] sm:$0xff] }
 0x188   : > { %v1008_v43 = vld [vmem:[%s11658_s1 + $0x19e0] sm:$0xff] }
 0x189   : > { %6273 = vmatmul.mubr.bf16.vlgmr.msra.gmra.mrb[0].mxu0 %v9865_v46  ;;  %6601 = vmatmul.mubr.bf16.vlgmr.msra.gmra.mrb[0].mxu1 %v9865_v46  ;;  %v8272_v60 = vcombine.low %v1004_v42, %v1008_v43 }
 0x18a   : > { %6282 = vmatpush1.bf16.msra.mxu0 %v8216_v50  ;;  %6610 = vmatpush1.bf16.msra.mxu1 %v8218_v51  ;;  %v8273_v50 = vcombine.high %v1004_v42, %v1008_v43  ;;  %v8275_v51 = vcombine.high %v1005_v25, %v1009_v44  ;;  %v1053_v42 = vld [vmem:[%s11658_s1 + $0x1b48] sm:$0xff]  ;;  %v8314_v44 = vcombine.low %v1045_v32, %v1049_v33 }
 0x18b   : > { %6283 = vmatprep.subr.bf16.mxu0 %v8225_v52  ;;  %6611 = vmatprep.subr.bf16.mxu1 %v8227_v54  ;;  %v1012_v52 = vld [vmem:[%s11658_s1 + $0x1a00] sm:$0xff]  ;;  %v1057_v43 = vld [vmem:[%s11658_s1 + $0x1b68] sm:$0xff] }
 0x18c   : > { %6313 = vmatprep.mubr.bf16.mxu0 %v9884_v58  ;;  %6641 = vmatprep.mubr.bf16.mxu1 %v9884_v58  ;;  %v1016_v54 = vld [vmem:[%s11658_s1 + $0x1a20] sm:$0xff] }
 0x18d   : > { %v8280_v4 = vcombine.low %v1012_v52, %v1016_v54 }
 0x18e   : > { %6284 = vmatpush1.bf16.msra.mxu0 %v8224_v62  ;;  %6612 = vmatpush1.bf16.msra.mxu1 %v8226_v63  ;;  %v8281_v62 = vcombine.high %v1012_v52, %v1016_v54  ;;  %v8283_v63 = vcombine.high %v1013_v19, %v1017_v56  ;;  %v1061_v52 = vld [vmem:[%s11658_s1 + $0x1b88] sm:$0xff]  ;;  %v8322_v56 = vcombine.low %v1053_v42, %v1057_v43 }
 0x18f   : > { %6285 = vmatprep.subr.bf16.mxu0 %v8233_v39  ;;  %6613 = vmatprep.subr.bf16.mxu1 %v8235_v0  ;;  %v1020_v39 = vld [vmem:[%s11658_s1 + $0x1a40] sm:$0xff]  ;;  %v1065_v54 = vld [vmem:[%s11658_s1 + $0x1ba8] sm:$0xff] }
 0x190   : > { %v1024_v0 = vld [vmem:[%s11658_s1 + $0x1a60] sm:$0xff] }
 0x191   : > { %v8288_v13 = vcombine.low %v1020_v39, %v1024_v0 }
 0x192   : > { %6286 = vmatpush1.bf16.msra.mxu0 %v8232_v6  ;;  %6614 = vmatpush1.bf16.msra.mxu1 %v8234_v7  ;;  %v8289_v6 = vcombine.high %v1020_v39, %v1024_v0  ;;  %v8291_v7 = vcombine.high %v1021_v2, %v1025_v3  ;;  %v1069_v39 = vld [vmem:[%s11658_s1 + $0x1bc8] sm:$0xff]  ;;  %v8330_v3 = vcombine.low %v1061_v52, %v1065_v54 }
 0x193   : > { %6287 = vmatprep.subr.bf16.mxu0 %v8241_v8  ;;  %6615 = vmatprep.subr.bf16.mxu1 %v8243_v9  ;;  %v1028_v8 = vld [vmem:[%s11658_s1 + $0x1a80] sm:$0xff]  ;;  %v1073_v0 = vld [vmem:[%s11658_s1 + $0x1be8] sm:$0xff] }
 0x194   : > { %v1032_v9 = vld [vmem:[%s11658_s1 + $0x1aa0] sm:$0xff] }
 0x195   : > { %v8296_v59 = vcombine.low %v1028_v8, %v1032_v9 }
 0x196   : > { %6288 = vmatpush1.bf16.msra.mxu0 %v8240_v17  ;;  %6616 = vmatpush1.bf16.msra.mxu1 %v8242_v18  ;;  %v8297_v17 = vcombine.high %v1028_v8, %v1032_v9  ;;  %v8299_v18 = vcombine.high %v1029_v10, %v1033_v11  ;;  %v1077_v8 = vld [vmem:[%s11658_s1 + $0x1c08] sm:$0xff]  ;;  %v8338_v11 = vcombine.low %v1069_v39, %v1073_v0 }
 0x197   : > { %6289 = vmatprep.subr.bf16.mxu0 %v8249_v53  ;;  %6617 = vmatprep.subr.bf16.mxu1 %v8251_v20  ;;  %v1036_v53 = vld [vmem:[%s11658_s1 + $0x1ac0] sm:$0xff]  ;;  %v1081_v9 = vld [vmem:[%s11658_s1 + $0x1c28] sm:$0xff] }
 0x198   : > { %v1040_v20 = vld [vmem:[%s11658_s1 + $0x1ae0] sm:$0xff] }
 0x199   : > { %v8304_v34 = vcombine.low %v1036_v53, %v1040_v20 }
 0x19a   : > { %6290 = vmatpush1.bf16.msra.mxu0 %v8248_v28  ;;  %6618 = vmatpush1.bf16.msra.mxu1 %v8250_v29  ;;  %v8305_v28 = vcombine.high %v1036_v53, %v1040_v20  ;;  %v8307_v29 = vcombine.high %v1037_v23, %v1041_v24  ;;  %v10072_v53 = vcombine.low %v9874_v49, %v9874_v49  ;;  %v1085_v20 = vld [vmem:[%s11658_s1 + $0x1c48] sm:$0xff]  ;;  %v1092_v49 = vld [vmem:[%s11658_s1 + $0x1c80] sm:$0xff] }
 0x19b   : > { %6291 = vmatprep.subr.bf16.mxu0 %v8257_v15  ;;  %6619 = vmatprep.subr.bf16.mxu1 %v8259_v30  ;;  %v1044_v15 = vld [vmem:[%s11658_s1 + $0x1b00] sm:$0xff]  ;;  %v1089_v23 = vld [vmem:[%s11658_s1 + $0x1c68] sm:$0xff] }
 0x19c   : > { %v1048_v30 = vld [vmem:[%s11658_s1 + $0x1b20] sm:$0xff] }
 0x19d   : > { %v8312_v25 = vcombine.low %v1044_v15, %v1048_v30 }
 0x19e   : > { %6292 = vmatpush1.bf16.msra.mxu0 %v8256_v37  ;;  %6620 = vmatpush1.bf16.msra.mxu1 %v8258_v38  ;;  %v8313_v37 = vcombine.high %v1044_v15, %v1048_v30  ;;  %v8315_v38 = vcombine.high %v1045_v32, %v1049_v33  ;;  %v1093_v15 = vld [vmem:[%s11658_s1 + $0x1c88] sm:$0xff]  ;;  %v8354_v33 = vcombine.low %v1085_v20, %v1089_v23 }
 0x19f   : > { %6293 = vmatprep.subr.bf16.mxu0 %v8265_v40  ;;  %6621 = vmatprep.subr.bf16.mxu1 %v8267_v41  ;;  %v1052_v40 = vld [vmem:[%s11658_s1 + $0x1b40] sm:$0xff]  ;;  %v1097_v30 = vld [vmem:[%s11658_s1 + $0x1ca8] sm:$0xff] }
 0x1a0   : > { %v1056_v41 = vld [vmem:[%s11658_s1 + $0x1b60] sm:$0xff] }
 0x1a1   : > { %v8320_v19 = vcombine.low %v1052_v40, %v1056_v41 }
 0x1a2   : > { %6294 = vmatpush1.bf16.msra.mxu0 %v8264_v47  ;;  %6622 = vmatpush1.bf16.msra.mxu1 %v8266_v48  ;;  %v8321_v47 = vcombine.high %v1052_v40, %v1056_v41  ;;  %v8323_v48 = vcombine.high %v1053_v42, %v1057_v43  ;;  %v8568_v40 = vmov 0   ;;  %v1101_v41 = vld [vmem:[%s11658_s1 + $0x1cc8] sm:$0xff] }
 0x1a3   : > { %6295 = vmatprep.subr.bf16.mxu0 %v8273_v50  ;;  %6623 = vmatprep.subr.bf16.mxu1 %v8275_v51  ;;  %v1060_v50 = vld [vmem:[%s11658_s1 + $0x1b80] sm:$0xff]  ;;  %v1105_v42 = vld [vmem:[%s11658_s1 + $0x1ce8] sm:$0xff] }
 0x1a4   : > { %v1064_v51 = vld [vmem:[%s11658_s1 + $0x1ba0] sm:$0xff] }
 0x1a5   : > { %v8328_v2 = vcombine.low %v1060_v50, %v1064_v51 }
 0x1a6   : > { %6296 = vmatpush1.bf16.msra.mxu0 %v8272_v60  ;;  %6624 = vmatpush1.bf16.msra.mxu1 %v8274_v61  ;;  %v8329_v60 = vcombine.high %v1060_v50, %v1064_v51  ;;  %v8331_v61 = vcombine.high %v1061_v52, %v1065_v54  ;;  %v1112_v50 = vld [vmem:[%s11658_s1 + $0x1d20] sm:$0xff]  ;;  %v1109_v51 = vld [vmem:[%s11658_s1 + $0x1d08] sm:$0xff] }
 0x1a7   : > { %6297 = vmatprep.subr.bf16.mxu0 %v8281_v62  ;;  %6625 = vmatprep.subr.bf16.mxu1 %v8283_v63  ;;  %v1068_v62 = vld [vmem:[%s11658_s1 + $0x1bc0] sm:$0xff]  ;;  %v1113_v52 = vld [vmem:[%s11658_s1 + $0x1d28] sm:$0xff] }
 0x1a8   : > { %v1072_v63 = vld [vmem:[%s11658_s1 + $0x1be0] sm:$0xff] }
 0x1a9   : > { %v8336_v10 = vcombine.low %v1068_v62, %v1072_v63 }
 0x1aa   : > { %6298 = vmatpush1.bf16.msra.mxu0 %v8280_v4  ;;  %6626 = vmatpush1.bf16.msra.mxu1 %v8282_v5  ;;  %v8337_v4 = vcombine.high %v1068_v62, %v1072_v63  ;;  %v8339_v5 = vcombine.high %v1069_v39, %v1073_v0  ;;  %v1120_v62 = vld [vmem:[%s11658_s1 + $0x1d60] sm:$0xff]  ;;  %v1117_v63 = vld [vmem:[%s11658_s1 + $0x1d48] sm:$0xff] }
 0x1ab   : > { %6299 = vmatprep.subr.bf16.mxu0 %v8289_v6  ;;  %6627 = vmatprep.subr.bf16.mxu1 %v8291_v7  ;;  %v1076_v6 = vld [vmem:[%s11658_s1 + $0x1c00] sm:$0xff]  ;;  %v1121_v39 = vld [vmem:[%s11658_s1 + $0x1d68] sm:$0xff] }
 0x1ac   : > { %v1080_v7 = vld [vmem:[%s11658_s1 + $0x1c20] sm:$0xff] }
 0x1ad   : > { %v8344_v24 = vcombine.low %v1076_v6, %v1080_v7 }
 0x1ae   : > { %6300 = vmatpush1.bf16.msra.mxu0 %v8288_v13  ;;  %6628 = vmatpush1.bf16.msra.mxu1 %v8290_v14  ;;  %v8345_v13 = vcombine.high %v1076_v6, %v1080_v7  ;;  %v8347_v14 = vcombine.high %v1077_v8, %v1081_v9  ;;  %v1128_v6 = vld [vmem:[%s11658_s1 + $0x1da0] sm:$0xff]  ;;  %v1125_v7 = vld [vmem:[%s11658_s1 + $0x1d88] sm:$0xff] }
 0x1af   : > { %6301 = vmatprep.subr.bf16.mxu0 %v8297_v17  ;;  %6629 = vmatprep.subr.bf16.mxu1 %v8299_v18  ;;  %v1084_v17 = vld [vmem:[%s11658_s1 + $0x1c40] sm:$0xff] }
 0x1b0   : > { %v1088_v18 = vld [vmem:[%s11658_s1 + $0x1c60] sm:$0xff] }
 0x1b1   : > { %v8352_v32 = vcombine.low %v1084_v17, %v1088_v18 }
 0x1b2   : > { %6302 = vmatpush1.bf16.msra.mxu0 %v8296_v59  ;;  %6630 = vmatpush1.bf16.msra.mxu1 %v8298_v26  ;;  %v8346_v59 = vcombine.low %v1077_v8, %v1081_v9  ;;  %v8353_v26 = vcombine.high %v1084_v17, %v1088_v18  ;;  %v1129_v8 = vld [vmem:[%s11658_s1 + $0x1da8] sm:$0xff]  ;;  %v1136_v17 = vld [vmem:[%s11658_s1 + $0x1de0] sm:$0xff] }
 0x1b3   : > { %6303 = vmatprep.subr.bf16.mxu0 %v8305_v28  ;;  %6631 = vmatprep.subr.bf16.mxu1 %v8307_v29  ;;  %v8355_v28 = vcombine.high %v1085_v20, %v1089_v23  ;;  %v1096_v29 = vld [vmem:[%s11658_s1 + $0x1ca0] sm:$0xff]  ;;  %v1133_v18 = vld [vmem:[%s11658_s1 + $0x1dc8] sm:$0xff] }
 0x1b4   : > { %v8360_v43 = vcombine.low %v1092_v49, %v1096_v29  ;;  %v1137_v20 = vld [vmem:[%s11658_s1 + $0x1de8] sm:$0xff] }
 0x1b6   : > { %6304 = vmatpush1.bf16.msra.mxu0 %v8304_v34  ;;  %6632 = vmatpush1.bf16.msra.mxu1 %v8306_v35  ;;  %v8361_v34 = vcombine.high %v1092_v49, %v1096_v29  ;;  %v8363_v35 = vcombine.high %v1093_v15, %v1097_v30  ;;  %v186_v49 = vld [vmem:[%s11658_s1 + $0x30] sm:$0xff]  ;;  %v183_v29 = vld [vmem:[%s11658_s1 + $0x18] sm:$0xff] }
 0x1b7   : > { %6305 = vmatprep.subr.bf16.mxu0 %v8313_v37  ;;  %6633 = vmatprep.subr.bf16.mxu1 %v8315_v38  ;;  %v1100_v37 = vld [vmem:[%s11658_s1 + $0x1cc0] sm:$0xff] }
 0x1b8   : > { %v1104_v38 = vld [vmem:[%s11658_s1 + $0x1ce0] sm:$0xff] }
 0x1b9   : > { %v8368_v54 = vcombine.low %v1100_v37, %v1104_v38 }
 0x1ba   : > { %6306 = vmatpush1.bf16.msra.mxu0 %v8312_v25  ;;  %6634 = vmatpush1.bf16.msra.mxu1 %v8314_v44  ;;  %v8362_v25 = vcombine.low %v1093_v15, %v1097_v30  ;;  %v8369_v44 = vcombine.high %v1100_v37, %v1104_v38  ;;  %v187_v15 = vld [vmem:[%s11658_s1 + $0x38] sm:$0xff]  ;;  %v194_v37 = vld [vmem:[%s11658_s1 + $0x70] sm:$0xff] }
 0x1bb   : > { %6307 = vmatprep.subr.bf16.mxu0 %v8321_v47  ;;  %6635 = vmatprep.subr.bf16.mxu1 %v8323_v48  ;;  %v8371_v47 = vcombine.high %v1101_v41, %v1105_v42  ;;  %v1108_v48 = vld [vmem:[%s11658_s1 + $0x1d00] sm:$0xff]  ;;  %v8557_v38 = vld [vmem:[%s8685_s19 + $0x38] ss:$0 sps:$4 sm:$0xff]  }
 0x1bc   : > { %v8376_v0 = vcombine.low %v1108_v48, %v1112_v50 }
 0x1be   : > { %6308 = vmatpush1.bf16.msra.mxu0 %v8320_v19  ;;  %6636 = vmatpush1.bf16.msra.mxu1 %v8322_v56  ;;  %v8370_v19 = vcombine.low %v1101_v41, %v1105_v42  ;;  %v8377_v56 = vcombine.high %v1108_v48, %v1112_v50  ;;  %v191_v41 = vld [vmem:[%s11658_s1 + $0x58] sm:$0xff]  ;;  %v198_v48 = vld [vmem:[%s11658_s1 + $0x90] sm:$0xff] }
 0x1bf   : > { %6309 = vmatprep.subr.bf16.mxu0 %v8329_v60  ;;  %6637 = vmatprep.subr.bf16.mxu1 %v8331_v61  ;;  %v8379_v60 = vcombine.high %v1109_v51, %v1113_v52  ;;  %v1116_v61 = vld [vmem:[%s11658_s1 + $0x1d40] sm:$0xff]  ;;  %v195_v42 = vld [vmem:[%s11658_s1 + $0x78] sm:$0xff]  ;;  %v202_v50 = vld [vmem:[%s11658_s1 + $0xb0] sm:$0xff] }
 0x1c0   : > { %v8384_v9 = vcombine.low %v1116_v61, %v1120_v62 }
 0x1c2   : > { %6310 = vmatpush1.bf16.msra.mxu0 %v8328_v2  ;;  %6638 = vmatpush1.bf16.msra.mxu1 %v8330_v3  ;;  %v8378_v2 = vcombine.low %v1109_v51, %v1113_v52  ;;  %v8385_v3 = vcombine.high %v1116_v61, %v1120_v62  ;;  %v199_v51 = vld [vmem:[%s11658_s1 + $0x98] sm:$0xff]  ;;  %v206_v61 = vld [vmem:[%s11658_s1 + $0xd0] sm:$0xff] }
 0x1c3   : > { %6311 = vmatprep.subr.bf16.mxu0 %v8337_v4  ;;  %6639 = vmatprep.subr.bf16.mxu1 %v8339_v5  ;;  %v8387_v4 = vcombine.high %v1117_v63, %v1121_v39  ;;  %v1124_v5 = vld [vmem:[%s11658_s1 + $0x1d80] sm:$0xff]  ;;  %v203_v52 = vld [vmem:[%s11658_s1 + $0xb8] sm:$0xff]  ;;  %v210_v62 = vld [vmem:[%s11658_s1 + $0xf0] sm:$0xff] }
 0x1c4   : > { %v8392_v23 = vcombine.low %v1124_v5, %v1128_v6 }
 0x1c6   : > { %6312 = vmatpush1.bf16.msra.mxu0 %v8336_v10  ;;  %6640 = vmatpush1.bf16.msra.mxu1 %v8338_v11  ;;  %v8386_v10 = vcombine.low %v1117_v63, %v1121_v39  ;;  %v8393_v11 = vcombine.high %v1124_v5, %v1128_v6  ;;  %v207_v63 = vld [vmem:[%s11658_s1 + $0xd8] sm:$0xff]  ;;  %v214_v5 = vld [vmem:[%s11658_s1 + $0x110] sm:$0xff] }
 0x1c7   : > { %6322 = vmatprep.subr.bf16.mxu0 %v8345_v13  ;;  %6650 = vmatprep.subr.bf16.mxu1 %v8347_v14  ;;  %v8395_v13 = vcombine.high %v1125_v7, %v1129_v8  ;;  %v1132_v14 = vld [vmem:[%s11658_s1 + $0x1dc0] sm:$0xff]  ;;  %v211_v39 = vld [vmem:[%s11658_s1 + $0xf8] sm:$0xff]  ;;  %v218_v6 = vld [vmem:[%s11658_s1 + $0x130] sm:$0xff] }
 0x1c8   : > { %v8400_v30 = vcombine.low %v1132_v14, %v1136_v17 }
 0x1c9   : > { %6314 = vmatmul.mubr.bf16.vlgmr.msra.gmra.mrb[0].mxu0 %v10072_v53  ;;  %6642 = vmatmul.mubr.bf16.vlgmr.msra.gmra.mrb[0].mxu1 %v10072_v53 }
 0x1ca   : > { %6323 = vmatpush1.bf16.msra.mxu0 %v8344_v24  ;;  %6651 = vmatpush1.bf16.msra.mxu1 %v8346_v59  ;;  %v8394_v24 = vcombine.low %v1125_v7, %v1129_v8  ;;  %v8401_v59 = vcombine.high %v1132_v14, %v1136_v17  ;;  %v219_v7 = vld [vmem:[%s11658_s1 + $0x138] sm:$0xff]  ;;  %v7476_v8 = vcombine.low %v206_v61, %v210_v62  ;;  %v226_v14 = vld [vmem:[%s11658_s1 + $0x170] sm:$0xff] }
 0x1cb   : > { %6324 = vmatprep.subr.bf16.mxu0 %v8353_v26  ;;  %6652 = vmatprep.subr.bf16.mxu1 %v8355_v28  ;;  %v8403_v26 = vcombine.high %v1133_v18, %v1137_v20  ;;  %v182_v28 = vld [vmem:[%s11658_s1 + $0x10] sm:$0xff]  ;;  %v223_v17 = vld [vmem:[%s11658_s1 + $0x158] sm:$0xff] }
 0x1cc   : > { %6354 = vmatprep.mubr.bf16.mxu0 %v8568_v40  ;;  %6682 = vmatprep.mubr.bf16.mxu1 %v8568_v40 }
 0x1ce   : > { %6325 = vmatpush1.bf16.msra.mxu0 %v8352_v32  ;;  %6653 = vmatpush1.bf16.msra.mxu1 %v8354_v33  ;;  %v8402_v32 = vcombine.low %v1133_v18, %v1137_v20  ;;  %v7453_v33 = vcombine.high %v182_v28, %v186_v49  ;;  %v227_v18 = vld [vmem:[%s11658_s1 + $0x178] sm:$0xff]  ;;  %v7484_v20 = vcombine.low %v214_v5, %v218_v6 }
 0x1cf   : > { %6326 = vmatprep.subr.bf16.mxu0 %v8361_v34  ;;  %6654 = vmatprep.subr.bf16.mxu1 %v8363_v35  ;;  %v7455_v34 = vcombine.high %v183_v29, %v187_v15  ;;  %v190_v35 = vld [vmem:[%s11658_s1 + $0x50] sm:$0xff] }
 0x1d2   : > { %6327 = vmatpush1.bf16.msra.mxu0 %v8360_v43  ;;  %6655 = vmatpush1.bf16.msra.mxu1 %v8362_v25  ;;  %v7452_v43 = vcombine.low %v182_v28, %v186_v49  ;;  %v7454_v25 = vcombine.low %v183_v29, %v187_v15  ;;  %v234_v28 = vld [vmem:[%s11658_s1 + $0x1b0] sm:$0xff]  ;;  %v231_v49 = vld [vmem:[%s11658_s1 + $0x198] sm:$0xff] }
 0x1d3   : > { %6328 = vmatprep.subr.bf16.mxu0 %v8369_v44  ;;  %6656 = vmatprep.subr.bf16.mxu1 %v8371_v47  ;;  %v7461_v44 = vcombine.high %v190_v35, %v194_v37  ;;  %v7463_v47 = vcombine.high %v191_v41, %v195_v42  ;;  %v235_v29 = vld [vmem:[%s11658_s1 + $0x1b8] sm:$0xff] }
 0x1d6   : > { %6329 = vmatpush1.bf16.msra.mxu0 %v8368_v54  ;;  %6657 = vmatpush1.bf16.msra.mxu1 %v8370_v19  ;;  %v7460_v54 = vcombine.low %v190_v35, %v194_v37  ;;  %v7462_v19 = vcombine.low %v191_v41, %v195_v42  ;;  %v242_v35 = vld [vmem:[%s11658_s1 + $0x1f0] sm:$0xff]  ;;  %v239_v37 = vld [vmem:[%s11658_s1 + $0x1d8] sm:$0xff]  ;;  %v7502_v42 = vcombine.low %v231_v49, %v235_v29 }
 0x1d7   : > { %6330 = vmatprep.subr.bf16.mxu0 %v8377_v56  ;;  %6658 = vmatprep.subr.bf16.mxu1 %v8379_v60  ;;  %v7469_v56 = vcombine.high %v198_v48, %v202_v50  ;;  %v7471_v60 = vcombine.high %v199_v51, %v203_v52 }
 0x1da   : > { %6331 = vmatpush1.bf16.msra.mxu0 %v8376_v0  ;;  %6659 = vmatpush1.bf16.msra.mxu1 %v8378_v2  ;;  %v7468_v0 = vcombine.low %v198_v48, %v202_v50  ;;  %v7470_v2 = vcombine.low %v199_v51, %v203_v52  ;;  %v247_v48 = vld [vmem:[%s11658_s1 + $0x218] sm:$0xff] }
 0x1db   : > { %6332 = vmatprep.subr.bf16.mxu0 %v8385_v3  ;;  %6660 = vmatprep.subr.bf16.mxu1 %v8387_v4  ;;  %v7477_v3 = vcombine.high %v206_v61, %v210_v62  ;;  %v7479_v4 = vcombine.high %v207_v63, %v211_v39  ;;  %v251_v50 = vld [vmem:[%s11658_s1 + $0x238] sm:$0xff] }
 0x1dc   : > { %v255_v61 = vld [vmem:[%s11658_s1 + $0x258] sm:$0xff] }
 0x1dd   : > { %v259_v62 = vld [vmem:[%s11658_s1 + $0x278] sm:$0xff] }
 0x1de   : > { %6333 = vmatpush1.bf16.msra.mxu0 %v8384_v9  ;;  %6661 = vmatpush1.bf16.msra.mxu1 %v8386_v10  ;;  %v7478_v9 = vcombine.low %v207_v63, %v211_v39  ;;  %v7485_v10 = vcombine.high %v214_v5, %v218_v6  ;;  %v7518_v39 = vcombine.low %v247_v48, %v251_v50  ;;  %v263_v5 = vld [vmem:[%s11658_s1 + $0x298] sm:$0xff] }
 0x1df   : > { %6334 = vmatprep.subr.bf16.mxu0 %v8393_v11  ;;  %6662 = vmatprep.subr.bf16.mxu1 %v8395_v13  ;;  %v222_v13 = vld [vmem:[%s11658_s1 + $0x150] sm:$0xff]  ;;  %v267_v6 = vld [vmem:[%s11658_s1 + $0x2b8] sm:$0xff] }
 0x1e0   : > { %v7492_v15 = vcombine.low %v222_v13, %v226_v14 }
 0x1e2   : > { %6335 = vmatpush1.bf16.msra.mxu0 %v8392_v23  ;;  %6663 = vmatpush1.bf16.msra.mxu1 %v8394_v24  ;;  %v7493_v24 = vcombine.high %v222_v13, %v226_v14  ;;  %v271_v13 = vld [vmem:[%s11658_s1 + $0x2d8] sm:$0xff] }
 0x1e3   : > { %6336 = vmatprep.subr.bf16.mxu0 %v8401_v59  ;;  %6664 = vmatprep.subr.bf16.mxu1 %v8403_v26  ;;  %v7495_v59 = vcombine.high %v223_v17, %v227_v18  ;;  %v230_v26 = vld [vmem:[%s11658_s1 + $0x190] sm:$0xff]  ;;  %v275_v14 = vld [vmem:[%s11658_s1 + $0x2f8] sm:$0xff] }
 0x1e4   : > { %v7500_v41 = vcombine.low %v230_v26, %v234_v28 }
 0x1e6   : > { %6337 = vmatpush1.bf16.msra.mxu0 %v8400_v30  ;;  %6665 = vmatpush1.bf16.msra.mxu1 %v8402_v32  ;;  %v7494_v30 = vcombine.low %v223_v17, %v227_v18  ;;  %v7501_v32 = vcombine.high %v230_v26, %v234_v28  ;;  %v7534_v18 = vcombine.low %v263_v5, %v267_v6  ;;  %v279_v26 = vld [vmem:[%s11658_s1 + $0x318] sm:$0xff] }
 0x1e7   : > { %6691 = vmatprep.subr.bf16.mxu0 %v7453_v33  ;;  %7019 = vmatprep.subr.bf16.mxu1 %v7455_v34  ;;  %v7503_v33 = vcombine.high %v231_v49, %v235_v29  ;;  %v238_v34 = vld [vmem:[%s11658_s1 + $0x1d0] sm:$0xff]  ;;  %v283_v28 = vld [vmem:[%s11658_s1 + $0x338] sm:$0xff]  ;;  %v7542_v29 = vcombine.low %v271_v13, %v275_v14 }
 0x1e8   : > { %v7508_v51 = vcombine.low %v238_v34, %v242_v35 }
 0x1e9   : > { %6355 = vmatmul.mubr.bf16.vlgmr.msra.gmra.mrb[0].mxu0 %v8557_v38  ;;  %6683 = vmatmul.mubr.bf16.vlgmr.msra.gmra.mrb[0].mxu1 %v8557_v38  ;;  %v243_v38 = vld [vmem:[%s11658_s1 + $0x1f8] sm:$0xff] }
 0x1ea   : > { %6692 = vmatpush1.bf16.msra.mxu0 %v7452_v43  ;;  %7020 = vmatpush1.bf16.msra.mxu1 %v7454_v25  ;;  %v7509_v43 = vcombine.high %v238_v34, %v242_v35  ;;  %v7511_v25 = vcombine.high %v239_v37, %v243_v38  ;;  %v7510_v52 = vcombine.low %v239_v37, %v243_v38  ;;  %v287_v34 = vld [vmem:[%s11658_s1 + $0x358] sm:$0xff] }
 0x1eb   : > { %6693 = vmatprep.subr.bf16.mxu0 %v7461_v44  ;;  %7021 = vmatprep.subr.bf16.mxu1 %v7463_v47  ;;  %v246_v44 = vld [vmem:[%s11658_s1 + $0x210] sm:$0xff]  ;;  %v291_v35 = vld [vmem:[%s11658_s1 + $0x378] sm:$0xff]  ;;  %v7550_v38 = vcombine.low %v279_v26, %v283_v28 }
 0x1ec   : > { %6723 = vmatprep.mubr.bf16.mxu0 %v8704_v57  ;;  %7051 = vmatprep.mubr.bf16.mxu1 %v8704_v57  ;;  %v215_v57 = vld [vmem:[%s11658_s1 + $0x118] sm:$0xff]  ;;  %v250_v47 = vld [vmem:[%s11658_s1 + $0x230] sm:$0xff] }
 0x1ed   : > { %v7487_v11 = vcombine.high %v215_v57, %v219_v7  ;;  %v7486_v23 = vcombine.low %v215_v57, %v219_v7  ;;  %v7516_v63 = vcombine.low %v246_v44, %v250_v47  ;;  %v7526_v7 = vcombine.low %v255_v61, %v259_v62 }
 0x1ee   : > { %6694 = vmatpush1.bf16.msra.mxu0 %v7460_v54  ;;  %7022 = vmatpush1.bf16.msra.mxu1 %v7462_v19  ;;  %v7517_v54 = vcombine.high %v246_v44, %v250_v47  ;;  %v7519_v19 = vcombine.high %v247_v48, %v251_v50  ;;  %v295_v44 = vld [vmem:[%s11658_s1 + $0x398] sm:$0xff]  ;;  %v7558_v50 = vcombine.low %v287_v34, %v291_v35 }
 0x1ef   : > { %6695 = vmatprep.subr.bf16.mxu0 %v7469_v56  ;;  %7023 = vmatprep.subr.bf16.mxu1 %v7471_v60  ;;  %v254_v56 = vld [vmem:[%s11658_s1 + $0x250] sm:$0xff]  ;;  %v299_v47 = vld [vmem:[%s11658_s1 + $0x3b8] sm:$0xff] }
 0x1f0   : > { %v258_v60 = vld [vmem:[%s11658_s1 + $0x270] sm:$0xff] }
 0x1f1   : > { %v7524_v57 = vcombine.low %v254_v56, %v258_v60 }
 0x1f2   : > { %6696 = vmatpush1.bf16.msra.mxu0 %v7468_v0  ;;  %7024 = vmatpush1.bf16.msra.mxu1 %v7470_v2  ;;  %v7525_v0 = vcombine.high %v254_v56, %v258_v60  ;;  %v7527_v2 = vcombine.high %v255_v61, %v259_v62  ;;  %v303_v56 = vld [vmem:[%s11658_s1 + $0x3d8] sm:$0xff]  ;;  %v7566_v62 = vcombine.low %v295_v44, %v299_v47 }
 0x1f3   : > { %6697 = vmatprep.subr.bf16.mxu0 %v7477_v3  ;;  %7025 = vmatprep.subr.bf16.mxu1 %v7479_v4  ;;  %v262_v3 = vld [vmem:[%s11658_s1 + $0x290] sm:$0xff]  ;;  %v307_v60 = vld [vmem:[%s11658_s1 + $0x3f8] sm:$0xff] }
 0x1f4   : > { %v266_v4 = vld [vmem:[%s11658_s1 + $0x2b0] sm:$0xff] }
 0x1f5   : > { %v7532_v17 = vcombine.low %v262_v3, %v266_v4 }
 0x1f6   : > { %6698 = vmatpush1.bf16.msra.mxu0 %v7476_v8  ;;  %7026 = vmatpush1.bf16.msra.mxu1 %v7478_v9  ;;  %v7533_v8 = vcombine.high %v262_v3, %v266_v4  ;;  %v7535_v9 = vcombine.high %v263_v5, %v267_v6  ;;  %v311_v3 = vld [vmem:[%s11658_s1 + $0x418] sm:$0xff]  ;;  %v7574_v6 = vcombine.low %v303_v56, %v307_v60 }
 0x1f7   : > { %6699 = vmatprep.subr.bf16.mxu0 %v7485_v10  ;;  %7027 = vmatprep.subr.bf16.mxu1 %v7487_v11  ;;  %v270_v10 = vld [vmem:[%s11658_s1 + $0x2d0] sm:$0xff]  ;;  %v315_v4 = vld [vmem:[%s11658_s1 + $0x438] sm:$0xff] }
 0x1f8   : > { %v274_v11 = vld [vmem:[%s11658_s1 + $0x2f0] sm:$0xff] }
 0x1f9   : > { %v7540_v49 = vcombine.low %v270_v10, %v274_v11 }
 0x1fa   : > { %6700 = vmatpush1.bf16.msra.mxu0 %v7484_v20  ;;  %7028 = vmatpush1.bf16.msra.mxu1 %v7486_v23  ;;  %v7541_v20 = vcombine.high %v270_v10, %v274_v11  ;;  %v7543_v23 = vcombine.high %v271_v13, %v275_v14  ;;  %v319_v10 = vld [vmem:[%s11658_s1 + $0x458] sm:$0xff]  ;;  %v7582_v14 = vcombine.low %v311_v3, %v315_v4 }
 0x1fb   : > { %6701 = vmatprep.subr.bf16.mxu0 %v7493_v24  ;;  %7029 = vmatprep.subr.bf16.mxu1 %v7495_v59  ;;  %v278_v24 = vld [vmem:[%s11658_s1 + $0x310] sm:$0xff]  ;;  %v323_v11 = vld [vmem:[%s11658_s1 + $0x478] sm:$0xff] }
 0x1fc   : > { %v282_v59 = vld [vmem:[%s11658_s1 + $0x330] sm:$0xff] }
 0x1fd   : > { %v7548_v37 = vcombine.low %v278_v24, %v282_v59 }
 0x1fe   : > { %6702 = vmatpush1.bf16.msra.mxu0 %v7492_v15  ;;  %7030 = vmatpush1.bf16.msra.mxu1 %v7494_v30  ;;  %v7549_v15 = vcombine.high %v278_v24, %v282_v59  ;;  %v7551_v30 = vcombine.high %v279_v26, %v283_v28  ;;  %v327_v24 = vld [vmem:[%s11658_s1 + $0x498] sm:$0xff]  ;;  %v7590_v28 = vcombine.low %v319_v10, %v323_v11 }
 0x1ff   : > { %6703 = vmatprep.subr.bf16.mxu0 %v7501_v32  ;;  %7031 = vmatprep.subr.bf16.mxu1 %v7503_v33  ;;  %v286_v32 = vld [vmem:[%s11658_s1 + $0x350] sm:$0xff]  ;;  %v331_v59 = vld [vmem:[%s11658_s1 + $0x4b8] sm:$0xff] }
 0x200   : > { %v290_v33 = vld [vmem:[%s11658_s1 + $0x370] sm:$0xff] }
 0x201   : > { %v7556_v48 = vcombine.low %v286_v32, %v290_v33 }
 0x202   : > { %6704 = vmatpush1.bf16.msra.mxu0 %v7500_v41  ;;  %7032 = vmatpush1.bf16.msra.mxu1 %v7502_v42  ;;  %v7557_v41 = vcombine.high %v286_v32, %v290_v33  ;;  %v7559_v42 = vcombine.high %v287_v34, %v291_v35  ;;  %v339_v32 = vld [vmem:[%s11658_s1 + $0x4f8] sm:$0xff]  ;;  %v7598_v34 = vcombine.low %v327_v24, %v331_v59 }
 0x203   : > { %6705 = vmatprep.subr.bf16.mxu0 %v7509_v43  ;;  %7033 = vmatprep.subr.bf16.mxu1 %v7511_v25  ;;  %v294_v43 = vld [vmem:[%s11658_s1 + $0x390] sm:$0xff] }
 0x204   : > { %v298_v25 = vld [vmem:[%s11658_s1 + $0x3b0] sm:$0xff] }
 0x205   : > { %v7564_v61 = vcombine.low %v294_v43, %v298_v25 }
 0x206   : > { %6706 = vmatpush1.bf16.msra.mxu0 %v7508_v51  ;;  %7034 = vmatpush1.bf16.msra.mxu1 %v7510_v52  ;;  %v7565_v51 = vcombine.high %v294_v43, %v298_v25  ;;  %v7567_v52 = vcombine.high %v295_v44, %v299_v47 }
 0x207   : > { %6707 = vmatprep.subr.bf16.mxu0 %v7517_v54  ;;  %7035 = vmatprep.subr.bf16.mxu1 %v7519_v19  ;;  %v302_v54 = vld [vmem:[%s11658_s1 + $0x3d0] sm:$0xff] }
 0x208   : > { %v306_v19 = vld [vmem:[%s11658_s1 + $0x3f0] sm:$0xff] }
 0x209   : > { %v7572_v5 = vcombine.low %v302_v54, %v306_v19 }
 0x20a   : > { %6708 = vmatpush1.bf16.msra.mxu0 %v7516_v63  ;;  %7036 = vmatpush1.bf16.msra.mxu1 %v7518_v39  ;;  %v7573_v63 = vcombine.high %v302_v54, %v306_v19  ;;  %v7575_v39 = vcombine.high %v303_v56, %v307_v60 }
 0x20b   : > { %6709 = vmatprep.subr.bf16.mxu0 %v7525_v0  ;;  %7037 = vmatprep.subr.bf16.mxu1 %v7527_v2  ;;  %v310_v0 = vld [vmem:[%s11658_s1 + $0x410] sm:$0xff] }
 0x20c   : > { %v314_v2 = vld [vmem:[%s11658_s1 + $0x430] sm:$0xff] }
 0x20d   : > { %v7580_v13 = vcombine.low %v310_v0, %v314_v2 }
 0x20e   : > { %6710 = vmatpush1.bf16.msra.mxu0 %v7524_v57  ;;  %7038 = vmatpush1.bf16.msra.mxu1 %v7526_v7  ;;  %v7581_v57 = vcombine.high %v310_v0, %v314_v2  ;;  %v7583_v7 = vcombine.high %v311_v3, %v315_v4 }
 0x20f   : > { %6711 = vmatprep.subr.bf16.mxu0 %v7533_v8  ;;  %7039 = vmatprep.subr.bf16.mxu1 %v7535_v9  ;;  %v318_v8 = vld [vmem:[%s11658_s1 + $0x450] sm:$0xff] }
 0x210   : > { %v322_v9 = vld [vmem:[%s11658_s1 + $0x470] sm:$0xff] }
 0x211   : > { %v7588_v26 = vcombine.low %v318_v8, %v322_v9 }
 0x212   : > { %6712 = vmatpush1.bf16.msra.mxu0 %v7532_v17  ;;  %7040 = vmatpush1.bf16.msra.mxu1 %v7534_v18  ;;  %v7589_v17 = vcombine.high %v318_v8, %v322_v9  ;;  %v7591_v18 = vcombine.high %v319_v10, %v323_v11 }
 0x213   : > { %6713 = vmatprep.subr.bf16.mxu0 %v7541_v20  ;;  %7041 = vmatprep.subr.bf16.mxu1 %v7543_v23  ;;  %v326_v20 = vld [vmem:[%s11658_s1 + $0x490] sm:$0xff] }
 0x214   : > { %v330_v23 = vld [vmem:[%s11658_s1 + $0x4b0] sm:$0xff] }
 0x215   : > { %v7596_v33 = vcombine.low %v326_v20, %v330_v23 }
 0x216   : > { %6714 = vmatpush1.bf16.msra.mxu0 %v7540_v49  ;;  %7042 = vmatpush1.bf16.msra.mxu1 %v7542_v29  ;;  %v7597_v49 = vcombine.high %v326_v20, %v330_v23  ;;  %v7599_v29 = vcombine.high %v327_v24, %v331_v59 }
 0x217   : > { %6715 = vmatprep.subr.bf16.mxu0 %v7549_v15  ;;  %7043 = vmatprep.subr.bf16.mxu1 %v7551_v30  ;;  %v334_v15 = vld [vmem:[%s11658_s1 + $0x4d0] sm:$0xff] }
 0x218   : > { %v338_v30 = vld [vmem:[%s11658_s1 + $0x4f0] sm:$0xff] }
 0x219   : > { %v7605_v35 = vcombine.high %v334_v15, %v338_v30  ;;  %v7604_v43 = vcombine.low %v334_v15, %v338_v30 }
 0x21a   : > { %6716 = vmatpush1.bf16.msra.mxu0 %v7548_v37  ;;  %7044 = vmatpush1.bf16.msra.mxu1 %v7550_v38  ;;  %v342_v38 = vld [vmem:[%s11658_s1 + $0x510] sm:$0xff] }
 0x21b   : > { %6717 = vmatprep.subr.bf16.mxu0 %v7557_v41  ;;  %7045 = vmatprep.subr.bf16.mxu1 %v7559_v42  ;;  %v346_v41 = vld [vmem:[%s11658_s1 + $0x530] sm:$0xff]  ;;  %v347_v42 = vld [vmem:[%s11658_s1 + $0x538] sm:$0xff] }
 0x21c   : > { %v7613_v44 = vcombine.high %v342_v38, %v346_v41  ;;  %v7612_v54 = vcombine.low %v342_v38, %v346_v41 }
 0x21e   : > { %6718 = vmatpush1.bf16.msra.mxu0 %v7556_v48  ;;  %7046 = vmatpush1.bf16.msra.mxu1 %v7558_v50  ;;  %v350_v48 = vld [vmem:[%s11658_s1 + $0x550] sm:$0xff] }
 0x21f   : > { %6719 = vmatprep.subr.bf16.mxu0 %v7565_v51  ;;  %7047 = vmatprep.subr.bf16.mxu1 %v7567_v52  ;;  %v354_v50 = vld [vmem:[%s11658_s1 + $0x570] sm:$0xff]  ;;  %v351_v51 = vld [vmem:[%s11658_s1 + $0x558] sm:$0xff] }
 0x220   : > { %v355_v52 = vld [vmem:[%s11658_s1 + $0x578] sm:$0xff]  ;;  %v7621_v56 = vcombine.high %v350_v48, %v354_v50  ;;  %v7620_v0 = vcombine.low %v350_v48, %v354_v50 }
 0x221   : > { %v7623_v60 = vcombine.high %v351_v51, %v355_v52  ;;  %v7622_v2 = vcombine.low %v351_v51, %v355_v52 }
 0x222   : > { %6720 = vmatpush1.bf16.msra.mxu0 %v7564_v61  ;;  %7048 = vmatpush1.bf16.msra.mxu1 %v7566_v62  ;;  %v358_v61 = vld [vmem:[%s11658_s1 + $0x590] sm:$0xff] }
 0x223   : > { %6721 = vmatprep.subr.bf16.mxu0 %v7573_v63  ;;  %7049 = vmatprep.subr.bf16.mxu1 %v7575_v39  ;;  %v362_v62 = vld [vmem:[%s11658_s1 + $0x5b0] sm:$0xff]  ;;  %v359_v63 = vld [vmem:[%s11658_s1 + $0x598] sm:$0xff] }
 0x224   : > { %v363_v39 = vld [vmem:[%s11658_s1 + $0x5b8] sm:$0xff]  ;;  %v7629_v3 = vcombine.high %v358_v61, %v362_v62  ;;  %v7628_v8 = vcombine.low %v358_v61, %v362_v62 }
 0x225   : > { %v7631_v4 = vcombine.high %v359_v63, %v363_v39  ;;  %v7630_v9 = vcombine.low %v359_v63, %v363_v39 }
 0x226   : > { %6722 = vmatpush1.bf16.msra.mxu0 %v7572_v5  ;;  %7050 = vmatpush1.bf16.msra.mxu1 %v7574_v6  ;;  %v366_v5 = vld [vmem:[%s11658_s1 + $0x5d0] sm:$0xff] }
 0x227   : > { %6732 = vmatprep.subr.bf16.mxu0 %v7581_v57  ;;  %7060 = vmatprep.subr.bf16.mxu1 %v7583_v7  ;;  %v370_v6 = vld [vmem:[%s11658_s1 + $0x5f0] sm:$0xff]  ;;  %v367_v57 = vld [vmem:[%s11658_s1 + $0x5d8] sm:$0xff] }
 0x228   : > { %v371_v7 = vld [vmem:[%s11658_s1 + $0x5f8] sm:$0xff]  ;;  %v7637_v10 = vcombine.high %v366_v5, %v370_v6  ;;  %v7636_v20 = vcombine.low %v366_v5, %v370_v6 }
 0x229   : > { %6724 = vmatmul.mubr.bf16.vlgmr.msra.gmra.mrb[4].mxu0 %v8830_v12  ;;  %7052 = vmatmul.mubr.bf16.vlgmr.msra.gmra.mrb[4].mxu1 %v8830_v12  ;;  %v335_v12 = vld [vmem:[%s11658_s1 + $0x4d8] sm:$0xff]  ;;  %v7639_v11 = vcombine.high %v367_v57, %v371_v7  ;;  %v7638_v23 = vcombine.low %v367_v57, %v371_v7 }
 0x22a   : > { %6733 = vmatpush1.bf16.msra.mxu0 %v7580_v13  ;;  %7061 = vmatpush1.bf16.msra.mxu1 %v7582_v14  ;;  %v7607_v37 = vcombine.high %v335_v12, %v339_v32  ;;  %v7606_v25 = vcombine.low %v335_v12, %v339_v32  ;;  %v374_v13 = vld [vmem:[%s11658_s1 + $0x610] sm:$0xff] }
 0x22b   : > { %6734 = vmatprep.subr.bf16.mxu0 %v7589_v17  ;;  %7062 = vmatprep.subr.bf16.mxu1 %v7591_v18  ;;  %v378_v14 = vld [vmem:[%s11658_s1 + $0x630] sm:$0xff]  ;;  %v375_v17 = vld [vmem:[%s11658_s1 + $0x618] sm:$0xff] }
 0x22c   : > { %6764 = vmatprep.mubr.bf16.mxu0 %v8849_v21  ;;  %7092 = vmatprep.mubr.bf16.mxu1 %v8849_v21  ;;  %v343_v21 = vld [vmem:[%s11658_s1 + $0x518] sm:$0xff]  ;;  %v7645_v24 = vcombine.high %v374_v13, %v378_v14  ;;  %v7644_v15 = vcombine.low %v374_v13, %v378_v14 }
 0x22d   : > { %v7615_v47 = vcombine.high %v343_v21, %v347_v42  ;;  %v7614_v19 = vcombine.low %v343_v21, %v347_v42  ;;  %v379_v18 = vld [vmem:[%s11658_s1 + $0x638] sm:$0xff] }
 0x22e   : > { %6735 = vmatpush1.bf16.msra.mxu0 %v7588_v26  ;;  %7063 = vmatpush1.bf16.msra.mxu1 %v7590_v28  ;;  %v7647_v59 = vcombine.high %v375_v17, %v379_v18  ;;  %v382_v26 = vld [vmem:[%s11658_s1 + $0x650] sm:$0xff]  ;;  %v7646_v30 = vcombine.low %v375_v17, %v379_v18 }
 0x22f   : > { %6736 = vmatprep.subr.bf16.mxu0 %v7597_v49  ;;  %7064 = vmatprep.subr.bf16.mxu1 %v7599_v29  ;;  %v386_v28 = vld [vmem:[%s11658_s1 + $0x670] sm:$0xff]  ;;  %v383_v49 = vld [vmem:[%s11658_s1 + $0x658] sm:$0xff] }
 0x230   : > { %v387_v29 = vld [vmem:[%s11658_s1 + $0x678] sm:$0xff]  ;;  %v7653_v12 = vcombine.high %v382_v26, %v386_v28  ;;  %v7652_v38 = vcombine.low %v382_v26, %v386_v28 }
 0x231   : > { %v7655_v32 = vcombine.high %v383_v49, %v387_v29  ;;  %v7654_v41 = vcombine.low %v383_v49, %v387_v29 }
 0x232   : > { %6737 = vmatpush1.bf16.msra.mxu0 %v7596_v33  ;;  %7065 = vmatpush1.bf16.msra.mxu1 %v7598_v34  ;;  %v390_v33 = vld [vmem:[%s11658_s1 + $0x690] sm:$0xff] }
 0x233   : > { %6738 = vmatprep.subr.bf16.mxu0 %v7605_v35  ;;  %7066 = vmatprep.subr.bf16.mxu1 %v7607_v37  ;;  %v394_v34 = vld [vmem:[%s11658_s1 + $0x6b0] sm:$0xff]  ;;  %v391_v35 = vld [vmem:[%s11658_s1 + $0x698] sm:$0xff] }
 0x234   : > { %v395_v37 = vld [vmem:[%s11658_s1 + $0x6b8] sm:$0xff]  ;;  %v7661_v21 = vcombine.high %v390_v33, %v394_v34  ;;  %v7660_v48 = vcombine.low %v390_v33, %v394_v34 }
 0x235   : > { %v7663_v42 = vcombine.high %v391_v35, %v395_v37  ;;  %v7662_v50 = vcombine.low %v391_v35, %v395_v37 }
 0x236   : > { %6739 = vmatpush1.bf16.msra.mxu0 %v7604_v43  ;;  %7067 = vmatpush1.bf16.msra.mxu1 %v7606_v25  ;;  %v398_v43 = vld [vmem:[%s11658_s1 + $0x6d0] sm:$0xff] }
 0x237   : > { %6740 = vmatprep.subr.bf16.mxu0 %v7613_v44  ;;  %7068 = vmatprep.subr.bf16.mxu1 %v7615_v47  ;;  %v402_v25 = vld [vmem:[%s11658_s1 + $0x6f0] sm:$0xff]  ;;  %v399_v44 = vld [vmem:[%s11658_s1 + $0x6d8] sm:$0xff] }
 0x238   : > { %v403_v47 = vld [vmem:[%s11658_s1 + $0x6f8] sm:$0xff]  ;;  %v7669_v51 = vcombine.high %v398_v43, %v402_v25  ;;  %v7668_v61 = vcombine.low %v398_v43, %v402_v25 }
 0x239   : > { %v7671_v52 = vcombine.high %v399_v44, %v403_v47  ;;  %v7670_v62 = vcombine.low %v399_v44, %v403_v47 }
 0x23a   : > { %6741 = vmatpush1.bf16.msra.mxu0 %v7612_v54  ;;  %7069 = vmatpush1.bf16.msra.mxu1 %v7614_v19  ;;  %v406_v54 = vld [vmem:[%s11658_s1 + $0x710] sm:$0xff] }
 0x23b   : > { %6742 = vmatprep.subr.bf16.mxu0 %v7621_v56  ;;  %7070 = vmatprep.subr.bf16.mxu1 %v7623_v60  ;;  %v410_v19 = vld [vmem:[%s11658_s1 + $0x730] sm:$0xff]  ;;  %v407_v56 = vld [vmem:[%s11658_s1 + $0x718] sm:$0xff] }
 0x23c   : > { %v411_v60 = vld [vmem:[%s11658_s1 + $0x738] sm:$0xff]  ;;  %v7677_v63 = vcombine.high %v406_v54, %v410_v19  ;;  %v7676_v5 = vcombine.low %v406_v54, %v410_v19 }
 0x23d   : > { %v7679_v39 = vcombine.high %v407_v56, %v411_v60  ;;  %v7678_v6 = vcombine.low %v407_v56, %v411_v60 }
 0x23e   : > { %6743 = vmatpush1.bf16.msra.mxu0 %v7620_v0  ;;  %7071 = vmatpush1.bf16.msra.mxu1 %v7622_v2  ;;  %v414_v0 = vld [vmem:[%s11658_s1 + $0x750] sm:$0xff] }
 0x23f   : > { %6744 = vmatprep.subr.bf16.mxu0 %v7629_v3  ;;  %7072 = vmatprep.subr.bf16.mxu1 %v7631_v4  ;;  %v418_v2 = vld [vmem:[%s11658_s1 + $0x770] sm:$0xff]  ;;  %v415_v3 = vld [vmem:[%s11658_s1 + $0x758] sm:$0xff] }
 0x240   : > { %v419_v4 = vld [vmem:[%s11658_s1 + $0x778] sm:$0xff]  ;;  %v7685_v57 = vcombine.high %v414_v0, %v418_v2  ;;  %v7684_v13 = vcombine.low %v414_v0, %v418_v2 }
 0x241   : > { %v7687_v7 = vcombine.high %v415_v3, %v419_v4  ;;  %v7686_v14 = vcombine.low %v415_v3, %v419_v4  ;;  %v470_v4 = vld [vmem:[%s11658_s1 + $0x910] sm:$0xff] }
 0x242   : > { %6745 = vmatpush1.bf16.msra.mxu0 %v7628_v8  ;;  %7073 = vmatpush1.bf16.msra.mxu1 %v7630_v9  ;;  %v422_v8 = vld [vmem:[%s11658_s1 + $0x790] sm:$0xff] }
 0x243   : > { %6746 = vmatprep.subr.bf16.mxu0 %v7637_v10  ;;  %7074 = vmatprep.subr.bf16.mxu1 %v7639_v11  ;;  %v426_v9 = vld [vmem:[%s11658_s1 + $0x7b0] sm:$0xff]  ;;  %v423_v10 = vld [vmem:[%s11658_s1 + $0x798] sm:$0xff] }
 0x244   : > { %v427_v11 = vld [vmem:[%s11658_s1 + $0x7b8] sm:$0xff]  ;;  %v7693_v17 = vcombine.high %v422_v8, %v426_v9  ;;  %v7692_v26 = vcombine.low %v422_v8, %v426_v9 }
 0x245   : > { %v7695_v18 = vcombine.high %v423_v10, %v427_v11  ;;  %v7694_v28 = vcombine.low %v423_v10, %v427_v11  ;;  %v478_v10 = vld [vmem:[%s11658_s1 + $0x950] sm:$0xff] }
 0x246   : > { %6747 = vmatpush1.bf16.msra.mxu0 %v7636_v20  ;;  %7075 = vmatpush1.bf16.msra.mxu1 %v7638_v23  ;;  %v430_v20 = vld [vmem:[%s11658_s1 + $0x7d0] sm:$0xff] }
 0x247   : > { %6748 = vmatprep.subr.bf16.mxu0 %v7645_v24  ;;  %7076 = vmatprep.subr.bf16.mxu1 %v7647_v59  ;;  %v434_v23 = vld [vmem:[%s11658_s1 + $0x7f0] sm:$0xff]  ;;  %v431_v24 = vld [vmem:[%s11658_s1 + $0x7d8] sm:$0xff] }
 0x248   : > { %v435_v59 = vld [vmem:[%s11658_s1 + $0x7f8] sm:$0xff]  ;;  %v7701_v49 = vcombine.high %v430_v20, %v434_v23  ;;  %v7700_v33 = vcombine.low %v430_v20, %v434_v23  ;;  %v482_v11 = vld [vmem:[%s11658_s1 + $0x970] sm:$0xff] }
 0x249   : > { %v7703_v29 = vcombine.high %v431_v24, %v435_v59  ;;  %v7702_v34 = vcombine.low %v431_v24, %v435_v59  ;;  %v7749_v20 = vcombine.high %v478_v10, %v482_v11  ;;  %v486_v24 = vld [vmem:[%s11658_s1 + $0x990] sm:$0xff] }
 0x24a   : > { %6749 = vmatpush1.bf16.msra.mxu0 %v7644_v15  ;;  %7077 = vmatpush1.bf16.msra.mxu1 %v7646_v30  ;;  %v438_v15 = vld [vmem:[%s11658_s1 + $0x810] sm:$0xff] }
 0x24b   : > { %6750 = vmatprep.subr.bf16.mxu0 %v7653_v12  ;;  %7078 = vmatprep.subr.bf16.mxu1 %v7655_v32  ;;  %v442_v30 = vld [vmem:[%s11658_s1 + $0x830] sm:$0xff]  ;;  %v439_v12 = vld [vmem:[%s11658_s1 + $0x818] sm:$0xff] }
 0x24c   : > { %v443_v32 = vld [vmem:[%s11658_s1 + $0x838] sm:$0xff]  ;;  %v7709_v35 = vcombine.high %v438_v15, %v442_v30  ;;  %v7708_v43 = vcombine.low %v438_v15, %v442_v30  ;;  %v490_v59 = vld [vmem:[%s11658_s1 + $0x9b0] sm:$0xff] }
 0x24d   : > { %v7711_v37 = vcombine.high %v439_v12, %v443_v32  ;;  %v7710_v25 = vcombine.low %v439_v12, %v443_v32  ;;  %v7757_v15 = vcombine.high %v486_v24, %v490_v59  ;;  %v494_v12 = vld [vmem:[%s11658_s1 + $0x9d0] sm:$0xff] }
 0x24e   : > { %6751 = vmatpush1.bf16.msra.mxu0 %v7652_v38  ;;  %7079 = vmatpush1.bf16.msra.mxu1 %v7654_v41  ;;  %v446_v38 = vld [vmem:[%s11658_s1 + $0x850] sm:$0xff] }
 0x24f   : > { %6752 = vmatprep.subr.bf16.mxu0 %v7661_v21  ;;  %7080 = vmatprep.subr.bf16.mxu1 %v7663_v42  ;;  %v450_v41 = vld [vmem:[%s11658_s1 + $0x870] sm:$0xff]  ;;  %v447_v21 = vld [vmem:[%s11658_s1 + $0x858] sm:$0xff] }
 0x250   : > { %v451_v42 = vld [vmem:[%s11658_s1 + $0x878] sm:$0xff]  ;;  %v7717_v44 = vcombine.high %v446_v38, %v450_v41  ;;  %v7716_v54 = vcombine.low %v446_v38, %v450_v41  ;;  %v498_v32 = vld [vmem:[%s11658_s1 + $0x9f0] sm:$0xff] }
 0x251   : > { %v7719_v47 = vcombine.high %v447_v21, %v451_v42  ;;  %v7718_v19 = vcombine.low %v447_v21, %v451_v42  ;;  %v7765_v38 = vcombine.high %v494_v12, %v498_v32  ;;  %v502_v21 = vld [vmem:[%s11658_s1 + $0xa10] sm:$0xff] }
 0x252   : > { %6753 = vmatpush1.bf16.msra.mxu0 %v7660_v48  ;;  %7081 = vmatpush1.bf16.msra.mxu1 %v7662_v50  ;;  %v454_v48 = vld [vmem:[%s11658_s1 + $0x890] sm:$0xff] }
 0x253   : > { %6754 = vmatprep.subr.bf16.mxu0 %v7669_v51  ;;  %7082 = vmatprep.subr.bf16.mxu1 %v7671_v52  ;;  %v458_v50 = vld [vmem:[%s11658_s1 + $0x8b0] sm:$0xff]  ;;  %v455_v51 = vld [vmem:[%s11658_s1 + $0x898] sm:$0xff] }
 0x254   : > { %v459_v52 = vld [vmem:[%s11658_s1 + $0x8b8] sm:$0xff]  ;;  %v7725_v56 = vcombine.high %v454_v48, %v458_v50  ;;  %v506_v42 = vld [vmem:[%s11658_s1 + $0xa30] sm:$0xff] }
 0x255   : > { %v7727_v60 = vcombine.high %v455_v51, %v459_v52  ;;  %v7726_v0 = vcombine.low %v455_v51, %v459_v52  ;;  %v510_v51 = vld [vmem:[%s11658_s1 + $0xa50] sm:$0xff] }
 0x256   : > { %6755 = vmatpush1.bf16.msra.mxu0 %v7668_v61  ;;  %7083 = vmatpush1.bf16.msra.mxu1 %v7670_v62  ;;  %v462_v61 = vld [vmem:[%s11658_s1 + $0x8d0] sm:$0xff] }
 0x257   : > { %6756 = vmatprep.subr.bf16.mxu0 %v7677_v63  ;;  %7084 = vmatprep.subr.bf16.mxu1 %v7679_v39  ;;  %v466_v62 = vld [vmem:[%s11658_s1 + $0x8f0] sm:$0xff]  ;;  %v467_v63 = vld [vmem:[%s11658_s1 + $0x8f8] sm:$0xff]  ;;  %v7724_v39 = vcombine.low %v454_v48, %v458_v50  ;;  %v7773_v48 = vcombine.high %v502_v21, %v506_v42 }
 0x258   : > { %v7733_v2 = vcombine.high %v462_v61, %v466_v62  ;;  %v514_v52 = vld [vmem:[%s11658_s1 + $0xa70] sm:$0xff] }
 0x25a   : > { %6757 = vmatpush1.bf16.msra.mxu0 %v7676_v5  ;;  %7085 = vmatpush1.bf16.msra.mxu1 %v7678_v6  ;;  %v474_v5 = vld [vmem:[%s11658_s1 + $0x930] sm:$0xff]  ;;  %v475_v6 = vld [vmem:[%s11658_s1 + $0x938] sm:$0xff] }
 0x25b   : > { %6758 = vmatprep.subr.bf16.mxu0 %v7685_v57  ;;  %7086 = vmatprep.subr.bf16.mxu1 %v7687_v7  ;;  %v7732_v57 = vcombine.low %v462_v61, %v466_v62  ;;  %v7741_v8 = vcombine.high %v470_v4, %v474_v5  ;;  %v7781_v61 = vcombine.high %v510_v51, %v514_v52 }
 0x25e   : > { %6759 = vmatpush1.bf16.msra.mxu0 %v7684_v13  ;;  %7087 = vmatpush1.bf16.msra.mxu1 %v7686_v14  ;;  %v479_v13 = vld [vmem:[%s11658_s1 + $0x958] sm:$0xff] }
 0x25f   : > { %6760 = vmatprep.subr.bf16.mxu0 %v7693_v17  ;;  %7088 = vmatprep.subr.bf16.mxu1 %v7695_v18  ;;  %v483_v14 = vld [vmem:[%s11658_s1 + $0x978] sm:$0xff]  ;;  %v7740_v17 = vcombine.low %v470_v4, %v474_v5 }
 0x260   : > { %v7751_v23 = vcombine.high %v479_v13, %v483_v14 }
 0x262   : > { %6761 = vmatpush1.bf16.msra.mxu0 %v7692_v26  ;;  %7089 = vmatpush1.bf16.msra.mxu1 %v7694_v28  ;;  %v487_v26 = vld [vmem:[%s11658_s1 + $0x998] sm:$0xff] }
 0x263   : > { %6762 = vmatprep.subr.bf16.mxu0 %v7701_v49  ;;  %7090 = vmatprep.subr.bf16.mxu1 %v7703_v29  ;;  %v491_v28 = vld [vmem:[%s11658_s1 + $0x9b8] sm:$0xff]  ;;  %v7748_v49 = vcombine.low %v478_v10, %v482_v11  ;;  %v7750_v29 = vcombine.low %v479_v13, %v483_v14  ;;  %v534_v13 = vld [vmem:[%s11658_s1 + $0xb10] sm:$0xff] }
 0x264   : > { %v7759_v30 = vcombine.high %v487_v26, %v491_v28  ;;  %v538_v14 = vld [vmem:[%s11658_s1 + $0xb30] sm:$0xff] }
 0x266   : > { %6763 = vmatpush1.bf16.msra.mxu0 %v7700_v33  ;;  %7091 = vmatpush1.bf16.msra.mxu1 %v7702_v34  ;;  %v495_v33 = vld [vmem:[%s11658_s1 + $0x9d8] sm:$0xff] }
 0x267   : > { %6773 = vmatprep.subr.bf16.mxu0 %v7709_v35  ;;  %7101 = vmatprep.subr.bf16.mxu1 %v7711_v37  ;;  %v499_v34 = vld [vmem:[%s11658_s1 + $0x9f8] sm:$0xff]  ;;  %v7756_v35 = vcombine.low %v486_v24, %v490_v59  ;;  %v7758_v37 = vcombine.low %v487_v26, %v491_v28  ;;  %v7805_v24 = vcombine.high %v534_v13, %v538_v14  ;;  %v542_v26 = vld [vmem:[%s11658_s1 + $0xb50] sm:$0xff] }
 0x268   : > { %v7767_v41 = vcombine.high %v495_v33, %v499_v34  ;;  %v546_v28 = vld [vmem:[%s11658_s1 + $0xb70] sm:$0xff] }
 0x269   : > { %6765 = vmatmul.mubr.bf16.vlgmr.msra.gmra.mrb[4].mxu0 %v9037_v22  ;;  %7093 = vmatmul.mubr.bf16.vlgmr.msra.gmra.mrb[4].mxu1 %v9037_v22  ;;  %v463_v22 = vld [vmem:[%s11658_s1 + $0x8d8] sm:$0xff] }
 0x26a   : > { %6774 = vmatpush1.bf16.msra.mxu0 %v7708_v43  ;;  %7102 = vmatpush1.bf16.msra.mxu1 %v7710_v25  ;;  %v7735_v3 = vcombine.high %v463_v22, %v467_v63  ;;  %v7734_v7 = vcombine.low %v463_v22, %v467_v63  ;;  %v503_v43 = vld [vmem:[%s11658_s1 + $0xa18] sm:$0xff]  ;;  %v518_v22 = vld [vmem:[%s11658_s1 + $0xa90] sm:$0xff] }
 0x26b   : > { %6775 = vmatprep.subr.bf16.mxu0 %v7717_v44  ;;  %7103 = vmatprep.subr.bf16.mxu1 %v7719_v47  ;;  %v507_v25 = vld [vmem:[%s11658_s1 + $0xa38] sm:$0xff]  ;;  %v7764_v44 = vcombine.low %v494_v12, %v498_v32  ;;  %v7766_v47 = vcombine.low %v495_v33, %v499_v34  ;;  %v522_v63 = vld [vmem:[%s11658_s1 + $0xab0] sm:$0xff]  ;;  %v7813_v12 = vcombine.high %v542_v26, %v546_v28 }
 0x26c   : > { %6805 = vmatprep.mubr.bf16.mxu0 %v9056_v31  ;;  %7133 = vmatprep.mubr.bf16.mxu1 %v9056_v31  ;;  %v471_v31 = vld [vmem:[%s11658_s1 + $0x918] sm:$0xff]  ;;  %v7775_v50 = vcombine.high %v503_v43, %v507_v25  ;;  %v7789_v4 = vcombine.high %v518_v22, %v522_v63  ;;  %v550_v33 = vld [vmem:[%s11658_s1 + $0xb90] sm:$0xff] }
 0x26d   : > { %v7743_v9 = vcombine.high %v471_v31, %v475_v6  ;;  %v7742_v18 = vcombine.low %v471_v31, %v475_v6  ;;  %v526_v31 = vld [vmem:[%s11658_s1 + $0xad0] sm:$0xff] }
 0x26e   : > { %6776 = vmatpush1.bf16.msra.mxu0 %v7716_v54  ;;  %7104 = vmatpush1.bf16.msra.mxu1 %v7718_v19  ;;  %v511_v54 = vld [vmem:[%s11658_s1 + $0xa58] sm:$0xff]  ;;  %v530_v6 = vld [vmem:[%s11658_s1 + $0xaf0] sm:$0xff] }
 0x26f   : > { %6777 = vmatprep.subr.bf16.mxu0 %v7725_v56  ;;  %7105 = vmatprep.subr.bf16.mxu1 %v7727_v60  ;;  %v515_v19 = vld [vmem:[%s11658_s1 + $0xa78] sm:$0xff]  ;;  %v7772_v56 = vcombine.low %v502_v21, %v506_v42  ;;  %v7774_v60 = vcombine.low %v503_v43, %v507_v25  ;;  %v7797_v10 = vcombine.high %v526_v31, %v530_v6  ;;  %v554_v34 = vld [vmem:[%s11658_s1 + $0xbb0] sm:$0xff] }
 0x270   : > { %v7783_v62 = vcombine.high %v511_v54, %v515_v19  ;;  %v7821_v21 = vcombine.high %v550_v33, %v554_v34  ;;  %v558_v43 = vld [vmem:[%s11658_s1 + $0xbd0] sm:$0xff] }
 0x271   : > { %v562_v25 = vld [vmem:[%s11658_s1 + $0xbf0] sm:$0xff] }
 0x272   : > { %6778 = vmatpush1.bf16.msra.mxu0 %v7724_v39  ;;  %7106 = vmatpush1.bf16.msra.mxu1 %v7726_v0  ;;  %v519_v39 = vld [vmem:[%s11658_s1 + $0xa98] sm:$0xff] }
 0x273   : > { %6779 = vmatprep.subr.bf16.mxu0 %v7733_v2  ;;  %7107 = vmatprep.subr.bf16.mxu1 %v7735_v3  ;;  %v523_v0 = vld [vmem:[%s11658_s1 + $0xab8] sm:$0xff]  ;;  %v7780_v2 = vcombine.low %v510_v51, %v514_v52  ;;  %v7782_v3 = vcombine.low %v511_v54, %v515_v19  ;;  %v7829_v51 = vcombine.high %v558_v43, %v562_v25  ;;  %v566_v54 = vld [vmem:[%s11658_s1 + $0xc10] sm:$0xff] }
 0x274   : > { %v7791_v5 = vcombine.high %v519_v39, %v523_v0  ;;  %v570_v19 = vld [vmem:[%s11658_s1 + $0xc30] sm:$0xff] }
 0x276   : > { %6780 = vmatpush1.bf16.msra.mxu0 %v7732_v57  ;;  %7108 = vmatpush1.bf16.msra.mxu1 %v7734_v7  ;;  %v527_v57 = vld [vmem:[%s11658_s1 + $0xad8] sm:$0xff] }
 0x277   : > { %6781 = vmatprep.subr.bf16.mxu0 %v7741_v8  ;;  %7109 = vmatprep.subr.bf16.mxu1 %v7743_v9  ;;  %v531_v7 = vld [vmem:[%s11658_s1 + $0xaf8] sm:$0xff]  ;;  %v7788_v8 = vcombine.low %v518_v22, %v522_v63  ;;  %v7790_v9 = vcombine.low %v519_v39, %v523_v0  ;;  %v7837_v22 = vcombine.high %v566_v54, %v570_v19  ;;  %v574_v39 = vld [vmem:[%s11658_s1 + $0xc50] sm:$0xff] }
 0x278   : > { %v7799_v11 = vcombine.high %v527_v57, %v531_v7  ;;  %v578_v0 = vld [vmem:[%s11658_s1 + $0xc70] sm:$0xff] }
 0x27a   : > { %6782 = vmatpush1.bf16.msra.mxu0 %v7740_v17  ;;  %7110 = vmatpush1.bf16.msra.mxu1 %v7742_v18  ;;  %v535_v17 = vld [vmem:[%s11658_s1 + $0xb18] sm:$0xff] }
 0x27b   : > { %6783 = vmatprep.subr.bf16.mxu0 %v7749_v20  ;;  %7111 = vmatprep.subr.bf16.mxu1 %v7751_v23  ;;  %v539_v18 = vld [vmem:[%s11658_s1 + $0xb38] sm:$0xff]  ;;  %v7796_v20 = vcombine.low %v526_v31, %v530_v6  ;;  %v7798_v23 = vcombine.low %v527_v57, %v531_v7  ;;  %v7845_v31 = vcombine.high %v574_v39, %v578_v0  ;;  %v582_v57 = vld [vmem:[%s11658_s1 + $0xc90] sm:$0xff] }
 0x27c   : > { %v7807_v59 = vcombine.high %v535_v17, %v539_v18  ;;  %v586_v7 = vld [vmem:[%s11658_s1 + $0xcb0] sm:$0xff] }
 0x27e   : > { %6784 = vmatpush1.bf16.msra.mxu0 %v7748_v49  ;;  %7112 = vmatpush1.bf16.msra.mxu1 %v7750_v29  ;;  %v543_v49 = vld [vmem:[%s11658_s1 + $0xb58] sm:$0xff] }
 0x27f   : > { %6785 = vmatprep.subr.bf16.mxu0 %v7757_v15  ;;  %7113 = vmatprep.subr.bf16.mxu1 %v7759_v30  ;;  %v547_v29 = vld [vmem:[%s11658_s1 + $0xb78] sm:$0xff]  ;;  %v7804_v15 = vcombine.low %v534_v13, %v538_v14  ;;  %v7806_v30 = vcombine.low %v535_v17, %v539_v18  ;;  %v7853_v13 = vcombine.high %v582_v57, %v586_v7  ;;  %v590_v17 = vld [vmem:[%s11658_s1 + $0xcd0] sm:$0xff] }
 0x280   : > { %v7815_v32 = vcombine.high %v543_v49, %v547_v29  ;;  %v594_v18 = vld [vmem:[%s11658_s1 + $0xcf0] sm:$0xff] }
 0x282   : > { %6786 = vmatpush1.bf16.msra.mxu0 %v7756_v35  ;;  %7114 = vmatpush1.bf16.msra.mxu1 %v7758_v37  ;;  %v551_v35 = vld [vmem:[%s11658_s1 + $0xb98] sm:$0xff] }
 0x283   : > { %6787 = vmatprep.subr.bf16.mxu0 %v7765_v38  ;;  %7115 = vmatprep.subr.bf16.mxu1 %v7767_v41  ;;  %v555_v37 = vld [vmem:[%s11658_s1 + $0xbb8] sm:$0xff]  ;;  %v7812_v38 = vcombine.low %v542_v26, %v546_v28  ;;  %v7814_v41 = vcombine.low %v543_v49, %v547_v29  ;;  %v7861_v26 = vcombine.high %v590_v17, %v594_v18  ;;  %v598_v49 = vld [vmem:[%s11658_s1 + $0xd10] sm:$0xff] }
 0x284   : > { %v7823_v42 = vcombine.high %v551_v35, %v555_v37  ;;  %v602_v29 = vld [vmem:[%s11658_s1 + $0xd30] sm:$0xff] }
 0x286   : > { %6788 = vmatpush1.bf16.msra.mxu0 %v7764_v44  ;;  %7116 = vmatpush1.bf16.msra.mxu1 %v7766_v47  ;;  %v559_v44 = vld [vmem:[%s11658_s1 + $0xbd8] sm:$0xff] }
 0x287   : > { %6789 = vmatprep.subr.bf16.mxu0 %v7773_v48  ;;  %7117 = vmatprep.subr.bf16.mxu1 %v7775_v50  ;;  %v563_v47 = vld [vmem:[%s11658_s1 + $0xbf8] sm:$0xff]  ;;  %v7820_v48 = vcombine.low %v550_v33, %v554_v34  ;;  %v7822_v50 = vcombine.low %v551_v35, %v555_v37  ;;  %v7869_v33 = vcombine.high %v598_v49, %v602_v29  ;;  %v606_v35 = vld [vmem:[%s11658_s1 + $0xd50] sm:$0xff] }
 0x288   : > { %v7831_v52 = vcombine.high %v559_v44, %v563_v47  ;;  %v610_v37 = vld [vmem:[%s11658_s1 + $0xd70] sm:$0xff] }
 0x28a   : > { %6790 = vmatpush1.bf16.msra.mxu0 %v7772_v56  ;;  %7118 = vmatpush1.bf16.msra.mxu1 %v7774_v60  ;;  %v567_v56 = vld [vmem:[%s11658_s1 + $0xc18] sm:$0xff] }
 0x28b   : > { %6791 = vmatprep.subr.bf16.mxu0 %v7781_v61  ;;  %7119 = vmatprep.subr.bf16.mxu1 %v7783_v62  ;;  %v571_v60 = vld [vmem:[%s11658_s1 + $0xc38] sm:$0xff]  ;;  %v7828_v61 = vcombine.low %v558_v43, %v562_v25  ;;  %v7830_v62 = vcombine.low %v559_v44, %v563_v47  ;;  %v1140_v43 = vld [vmem:[%s11659_s2] sm:$0xff] }
 0x28c   : > { %v7839_v63 = vcombine.high %v567_v56, %v571_v60 }
 0x28e   : > { %6792 = vmatpush1.bf16.msra.mxu0 %v7780_v2  ;;  %7120 = vmatpush1.bf16.msra.mxu1 %v7782_v3  ;;  %v575_v2 = vld [vmem:[%s11658_s1 + $0xc58] sm:$0xff] }
 0x28f   : > { %6793 = vmatprep.subr.bf16.mxu0 %v7789_v4  ;;  %7121 = vmatprep.subr.bf16.mxu1 %v7791_v5  ;;  %v579_v3 = vld [vmem:[%s11658_s1 + $0xc78] sm:$0xff]  ;;  %v7836_v4 = vcombine.low %v566_v54, %v570_v19  ;;  %v7838_v5 = vcombine.low %v567_v56, %v571_v60  ;;  %v618_v54 = vld [vmem:[%s11658_s1 + $0xdb0] sm:$0xff] }
 0x290   : > { %v7847_v6 = vcombine.high %v575_v2, %v579_v3  ;;  %v615_v56 = vld [vmem:[%s11658_s1 + $0xd98] sm:$0xff] }
 0x291   : > { %v619_v60 = vld [vmem:[%s11658_s1 + $0xdb8] sm:$0xff] }
 0x292   : > { %6794 = vmatpush1.bf16.msra.mxu0 %v7788_v8  ;;  %7122 = vmatpush1.bf16.msra.mxu1 %v7790_v9  ;;  %v583_v8 = vld [vmem:[%s11658_s1 + $0xc98] sm:$0xff] }
 0x293   : > { %6795 = vmatprep.subr.bf16.mxu0 %v7797_v10  ;;  %7123 = vmatprep.subr.bf16.mxu1 %v7799_v11  ;;  %v587_v9 = vld [vmem:[%s11658_s1 + $0xcb8] sm:$0xff]  ;;  %v7844_v10 = vcombine.low %v574_v39, %v578_v0  ;;  %v7846_v11 = vcombine.low %v575_v2, %v579_v3  ;;  %v7887_v3 = vcombine.high %v615_v56, %v619_v60 }
 0x294   : > { %v7855_v14 = vcombine.high %v583_v8, %v587_v9 }
 0x296   : > { %6796 = vmatpush1.bf16.msra.mxu0 %v7796_v20  ;;  %7124 = vmatpush1.bf16.msra.mxu1 %v7798_v23  ;;  %v595_v20 = vld [vmem:[%s11658_s1 + $0xcf8] sm:$0xff]  ;;  %v1142_v23 = vlaneseq }
 0x297   : > { %6797 = vmatprep.subr.bf16.mxu0 %v7805_v24  ;;  %7125 = vmatprep.subr.bf16.mxu1 %v7807_v59  ;;  %v7852_v24 = vcombine.low %v582_v57, %v586_v7  ;;  %v7854_v59 = vcombine.low %v583_v8, %v587_v9  ;;  %v623_v7 = vld [vmem:[%s11658_s1 + $0xdd8] sm:$0xff] }
 0x298   : > { %v627_v8 = vld [vmem:[%s11658_s1 + $0xdf8] sm:$0xff] }
 0x29a   : > { %6798 = vmatpush1.bf16.msra.mxu0 %v7804_v15  ;;  %7126 = vmatpush1.bf16.msra.mxu1 %v7806_v30  ;;  %v603_v15 = vld [vmem:[%s11658_s1 + $0xd38] sm:$0xff]  ;;  %v10807_v30 = vshrl.u32 %v1142_v23, 7  ;;  %v7886_v23 = vcombine.low %v615_v56, %v619_v60 }
 0x29b   : > { %6799 = vmatprep.subr.bf16.mxu0 %v7813_v12  ;;  %7127 = vmatprep.subr.bf16.mxu1 %v7815_v32  ;;  %v7860_v12 = vcombine.low %v590_v17, %v594_v18 }
 0x29c   : > { %v1152_v25 = vsub.s32 2, %v10807_v30  ;;  %v1148_v44 = vsub.s32 1, %v10807_v30 }
 0x29e   : > { %6800 = vmatpush1.bf16.msra.mxu0 %v7812_v38  ;;  %7128 = vmatpush1.bf16.msra.mxu1 %v7814_v41  ;;  %v1144_v38 = vsub.s32 0, %v10807_v30  ;;  %v607_v41 = vld [vmem:[%s11658_s1 + $0xd58] sm:$0xff] }
 0x29f   : > { %6801 = vmatprep.subr.bf16.mxu0 %v7821_v21  ;;  %7129 = vmatprep.subr.bf16.mxu1 %v7823_v42  ;;  %v611_v21 = vld [vmem:[%s11658_s1 + $0xd78] sm:$0xff]  ;;  %v7868_v42 = vcombine.low %v598_v49, %v602_v29  ;;  %v7895_v49 = vcombine.high %v623_v7, %v627_v8  ;;  %v630_v29 = vld [vmem:[%s11658_s1 + $0xe10] sm:$0xff] }
 0x2a0   : > { %v1145_v19 = vrot.slane %v1140_v43, %v1144_v38  ;;  %v7878_v39 = vcombine.low %v607_v41, %v611_v21 }
 0x2a2   : > { %6802 = vmatpush1.bf16.msra.mxu0 %v7820_v48  ;;  %7130 = vmatpush1.bf16.msra.mxu1 %v7822_v50  ;;  %v1156_v48 = vsub.s32 3, %v10807_v30  ;;  %v7877_v50 = vcombine.high %v606_v35, %v610_v37 }
 0x2a3   : > { %6803 = vmatprep.subr.bf16.mxu0 %v7829_v51  ;;  %7131 = vmatprep.subr.bf16.mxu1 %v7831_v52  ;;  %v7879_v51 = vcombine.high %v607_v41, %v611_v21  ;;  %v614_v52 = vld [vmem:[%s11658_s1 + $0xd90] sm:$0xff] }
 0x2a4   : > { %v7885_v0 = vcombine.high %v614_v52, %v618_v54  ;;  %v638_v21 = vld [vmem:[%s11658_s1 + $0xe50] sm:$0xff] }
 0x2a6   : > { %6804 = vmatpush1.bf16.msra.mxu0 %v7828_v61  ;;  %7132 = vmatpush1.bf16.msra.mxu1 %v7830_v62  ;;  %v1153_v61 = vrot.slane %v1140_v43, %v1152_v25  ;;  %v1149_v62 = vrot.slane %v1140_v43, %v1148_v44  ;;  %v643_v25 = vld [vmem:[%s11658_s1 + $0xe78] sm:$0xff] }
 0x2a7   : > { %6814 = vmatprep.subr.bf16.mxu0 %v7837_v22  ;;  %7142 = vmatprep.subr.bf16.mxu1 %v7839_v63  ;;  %v7876_v22 = vcombine.low %v606_v35, %v610_v37  ;;  %v1157_v63 = vrot.slane %v1140_v43, %v1156_v48  ;;  %v7894_v37 = vcombine.low %v623_v7, %v627_v8  ;;  %v639_v43 = vld [vmem:[%s11658_s1 + $0xe58] sm:$0xff] }
 0x2a8   : > { %v7910_v60 = vcombine.low %v639_v43, %v643_v25  ;;  %v667_v7 = vld [vmem:[%s11658_s1 + $0xf38] sm:$0xff] }
 0x2a9   : > { %6806 = vmatmul.mubr.bf16.vlgmr.msra.gmra.mrb[4].mxu0 %v9244_v36  ;;  %7134 = vmatmul.mubr.bf16.vlgmr.msra.gmra.mrb[4].mxu1 %v9244_v36  ;;  %v591_v36 = vld [vmem:[%s11658_s1 + $0xcd8] sm:$0xff] }
 0x2aa   : > { %6815 = vmatpush1.bf16.msra.mxu0 %v7836_v4  ;;  %7143 = vmatpush1.bf16.msra.mxu1 %v7838_v5  ;;  %v7863_v28 = vcombine.high %v591_v36, %v595_v20  ;;  %v7862_v32 = vcombine.low %v591_v36, %v595_v20  ;;  %v622_v4 = vld [vmem:[%s11658_s1 + $0xdd0] sm:$0xff] }
 0x2ab   : > { %6816 = vmatprep.subr.bf16.mxu0 %v7845_v31  ;;  %7144 = vmatprep.subr.bf16.mxu1 %v7847_v6  ;;  %v626_v5 = vld [vmem:[%s11658_s1 + $0xdf0] sm:$0xff] }
 0x2ac   : > { %6846 = vmatprep.mubr.bf16.mxu0 %v9263_v45  ;;  %7174 = vmatprep.mubr.bf16.mxu1 %v9263_v45  ;;  %v599_v45 = vld [vmem:[%s11658_s1 + $0xd18] sm:$0xff] }
 0x2ad   : > { %v7871_v34 = vcombine.high %v599_v45, %v603_v15  ;;  %v7870_v47 = vcombine.low %v599_v45, %v603_v15  ;;  %v634_v45 = vld [vmem:[%s11658_s1 + $0xe30] sm:$0xff] }
 0x2ae   : > { %6817 = vmatpush1.bf16.msra.mxu0 %v7844_v10  ;;  %7145 = vmatpush1.bf16.msra.mxu1 %v7846_v11  ;;  %v7901_v38 = vcombine.high %v630_v29, %v634_v45  ;;  %v7900_v44 = vcombine.low %v630_v29, %v634_v45 }
 0x2af   : > { %6818 = vmatprep.subr.bf16.mxu0 %v7853_v13  ;;  %7146 = vmatprep.subr.bf16.mxu1 %v7855_v14  ;;  %v7884_v14 = vcombine.low %v614_v52, %v618_v54  ;;  %v650_v52 = vld [vmem:[%s11658_s1 + $0xeb0] sm:$0xff]  ;;  %v647_v54 = vld [vmem:[%s11658_s1 + $0xe98] sm:$0xff] }
 0x2b2   : > { %6819 = vmatpush1.bf16.msra.mxu0 %v7852_v24  ;;  %7147 = vmatpush1.bf16.msra.mxu1 %v7854_v59  ;;  %v7893_v24 = vcombine.high %v622_v4, %v626_v5 }
 0x2b3   : > { %6820 = vmatprep.subr.bf16.mxu0 %v7861_v26  ;;  %7148 = vmatprep.subr.bf16.mxu1 %v7863_v28 }
 0x2b6   : > { %6821 = vmatpush1.bf16.msra.mxu0 %v7860_v12  ;;  %7149 = vmatpush1.bf16.msra.mxu1 %v7862_v32  ;;  %v631_v12 = vld [vmem:[%s11658_s1 + $0xe18] sm:$0xff] }
 0x2b7   : > { %6822 = vmatprep.subr.bf16.mxu0 %v7869_v33  ;;  %7150 = vmatprep.subr.bf16.mxu1 %v7871_v34  ;;  %v635_v32 = vld [vmem:[%s11658_s1 + $0xe38] sm:$0xff]  ;;  %v7892_v34 = vcombine.low %v622_v4, %v626_v5 }
 0x2b8   : > { %v7903_v41 = vcombine.high %v631_v12, %v635_v32 }
 0x2ba   : > { %6823 = vmatpush1.bf16.msra.mxu0 %v7868_v42  ;;  %7151 = vmatpush1.bf16.msra.mxu1 %v7870_v47  ;;  %v642_v42 = vld [vmem:[%s11658_s1 + $0xe70] sm:$0xff]  ;;  %v7902_v47 = vcombine.low %v631_v12, %v635_v32 }
 0x2bb   : > { %6824 = vmatprep.subr.bf16.mxu0 %v7877_v50  ;;  %7152 = vmatprep.subr.bf16.mxu1 %v7879_v51  ;;  %v7909_v48 = vcombine.high %v638_v21, %v642_v42  ;;  %v7911_v50 = vcombine.high %v639_v43, %v643_v25  ;;  %v646_v51 = vld [vmem:[%s11658_s1 + $0xe90] sm:$0xff]  ;;  %v7908_v56 = vcombine.low %v638_v21, %v642_v42 }
 0x2bc   : > { %v6356_v2 = vpop.f32.mrb[0].mxu0  ;;  %v6684_v6 = vpop.f32.mrb[0].mxu1  ;;  %v686_v32 = vld [vmem:[%s11658_s1 + $0xfd0] sm:$0xff] }
 0x2bd   : > { %v8413_v31 = vadd.f32 %v6356_v2, %v1145_v19  ;;  %v6358_v57 = vpop.f32.mrb[1].mxu0  ;;  %v8415_v9 = vadd.f32 %v6684_v6, %v1153_v61  ;;  %v6686_v11 = vpop.f32.mrb[1].mxu1  ;;  %v651_v19 = vld [vmem:[%s11658_s1 + $0xeb8] sm:$0xff]  ;;  %v7917_v61 = vcombine.high %v646_v51, %v650_v52  ;;  %v7916_v2 = vcombine.low %v646_v51, %v650_v52  ;;  %v666_v6 = vld [vmem:[%s11658_s1 + $0xf30] sm:$0xff] }
 0x2be   : > { %v8414_v10 = vadd.f32 %v6358_v57, %v1149_v62  ;;  %v6360_v13 = vpop.f32.mrb[2].mxu0  ;;  %6825 = vmatpush1.bf16.msra.mxu0 %v7876_v22  ;;  %v8416_v18 = vadd.f32 %v6686_v11, %v1157_v63  ;;  %v6688_v36 = vpop.f32.mrb[2].mxu1  ;;  %7153 = vmatpush1.bf16.msra.mxu1 %v7878_v39  ;;  %v7919_v62 = vcombine.high %v647_v54, %v651_v19  ;;  %v654_v22 = vld [vmem:[%s11658_s1 + $0xed0] sm:$0xff]  ;;  %v655_v39 = vld [vmem:[%s11658_s1 + $0xed8] sm:$0xff] }
 0x2bf   : > { %v7347_v17 = vmax.f32 %v8413_v31, 0.0  ;;  %v6361_v20 = vpop.f32.mrb[3].mxu0  ;;  %6826 = vmatprep.subr.bf16.mxu0 %v7885_v0  ;;  %v7349_v59 = vmax.f32 %v8415_v9, 0.0  ;;  %v6689_v28 = vpop.f32.mrb[3].mxu1  ;;  %7154 = vmatprep.subr.bf16.mxu1 %v7887_v3  ;;  %v658_v63 = vld [vmem:[%s11658_s1 + $0xef0] sm:$0xff]  ;;  %v659_v0 = vld [vmem:[%s11658_s1 + $0xef8] sm:$0xff]  ;;  %v7918_v3 = vcombine.low %v647_v54, %v651_v19 }
 0x2c0   : > { %v7348_v26 = vmax.f32 %v8414_v10, 0.0  ;;  %v7350_v15 = vmax.f32 %v8416_v18, 0.0  ;;  %v7925_v4 = vcombine.high %v654_v22, %v658_v63  ;;  %v7927_v5 = vcombine.high %v655_v39, %v659_v0  ;;  %v662_v31 = vld [vmem:[%s11658_s1 + $0xf10] sm:$0xff]  ;;  %v663_v57 = vld [vmem:[%s11658_s1 + $0xf18] sm:$0xff] }
 0x2c1   : > { %v10864_v33 = vmax.f32 %v7347_v17, %v7349_v59  ;;  %v7924_v8 = vcombine.low %v654_v22, %v658_v63  ;;  %v7926_v9 = vcombine.low %v655_v39, %v659_v0  ;;  %v7933_v10 = vcombine.high %v662_v31, %v666_v6  ;;  %v670_v13 = vld [vmem:[%s11658_s1 + $0xf50] sm:$0xff]  ;;  %v671_v17 = vld [vmem:[%s11658_s1 + $0xf58] sm:$0xff] }
 0x2c2   : > { %6827 = vmatpush1.bf16.msra.mxu0 %v7884_v14  ;;  %v10866_v35 = vmax.f32 %v7348_v26, %v7350_v15  ;;  %7155 = vmatpush1.bf16.msra.mxu1 %v7886_v23  ;;  %v7935_v11 = vcombine.high %v663_v57, %v667_v7  ;;  %v674_v14 = vld [vmem:[%s11658_s1 + $0xf70] sm:$0xff]  ;;  %v675_v18 = vld [vmem:[%s11658_s1 + $0xf78] sm:$0xff]  ;;  %v7932_v36 = vcombine.low %v662_v31, %v666_v6 }
 0x2c3   : > { %6828 = vmatprep.subr.bf16.mxu0 %v7893_v24  ;;  %7156 = vmatprep.subr.bf16.mxu1 %v7895_v49  ;;  %v7934_v20 = vcombine.low %v663_v57, %v667_v7  ;;  %v7941_v23 = vcombine.high %v670_v13, %v674_v14  ;;  %v7943_v24 = vcombine.high %v671_v17, %v675_v18  ;;  %v678_v59 = vld [vmem:[%s11658_s1 + $0xf90] sm:$0xff]  ;;  %v679_v28 = vld [vmem:[%s11658_s1 + $0xf98] sm:$0xff] }
 0x2c4   : > { %v682_v26 = vld [vmem:[%s11658_s1 + $0xfb0] sm:$0xff]  ;;  %v683_v49 = vld [vmem:[%s11658_s1 + $0xfb8] sm:$0xff]  ;;  %v7940_v29 = vcombine.low %v670_v13, %v674_v14  ;;  %v7942_v45 = vcombine.low %v671_v17, %v675_v18 }
 0x2c5   : > { %v7949_v15 = vcombine.high %v678_v59, %v682_v26  ;;  %v7951_v12 = vcombine.high %v679_v28, %v683_v49  ;;  %v7950_v21 = vcombine.low %v679_v28, %v683_v49  ;;  %v694_v25 = vld [vmem:[%s11658_s1 + $0x1010] sm:$0xff]  ;;  %v735_v49 = vld [vmem:[%s11658_s1 + $0x1158] sm:$0xff] }
 0x2c6   : > { %6829 = vmatpush1.bf16.msra.mxu0 %v7892_v34  ;;  %7157 = vmatpush1.bf16.msra.mxu1 %v7894_v37  ;;  %v690_v34 = vld [vmem:[%s11658_s1 + $0xff0] sm:$0xff]  ;;  %v687_v37 = vld [vmem:[%s11658_s1 + $0xfd8] sm:$0xff] }
 0x2c7   : > { %6830 = vmatprep.subr.bf16.mxu0 %v7901_v38  ;;  %7158 = vmatprep.subr.bf16.mxu1 %v7903_v41  ;;  %v691_v38 = vld [vmem:[%s11658_s1 + $0xff8] sm:$0xff]  ;;  %v7948_v41 = vcombine.low %v678_v59, %v682_v26  ;;  %v7957_v42 = vcombine.high %v686_v32, %v690_v34  ;;  %v702_v19 = vld [vmem:[%s11658_s1 + $0x1050] sm:$0xff] }
 0x2c8   : > { %v7959_v43 = vcombine.high %v687_v37, %v691_v38  ;;  %v7958_v51 = vcombine.low %v687_v37, %v691_v38  ;;  %v710_v0 = vld [vmem:[%s11658_s1 + $0x1090] sm:$0xff]  ;;  %v743_v38 = vld [vmem:[%s11658_s1 + $0x1198] sm:$0xff] }
 0x2c9   : > { %v718_v7 = vld [vmem:[%s11658_s1 + $0x10d0] sm:$0xff] }
 0x2ca   : > { %6831 = vmatpush1.bf16.msra.mxu0 %v7900_v44  ;;  %7159 = vmatpush1.bf16.msra.mxu1 %v7902_v47  ;;  %v698_v44 = vld [vmem:[%s11658_s1 + $0x1030] sm:$0xff]  ;;  %v695_v47 = vld [vmem:[%s11658_s1 + $0x1018] sm:$0xff] }
 0x2cb   : > { %6832 = vmatprep.subr.bf16.mxu0 %v7909_v48  ;;  %7160 = vmatprep.subr.bf16.mxu1 %v7911_v50  ;;  %v699_v48 = vld [vmem:[%s11658_s1 + $0x1038] sm:$0xff]  ;;  %v7956_v50 = vcombine.low %v686_v32, %v690_v34  ;;  %v7965_v52 = vcombine.high %v694_v25, %v698_v44  ;;  %v726_v17 = vld [vmem:[%s11658_s1 + $0x1110] sm:$0xff] }
 0x2cc   : > { %v7967_v54 = vcombine.high %v695_v47, %v699_v48  ;;  %v7966_v22 = vcombine.low %v695_v47, %v699_v48  ;;  %v730_v18 = vld [vmem:[%s11658_s1 + $0x1130] sm:$0xff]  ;;  %v751_v48 = vld [vmem:[%s11658_s1 + $0x11d8] sm:$0xff] }
 0x2cd   : > { %v734_v26 = vld [vmem:[%s11658_s1 + $0x1150] sm:$0xff] }
 0x2ce   : > { %6833 = vmatpush1.bf16.msra.mxu0 %v7908_v56  ;;  %7161 = vmatpush1.bf16.msra.mxu1 %v7910_v60  ;;  %v706_v56 = vld [vmem:[%s11658_s1 + $0x1070] sm:$0xff]  ;;  %v703_v60 = vld [vmem:[%s11658_s1 + $0x1058] sm:$0xff] }
 0x2cf   : > { %6834 = vmatprep.subr.bf16.mxu0 %v7917_v61  ;;  %7162 = vmatprep.subr.bf16.mxu1 %v7919_v62  ;;  %v707_v61 = vld [vmem:[%s11658_s1 + $0x1078] sm:$0xff]  ;;  %v7964_v62 = vcombine.low %v694_v25, %v698_v44  ;;  %v7973_v63 = vcombine.high %v702_v19, %v706_v56  ;;  %v738_v28 = vld [vmem:[%s11658_s1 + $0x1170] sm:$0xff] }
 0x2d0   : > { %v7975_v39 = vcombine.high %v703_v60, %v707_v61  ;;  %v7974_v31 = vcombine.low %v703_v60, %v707_v61  ;;  %v742_v34 = vld [vmem:[%s11658_s1 + $0x1190] sm:$0xff]  ;;  %v759_v61 = vld [vmem:[%s11658_s1 + $0x1218] sm:$0xff] }
 0x2d1   : > { %v746_v37 = vld [vmem:[%s11658_s1 + $0x11b0] sm:$0xff] }
 0x2d2   : > { %6835 = vmatpush1.bf16.msra.mxu0 %v7916_v2  ;;  %7163 = vmatpush1.bf16.msra.mxu1 %v7918_v3  ;;  %v714_v2 = vld [vmem:[%s11658_s1 + $0x10b0] sm:$0xff]  ;;  %v711_v3 = vld [vmem:[%s11658_s1 + $0x1098] sm:$0xff] }
 0x2d3   : > { %6836 = vmatprep.subr.bf16.mxu0 %v7925_v4  ;;  %7164 = vmatprep.subr.bf16.mxu1 %v7927_v5  ;;  %v715_v4 = vld [vmem:[%s11658_s1 + $0x10b8] sm:$0xff]  ;;  %v7972_v5 = vcombine.low %v702_v19, %v706_v56  ;;  %v7981_v6 = vcombine.high %v710_v0, %v714_v2  ;;  %v750_v44 = vld [vmem:[%s11658_s1 + $0x11d0] sm:$0xff] }
 0x2d4   : > { %v7983_v57 = vcombine.high %v711_v3, %v715_v4  ;;  %v754_v47 = vld [vmem:[%s11658_s1 + $0x11f0] sm:$0xff] }
 0x2d5   : > { %v758_v56 = vld [vmem:[%s11658_s1 + $0x1210] sm:$0xff] }
 0x2d6   : > { %6837 = vmatpush1.bf16.msra.mxu0 %v7924_v8  ;;  %7165 = vmatpush1.bf16.msra.mxu1 %v7926_v9  ;;  %v722_v8 = vld [vmem:[%s11658_s1 + $0x10f0] sm:$0xff]  ;;  %v723_v9 = vld [vmem:[%s11658_s1 + $0x10f8] sm:$0xff] }
 0x2d7   : > { %6838 = vmatprep.subr.bf16.mxu0 %v7933_v10  ;;  %7166 = vmatprep.subr.bf16.mxu1 %v7935_v11  ;;  %v7980_v10 = vcombine.low %v710_v0, %v714_v2  ;;  %v7982_v11 = vcombine.low %v711_v3, %v715_v4  ;;  %v7989_v13 = vcombine.high %v718_v7, %v722_v8  ;;  %v762_v60 = vld [vmem:[%s11658_s1 + $0x1230] sm:$0xff]  ;;  %v767_v4 = vld [vmem:[%s11658_s1 + $0x1258] sm:$0xff] }
 0x2d8   : > { %v766_v2 = vld [vmem:[%s11658_s1 + $0x1250] sm:$0xff] }
 0x2d9   : > { %v770_v3 = vld [vmem:[%s11658_s1 + $0x1270] sm:$0xff] }
 0x2da   : > { %6839 = vmatpush1.bf16.msra.mxu0 %v7932_v36  ;;  %7167 = vmatpush1.bf16.msra.mxu1 %v7934_v20  ;;  %v731_v36 = vld [vmem:[%s11658_s1 + $0x1138] sm:$0xff]  ;;  %v7988_v20 = vcombine.low %v718_v7, %v722_v8  ;;  %v774_v8 = vld [vmem:[%s11658_s1 + $0x1290] sm:$0xff] }
 0x2db   : > { %6840 = vmatprep.subr.bf16.mxu0 %v7941_v23  ;;  %7168 = vmatprep.subr.bf16.mxu1 %v7943_v24  ;;  %v7997_v24 = vcombine.high %v726_v17, %v730_v18 }
 0x2de   : > { %6841 = vmatpush1.bf16.msra.mxu0 %v7940_v29  ;;  %7169 = vmatpush1.bf16.msra.mxu1 %v7942_v45  ;;  %v739_v29 = vld [vmem:[%s11658_s1 + $0x1178] sm:$0xff]  ;;  %v7996_v45 = vcombine.low %v726_v17, %v730_v18  ;;  %v782_v18 = vld [vmem:[%s11658_s1 + $0x12d0] sm:$0xff] }
 0x2df   : > { %6842 = vmatprep.subr.bf16.mxu0 %v7949_v15  ;;  %7170 = vmatprep.subr.bf16.mxu1 %v7951_v12  ;;  %v8005_v12 = vcombine.high %v734_v26, %v738_v28  ;;  %v8007_v32 = vcombine.high %v735_v49, %v739_v29 }
 0x2e2   : > { %6843 = vmatpush1.bf16.msra.mxu0 %v7948_v41  ;;  %7171 = vmatpush1.bf16.msra.mxu1 %v7950_v21  ;;  %v747_v41 = vld [vmem:[%s11658_s1 + $0x11b8] sm:$0xff]  ;;  %v8004_v21 = vcombine.low %v734_v26, %v738_v28  ;;  %v790_v28 = vld [vmem:[%s11658_s1 + $0x1310] sm:$0xff] }
 0x2e3   : > { %6844 = vmatprep.subr.bf16.mxu0 %v7957_v42  ;;  %7172 = vmatprep.subr.bf16.mxu1 %v7959_v43  ;;  %v8006_v42 = vcombine.low %v735_v49, %v739_v29  ;;  %v8013_v43 = vcombine.high %v742_v34, %v746_v37  ;;  %v8015_v25 = vcombine.high %v743_v38, %v747_v41  ;;  %v794_v49 = vld [vmem:[%s11658_s1 + $0x1330] sm:$0xff]  ;;  %v791_v29 = vld [vmem:[%s11658_s1 + $0x1318] sm:$0xff] }
 0x2e6   : > { %6845 = vmatpush1.bf16.msra.mxu0 %v7956_v50  ;;  %7173 = vmatpush1.bf16.msra.mxu1 %v7958_v51  ;;  %v755_v50 = vld [vmem:[%s11658_s1 + $0x11f8] sm:$0xff]  ;;  %v8012_v51 = vcombine.low %v742_v34, %v746_v37  ;;  %v798_v37 = vld [vmem:[%s11658_s1 + $0x1350] sm:$0xff] }
 0x2e7   : > { %6855 = vmatprep.subr.bf16.mxu0 %v7965_v52  ;;  %7183 = vmatprep.subr.bf16.mxu1 %v7967_v54  ;;  %v8014_v52 = vcombine.low %v743_v38, %v747_v41  ;;  %v8021_v54 = vcombine.high %v750_v44, %v754_v47  ;;  %v8023_v19 = vcombine.high %v751_v48, %v755_v50  ;;  %v802_v38 = vld [vmem:[%s11658_s1 + $0x1370] sm:$0xff]  ;;  %v799_v41 = vld [vmem:[%s11658_s1 + $0x1358] sm:$0xff] }
 0x2e9   : > { %6847 = vmatmul.mubr.bf16.vlgmr.msra.gmra.mrb[4].mxu0 %v9451_v55  ;;  %7175 = vmatmul.mubr.bf16.vlgmr.msra.gmra.mrb[4].mxu1 %v9451_v55  ;;  %v719_v55 = vld [vmem:[%s11658_s1 + $0x10d8] sm:$0xff] }
 0x2ea   : > { %6856 = vmatpush1.bf16.msra.mxu0 %v7964_v62  ;;  %7184 = vmatpush1.bf16.msra.mxu1 %v7966_v22  ;;  %v7991_v14 = vcombine.high %v719_v55, %v723_v9  ;;  %v7990_v23 = vcombine.low %v719_v55, %v723_v9  ;;  %v763_v62 = vld [vmem:[%s11658_s1 + $0x1238] sm:$0xff]  ;;  %v8020_v22 = vcombine.low %v750_v44, %v754_v47  ;;  %v778_v55 = vld [vmem:[%s11658_s1 + $0x12b0] sm:$0xff] }
 0x2eb   : > { %6857 = vmatprep.subr.bf16.mxu0 %v7973_v63  ;;  %7185 = vmatprep.subr.bf16.mxu1 %v7975_v39  ;;  %v8022_v63 = vcombine.low %v751_v48, %v755_v50  ;;  %v8029_v39 = vcombine.high %v758_v56, %v762_v60  ;;  %v8031_v0 = vcombine.high %v759_v61, %v763_v62  ;;  %v775_v9 = vld [vmem:[%s11658_s1 + $0x1298] sm:$0xff]  ;;  %v806_v47 = vld [vmem:[%s11658_s1 + $0x1390] sm:$0xff] }
 0x2ec   : > { %6887 = vmatprep.mubr.bf16.mxu0 %v9470_v1  ;;  %7215 = vmatprep.mubr.bf16.mxu1 %v9470_v1  ;;  %v727_v1 = vld [vmem:[%s11658_s1 + $0x1118] sm:$0xff]  ;;  %v810_v48 = vld [vmem:[%s11658_s1 + $0x13b0] sm:$0xff] }
 0x2ed   : > { %v7999_v59 = vcombine.high %v727_v1, %v731_v36  ;;  %v7998_v15 = vcombine.low %v727_v1, %v731_v36  ;;  %v786_v1 = vld [vmem:[%s11658_s1 + $0x12f0] sm:$0xff]  ;;  %v783_v36 = vld [vmem:[%s11658_s1 + $0x12d8] sm:$0xff] }
 0x2ee   : > { %6858 = vmatpush1.bf16.msra.mxu0 %v7972_v5  ;;  %7186 = vmatpush1.bf16.msra.mxu1 %v7974_v31  ;;  %v771_v5 = vld [vmem:[%s11658_s1 + $0x1278] sm:$0xff]  ;;  %v8028_v31 = vcombine.low %v758_v56, %v762_v60  ;;  %v814_v60 = vld [vmem:[%s11658_s1 + $0x13d0] sm:$0xff] }
 0x2ef   : > { %6859 = vmatprep.subr.bf16.mxu0 %v7981_v6  ;;  %7187 = vmatprep.subr.bf16.mxu1 %v7983_v57  ;;  %v8030_v6 = vcombine.low %v759_v61, %v763_v62  ;;  %v8037_v57 = vcombine.high %v766_v2, %v770_v3  ;;  %v8039_v7 = vcombine.high %v767_v4, %v771_v5  ;;  %v807_v50 = vld [vmem:[%s11658_s1 + $0x1398] sm:$0xff]  ;;  %v818_v61 = vld [vmem:[%s11658_s1 + $0x13f0] sm:$0xff] }
 0x2f0   : > { %v815_v62 = vld [vmem:[%s11658_s1 + $0x13d8] sm:$0xff] }
 0x2f2   : > { %6860 = vmatpush1.bf16.msra.mxu0 %v7980_v10  ;;  %7188 = vmatpush1.bf16.msra.mxu1 %v7982_v11  ;;  %v779_v10 = vld [vmem:[%s11658_s1 + $0x12b8] sm:$0xff]  ;;  %v8036_v11 = vcombine.low %v766_v2, %v770_v3  ;;  %v822_v3 = vld [vmem:[%s11658_s1 + $0x1410] sm:$0xff] }
 0x2f3   : > { %6861 = vmatprep.subr.bf16.mxu0 %v7989_v13  ;;  %7189 = vmatprep.subr.bf16.mxu1 %v7991_v14  ;;  %v8038_v13 = vcombine.low %v767_v4, %v771_v5  ;;  %v8045_v14 = vcombine.high %v774_v8, %v778_v55  ;;  %v8047_v17 = vcombine.high %v775_v9, %v779_v10  ;;  %v826_v4 = vld [vmem:[%s11658_s1 + $0x1430] sm:$0xff]  ;;  %v823_v5 = vld [vmem:[%s11658_s1 + $0x1418] sm:$0xff] }
 0x2f6   : > { %6862 = vmatpush1.bf16.msra.mxu0 %v7988_v20  ;;  %7190 = vmatpush1.bf16.msra.mxu1 %v7990_v23  ;;  %v787_v20 = vld [vmem:[%s11658_s1 + $0x12f8] sm:$0xff]  ;;  %v8044_v23 = vcombine.low %v774_v8, %v778_v55  ;;  %v830_v55 = vld [vmem:[%s11658_s1 + $0x1450] sm:$0xff] }
 0x2f7   : > { %6863 = vmatprep.subr.bf16.mxu0 %v7997_v24  ;;  %7191 = vmatprep.subr.bf16.mxu1 %v7999_v59  ;;  %v8046_v24 = vcombine.low %v775_v9, %v779_v10  ;;  %v8053_v59 = vcombine.high %v782_v18, %v786_v1  ;;  %v8055_v26 = vcombine.high %v783_v36, %v787_v20  ;;  %v834_v9 = vld [vmem:[%s11658_s1 + $0x1470] sm:$0xff]  ;;  %v831_v10 = vld [vmem:[%s11658_s1 + $0x1458] sm:$0xff] }
 0x2fa   : > { %6864 = vmatpush1.bf16.msra.mxu0 %v7996_v45  ;;  %7192 = vmatpush1.bf16.msra.mxu1 %v7998_v15  ;;  %v795_v45 = vld [vmem:[%s11658_s1 + $0x1338] sm:$0xff]  ;;  %v8052_v15 = vcombine.low %v782_v18, %v786_v1  ;;  %v838_v1 = vld [vmem:[%s11658_s1 + $0x1490] sm:$0xff] }
 0x2fb   : > { %6865 = vmatprep.subr.bf16.mxu0 %v8005_v12  ;;  %7193 = vmatprep.subr.bf16.mxu1 %v8007_v32  ;;  %v8054_v12 = vcombine.low %v783_v36, %v787_v20  ;;  %v8061_v32 = vcombine.high %v790_v28, %v794_v49  ;;  %v8063_v34 = vcombine.high %v791_v29, %v795_v45  ;;  %v842_v36 = vld [vmem:[%s11658_s1 + $0x14b0] sm:$0xff]  ;;  %v839_v20 = vld [vmem:[%s11658_s1 + $0x1498] sm:$0xff] }
 0x2fe   : > { %6866 = vmatpush1.bf16.msra.mxu0 %v8004_v21  ;;  %7194 = vmatpush1.bf16.msra.mxu1 %v8006_v42  ;;  %v803_v21 = vld [vmem:[%s11658_s1 + $0x1378] sm:$0xff]  ;;  %v8060_v42 = vcombine.low %v790_v28, %v794_v49  ;;  %v846_v49 = vld [vmem:[%s11658_s1 + $0x14d0] sm:$0xff] }
 0x2ff   : > { %6867 = vmatprep.subr.bf16.mxu0 %v8013_v43  ;;  %7195 = vmatprep.subr.bf16.mxu1 %v8015_v25  ;;  %v8062_v43 = vcombine.low %v791_v29, %v795_v45  ;;  %v8069_v25 = vcombine.high %v798_v37, %v802_v38  ;;  %v8071_v44 = vcombine.high %v799_v41, %v803_v21  ;;  %v850_v29 = vld [vmem:[%s11658_s1 + $0x14f0] sm:$0xff]  ;;  %v851_v45 = vld [vmem:[%s11658_s1 + $0x14f8] sm:$0xff] }
 0x302   : > { %6868 = vmatpush1.bf16.msra.mxu0 %v8012_v51  ;;  %7196 = vmatpush1.bf16.msra.mxu1 %v8014_v52  ;;  %v811_v51 = vld [vmem:[%s11658_s1 + $0x13b8] sm:$0xff]  ;;  %v8068_v52 = vcombine.low %v798_v37, %v802_v38  ;;  %v854_v37 = vld [vmem:[%s11658_s1 + $0x1510] sm:$0xff] }
 0x303   : > { %6869 = vmatprep.subr.bf16.mxu0 %v8021_v54  ;;  %7197 = vmatprep.subr.bf16.mxu1 %v8023_v19  ;;  %v8070_v54 = vcombine.low %v799_v41, %v803_v21  ;;  %v8077_v19 = vcombine.high %v806_v47, %v810_v48  ;;  %v8079_v56 = vcombine.high %v807_v50, %v811_v51  ;;  %v858_v38 = vld [vmem:[%s11658_s1 + $0x1530] sm:$0xff]  ;;  %v859_v41 = vld [vmem:[%s11658_s1 + $0x1538] sm:$0xff] }
 0x304   : > { %v8116_v21 = vcombine.low %v846_v49, %v850_v29 }
 0x306   : > { %6870 = vmatpush1.bf16.msra.mxu0 %v8020_v22  ;;  %7198 = vmatpush1.bf16.msra.mxu1 %v8022_v63  ;;  %v819_v22 = vld [vmem:[%s11658_s1 + $0x13f8] sm:$0xff]  ;;  %v8076_v63 = vcombine.low %v806_v47, %v810_v48  ;;  %v866_v47 = vld [vmem:[%s11658_s1 + $0x1570] sm:$0xff] }
 0x307   : > { %6871 = vmatprep.subr.bf16.mxu0 %v8029_v39  ;;  %7199 = vmatprep.subr.bf16.mxu1 %v8031_v0  ;;  %v8078_v39 = vcombine.low %v807_v50, %v811_v51  ;;  %v8085_v0 = vcombine.high %v814_v60, %v818_v61  ;;  %v8087_v2 = vcombine.high %v815_v62, %v819_v22  ;;  %v863_v48 = vld [vmem:[%s11658_s1 + $0x1558] sm:$0xff] }
 0x308   : > { %v867_v50 = vld [vmem:[%s11658_s1 + $0x1578] sm:$0xff]  ;;  %v8124_v51 = vcombine.low %v854_v37, %v858_v38 }
 0x30a   : > { %6872 = vmatpush1.bf16.msra.mxu0 %v8028_v31  ;;  %7200 = vmatpush1.bf16.msra.mxu1 %v8030_v6  ;;  %v827_v31 = vld [vmem:[%s11658_s1 + $0x1438] sm:$0xff]  ;;  %v8084_v6 = vcombine.low %v814_v60, %v818_v61  ;;  %v874_v60 = vld [vmem:[%s11658_s1 + $0x15b0] sm:$0xff] }
 0x30b   : > { %6873 = vmatprep.subr.bf16.mxu0 %v8037_v57  ;;  %7201 = vmatprep.subr.bf16.mxu1 %v8039_v7  ;;  %v8086_v57 = vcombine.low %v815_v62, %v819_v22  ;;  %v8093_v7 = vcombine.high %v822_v3, %v826_v4  ;;  %v8095_v8 = vcombine.high %v823_v5, %v827_v31  ;;  %v871_v61 = vld [vmem:[%s11658_s1 + $0x1598] sm:$0xff] }
 0x30c   : > { %v875_v62 = vld [vmem:[%s11658_s1 + $0x15b8] sm:$0xff] }
 0x30e   : > { %6874 = vmatpush1.bf16.msra.mxu0 %v8036_v11  ;;  %7202 = vmatpush1.bf16.msra.mxu1 %v8038_v13  ;;  %v835_v11 = vld [vmem:[%s11658_s1 + $0x1478] sm:$0xff]  ;;  %v8092_v13 = vcombine.low %v822_v3, %v826_v4  ;;  %v882_v3 = vld [vmem:[%s11658_s1 + $0x15f0] sm:$0xff] }
 0x30f   : > { %6875 = vmatprep.subr.bf16.mxu0 %v8045_v14  ;;  %7203 = vmatprep.subr.bf16.mxu1 %v8047_v17  ;;  %v8094_v14 = vcombine.low %v823_v5, %v827_v31  ;;  %v8101_v17 = vcombine.high %v830_v55, %v834_v9  ;;  %v8103_v18 = vcombine.high %v831_v10, %v835_v11  ;;  %v879_v4 = vld [vmem:[%s11658_s1 + $0x15d8] sm:$0xff] }
 0x310   : > { %v883_v5 = vld [vmem:[%s11658_s1 + $0x15f8] sm:$0xff] }
 0x312   : > { %6876 = vmatpush1.bf16.msra.mxu0 %v8044_v23  ;;  %7204 = vmatpush1.bf16.msra.mxu1 %v8046_v24  ;;  %v843_v23 = vld [vmem:[%s11658_s1 + $0x14b8] sm:$0xff]  ;;  %v8100_v24 = vcombine.low %v830_v55, %v834_v9  ;;  %v890_v55 = vld [vmem:[%s11658_s1 + $0x1630] sm:$0xff] }
 0x313   : > { %6877 = vmatprep.subr.bf16.mxu0 %v8053_v59  ;;  %7205 = vmatprep.subr.bf16.mxu1 %v8055_v26  ;;  %v8102_v59 = vcombine.low %v831_v10, %v835_v11  ;;  %v8109_v26 = vcombine.high %v838_v1, %v842_v36  ;;  %v8111_v28 = vcombine.high %v839_v20, %v843_v23  ;;  %v887_v9 = vld [vmem:[%s11658_s1 + $0x1618] sm:$0xff] }
 0x314   : > { %v891_v10 = vld [vmem:[%s11658_s1 + $0x1638] sm:$0xff] }
 0x316   : > { %6878 = vmatpush1.bf16.msra.mxu0 %v8052_v15  ;;  %7206 = vmatpush1.bf16.msra.mxu1 %v8054_v12  ;;  %v8108_v15 = vcombine.low %v838_v1, %v842_v36  ;;  %v8110_v12 = vcombine.low %v839_v20, %v843_v23  ;;  %v898_v1 = vld [vmem:[%s11658_s1 + $0x1670] sm:$0xff]  ;;  %v895_v36 = vld [vmem:[%s11658_s1 + $0x1658] sm:$0xff] }
 0x317   : > { %6879 = vmatprep.subr.bf16.mxu0 %v8061_v32  ;;  %7207 = vmatprep.subr.bf16.mxu1 %v8063_v34  ;;  %v8117_v32 = vcombine.high %v846_v49, %v850_v29  ;;  %v899_v20 = vld [vmem:[%s11658_s1 + $0x1678] sm:$0xff]  ;;  %v906_v49 = vld [vmem:[%s11658_s1 + $0x16b0] sm:$0xff] }
 0x318   : > { %v903_v29 = vld [vmem:[%s11658_s1 + $0x1698] sm:$0xff] }
 0x31a   : > { %6880 = vmatpush1.bf16.msra.mxu0 %v8060_v42  ;;  %7208 = vmatpush1.bf16.msra.mxu1 %v8062_v43  ;;  %v8125_v43 = vcombine.high %v854_v37, %v858_v38  ;;  %v914_v37 = vld [vmem:[%s11658_s1 + $0x16f0] sm:$0xff]  ;;  %v911_v38 = vld [vmem:[%s11658_s1 + $0x16d8] sm:$0xff] }
 0x31b   : > { %6881 = vmatprep.subr.bf16.mxu0 %v8069_v25  ;;  %7209 = vmatprep.subr.bf16.mxu1 %v8071_v44  ;;  %v862_v44 = vld [vmem:[%s11658_s1 + $0x1550] sm:$0xff] }
 0x31c   : > { %v8132_v22 = vcombine.low %v862_v44, %v866_v47 }
 0x31e   : > { %6882 = vmatpush1.bf16.msra.mxu0 %v8068_v52  ;;  %7210 = vmatpush1.bf16.msra.mxu1 %v8070_v54  ;;  %v8133_v54 = vcombine.high %v862_v44, %v866_v47  ;;  %v922_v44 = vld [vmem:[%s11658_s1 + $0x1730] sm:$0xff]  ;;  %v919_v47 = vld [vmem:[%s11658_s1 + $0x1718] sm:$0xff] }
 0x31f   : > { %6883 = vmatprep.subr.bf16.mxu0 %v8077_v19  ;;  %7211 = vmatprep.subr.bf16.mxu1 %v8079_v56  ;;  %v8135_v19 = vcombine.high %v863_v48, %v867_v50  ;;  %v870_v56 = vld [vmem:[%s11658_s1 + $0x1590] sm:$0xff] }
 0x320   : > { %v8140_v31 = vcombine.low %v870_v56, %v874_v60 }
 0x322   : > { %6884 = vmatpush1.bf16.msra.mxu0 %v8076_v63  ;;  %7212 = vmatpush1.bf16.msra.mxu1 %v8078_v39  ;;  %v8134_v63 = vcombine.low %v863_v48, %v867_v50  ;;  %v8141_v39 = vcombine.high %v870_v56, %v874_v60  ;;  %v923_v48 = vld [vmem:[%s11658_s1 + $0x1738] sm:$0xff]  ;;  %v930_v56 = vld [vmem:[%s11658_s1 + $0x1770] sm:$0xff] }
 0x323   : > { %6885 = vmatprep.subr.bf16.mxu0 %v8085_v0  ;;  %7213 = vmatprep.subr.bf16.mxu1 %v8087_v2  ;;  %v8143_v0 = vcombine.high %v871_v61, %v875_v62  ;;  %v878_v2 = vld [vmem:[%s11658_s1 + $0x15d0] sm:$0xff]  ;;  %v927_v60 = vld [vmem:[%s11658_s1 + $0x1758] sm:$0xff] }
 0x324   : > { %v8148_v11 = vcombine.low %v878_v2, %v882_v3 }
 0x326   : > { %6886 = vmatpush1.bf16.msra.mxu0 %v8084_v6  ;;  %7214 = vmatpush1.bf16.msra.mxu1 %v8086_v57  ;;  %v8142_v6 = vcombine.low %v871_v61, %v875_v62  ;;  %v8149_v57 = vcombine.high %v878_v2, %v882_v3  ;;  %v931_v61 = vld [vmem:[%s11658_s1 + $0x1778] sm:$0xff]  ;;  %v938_v2 = vld [vmem:[%s11658_s1 + $0x17b0] sm:$0xff] }
 0x327   : > { %6896 = vmatprep.subr.bf16.mxu0 %v8093_v7  ;;  %7224 = vmatprep.subr.bf16.mxu1 %v8095_v8  ;;  %v8151_v7 = vcombine.high %v879_v4, %v883_v5  ;;  %v886_v8 = vld [vmem:[%s11658_s1 + $0x1610] sm:$0xff]  ;;  %v935_v3 = vld [vmem:[%s11658_s1 + $0x1798] sm:$0xff] }
 0x328   : > { %v8156_v23 = vcombine.low %v886_v8, %v890_v55 }
 0x329   : > { %6888 = vmatmul.mubr.bf16.vlgmr.msra.gmra.mrb[4].mxu0 %v9658_v16  ;;  %7216 = vmatmul.mubr.bf16.vlgmr.msra.gmra.mrb[4].mxu1 %v9658_v16  ;;  %v847_v16 = vld [vmem:[%s11658_s1 + $0x14d8] sm:$0xff] }
 0x32a   : > { %6897 = vmatpush1.bf16.msra.mxu0 %v8092_v13  ;;  %7225 = vmatpush1.bf16.msra.mxu1 %v8094_v14  ;;  %v8119_v34 = vcombine.high %v847_v16, %v851_v45  ;;  %v8118_v42 = vcombine.low %v847_v16, %v851_v45  ;;  %v8150_v13 = vcombine.low %v879_v4, %v883_v5  ;;  %v907_v16 = vld [vmem:[%s11658_s1 + $0x16b8] sm:$0xff] }
 0x32b   : > { %6898 = vmatprep.subr.bf16.mxu0 %v8101_v17  ;;  %7226 = vmatprep.subr.bf16.mxu1 %v8103_v18  ;;  %v8157_v14 = vcombine.high %v886_v8, %v890_v55  ;;  %v8159_v17 = vcombine.high %v887_v9, %v891_v10  ;;  %v894_v18 = vld [vmem:[%s11658_s1 + $0x1650] sm:$0xff]  ;;  %v939_v4 = vld [vmem:[%s11658_s1 + $0x17b8] sm:$0xff] }
 0x32c   : > { %6928 = vmatprep.mubr.bf16.mxu0 %v9677_v27  ;;  %7256 = vmatprep.mubr.bf16.mxu1 %v9677_v27  ;;  %v855_v27 = vld [vmem:[%s11658_s1 + $0x1518] sm:$0xff]  ;;  %v8164_v45 = vcombine.low %v894_v18, %v898_v1  ;;  %v946_v8 = vld [vmem:[%s11658_s1 + $0x17f0] sm:$0xff] }
 0x32d   : > { %v8127_v25 = vcombine.high %v855_v27, %v859_v41  ;;  %v8126_v52 = vcombine.low %v855_v27, %v859_v41  ;;  %v915_v27 = vld [vmem:[%s11658_s1 + $0x16f8] sm:$0xff] }
 0x32e   : > { %6899 = vmatpush1.bf16.msra.mxu0 %v8100_v24  ;;  %7227 = vmatpush1.bf16.msra.mxu1 %v8102_v59  ;;  %v8158_v24 = vcombine.low %v887_v9, %v891_v10  ;;  %v8165_v59 = vcombine.high %v894_v18, %v898_v1  ;;  %v943_v55 = vld [vmem:[%s11658_s1 + $0x17d8] sm:$0xff]  ;;  %v954_v18 = vld [vmem:[%s11658_s1 + $0x1830] sm:$0xff] }
 0x32f   : > { %6900 = vmatprep.subr.bf16.mxu0 %v8109_v26  ;;  %7228 = vmatprep.subr.bf16.mxu1 %v8111_v28  ;;  %v8167_v26 = vcombine.high %v895_v36, %v899_v20  ;;  %v902_v28 = vld [vmem:[%s11658_s1 + $0x1690] sm:$0xff]  ;;  %v947_v9 = vld [vmem:[%s11658_s1 + $0x17f8] sm:$0xff] }
 0x330   : > { %v8172_v41 = vcombine.low %v902_v28, %v906_v49  ;;  %v951_v1 = vld [vmem:[%s11658_s1 + $0x1818] sm:$0xff] }
 0x332   : > { %6901 = vmatpush1.bf16.msra.mxu0 %v8108_v15  ;;  %7229 = vmatpush1.bf16.msra.mxu1 %v8110_v12  ;;  %v8166_v15 = vcombine.low %v895_v36, %v899_v20  ;;  %v8173_v12 = vcombine.high %v902_v28, %v906_v49  ;;  %v955_v36 = vld [vmem:[%s11658_s1 + $0x1838] sm:$0xff]  ;;  %v962_v28 = vld [vmem:[%s11658_s1 + $0x1870] sm:$0xff] }
 0x333   : > { %6902 = vmatprep.subr.bf16.mxu0 %v8117_v32  ;;  %7230 = vmatprep.subr.bf16.mxu1 %v8119_v34  ;;  %v8175_v32 = vcombine.high %v903_v29, %v907_v16  ;;  %v910_v34 = vld [vmem:[%s11658_s1 + $0x16d0] sm:$0xff]  ;;  %v959_v49 = vld [vmem:[%s11658_s1 + $0x1858] sm:$0xff] }
 0x334   : > { %v8180_v50 = vcombine.low %v910_v34, %v914_v37 }
 0x336   : > { %6903 = vmatpush1.bf16.msra.mxu0 %v8116_v21  ;;  %7231 = vmatpush1.bf16.msra.mxu1 %v8118_v42  ;;  %v8174_v21 = vcombine.low %v903_v29, %v907_v16  ;;  %v8181_v42 = vcombine.high %v910_v34, %v914_v37  ;;  %v963_v29 = vld [vmem:[%s11658_s1 + $0x1878] sm:$0xff]  ;;  %v970_v34 = vld [vmem:[%s11658_s1 + $0x18b0] sm:$0xff] }
 0x337   : > { %6904 = vmatprep.subr.bf16.mxu0 %v8125_v43  ;;  %7232 = vmatprep.subr.bf16.mxu1 %v8127_v25  ;;  %v8183_v43 = vcombine.high %v911_v38, %v915_v27  ;;  %v918_v25 = vld [vmem:[%s11658_s1 + $0x1710] sm:$0xff]  ;;  %v967_v37 = vld [vmem:[%s11658_s1 + $0x1898] sm:$0xff] }
 0x338   : > { %v8188_v62 = vcombine.low %v918_v25, %v922_v44 }
 0x33a   : > { %6905 = vmatpush1.bf16.msra.mxu0 %v8124_v51  ;;  %7233 = vmatpush1.bf16.msra.mxu1 %v8126_v52  ;;  %v8182_v51 = vcombine.low %v911_v38, %v915_v27  ;;  %v8189_v52 = vcombine.high %v918_v25, %v922_v44  ;;  %v971_v38 = vld [vmem:[%s11658_s1 + $0x18b8] sm:$0xff]  ;;  %v978_v25 = vld [vmem:[%s11658_s1 + $0x18f0] sm:$0xff] }
 0x33b   : > { %6906 = vmatprep.subr.bf16.mxu0 %v8133_v54  ;;  %7234 = vmatprep.subr.bf16.mxu1 %v8135_v19  ;;  %v8191_v54 = vcombine.high %v919_v47, %v923_v48  ;;  %v926_v19 = vld [vmem:[%s11658_s1 + $0x1750] sm:$0xff]  ;;  %v979_v44 = vld [vmem:[%s11658_s1 + $0x18f8] sm:$0xff] }
 0x33c   : > { %v8196_v5 = vcombine.low %v926_v19, %v930_v56 }
 0x33e   : > { %6907 = vmatpush1.bf16.msra.mxu0 %v8132_v22  ;;  %7235 = vmatpush1.bf16.msra.mxu1 %v8134_v63  ;;  %v8190_v22 = vcombine.low %v919_v47, %v923_v48  ;;  %v8197_v63 = vcombine.high %v926_v19, %v930_v56  ;;  %v8238_v48 = vcombine.low %v967_v37, %v971_v38  ;;  %v987_v19 = vld [vmem:[%s11658_s1 + $0x1938] sm:$0xff] }
 0x33f   : > { %6908 = vmatprep.subr.bf16.mxu0 %v8141_v39  ;;  %7236 = vmatprep.subr.bf16.mxu1 %v8143_v0  ;;  %v8199_v39 = vcombine.high %v927_v60, %v931_v61  ;;  %v934_v0 = vld [vmem:[%s11658_s1 + $0x1790] sm:$0xff] }
 0x340   : > { %v8204_v10 = vcombine.low %v934_v0, %v938_v2 }
 0x342   : > { %6909 = vmatpush1.bf16.msra.mxu0 %v8140_v31  ;;  %7237 = vmatpush1.bf16.msra.mxu1 %v8142_v6  ;;  %v8198_v31 = vcombine.low %v927_v60, %v931_v61  ;;  %v8205_v6 = vcombine.high %v934_v0, %v938_v2  ;;  %v995_v0 = vld [vmem:[%s11658_s1 + $0x1978] sm:$0xff] }
 0x343   : > { %6910 = vmatprep.subr.bf16.mxu0 %v8149_v57  ;;  %7238 = vmatprep.subr.bf16.mxu1 %v8151_v7  ;;  %v8207_v57 = vcombine.high %v935_v3, %v939_v4  ;;  %v942_v7 = vld [vmem:[%s11658_s1 + $0x17d0] sm:$0xff] }
 0x344   : > { %v8212_v20 = vcombine.low %v942_v7, %v946_v8 }
 0x346   : > { %6911 = vmatpush1.bf16.msra.mxu0 %v8148_v11  ;;  %7239 = vmatpush1.bf16.msra.mxu1 %v8150_v13  ;;  %v8206_v11 = vcombine.low %v935_v3, %v939_v4  ;;  %v8213_v13 = vcombine.high %v942_v7, %v946_v8  ;;  %v1003_v7 = vld [vmem:[%s11658_s1 + $0x19b8] sm:$0xff] }
 0x347   : > { %6912 = vmatprep.subr.bf16.mxu0 %v8157_v14  ;;  %7240 = vmatprep.subr.bf16.mxu1 %v8159_v17  ;;  %v8215_v14 = vcombine.high %v943_v55, %v947_v9  ;;  %v950_v17 = vld [vmem:[%s11658_s1 + $0x1810] sm:$0xff] }
 0x348   : > { %v8220_v16 = vcombine.low %v950_v17, %v954_v18 }
 0x34a   : > { %6913 = vmatpush1.bf16.msra.mxu0 %v8156_v23  ;;  %7241 = vmatpush1.bf16.msra.mxu1 %v8158_v24  ;;  %v8214_v23 = vcombine.low %v943_v55, %v947_v9  ;;  %v8221_v24 = vcombine.high %v950_v17, %v954_v18  ;;  %v1011_v17 = vld [vmem:[%s11658_s1 + $0x19f8] sm:$0xff] }
 0x34b   : > { %6914 = vmatprep.subr.bf16.mxu0 %v8165_v59  ;;  %7242 = vmatprep.subr.bf16.mxu1 %v8167_v26  ;;  %v8223_v59 = vcombine.high %v951_v1, %v955_v36  ;;  %v958_v26 = vld [vmem:[%s11658_s1 + $0x1850] sm:$0xff] }
 0x34c   : > { %v8228_v27 = vcombine.low %v958_v26, %v962_v28 }
 0x34e   : > { %6915 = vmatpush1.bf16.msra.mxu0 %v8164_v45  ;;  %7243 = vmatpush1.bf16.msra.mxu1 %v8166_v15  ;;  %v8222_v45 = vcombine.low %v951_v1, %v955_v36  ;;  %v8229_v15 = vcombine.high %v958_v26, %v962_v28  ;;  %v1019_v26 = vld [vmem:[%s11658_s1 + $0x1a38] sm:$0xff] }
 0x34f   : > { %6916 = vmatprep.subr.bf16.mxu0 %v8173_v12  ;;  %7244 = vmatprep.subr.bf16.mxu1 %v8175_v32  ;;  %v8231_v12 = vcombine.high %v959_v49, %v963_v29  ;;  %v966_v32 = vld [vmem:[%s11658_s1 + $0x1890] sm:$0xff] }
 0x350   : > { %v8236_v47 = vcombine.low %v966_v32, %v970_v34 }
 0x352   : > { %6917 = vmatpush1.bf16.msra.mxu0 %v8172_v41  ;;  %7245 = vmatpush1.bf16.msra.mxu1 %v8174_v21  ;;  %v8230_v41 = vcombine.low %v959_v49, %v963_v29  ;;  %v8237_v21 = vcombine.high %v966_v32, %v970_v34  ;;  %v1027_v32 = vld [vmem:[%s11658_s1 + $0x1a78] sm:$0xff] }
 0x353   : > { %6918 = vmatprep.subr.bf16.mxu0 %v8181_v42  ;;  %7246 = vmatprep.subr.bf16.mxu1 %v8183_v43  ;;  %v8239_v42 = vcombine.high %v967_v37, %v971_v38  ;;  %v974_v43 = vld [vmem:[%s11658_s1 + $0x18d0] sm:$0xff] }
 0x354   : > { %v8244_v56 = vcombine.low %v974_v43, %v978_v25 }
 0x356   : > { %6919 = vmatpush1.bf16.msra.mxu0 %v8180_v50  ;;  %7247 = vmatpush1.bf16.msra.mxu1 %v8182_v51  ;;  %v8245_v50 = vcombine.high %v974_v43, %v978_v25  ;;  %v1035_v43 = vld [vmem:[%s11658_s1 + $0x1ab8] sm:$0xff] }
 0x357   : > { %6920 = vmatprep.subr.bf16.mxu0 %v8189_v52  ;;  %7248 = vmatprep.subr.bf16.mxu1 %v8191_v54  ;;  %v982_v52 = vld [vmem:[%s11658_s1 + $0x1910] sm:$0xff] }
 0x358   : > { %v986_v54 = vld [vmem:[%s11658_s1 + $0x1930] sm:$0xff] }
 0x359   : > { %v8253_v61 = vcombine.high %v982_v52, %v986_v54  ;;  %v8252_v2 = vcombine.low %v982_v52, %v986_v54  ;;  %v1043_v52 = vld [vmem:[%s11658_s1 + $0x1af8] sm:$0xff] }
 0x35a   : > { %6921 = vmatpush1.bf16.msra.mxu0 %v8188_v62  ;;  %7249 = vmatpush1.bf16.msra.mxu1 %v8190_v22  ;;  %v990_v22 = vld [vmem:[%s11658_s1 + $0x1950] sm:$0xff] }
 0x35b   : > { %6922 = vmatprep.subr.bf16.mxu0 %v8197_v63  ;;  %7250 = vmatprep.subr.bf16.mxu1 %v8199_v39  ;;  %v994_v63 = vld [vmem:[%s11658_s1 + $0x1970] sm:$0xff]  ;;  %v991_v39 = vld [vmem:[%s11658_s1 + $0x1958] sm:$0xff] }
 0x35c   : > { %v8261_v4 = vcombine.high %v990_v22, %v994_v63  ;;  %v8260_v8 = vcombine.low %v990_v22, %v994_v63  ;;  %v8262_v55 = vcombine.low %v991_v39, %v995_v0  ;;  %v1051_v22 = vld [vmem:[%s11658_s1 + $0x1b38] sm:$0xff] }
 0x35e   : > { %6923 = vmatpush1.bf16.msra.mxu0 %v8196_v5  ;;  %7251 = vmatpush1.bf16.msra.mxu1 %v8198_v31  ;;  %v8263_v5 = vcombine.high %v991_v39, %v995_v0  ;;  %v998_v31 = vld [vmem:[%s11658_s1 + $0x1990] sm:$0xff] }
 0x35f   : > { %6924 = vmatprep.subr.bf16.mxu0 %v8205_v6  ;;  %7252 = vmatprep.subr.bf16.mxu1 %v8207_v57  ;;  %v1002_v6 = vld [vmem:[%s11658_s1 + $0x19b0] sm:$0xff]  ;;  %v999_v57 = vld [vmem:[%s11658_s1 + $0x1998] sm:$0xff] }
 0x360   : > { %v8269_v9 = vcombine.high %v998_v31, %v1002_v6  ;;  %v8268_v18 = vcombine.low %v998_v31, %v1002_v6  ;;  %v8270_v1 = vcombine.low %v999_v57, %v1003_v7  ;;  %v1059_v31 = vld [vmem:[%s11658_s1 + $0x1b78] sm:$0xff] }
 0x362   : > { %6925 = vmatpush1.bf16.msra.mxu0 %v8204_v10  ;;  %7253 = vmatpush1.bf16.msra.mxu1 %v8206_v11  ;;  %v8271_v10 = vcombine.high %v999_v57, %v1003_v7  ;;  %v1006_v11 = vld [vmem:[%s11658_s1 + $0x19d0] sm:$0xff] }
 0x363   : > { %6926 = vmatprep.subr.bf16.mxu0 %v8213_v13  ;;  %7254 = vmatprep.subr.bf16.mxu1 %v8215_v14  ;;  %v1010_v13 = vld [vmem:[%s11658_s1 + $0x19f0] sm:$0xff]  ;;  %v1007_v14 = vld [vmem:[%s11658_s1 + $0x19d8] sm:$0xff] }
 0x364   : > { %v8277_v36 = vcombine.high %v1006_v11, %v1010_v13  ;;  %v8276_v28 = vcombine.low %v1006_v11, %v1010_v13  ;;  %v8278_v49 = vcombine.low %v1007_v14, %v1011_v17  ;;  %v1067_v11 = vld [vmem:[%s11658_s1 + $0x1bb8] sm:$0xff] }
 0x366   : > { %6927 = vmatpush1.bf16.msra.mxu0 %v8212_v20  ;;  %7255 = vmatpush1.bf16.msra.mxu1 %v8214_v23  ;;  %v8279_v20 = vcombine.high %v1007_v14, %v1011_v17  ;;  %v1014_v23 = vld [vmem:[%s11658_s1 + $0x1a10] sm:$0xff] }
 0x367   : > { %6937 = vmatprep.subr.bf16.mxu0 %v8221_v24  ;;  %7265 = vmatprep.subr.bf16.mxu1 %v8223_v59  ;;  %v1018_v24 = vld [vmem:[%s11658_s1 + $0x1a30] sm:$0xff]  ;;  %v1015_v59 = vld [vmem:[%s11658_s1 + $0x1a18] sm:$0xff] }
 0x368   : > { %v8285_v29 = vcombine.high %v1014_v23, %v1018_v24  ;;  %v8284_v34 = vcombine.low %v1014_v23, %v1018_v24  ;;  %v8286_v37 = vcombine.low %v1015_v59, %v1019_v26  ;;  %v1075_v23 = vld [vmem:[%s11658_s1 + $0x1bf8] sm:$0xff] }
 0x369   : > { %6929 = vmatmul.mubr.bf16.vlgmr.msra.gmra.mrb[4].mxu0 %v9865_v46  ;;  %7257 = vmatmul.mubr.bf16.vlgmr.msra.gmra.mrb[4].mxu1 %v9865_v46  ;;  %v975_v46 = vld [vmem:[%s11658_s1 + $0x18d8] sm:$0xff] }
 0x36a   : > { %6938 = vmatpush1.bf16.msra.mxu0 %v8220_v16  ;;  %7266 = vmatpush1.bf16.msra.mxu1 %v8222_v45  ;;  %v8247_v51 = vcombine.high %v975_v46, %v979_v44  ;;  %v8246_v60 = vcombine.low %v975_v46, %v979_v44  ;;  %v8287_v16 = vcombine.high %v1015_v59, %v1019_v26  ;;  %v1022_v45 = vld [vmem:[%s11658_s1 + $0x1a50] sm:$0xff] }
 0x36b   : > { %6939 = vmatprep.subr.bf16.mxu0 %v8229_v15  ;;  %7267 = vmatprep.subr.bf16.mxu1 %v8231_v12  ;;  %v1026_v15 = vld [vmem:[%s11658_s1 + $0x1a70] sm:$0xff]  ;;  %v1023_v12 = vld [vmem:[%s11658_s1 + $0x1a58] sm:$0xff] }
 0x36c   : > { %6969 = vmatprep.mubr.bf16.mxu0 %v9884_v58  ;;  %7297 = vmatprep.mubr.bf16.mxu1 %v9884_v58  ;;  %v983_v58 = vld [vmem:[%s11658_s1 + $0x1918] sm:$0xff]  ;;  %v8293_v38 = vcombine.high %v1022_v45, %v1026_v15  ;;  %v8292_v25 = vcombine.low %v1022_v45, %v1026_v15  ;;  %v8294_v46 = vcombine.low %v1023_v12, %v1027_v32 }
 0x36d   : > { %v8255_v62 = vcombine.high %v983_v58, %v987_v19  ;;  %v8254_v3 = vcombine.low %v983_v58, %v987_v19  ;;  %v1083_v45 = vld [vmem:[%s11658_s1 + $0x1c38] sm:$0xff] }
 0x36e   : > { %6940 = vmatpush1.bf16.msra.mxu0 %v8228_v27  ;;  %7268 = vmatpush1.bf16.msra.mxu1 %v8230_v41  ;;  %v8295_v27 = vcombine.high %v1023_v12, %v1027_v32  ;;  %v1030_v41 = vld [vmem:[%s11658_s1 + $0x1a90] sm:$0xff] }
 0x36f   : > { %6941 = vmatprep.subr.bf16.mxu0 %v8237_v21  ;;  %7269 = vmatprep.subr.bf16.mxu1 %v8239_v42  ;;  %v1034_v21 = vld [vmem:[%s11658_s1 + $0x1ab0] sm:$0xff]  ;;  %v1031_v42 = vld [vmem:[%s11658_s1 + $0x1a98] sm:$0xff] }
 0x370   : > { %v8301_v44 = vcombine.high %v1030_v41, %v1034_v21  ;;  %v8300_v54 = vcombine.low %v1030_v41, %v1034_v21  ;;  %v8302_v58 = vcombine.low %v1031_v42, %v1035_v43  ;;  %v1091_v41 = vld [vmem:[%s11658_s1 + $0x1c78] sm:$0xff] }
 0x372   : > { %6942 = vmatpush1.bf16.msra.mxu0 %v8236_v47  ;;  %7270 = vmatpush1.bf16.msra.mxu1 %v8238_v48  ;;  %v8303_v47 = vcombine.high %v1031_v42, %v1035_v43  ;;  %v1038_v48 = vld [vmem:[%s11658_s1 + $0x1ad0] sm:$0xff] }
 0x373   : > { %6943 = vmatprep.subr.bf16.mxu0 %v8245_v50  ;;  %7271 = vmatprep.subr.bf16.mxu1 %v8247_v51  ;;  %v1042_v50 = vld [vmem:[%s11658_s1 + $0x1af0] sm:$0xff]  ;;  %v1039_v51 = vld [vmem:[%s11658_s1 + $0x1ad8] sm:$0xff] }
 0x374   : > { %v8309_v19 = vcombine.high %v1038_v48, %v1042_v50  ;;  %v8308_v63 = vcombine.low %v1038_v48, %v1042_v50  ;;  %v8310_v39 = vcombine.low %v1039_v51, %v1043_v52  ;;  %v1099_v48 = vld [vmem:[%s11658_s1 + $0x1cb8] sm:$0xff] }
 0x376   : > { %6944 = vmatpush1.bf16.msra.mxu0 %v8244_v56  ;;  %7272 = vmatpush1.bf16.msra.mxu1 %v8246_v60  ;;  %v8311_v56 = vcombine.high %v1039_v51, %v1043_v52  ;;  %v1046_v60 = vld [vmem:[%s11658_s1 + $0x1b10] sm:$0xff] }
 0x377   : > { %6945 = vmatprep.subr.bf16.mxu0 %v8253_v61  ;;  %7273 = vmatprep.subr.bf16.mxu1 %v8255_v62  ;;  %v1050_v61 = vld [vmem:[%s11658_s1 + $0x1b30] sm:$0xff]  ;;  %v1047_v62 = vld [vmem:[%s11658_s1 + $0x1b18] sm:$0xff] }
 0x378   : > { %v8317_v0 = vcombine.high %v1046_v60, %v1050_v61  ;;  %v8316_v6 = vcombine.low %v1046_v60, %v1050_v61  ;;  %v8318_v57 = vcombine.low %v1047_v62, %v1051_v22 }
 0x37a   : > { %6946 = vmatpush1.bf16.msra.mxu0 %v8252_v2  ;;  %7274 = vmatpush1.bf16.msra.mxu1 %v8254_v3  ;;  %v8319_v2 = vcombine.high %v1047_v62, %v1051_v22  ;;  %v1054_v3 = vld [vmem:[%s11658_s1 + $0x1b50] sm:$0xff] }
 0x37b   : > { %6947 = vmatprep.subr.bf16.mxu0 %v8261_v4  ;;  %7275 = vmatprep.subr.bf16.mxu1 %v8263_v5  ;;  %v1058_v4 = vld [vmem:[%s11658_s1 + $0x1b70] sm:$0xff]  ;;  %v1055_v5 = vld [vmem:[%s11658_s1 + $0x1b58] sm:$0xff] }
 0x37c   : > { %v8325_v7 = vcombine.high %v1054_v3, %v1058_v4  ;;  %v8324_v13 = vcombine.low %v1054_v3, %v1058_v4  ;;  %v8326_v14 = vcombine.low %v1055_v5, %v1059_v31 }
 0x37e   : > { %6948 = vmatpush1.bf16.msra.mxu0 %v8260_v8  ;;  %7276 = vmatpush1.bf16.msra.mxu1 %v8262_v55  ;;  %v8327_v8 = vcombine.high %v1055_v5, %v1059_v31  ;;  %v1062_v55 = vld [vmem:[%s11658_s1 + $0x1b90] sm:$0xff] }
 0x37f   : > { %6949 = vmatprep.subr.bf16.mxu0 %v8269_v9  ;;  %7277 = vmatprep.subr.bf16.mxu1 %v8271_v10  ;;  %v1066_v9 = vld [vmem:[%s11658_s1 + $0x1bb0] sm:$0xff]  ;;  %v1063_v10 = vld [vmem:[%s11658_s1 + $0x1b98] sm:$0xff] }
 0x380   : > { %v8333_v17 = vcombine.high %v1062_v55, %v1066_v9  ;;  %v8332_v24 = vcombine.low %v1062_v55, %v1066_v9  ;;  %v8334_v59 = vcombine.low %v1063_v10, %v1067_v11  ;;  %v1118_v31 = vld [vmem:[%s11658_s1 + $0x1d50] sm:$0xff] }
 0x382   : > { %6950 = vmatpush1.bf16.msra.mxu0 %v8268_v18  ;;  %7278 = vmatpush1.bf16.msra.mxu1 %v8270_v1  ;;  %v8335_v18 = vcombine.high %v1063_v10, %v1067_v11  ;;  %v1070_v1 = vld [vmem:[%s11658_s1 + $0x1bd0] sm:$0xff] }
 0x383   : > { %6951 = vmatprep.subr.bf16.mxu0 %v8277_v36  ;;  %7279 = vmatprep.subr.bf16.mxu1 %v8279_v20  ;;  %v1074_v36 = vld [vmem:[%s11658_s1 + $0x1bf0] sm:$0xff]  ;;  %v1071_v20 = vld [vmem:[%s11658_s1 + $0x1bd8] sm:$0xff] }
 0x384   : > { %v8341_v26 = vcombine.high %v1070_v1, %v1074_v36  ;;  %v8340_v15 = vcombine.low %v1070_v1, %v1074_v36  ;;  %v8342_v12 = vcombine.low %v1071_v20, %v1075_v23  ;;  %v1126_v11 = vld [vmem:[%s11658_s1 + $0x1d90] sm:$0xff] }
 0x386   : > { %6952 = vmatpush1.bf16.msra.mxu0 %v8276_v28  ;;  %7280 = vmatpush1.bf16.msra.mxu1 %v8278_v49  ;;  %v8343_v28 = vcombine.high %v1071_v20, %v1075_v23  ;;  %v1078_v49 = vld [vmem:[%s11658_s1 + $0x1c10] sm:$0xff] }
 0x387   : > { %6953 = vmatprep.subr.bf16.mxu0 %v8285_v29  ;;  %7281 = vmatprep.subr.bf16.mxu1 %v8287_v16  ;;  %v1082_v29 = vld [vmem:[%s11658_s1 + $0x1c30] sm:$0xff]  ;;  %v1079_v16 = vld [vmem:[%s11658_s1 + $0x1c18] sm:$0xff] }
 0x388   : > { %v8349_v32 = vcombine.high %v1078_v49, %v1082_v29  ;;  %v8348_v21 = vcombine.low %v1078_v49, %v1082_v29  ;;  %v8350_v42 = vcombine.low %v1079_v16, %v1083_v45  ;;  %v1134_v23 = vld [vmem:[%s11658_s1 + $0x1dd0] sm:$0xff] }
 0x38a   : > { %6954 = vmatpush1.bf16.msra.mxu0 %v8284_v34  ;;  %7282 = vmatpush1.bf16.msra.mxu1 %v8286_v37  ;;  %v8351_v34 = vcombine.high %v1079_v16, %v1083_v45  ;;  %v1086_v37 = vld [vmem:[%s11658_s1 + $0x1c50] sm:$0xff] }
 0x38b   : > { %6955 = vmatprep.subr.bf16.mxu0 %v8293_v38  ;;  %7283 = vmatprep.subr.bf16.mxu1 %v8295_v27  ;;  %v1090_v38 = vld [vmem:[%s11658_s1 + $0x1c70] sm:$0xff]  ;;  %v1087_v27 = vld [vmem:[%s11658_s1 + $0x1c58] sm:$0xff] }
 0x38c   : > { %v8357_v43 = vcombine.high %v1086_v37, %v1090_v38  ;;  %v8356_v50 = vcombine.low %v1086_v37, %v1090_v38  ;;  %v8358_v51 = vcombine.low %v1087_v27, %v1091_v41  ;;  %v1164_v37 = vsub.s32 5, %v10807_v30 }
 0x38d   : > { %v1172_v38 = vsub.s32 7, %v10807_v30 }
 0x38e   : > { %6956 = vmatpush1.bf16.msra.mxu0 %v8292_v25  ;;  %7284 = vmatpush1.bf16.msra.mxu1 %v8294_v46  ;;  %v8359_v25 = vcombine.high %v1087_v27, %v1091_v41  ;;  %v1094_v46 = vld [vmem:[%s11658_s1 + $0x1c90] sm:$0xff]  ;;  %v8559_v27 = vld [vmem:[%s11659_s2] sm:$0xff] }
 0x38f   : > { %6957 = vmatprep.subr.bf16.mxu0 %v8301_v44  ;;  %7285 = vmatprep.subr.bf16.mxu1 %v8303_v47  ;;  %v1098_v44 = vld [vmem:[%s11658_s1 + $0x1cb0] sm:$0xff]  ;;  %v1095_v47 = vld [vmem:[%s11658_s1 + $0x1c98] sm:$0xff] }
 0x390   : > { %v8365_v52 = vcombine.high %v1094_v46, %v1098_v44  ;;  %v8364_v60 = vcombine.low %v1094_v46, %v1098_v44  ;;  %v8366_v61 = vcombine.low %v1095_v47, %v1099_v48 }
 0x392   : > { %6958 = vmatpush1.bf16.msra.mxu0 %v8300_v54  ;;  %7286 = vmatpush1.bf16.msra.mxu1 %v8302_v58  ;;  %v8367_v54 = vcombine.high %v1095_v47, %v1099_v48  ;;  %v1102_v58 = vld [vmem:[%s11658_s1 + $0x1cd0] sm:$0xff] }
 0x393   : > { %6959 = vmatprep.subr.bf16.mxu0 %v8309_v19  ;;  %7287 = vmatprep.subr.bf16.mxu1 %v8311_v56  ;;  %v1106_v19 = vld [vmem:[%s11658_s1 + $0x1cf0] sm:$0xff]  ;;  %v1107_v56 = vld [vmem:[%s11658_s1 + $0x1cf8] sm:$0xff] }
 0x394   : > { %v8373_v62 = vcombine.high %v1102_v58, %v1106_v19 }
 0x396   : > { %6960 = vmatpush1.bf16.msra.mxu0 %v8308_v63  ;;  %7288 = vmatpush1.bf16.msra.mxu1 %v8310_v39  ;;  %v1110_v63 = vld [vmem:[%s11658_s1 + $0x1d10] sm:$0xff] }
 0x397   : > { %6961 = vmatprep.subr.bf16.mxu0 %v8317_v0  ;;  %7289 = vmatprep.subr.bf16.mxu1 %v8319_v2  ;;  %v1114_v39 = vld [vmem:[%s11658_s1 + $0x1d30] sm:$0xff]  ;;  %v1115_v0 = vld [vmem:[%s11658_s1 + $0x1d38] sm:$0xff]  ;;  %v8372_v2 = vcombine.low %v1102_v58, %v1106_v19 }
 0x398   : > { %v8381_v4 = vcombine.high %v1110_v63, %v1114_v39 }
 0x39a   : > { %6962 = vmatpush1.bf16.msra.mxu0 %v8316_v6  ;;  %7290 = vmatpush1.bf16.msra.mxu1 %v8318_v57  ;;  %v1122_v6 = vld [vmem:[%s11658_s1 + $0x1d70] sm:$0xff]  ;;  %v1119_v57 = vld [vmem:[%s11658_s1 + $0x1d58] sm:$0xff] }
 0x39b   : > { %6963 = vmatprep.subr.bf16.mxu0 %v8325_v7  ;;  %7291 = vmatprep.subr.bf16.mxu1 %v8327_v8  ;;  %v1123_v7 = vld [vmem:[%s11658_s1 + $0x1d78] sm:$0xff]  ;;  %v8380_v8 = vcombine.low %v1110_v63, %v1114_v39  ;;  %v8389_v9 = vcombine.high %v1118_v31, %v1122_v6 }
 0x39c   : > { %v8391_v10 = vcombine.high %v1119_v57, %v1123_v7  ;;  %v8390_v1 = vcombine.low %v1119_v57, %v1123_v7 }
 0x39e   : > { %6964 = vmatpush1.bf16.msra.mxu0 %v8324_v13  ;;  %7292 = vmatpush1.bf16.msra.mxu1 %v8326_v14  ;;  %v1130_v13 = vld [vmem:[%s11658_s1 + $0x1db0] sm:$0xff]  ;;  %v1127_v14 = vld [vmem:[%s11658_s1 + $0x1d98] sm:$0xff] }
 0x39f   : > { %6965 = vmatprep.subr.bf16.mxu0 %v8333_v17  ;;  %7293 = vmatprep.subr.bf16.mxu1 %v8335_v18  ;;  %v1131_v17 = vld [vmem:[%s11658_s1 + $0x1db8] sm:$0xff]  ;;  %v8388_v18 = vcombine.low %v1118_v31, %v1122_v6  ;;  %v8397_v36 = vcombine.high %v1126_v11, %v1130_v13 }
 0x3a0   : > { %v8399_v20 = vcombine.high %v1127_v14, %v1131_v17  ;;  %v8398_v49 = vcombine.low %v1127_v14, %v1131_v17 }
 0x3a2   : > { %6966 = vmatpush1.bf16.msra.mxu0 %v8332_v24  ;;  %7294 = vmatpush1.bf16.msra.mxu1 %v8334_v59  ;;  %v1138_v24 = vld [vmem:[%s11658_s1 + $0x1df0] sm:$0xff]  ;;  %v1135_v59 = vld [vmem:[%s11658_s1 + $0x1dd8] sm:$0xff] }
 0x3a3   : > { %6967 = vmatprep.subr.bf16.mxu0 %v8341_v26  ;;  %7295 = vmatprep.subr.bf16.mxu1 %v8343_v28  ;;  %v1139_v26 = vld [vmem:[%s11658_s1 + $0x1df8] sm:$0xff]  ;;  %v8396_v28 = vcombine.low %v1126_v11, %v1130_v13  ;;  %v8405_v29 = vcombine.high %v1134_v23, %v1138_v24  ;;  %v8404_v45 = vcombine.low %v1134_v23, %v1138_v24 }
 0x3a4   : > { %v8407_v16 = vcombine.high %v1135_v59, %v1139_v26 }
 0x3a6   : > { %6968 = vmatpush1.bf16.msra.mxu0 %v8340_v15  ;;  %7296 = vmatpush1.bf16.msra.mxu1 %v8342_v12  ;;  %v8406_v15 = vcombine.low %v1135_v59, %v1139_v26  ;;  %v8558_v12 = vld [vmem:[%s8685_s19 + $0x38] ss:$0 sps:$4 sm:$0xff]   ;;  %s8411_s19 = sshll.u32 %s11662_s13, 3 }
 0x3a7   : > { %6978 = vmatprep.subr.bf16.mxu0 %v8349_v32  ;;  %7306 = vmatprep.subr.bf16.mxu1 %v8351_v34  ;;  %v1160_v32 = vsub.s32 4, %v10807_v30  ;;  %v1168_v34 = vsub.s32 6, %v10807_v30  ;;  %s170_s22 = scalar_lea.vmem %s11660_s3, %s8411_s19 }
 0x3a9   : > { %6970 = vmatmul.mubr.bf16.vlgmr.msra.gmra.mrb[4].mxu0 %v10072_v53  ;;  %7298 = vmatmul.mubr.bf16.vlgmr.msra.gmra.mrb[4].mxu1 %v10072_v53  ;;  %v1103_v53 = vld [vmem:[%s11658_s1 + $0x1cd8] sm:$0xff]  ;;  %v1161_v41 = vrot.slane %v8559_v27, %v1160_v32 }
 0x3aa   : > { %6979 = vmatpush1.bf16.msra.mxu0 %v8348_v21  ;;  %7307 = vmatpush1.bf16.msra.mxu1 %v8350_v42  ;;  %v8375_v22 = vcombine.high %v1103_v53, %v1107_v56  ;;  %v8374_v3 = vcombine.low %v1103_v53, %v1107_v56  ;;  %v1169_v21 = vrot.slane %v8559_v27, %v1168_v34 }
 0x3ab   : > { %6980 = vmatprep.subr.bf16.mxu0 %v8357_v43  ;;  %7308 = vmatprep.subr.bf16.mxu1 %v8359_v25  ;;  %v1165_v42 = vrot.slane %v8559_v27, %v1164_v37  ;;  %v1173_v43 = vrot.slane %v8559_v27, %v1172_v38 }
 0x3ac   : > { %7010 = vmatprep.mubr.bf16.mxu0 %v8568_v40  ;;  %7338 = vmatprep.mubr.bf16.mxu1 %v8568_v40  ;;  %v1111_v40 = vld [vmem:[%s11658_s1 + $0x1d18] sm:$0xff] }
 0x3ad   : > { %v8383_v5 = vcombine.high %v1111_v40, %v1115_v0  ;;  %v8382_v55 = vcombine.low %v1111_v40, %v1115_v0 }
 0x3ae   : > { %6981 = vmatpush1.bf16.msra.mxu0 %v8356_v50  ;;  %7309 = vmatpush1.bf16.msra.mxu1 %v8358_v51 }
 0x3af   : > { %6982 = vmatprep.subr.bf16.mxu0 %v8365_v52  ;;  %7310 = vmatprep.subr.bf16.mxu1 %v8367_v54 }
 0x3b2   : > { %6983 = vmatpush1.bf16.msra.mxu0 %v8364_v60  ;;  %7311 = vmatpush1.bf16.msra.mxu1 %v8366_v61 }
 0x3b3   : > { %6984 = vmatprep.subr.bf16.mxu0 %v8373_v62  ;;  %7312 = vmatprep.subr.bf16.mxu1 %v8375_v22 }
 0x3b6   : > { %6985 = vmatpush1.bf16.msra.mxu0 %v8372_v2  ;;  %7313 = vmatpush1.bf16.msra.mxu1 %v8374_v3 }
 0x3b7   : > { %6986 = vmatprep.subr.bf16.mxu0 %v8381_v4  ;;  %7314 = vmatprep.subr.bf16.mxu1 %v8383_v5 }
 0x3ba   : > { %6987 = vmatpush1.bf16.msra.mxu0 %v8380_v8  ;;  %7315 = vmatpush1.bf16.msra.mxu1 %v8382_v55 }
 0x3bb   : > { %6988 = vmatprep.subr.bf16.mxu0 %v8389_v9  ;;  %7316 = vmatprep.subr.bf16.mxu1 %v8391_v10 }
 0x3be   : > { %6989 = vmatpush1.bf16.msra.mxu0 %v8388_v18  ;;  %7317 = vmatpush1.bf16.msra.mxu1 %v8390_v1 }
 0x3bf   : > { %6990 = vmatprep.subr.bf16.mxu0 %v8397_v36  ;;  %7318 = vmatprep.subr.bf16.mxu1 %v8399_v20 }
 0x3c2   : > { %6991 = vmatpush1.bf16.msra.mxu0 %v8396_v28  ;;  %7319 = vmatpush1.bf16.msra.mxu1 %v8398_v49 }
 0x3c3   : > { %6992 = vmatprep.subr.bf16.mxu0 %v8405_v29  ;;  %7320 = vmatprep.subr.bf16.mxu1 %v8407_v16 }
 0x3c6   : > { %6993 = vmatpush1.bf16.msra.mxu0 %v8404_v45  ;;  %7321 = vmatpush1.bf16.msra.mxu1 %v8406_v15 }
 0x3c9   : > { %7011 = vmatmul.mubr.bf16.vlgmr.msra.gmra.mrb[4].mxu0 %v8558_v12  ;;  %7339 = vmatmul.mubr.bf16.vlgmr.msra.gmra.mrb[4].mxu1 %v8558_v12 }
 0x49c   : > { %v7012_v25 = vpop.f32.mrb[4].mxu0  ;;  %v7340_v44 = vpop.f32.mrb[4].mxu1 }
 0x49d   : > { %v8417_v46 = vadd.f32 %v7012_v25, %v1161_v41  ;;  %v7014_v47 = vpop.f32.mrb[5].mxu0  ;;  %v8419_v48 = vadd.f32 %v7340_v44, %v1169_v21  ;;  %v7342_v51 = vpop.f32.mrb[5].mxu1 }
 0x49e   : > { %v8418_v50 = vadd.f32 %v7014_v47, %v1165_v42  ;;  %v7016_v52 = vpop.f32.mrb[6].mxu0  ;;  %v8420_v58 = vadd.f32 %v7342_v51, %v1173_v43  ;;  %v7344_v30 = vpop.f32.mrb[6].mxu1 }
 0x49f   : > { %v7351_v54 = vmax.f32 %v8417_v46, 0.0  ;;  %v7017_v19 = vpop.f32.mrb[7].mxu0  ;;  %v7353_v53 = vmax.f32 %v8419_v48, 0.0  ;;  %v7345_v60 = vpop.f32.mrb[7].mxu1 }
 0x4a0   : > { %v7352_v56 = vmax.f32 %v8418_v50, 0.0  ;;  %v7354_v61 = vmax.f32 %v8420_v58, 0.0 }
 0x4a1   : > { %v7357_v62 = vmax.f32 %v7351_v54, %v7353_v53 }
 0x4a2   : > { %v7358_v22 = vmax.f32 %v7352_v56, %v7354_v61 }
 0x4a3   : > { %v7359_v63 = vmax.f32 %v10864_v33, %v7357_v62 }
 0x4a4   : > { %v7360_v39 = vmax.f32 %v10866_v35, %v7358_v22 }
 0x4a6   : > { %v8412_v40 = vpack.c.bf16 %v7360_v39, %v7359_v63 }
 0x4a8   : > { %7369 = vst [vmem:[%s170_s22] sm:$0xff] %v8412_v40 }
 0x4a9 PF: > { %s13_s12 = sadd.s32 1, %s8566_s12  }
 0x4aa   : > { %p10_p4 = scmp.ge.s32.totalorder %s13_s12, 4  }
 0x4ac   :  { %12 = sbr.rel (!%p10_p4) target bundleno = 1 (0x1), region = 62 }

// kernel: lzr_forward.5
= control target key start
LH: loop header
LB: loop body
LE: loop exit
PB: predicated region body
PF: predicated region fallthrough
CT: control target
= control target key end

     0   :  { %s2601_s24 = smov 0   ;;  %s3095_s0 = inlined_call_operand.vmem [shape: bf16[16,2048], index: 0, kind: input, shape index: {}]   ;;  %s3096_s1 = inlined_call_operand.vmem [shape: bf16[2048,128], index: 1, kind: input, shape index: {}]   ;;  %s3097_s2 = inlined_call_operand.vmem [shape: f32[1,128], index: 2, kind: input, shape index: {}]   ;;  %s3098_s3 = inlined_call_operand.vmem [shape: bf16[128,128], index: 3, kind: input, shape index: {}]   ;;  %s3099_s4 = inlined_call_operand.vmem [shape: f32[1,128], index: 4, kind: input, shape index: {}]   ;;  %s3100_s5 = inlined_call_operand.vmem [shape: bf16[128,128], index: 5, kind: input, shape index: {}]   ;;  %s3101_s6 = inlined_call_operand.vmem [shape: f32[1,128], index: 6, kind: input, shape index: {}]   ;;  %s3102_s7 = inlined_call_operand.vmem [shape: f32[16,128], index: 7, kind: output, shape index: {}]  }
   0x1 LB: > { %s1973_s25 = sadd.s32 4294967295, %s2557_s24   ;;  %p1977_p0 = scmp.ge.s32.totalorder %s2557_s24, 1  ;;  %s2557_s24 = sphi %s2601_s24, %s17_s24  }
   0x2   : > { %p237_p1 = scmp.lt.s32.totalorder %s2557_s24, 3 }
   0x4   : > { %p238_p2 = pnand %p1977_p0, %p237_p1 }
   0x5   : > { %v2391_v0 = vld [vmem:[%s3096_s1 + $0x40] sm:$0xff] (!%p238_p2)   ;;  %v2395_v4 = vld [vmem:[%s3096_s1 + $0x48] sm:$0xff] (!%p238_p2)   ;;  %v2399_v8 = vld [vmem:[%s3096_s1 + $0x50] sm:$0xff] (!%p238_p2)   ;;  %p268_p3 = scmp.lt.s32.totalorder (!%p238_p2), %s1973_s25, 1  ;;  %vm2560_vm0 = vmmov (!%p238_p2), 0  }
   0x6   : > { %241 = sbr.rel (%p238_p2) target bundleno = 791 (0x317), region = 48  ;;  %v2392_v1 = vld [vmem:[%s3096_s1 + $0xc0] sm:$0xff] (!%p238_p2)   ;;  %2147 = vmatprep.subr.bf16.mxu0 (!%p238_p2), %v2391_v0  ;;  %v2396_v5 = vld [vmem:[%s3096_s1 + $0xc8] sm:$0xff] (!%p238_p2)   ;;  %v2400_v9 = vld [vmem:[%s3096_s1 + $0xd0] sm:$0xff] (!%p238_p2)  }
   0x7   : > { %v2393_v2 = vld [vmem:[%s3096_s1] sm:$0xff] (!%p238_p2)   ;;  %2169 = vmatprep.subr.bf16.mxu1 (!%p238_p2), %v2392_v1  ;;  %v2397_v6 = vld [vmem:[%s3096_s1 + $0x8] sm:$0xff] (!%p238_p2)   ;;  %v2401_v10 = vld [vmem:[%s3096_s1 + $0x10] sm:$0xff] (!%p238_p2)  }
   0x8   : > { %v2394_v3 = vld [vmem:[%s3096_s1 + $0x80] sm:$0xff] (!%p238_p2)   ;;  %2148 = vmatpush3.bf16.msra.mxu0 (!%p238_p2), %v2393_v2  ;;  %v2398_v7 = vld [vmem:[%s3096_s1 + $0x88] sm:$0xff] (!%p238_p2)   ;;  %v2402_v11 = vld [vmem:[%s3096_s1 + $0x90] sm:$0xff] (!%p238_p2)  }
   0x9   : > { %2170 = vmatpush3.bf16.msra.mxu1 (!%p238_p2), %v2394_v3  ;;  %2149 = vmatprep.subr.bf16.mxu0 (!%p238_p2), %v2395_v4  ;;  %v2403_v12 = vld [vmem:[%s3096_s1 + $0x58] sm:$0xff] (!%p238_p2)   ;;  %v2407_v16 = vld [vmem:[%s3096_s1 + $0x60] sm:$0xff] (!%p238_p2)   ;;  %v2411_v20 = vld [vmem:[%s3096_s1 + $0x68] sm:$0xff] (!%p238_p2)  }
   0xa   : > { %2171 = vmatprep.subr.bf16.mxu1 (!%p238_p2), %v2396_v5  ;;  %v2404_v13 = vld [vmem:[%s3096_s1 + $0xd8] sm:$0xff] (!%p238_p2)   ;;  %v2408_v17 = vld [vmem:[%s3096_s1 + $0xe0] sm:$0xff] (!%p238_p2)   ;;  %v2412_v21 = vld [vmem:[%s3096_s1 + $0xe8] sm:$0xff] (!%p238_p2)  }
   0xb   : > { %v2405_v14 = vld [vmem:[%s3096_s1 + $0x18] sm:$0xff] (!%p238_p2)   ;;  %v2409_v18 = vld [vmem:[%s3096_s1 + $0x20] sm:$0xff] (!%p238_p2)   ;;  %v2413_v22 = vld [vmem:[%s3096_s1 + $0x28] sm:$0xff] (!%p238_p2)  }
   0xc   : > { %2150 = vmatpush3.bf16.msra.mxu0 (!%p238_p2), %v2397_v6  ;;  %v2406_v15 = vld [vmem:[%s3096_s1 + $0x98] sm:$0xff] (!%p238_p2)   ;;  %v2410_v19 = vld [vmem:[%s3096_s1 + $0xa0] sm:$0xff] (!%p238_p2)   ;;  %v2414_v23 = vld [vmem:[%s3096_s1 + $0xa8] sm:$0xff] (!%p238_p2)  }
   0xd   : > { %2172 = vmatpush3.bf16.msra.mxu1 %v2398_v7  ;;  %2151 = vmatprep.subr.bf16.mxu0 %v2399_v8  ;;  %s3104_s25 = smov (!%p268_p3, %s1973_s25), 1  ;;  %v2415_v24 = vld [vmem:[%s3096_s1 + $0x70] sm:$0xff]   ;;  %v2419_v28 = vld [vmem:[%s3096_s1 + $0x78] sm:$0xff]   ;;  %v2427_v38 = vld [vmem:[%s3096_s1 + $0x140] sm:$0xff]  }
   0xe   : > { %2173 = vmatprep.subr.bf16.mxu1 %v2400_v9  ;;  %v2416_v25 = vld [vmem:[%s3096_s1 + $0xf0] sm:$0xff]   ;;  %s2146_s15 = sshll.u32 %s3104_s25, 6  ;;  %v2420_v29 = vld [vmem:[%s3096_s1 + $0xf8] sm:$0xff]   ;;  %v2428_v39 = vld [vmem:[%s3096_s1 + $0x1c0] sm:$0xff]   ;;  %s1980_s14 = sshll.u32 %s3104_s25, 3 }
   0xf   : > { %v2417_v26 = vld [vmem:[%s3096_s1 + $0x30] sm:$0xff]   ;;  %s2709_s26 = scalar_lea.vmem %s3095_s0, %s2146_s15  ;;  %v2421_v30 = vld [vmem:[%s3096_s1 + $0x38] sm:$0xff]   ;;  %v2429_v40 = vld [vmem:[%s3096_s1 + $0x100] sm:$0xff]   ;;  %s276_s19 = scalar_lea.vmem %s3102_s7, %s1980_s14 }
  0x10   : > { %2152 = vmatpush3.bf16.msra.mxu0 %v2401_v10  ;;  %v2418_v27 = vld [vmem:[%s3096_s1 + $0xb0] sm:$0xff]   ;;  %v2422_v31 = vld [vmem:[%s3096_s1 + $0xb8] sm:$0xff]   ;;  %v278_v32 = vld [vmem:[%s2709_s26] sm:$0xff] }
  0x11   : > { %2174 = vmatpush3.bf16.msra.mxu1 %v2402_v11  ;;  %2153 = vmatprep.subr.bf16.mxu0 %v2403_v12  ;;  %v279_v33 = vld [vmem:[%s2709_s26 + $0x8] sm:$0xff]  ;;  %v1982_v34 = vcombine.low %v278_v32, %v278_v32  ;;  %v1983_v35 = vcombine.high %v278_v32, %v278_v32  ;;  %v2430_v41 = vld [vmem:[%s3096_s1 + $0x180] sm:$0xff]   ;;  %v2435_v46 = vld [vmem:[%s3096_s1 + $0x150] sm:$0xff]  }
  0x12   : > { %2175 = vmatprep.subr.bf16.mxu1 %v2404_v13  ;;  %v1984_v36 = vcombine.low %v279_v33, %v279_v33  ;;  %v1985_v37 = vcombine.high %v279_v33, %v279_v33  ;;  %v2431_v42 = vld [vmem:[%s3096_s1 + $0x148] sm:$0xff]   ;;  %v2436_v47 = vld [vmem:[%s3096_s1 + $0x1d0] sm:$0xff]   ;;  %v2439_v50 = vld [vmem:[%s3096_s1 + $0x158] sm:$0xff]  }
  0x13   : > { %1405 = vmatprep.mubr.bf16.mxu0 %v1983_v35  ;;  %v2432_v43 = vld [vmem:[%s3096_s1 + $0x1c8] sm:$0xff]   ;;  %v2437_v48 = vld [vmem:[%s3096_s1 + $0x110] sm:$0xff]   ;;  %v2440_v51 = vld [vmem:[%s3096_s1 + $0x1d8] sm:$0xff]  }
  0x14   : > { %2154 = vmatpush3.bf16.msra.mxu0 %v2405_v14  ;;  %1445 = vmatprep.mubr.bf16.mxu1 %v1985_v37  ;;  %v2433_v44 = vld [vmem:[%s3096_s1 + $0x108] sm:$0xff]   ;;  %v2438_v49 = vld [vmem:[%s3096_s1 + $0x190] sm:$0xff]   ;;  %v2441_v52 = vld [vmem:[%s3096_s1 + $0x118] sm:$0xff]  }
  0x15   : > { %2176 = vmatpush3.bf16.msra.mxu1 %v2406_v15  ;;  %2155 = vmatprep.subr.bf16.mxu0 %v2407_v16  ;;  %v2434_v45 = vld [vmem:[%s3096_s1 + $0x188] sm:$0xff]   ;;  %v2442_v53 = vld [vmem:[%s3096_s1 + $0x198] sm:$0xff]   ;;  %v2443_v54 = vld [vmem:[%s3096_s1 + $0x160] sm:$0xff]  }
  0x16   : > { %2177 = vmatprep.subr.bf16.mxu1 %v2408_v17  ;;  %v2444_v55 = vld [vmem:[%s3096_s1 + $0x1e0] sm:$0xff]   ;;  %v2447_v58 = vld [vmem:[%s3096_s1 + $0x168] sm:$0xff]   ;;  %v2451_v62 = vld [vmem:[%s3096_s1 + $0x170] sm:$0xff]  }
  0x17   : > { %v2445_v56 = vld [vmem:[%s3096_s1 + $0x120] sm:$0xff]   ;;  %v2448_v59 = vld [vmem:[%s3096_s1 + $0x1e8] sm:$0xff]   ;;  %v2452_v63 = vld [vmem:[%s3096_s1 + $0x1f0] sm:$0xff]  }
  0x18   : > { %2156 = vmatpush3.bf16.msra.mxu0 %v2409_v18  ;;  %v2446_v57 = vld [vmem:[%s3096_s1 + $0x1a0] sm:$0xff]   ;;  %v2449_v60 = vld [vmem:[%s3096_s1 + $0x128] sm:$0xff]   ;;  %v2453_v0 = vld [vmem:[%s3096_s1 + $0x130] sm:$0xff]  }
  0x19   : > { %2178 = vmatpush3.bf16.msra.mxu1 %v2410_v19  ;;  %2157 = vmatprep.subr.bf16.mxu0 %v2411_v20  ;;  %v2450_v61 = vld [vmem:[%s3096_s1 + $0x1a8] sm:$0xff]   ;;  %v2454_v1 = vld [vmem:[%s3096_s1 + $0x1b0] sm:$0xff]   ;;  %v2455_v2 = vld [vmem:[%s3096_s1 + $0x178] sm:$0xff]  }
  0x1a   : > { %2179 = vmatprep.subr.bf16.mxu1 %v2412_v21  ;;  %v2456_v3 = vld [vmem:[%s3096_s1 + $0x1f8] sm:$0xff]   ;;  %v280_v6 = vld [vmem:[%s2709_s26 + $0x10] sm:$0xff]  ;;  %v2463_v12 = vld [vmem:[%s3096_s1 + $0x240] sm:$0xff]  }
  0x1b   : > { %v2457_v4 = vld [vmem:[%s3096_s1 + $0x138] sm:$0xff]   ;;  %v1986_v7 = vcombine.low %v280_v6, %v280_v6  ;;  %v1987_v8 = vcombine.high %v280_v6, %v280_v6  ;;  %v2464_v13 = vld [vmem:[%s3096_s1 + $0x2c0] sm:$0xff]   ;;  %v2467_v16 = vld [vmem:[%s3096_s1 + $0x248] sm:$0xff]  }
  0x1c   : > { %2158 = vmatpush3.bf16.msra.mxu0 %v2413_v22  ;;  %v2458_v5 = vld [vmem:[%s3096_s1 + $0x1b8] sm:$0xff]   ;;  %v2465_v14 = vld [vmem:[%s3096_s1 + $0x200] sm:$0xff]   ;;  %v2468_v17 = vld [vmem:[%s3096_s1 + $0x2c8] sm:$0xff]  }
  0x1d   : > { %2180 = vmatpush3.bf16.msra.mxu1 %v2414_v23  ;;  %2159 = vmatprep.subr.bf16.mxu0 %v2415_v24  ;;  %v281_v9 = vld [vmem:[%s2709_s26 + $0x18] sm:$0xff]  ;;  %v2466_v15 = vld [vmem:[%s3096_s1 + $0x280] sm:$0xff]   ;;  %v2469_v18 = vld [vmem:[%s3096_s1 + $0x208] sm:$0xff]  }
  0x1e   : > { %2181 = vmatprep.subr.bf16.mxu1 %v2416_v25  ;;  %v1988_v10 = vcombine.low %v281_v9, %v281_v9  ;;  %v1989_v11 = vcombine.high %v281_v9, %v281_v9  ;;  %v2470_v19 = vld [vmem:[%s3096_s1 + $0x288] sm:$0xff]   ;;  %v2471_v20 = vld [vmem:[%s3096_s1 + $0x250] sm:$0xff]   ;;  %v2475_v24 = vld [vmem:[%s3096_s1 + $0x258] sm:$0xff]  }
  0x1f   : > { %v2472_v21 = vld [vmem:[%s3096_s1 + $0x2d0] sm:$0xff]   ;;  %v2476_v25 = vld [vmem:[%s3096_s1 + $0x2d8] sm:$0xff]   ;;  %v2483_v32 = vld [vmem:[%s3096_s1 + $0x268] sm:$0xff]  }
  0x20   : > { %2160 = vmatpush3.bf16.msra.mxu0 %v2417_v26  ;;  %v2473_v22 = vld [vmem:[%s3096_s1 + $0x210] sm:$0xff]   ;;  %v2477_v26 = vld [vmem:[%s3096_s1 + $0x218] sm:$0xff]   ;;  %v2484_v33 = vld [vmem:[%s3096_s1 + $0x2e8] sm:$0xff]  }
  0x21   : > { %2182 = vmatpush3.bf16.msra.mxu1 %v2418_v27  ;;  %2161 = vmatprep.subr.bf16.mxu0 %v2419_v28  ;;  %v2474_v23 = vld [vmem:[%s3096_s1 + $0x290] sm:$0xff]   ;;  %v2478_v27 = vld [vmem:[%s3096_s1 + $0x298] sm:$0xff]   ;;  %v2479_v28 = vld [vmem:[%s3096_s1 + $0x260] sm:$0xff]  }
  0x22   : > { %2183 = vmatprep.subr.bf16.mxu1 %v2420_v29  ;;  %v2480_v29 = vld [vmem:[%s3096_s1 + $0x2e0] sm:$0xff]   ;;  %v2486_v35 = vld [vmem:[%s3096_s1 + $0x2a8] sm:$0xff]   ;;  %v2488_v37 = vld [vmem:[%s3096_s1 + $0x2f0] sm:$0xff]  }
  0x23   : > { %v2519_v6 = vld [vmem:[%s3096_s1 + $0x368] sm:$0xff]  }
  0x24   : > { %2162 = vmatpush3.bf16.msra.mxu0 %v2421_v30  ;;  %v2481_v30 = vld [vmem:[%s3096_s1 + $0x220] sm:$0xff]   ;;  %v2522_v9 = vld [vmem:[%s3096_s1 + $0x3a8] sm:$0xff]  }
  0x25   : > { %2184 = vmatpush3.bf16.msra.mxu1 %v2422_v31  ;;  %2191 = vmatprep.subr.bf16.mxu0 %v2427_v38  ;;  %v2482_v31 = vld [vmem:[%s3096_s1 + $0x2a0] sm:$0xff]   ;;  %v2489_v38 = vld [vmem:[%s3096_s1 + $0x230] sm:$0xff]  }
  0x26   : > { %2213 = vmatprep.subr.bf16.mxu1 %v2428_v39  ;;  %v2490_v39 = vld [vmem:[%s3096_s1 + $0x2b0] sm:$0xff]  }
  0x27   : > { %1406 = vmatmul.mubr.bf16.vlgmr.msra.gmra.mrb[0].mxu0 %v1982_v34  ;;  %v2485_v34 = vld [vmem:[%s3096_s1 + $0x228] sm:$0xff]  }
  0x28   : > { %1446 = vmatmul.mubr.bf16.vlgmr.msra.gmra.mrb[0].mxu1 %v1984_v36  ;;  %2192 = vmatpush3.bf16.msra.mxu0 %v2429_v40  ;;  %v2487_v36 = vld [vmem:[%s3096_s1 + $0x270] sm:$0xff]   ;;  %v2491_v40 = vld [vmem:[%s3096_s1 + $0x278] sm:$0xff]  }
  0x29   : > { %2214 = vmatpush3.bf16.msra.mxu1 %v2430_v41  ;;  %2193 = vmatprep.subr.bf16.mxu0 %v2431_v42  ;;  %v2492_v41 = vld [vmem:[%s3096_s1 + $0x2f8] sm:$0xff]  }
  0x2a   : > { %2215 = vmatprep.subr.bf16.mxu1 %v2432_v43  ;;  %1485 = vmatprep.mubr.bf16.mxu0 %v1987_v8  ;;  %v2493_v42 = vld [vmem:[%s3096_s1 + $0x238] sm:$0xff]   ;;  %v2521_v8 = vld [vmem:[%s3096_s1 + $0x328] sm:$0xff]  }
  0x2b   : > { %1525 = vmatprep.mubr.bf16.mxu1 %v1989_v11  ;;  %v2494_v43 = vld [vmem:[%s3096_s1 + $0x2b8] sm:$0xff]   ;;  %v2524_v11 = vld [vmem:[%s3096_s1 + $0x3f0] sm:$0xff]  }
  0x2c   : > { %2194 = vmatpush3.bf16.msra.mxu0 %v2433_v44  ;;  %v282_v44 = vld [vmem:[%s2709_s26 + $0x20] sm:$0xff] }
  0x2d   : > { %2216 = vmatpush3.bf16.msra.mxu1 %v2434_v45  ;;  %2195 = vmatprep.subr.bf16.mxu0 %v2435_v46  ;;  %v283_v45 = vld [vmem:[%s2709_s26 + $0x28] sm:$0xff]  ;;  %v1990_v46 = vcombine.low %v282_v44, %v282_v44 }
  0x2e   : > { %2217 = vmatprep.subr.bf16.mxu1 %v2436_v47  ;;  %v1991_v47 = vcombine.high %v282_v44, %v282_v44 }
  0x30   : > { %2196 = vmatpush3.bf16.msra.mxu0 %v2437_v48  ;;  %v1992_v48 = vcombine.low %v283_v45, %v283_v45 }
  0x31   : > { %2218 = vmatpush3.bf16.msra.mxu1 %v2438_v49  ;;  %2197 = vmatprep.subr.bf16.mxu0 %v2439_v50  ;;  %v1993_v49 = vcombine.high %v283_v45, %v283_v45  ;;  %v2499_v50 = vld [vmem:[%s3096_s1 + $0x340] sm:$0xff]  }
  0x32   : > { %2219 = vmatprep.subr.bf16.mxu1 %v2440_v51  ;;  %v2500_v51 = vld [vmem:[%s3096_s1 + $0x3c0] sm:$0xff]  }
  0x34   : > { %2198 = vmatpush3.bf16.msra.mxu0 %v2441_v52  ;;  %v2501_v52 = vld [vmem:[%s3096_s1 + $0x300] sm:$0xff]  }
  0x35   : > { %2220 = vmatpush3.bf16.msra.mxu1 %v2442_v53  ;;  %2199 = vmatprep.subr.bf16.mxu0 %v2443_v54  ;;  %v2502_v53 = vld [vmem:[%s3096_s1 + $0x380] sm:$0xff]   ;;  %v2503_v54 = vld [vmem:[%s3096_s1 + $0x348] sm:$0xff]  }
  0x36   : > { %2221 = vmatprep.subr.bf16.mxu1 %v2444_v55  ;;  %v2504_v55 = vld [vmem:[%s3096_s1 + $0x3c8] sm:$0xff]  }
  0x38   : > { %2200 = vmatpush3.bf16.msra.mxu0 %v2445_v56  ;;  %v2505_v56 = vld [vmem:[%s3096_s1 + $0x308] sm:$0xff]  }
  0x39   : > { %2222 = vmatpush3.bf16.msra.mxu1 %v2446_v57  ;;  %2201 = vmatprep.subr.bf16.mxu0 %v2447_v58  ;;  %v2506_v57 = vld [vmem:[%s3096_s1 + $0x388] sm:$0xff]   ;;  %v2507_v58 = vld [vmem:[%s3096_s1 + $0x350] sm:$0xff]  }
  0x3a   : > { %2223 = vmatprep.subr.bf16.mxu1 %v2448_v59  ;;  %v2508_v59 = vld [vmem:[%s3096_s1 + $0x3d0] sm:$0xff]  }
  0x3c   : > { %2202 = vmatpush3.bf16.msra.mxu0 %v2449_v60  ;;  %v2509_v60 = vld [vmem:[%s3096_s1 + $0x310] sm:$0xff]  }
  0x3d   : > { %2224 = vmatpush3.bf16.msra.mxu1 %v2450_v61  ;;  %2203 = vmatprep.subr.bf16.mxu0 %v2451_v62  ;;  %v2510_v61 = vld [vmem:[%s3096_s1 + $0x390] sm:$0xff]   ;;  %v2511_v62 = vld [vmem:[%s3096_s1 + $0x358] sm:$0xff]  }
  0x3e   : > { %2225 = vmatprep.subr.bf16.mxu1 %v2452_v63  ;;  %v2512_v63 = vld [vmem:[%s3096_s1 + $0x3d8] sm:$0xff]  }
  0x40   : > { %2204 = vmatpush3.bf16.msra.mxu0 %v2453_v0  ;;  %v2513_v0 = vld [vmem:[%s3096_s1 + $0x318] sm:$0xff]  }
  0x41   : > { %2226 = vmatpush3.bf16.msra.mxu1 %v2454_v1  ;;  %2205 = vmatprep.subr.bf16.mxu0 %v2455_v2  ;;  %v2514_v1 = vld [vmem:[%s3096_s1 + $0x398] sm:$0xff]   ;;  %v2515_v2 = vld [vmem:[%s3096_s1 + $0x360] sm:$0xff]  }
  0x42   : > { %2227 = vmatprep.subr.bf16.mxu1 %v2456_v3  ;;  %v2516_v3 = vld [vmem:[%s3096_s1 + $0x3e0] sm:$0xff]  }
  0x44   : > { %2206 = vmatpush3.bf16.msra.mxu0 %v2457_v4  ;;  %v2517_v4 = vld [vmem:[%s3096_s1 + $0x320] sm:$0xff]  }
  0x45   : > { %2228 = vmatpush3.bf16.msra.mxu1 %v2458_v5  ;;  %2235 = vmatprep.subr.bf16.mxu0 %v2463_v12  ;;  %v2518_v5 = vld [vmem:[%s3096_s1 + $0x3a0] sm:$0xff]   ;;  %v2525_v12 = vld [vmem:[%s3096_s1 + $0x330] sm:$0xff]  }
  0x46   : > { %2257 = vmatprep.subr.bf16.mxu1 %v2464_v13  ;;  %v2526_v13 = vld [vmem:[%s3096_s1 + $0x3b0] sm:$0xff]  }
  0x47   : > { %1486 = vmatmul.mubr.bf16.vlgmr.msra.gmra.mrb[4].mxu0 %v1986_v7  ;;  %v2520_v7 = vld [vmem:[%s3096_s1 + $0x3e8] sm:$0xff]  }
  0x48   : > { %1526 = vmatmul.mubr.bf16.vlgmr.msra.gmra.mrb[4].mxu1 %v1988_v10  ;;  %2236 = vmatpush3.bf16.msra.mxu0 %v2465_v14  ;;  %v2523_v10 = vld [vmem:[%s3096_s1 + $0x370] sm:$0xff]   ;;  %v2527_v14 = vld [vmem:[%s3096_s1 + $0x378] sm:$0xff]  }
  0x49   : > { %2258 = vmatpush3.bf16.msra.mxu1 %v2466_v15  ;;  %2237 = vmatprep.subr.bf16.mxu0 %v2467_v16  ;;  %v2528_v15 = vld [vmem:[%s3096_s1 + $0x3f8] sm:$0xff]  }
  0x4a   : > { %2259 = vmatprep.subr.bf16.mxu1 %v2468_v17  ;;  %1565 = vmatprep.mubr.bf16.mxu0 %v1991_v47  ;;  %v2529_v16 = vld [vmem:[%s3096_s1 + $0x338] sm:$0xff]  }
  0x4b   : > { %1605 = vmatprep.mubr.bf16.mxu1 %v1993_v49  ;;  %v2530_v17 = vld [vmem:[%s3096_s1 + $0x3b8] sm:$0xff]  }
  0x4c   : > { %2238 = vmatpush3.bf16.msra.mxu0 %v2469_v18  ;;  %v284_v18 = vld [vmem:[%s2709_s26 + $0x30] sm:$0xff] }
  0x4d   : > { %2260 = vmatpush3.bf16.msra.mxu1 %v2470_v19  ;;  %2239 = vmatprep.subr.bf16.mxu0 %v2471_v20  ;;  %v285_v19 = vld [vmem:[%s2709_s26 + $0x38] sm:$0xff]  ;;  %v1994_v20 = vcombine.low %v284_v18, %v284_v18 }
  0x4e   : > { %2261 = vmatprep.subr.bf16.mxu1 %v2472_v21  ;;  %v1995_v21 = vcombine.high %v284_v18, %v284_v18 }
  0x50   : > { %2240 = vmatpush3.bf16.msra.mxu0 %v2473_v22  ;;  %v1996_v22 = vcombine.low %v285_v19, %v285_v19 }
  0x51   : > { %2262 = vmatpush3.bf16.msra.mxu1 %v2474_v23  ;;  %2241 = vmatprep.subr.bf16.mxu0 %v2475_v24  ;;  %v1997_v23 = vcombine.high %v285_v19, %v285_v19  ;;  %v2535_v24 = vld [vmem:[%s3098_s3] sm:$0xff]  }
  0x52   : > { %2263 = vmatprep.subr.bf16.mxu1 %v2476_v25  ;;  %v2559_v25 = vmov 0.0  }
  0x54   : > { %2242 = vmatpush3.bf16.msra.mxu0 %v2477_v26  ;;  %v2536_v26 = vld [vmem:[%s3098_s3 + $0x8] sm:$0xff]  }
  0x55   : > { %2264 = vmatpush3.bf16.msra.mxu1 %v2478_v27  ;;  %2243 = vmatprep.subr.bf16.mxu0 %v2479_v28  ;;  %v2537_v27 = vld [vmem:[%s3098_s3 + $0x10] sm:$0xff]   ;;  %v2538_v28 = vld [vmem:[%s3098_s3 + $0x18] sm:$0xff]  }
  0x56   : > { %2265 = vmatprep.subr.bf16.mxu1 %v2480_v29  ;;  %v2539_v29 = vld [vmem:[%s3098_s3 + $0x20] sm:$0xff]  }
  0x58   : > { %2244 = vmatpush3.bf16.msra.mxu0 %v2481_v30  ;;  %v2540_v30 = vld [vmem:[%s3098_s3 + $0x28] sm:$0xff]  }
  0x59   : > { %2266 = vmatpush3.bf16.msra.mxu1 %v2482_v31  ;;  %2245 = vmatprep.subr.bf16.mxu0 %v2483_v32  ;;  %v2541_v31 = vld [vmem:[%s3098_s3 + $0x30] sm:$0xff]   ;;  %v2542_v32 = vld [vmem:[%s3098_s3 + $0x38] sm:$0xff]  }
  0x5a   : > { %2267 = vmatprep.subr.bf16.mxu1 %v2484_v33  ;;  %v2543_v33 = vld [vmem:[%s3100_s5] sm:$0xff]  }
  0x5c   : > { %2246 = vmatpush3.bf16.msra.mxu0 %v2485_v34  ;;  %v2544_v34 = vld [vmem:[%s3100_s5 + $0x8] sm:$0xff]  }
  0x5d   : > { %2268 = vmatpush3.bf16.msra.mxu1 %v2486_v35  ;;  %2247 = vmatprep.subr.bf16.mxu0 %v2487_v36  ;;  %v2545_v35 = vld [vmem:[%s3100_s5 + $0x10] sm:$0xff]   ;;  %v2546_v36 = vld [vmem:[%s3100_s5 + $0x18] sm:$0xff]  }
  0x5e   : > { %2269 = vmatprep.subr.bf16.mxu1 %v2488_v37  ;;  %v2547_v37 = vld [vmem:[%s3100_s5 + $0x20] sm:$0xff]  }
  0x60   : > { %2248 = vmatpush3.bf16.msra.mxu0 %v2489_v38 }
  0x61   : > { %2270 = vmatpush3.bf16.msra.mxu1 %v2490_v39  ;;  %2249 = vmatprep.subr.bf16.mxu0 %v2491_v40  ;;  %v2548_v40 = vld [vmem:[%s3100_s5 + $0x28] sm:$0xff]  }
  0x62   : > { %2271 = vmatprep.subr.bf16.mxu1 %v2492_v41  ;;  %v1981_v41 = vld [vmem:[%s3097_s2] ss:$0 sm:$0xff] }
  0x64   : > { %2250 = vmatpush3.bf16.msra.mxu0 %v2493_v42 }
  0x65   : > { %2272 = vmatpush3.bf16.msra.mxu1 %v2494_v43  ;;  %2279 = vmatprep.subr.bf16.mxu0 %v2499_v50 }
  0x66   : > { %2301 = vmatprep.subr.bf16.mxu1 %v2500_v51 }
  0x67   : > { %1566 = vmatmul.mubr.bf16.vlgmr.msra.gmra.mrb[8].mxu0 %v1990_v46 }
  0x68   : > { %1606 = vmatmul.mubr.bf16.vlgmr.msra.gmra.mrb[8].mxu1 %v1992_v48  ;;  %2280 = vmatpush3.bf16.msra.mxu0 %v2501_v52 }
  0x69   : > { %2302 = vmatpush3.bf16.msra.mxu1 %v2502_v53  ;;  %2281 = vmatprep.subr.bf16.mxu0 %v2503_v54 }
  0x6a   : > { %2303 = vmatprep.subr.bf16.mxu1 %v2504_v55  ;;  %1645 = vmatprep.mubr.bf16.mxu0 %v1995_v21 }
  0x6b   : > { %1685 = vmatprep.mubr.bf16.mxu1 %v1997_v23 }
  0x6c   : > { %2282 = vmatpush3.bf16.msra.mxu0 %v2505_v56 }
  0x6d   : > { %2304 = vmatpush3.bf16.msra.mxu1 %v2506_v57  ;;  %2283 = vmatprep.subr.bf16.mxu0 %v2507_v58 }
  0x6e   : > { %2305 = vmatprep.subr.bf16.mxu1 %v2508_v59 }
  0x70   : > { %2284 = vmatpush3.bf16.msra.mxu0 %v2509_v60 }
  0x71   : > { %2306 = vmatpush3.bf16.msra.mxu1 %v2510_v61  ;;  %2285 = vmatprep.subr.bf16.mxu0 %v2511_v62 }
  0x72   : > { %2307 = vmatprep.subr.bf16.mxu1 %v2512_v63 }
  0x74   : > { %2286 = vmatpush3.bf16.msra.mxu0 %v2513_v0 }
  0x75   : > { %2308 = vmatpush3.bf16.msra.mxu1 %v2514_v1  ;;  %2287 = vmatprep.subr.bf16.mxu0 %v2515_v2 }
  0x76   : > { %2309 = vmatprep.subr.bf16.mxu1 %v2516_v3 }
  0x78   : > { %2288 = vmatpush3.bf16.msra.mxu0 %v2517_v4 }
  0x79   : > { %2310 = vmatpush3.bf16.msra.mxu1 %v2518_v5  ;;  %2289 = vmatprep.subr.bf16.mxu0 %v2519_v6 }
  0x7a   : > { %2311 = vmatprep.subr.bf16.mxu1 %v2520_v7 }
  0x7c   : > { %2290 = vmatpush3.bf16.msra.mxu0 %v2521_v8 }
  0x7d   : > { %2312 = vmatpush3.bf16.msra.mxu1 %v2522_v9  ;;  %2291 = vmatprep.subr.bf16.mxu0 %v2523_v10 }
  0x7e   : > { %2313 = vmatprep.subr.bf16.mxu1 %v2524_v11 }
  0x80   : > { %2292 = vmatpush3.bf16.msra.mxu0 %v2525_v12 }
  0x81   : > { %2314 = vmatpush3.bf16.msra.mxu1 %v2526_v13  ;;  %2293 = vmatprep.subr.bf16.mxu0 %v2527_v14 }
  0x82   : > { %2315 = vmatprep.subr.bf16.mxu1 %v2528_v15 }
  0x84   : > { %2294 = vmatpush3.bf16.msra.mxu0 %v2529_v16 }
  0x85   : > { %2316 = vmatpush3.bf16.msra.mxu1 %v2530_v17  ;;  %2341 = vmatprep.subr.bf16.mxu0 %v2559_v25 }
  0x86   : > { %2361 = vmatprep.subr.bf16.mxu1 %v2559_v25 }
  0x87   : > { %1646 = vmatmul.mubr.bf16.vlgmr.msra.gmra.mrb[12].mxu0 %v1994_v20 }
  0x88   : > { %1686 = vmatmul.mubr.bf16.vlgmr.msra.gmra.mrb[12].mxu1 %v1996_v22  ;;  %2342 = vmatpush3.bf16.msra.mxu0 %v2535_v24 }
  0x89   : > { %2343 = vmatprep.subr.bf16.mxu0 %v2559_v25  ;;  %2357 = vmatprep.mubr.msk.bf16.mxu0 %vm2560_vm0, %v2559_v25 }
  0x8a   : > { %2377 = vmatprep.mubr.msk.bf16.mxu1 %vm2560_vm0, %v2559_v25  ;;  %2362 = vmatpush3.bf16.msra.mxu1 %v2543_v33 }
  0x8b   : > { %2363 = vmatprep.subr.bf16.mxu1 %v2559_v25 }
  0x8c   : > { %2344 = vmatpush3.bf16.msra.mxu0 %v2536_v26 }
  0x8d   : > { %2345 = vmatprep.subr.bf16.mxu0 %v2559_v25 }
  0x8e   : > { %2364 = vmatpush3.bf16.msra.mxu1 %v2544_v34 }
  0x8f   : > { %2365 = vmatprep.subr.bf16.mxu1 %v2559_v25 }
  0x90   : > { %2346 = vmatpush3.bf16.msra.mxu0 %v2537_v27  ;;  %v2549_v27 = vld [vmem:[%s3100_s5 + $0x30] sm:$0xff]  }
  0x91   : > { %2347 = vmatprep.subr.bf16.mxu0 %v2559_v25 }
  0x92   : > { %2366 = vmatpush3.bf16.msra.mxu1 %v2545_v35 }
  0x93   : > { %2367 = vmatprep.subr.bf16.mxu1 %v2559_v25 }
  0x94   : > { %2348 = vmatpush3.bf16.msra.mxu0 %v2538_v28  ;;  %v2550_v28 = vld [vmem:[%s3100_s5 + $0x38] sm:$0xff]  }
  0x95   : > { %2349 = vmatprep.subr.bf16.mxu0 %v2559_v25 }
  0x96   : > { %2368 = vmatpush3.bf16.msra.mxu1 %v2546_v36 }
  0x97   : > { %2369 = vmatprep.subr.bf16.mxu1 %v2559_v25 }
  0x98   : > { %2350 = vmatpush3.bf16.msra.mxu0 %v2539_v29  ;;  %v2126_v29 = vld [vmem:[%s3099_s4] ss:$0 sm:$0xff] }
  0x99   : > { %2351 = vmatprep.subr.bf16.mxu0 %v2559_v25 }
  0x9a   : > { %2370 = vmatpush3.bf16.msra.mxu1 %v2547_v37 }
  0x9b   : > { %2371 = vmatprep.subr.bf16.mxu1 %v2559_v25 }
  0x9c   : > { %2352 = vmatpush3.bf16.msra.mxu0 %v2540_v30 }
  0x9d   : > { %2353 = vmatprep.subr.bf16.mxu0 %v2559_v25 }
  0x9e   : > { %2372 = vmatpush3.bf16.msra.mxu1 %v2548_v40 }
  0x9f   : > { %2373 = vmatprep.subr.bf16.mxu1 %v2559_v25 }
  0xa0   : > { %2354 = vmatpush3.bf16.msra.mxu0 %v2541_v31 }
  0xa1   : > { %2355 = vmatprep.subr.bf16.mxu0 %v2559_v25 }
  0xa2   : > { %2374 = vmatpush3.bf16.msra.mxu1 %v2549_v27 }
  0xa3   : > { %2375 = vmatprep.subr.bf16.mxu1 %v2559_v25  ;;  %v2135_v25 = vld [vmem:[%s3101_s6] ss:$0 sm:$0xff] }
  0xa4   : > { %2356 = vmatpush3.bf16.msra.mxu0 %v2542_v32 }
  0xa6   : > { %2376 = vmatpush3.bf16.msra.mxu1 %v2550_v28 }
  0xfa   : > { %v2163_v38 = vpop.f32.mrb[0].mxu0 }
  0xfb   : > { %v2185_v39 = vpop.f32.mrb[0].mxu1  ;;  %v2164_v42 = vpop.f32.mrb[1].mxu0 }
  0xfc   : > { %v2186_v43 = vpop.f32.mrb[1].mxu1  ;;  %v2165_v44 = vadd.f32 %v2164_v42, %v2163_v38  ;;  %v2166_v46 = vpop.f32.mrb[2].mxu0 }
  0xfd   : > { %v2187_v45 = vadd.f32 %v2186_v43, %v2185_v39  ;;  %v2188_v47 = vpop.f32.mrb[2].mxu1  ;;  %v2167_v48 = vpop.f32.mrb[3].mxu0 }
  0xfe   : > { %v2189_v49 = vpop.f32.mrb[3].mxu1  ;;  %v1408_v50 = vadd.f32 %v2165_v44, %v1981_v41 }
 0x100   : > { %v1448_v51 = vadd.f32 %v2187_v45, %v1408_v50 }
 0x11a   : > { %v2207_v52 = vpop.f32.mrb[4].mxu0 }
 0x11b   : > { %v2229_v53 = vpop.f32.mrb[4].mxu1  ;;  %v2208_v54 = vpop.f32.mrb[5].mxu0 }
 0x11c   : > { %v2230_v55 = vpop.f32.mrb[5].mxu1  ;;  %v2209_v56 = vadd.f32 %v2208_v54, %v2207_v52  ;;  %v2210_v58 = vpop.f32.mrb[6].mxu0 }
 0x11d   : > { %v2231_v57 = vadd.f32 %v2230_v55, %v2229_v53  ;;  %v2232_v59 = vpop.f32.mrb[6].mxu1  ;;  %v2211_v60 = vpop.f32.mrb[7].mxu0 }
 0x11e   : > { %v2233_v61 = vpop.f32.mrb[7].mxu1  ;;  %v1488_v62 = vadd.f32 %v2209_v56, %v1448_v51 }
 0x120   : > { %v1528_v63 = vadd.f32 %v2231_v57, %v1488_v62 }
 0x13a   : > { %v2251_v0 = vpop.f32.mrb[8].mxu0 }
 0x13b   : > { %v2273_v1 = vpop.f32.mrb[8].mxu1  ;;  %v2252_v2 = vpop.f32.mrb[9].mxu0 }
 0x13c   : > { %v2253_v3 = vadd.f32 %v2252_v2, %v2251_v0  ;;  %v2274_v4 = vpop.f32.mrb[9].mxu1  ;;  %v2254_v5 = vpop.f32.mrb[10].mxu0 }
 0x13d   : > { %v2275_v6 = vadd.f32 %v2274_v4, %v2273_v1  ;;  %v2276_v7 = vpop.f32.mrb[10].mxu1  ;;  %v2255_v8 = vpop.f32.mrb[11].mxu0 }
 0x13e   : > { %v1568_v9 = vadd.f32 %v2253_v3, %v1528_v63  ;;  %v2277_v10 = vpop.f32.mrb[11].mxu1 }
 0x140   : > { %v1608_v11 = vadd.f32 %v2275_v6, %v1568_v9 }
 0x15a   : > { %v2295_v12 = vpop.f32.mrb[12].mxu0 }
 0x15b   : > { %v2317_v13 = vpop.f32.mrb[12].mxu1  ;;  %v2296_v14 = vpop.f32.mrb[13].mxu0 }
 0x15c   : > { %v2297_v15 = vadd.f32 %v2296_v14, %v2295_v12  ;;  %v2318_v16 = vpop.f32.mrb[13].mxu1  ;;  %v2298_v17 = vpop.f32.mrb[14].mxu0 }
 0x15d   : > { %v2319_v18 = vadd.f32 %v2318_v16, %v2317_v13  ;;  %v2320_v19 = vpop.f32.mrb[14].mxu1  ;;  %v2299_v20 = vpop.f32.mrb[15].mxu0 }
 0x15e   : > { %v1648_v21 = vadd.f32 %v2297_v15, %v1608_v11  ;;  %v2321_v22 = vpop.f32.mrb[15].mxu1 }
 0x160   : > { %v1688_v23 = vadd.f32 %v2319_v18, %v1648_v21 }
 0x162   : > { %v1693_v24 = vmax.f32 %v1688_v23, 0.0 }
 0x164   : > { %v1694_v26 = vpack.c.bf16 %v1693_v24, %v1693_v24 }
 0x166   : > { %2358 = vmatmul.mubr.bf16.vlgmr.msra.gmra.mrb[16].mxu0 %v1694_v26 }
 0x239   : > { %v1800_v30 = vpop.f32.mrb[16].mxu0 }
 0x23a   : > { %v1801_v31 = vadd.f32 %v2126_v29, %v1800_v30  ;;  %v2359_v32 = vpop.f32.mrb[17].mxu0 }
 0x23b   : > { %v1803_v33 = vpop.f32.mrb[18].mxu0 }
 0x23c   : > { %v1806_v34 = vmax.f32 %v1801_v31, 0.0  ;;  %v2360_v35 = vpop.f32.mrb[19].mxu0 }
 0x23e   : > { %v1807_v36 = vpack.c.bf16 %v1806_v34, %v1806_v34 }
 0x240   : > { %2378 = vmatmul.mubr.bf16.vlgmr.msra.gmra.mrb[16].mxu1 %v1807_v36 }
 0x313   : > { %v1913_v37 = vpop.f32.mrb[16].mxu1 }
 0x314   : > { %v1914_v38 = vadd.f32 %v2135_v25, %v1913_v37  ;;  %v2379_v39 = vpop.f32.mrb[17].mxu1 }
 0x315   : > { %v1916_v40 = vpop.f32.mrb[18].mxu1 }
 0x316   : > { %1919 = vst [vmem:[%s276_s19] sm:$0xff] %v1914_v38  ;;  %v2380_v41 = vpop.f32.mrb[19].mxu1 }
 0x317 PF: > { %s17_s24 = sadd.s32 1, %s2557_s24  }
 0x318   : > { %p14_p4 = scmp.ge.s32.totalorder %s17_s24, 4  }
 0x31a   :  { %16 = sbr.rel (!%p14_p4) target bundleno = 1 (0x1), region = 78 }

</bundles_post_ra>
